<compile_context>
chip_gen: v5e
topology: v5e:2x2
jax: 0.10.0
libtpu: 0.0.40
codegen_flags: <defaults>
</compile_context>

<pallas_src>
import functools
import math

import jax
import jax.numpy as jnp
from jax.experimental import pallas as pl
from jax.experimental.pallas import tpu as pltpu


# Stage geometries: (H, W, padded per-sample lane length).
_G32 = (32, 32, 1024)
_G16 = (16, 16, 256)
_G8 = (8, 8, 128)

# 3x3 tap order (row-major); packed weights and resident masks use this order.
_TAPS = [(dh, dw) for dh in (-1, 0, 1) for dw in (-1, 0, 1)]


# ---------------------------------------------------------------------------
# Fused whole-network kernel (one grid step = B samples batched along lanes)
# ---------------------------------------------------------------------------

def _net_kernel(x_ref, m32_ref, m16_ref, m8_ref,
                w1_ref, g1_ref, b1_ref,
                w2_ref, g2_ref, b2_ref,
                w3_ref, s1_ref,
                w4_ref, g4_ref, b4_ref,
                w6_ref, s2_ref,
                w7_ref, g7_ref, b7_ref,
                w8_ref, g8_ref, b8_ref,
                w9_ref, g9_ref, b9_ref,
                w10_ref,
                o_ref, *, nb, eps):
    f32 = jnp.float32
    bf16 = jnp.bfloat16

    # Resident border masks, one (1, nb*L) row per non-center tap.
    m32 = m32_ref[...]
    m16 = m16_ref[...]
    m8 = m8_ref[...]
    masks = {
        32: [m32[k:k + 1, :] for k in range(8)],
        16: [m16[k:k + 1, :] for k in range(8)],
        8: [m8[k:k + 1, :] for k in range(8)],
    }

    def layer_norm(y, g, b, n_real, l_pad):
        """Per-sample LayerNorm over (C_real, H, W); y: (C_pad, nb*l_pad).

        Pad rows / pad lanes of y are exactly zero, so they do not perturb the
        one-pass statistics; gamma/beta pad entries are zero so the invariant
        is preserved on the output.
        """
        p1 = jnp.sum(y, axis=0, keepdims=True)           # (1, nb*L) sublane partials
        p2 = jnp.sum(y * y, axis=0, keepdims=True)
        p = jnp.concatenate([p1, p2], axis=0)            # (2, nb*L)
        inv_n = 1.0 / float(n_real)
        mean_parts, inv_parts = [], []
        for bi in range(nb):                              # aligned 128-multiple slices
            s = jnp.sum(p[:, bi * l_pad:(bi + 1) * l_pad], axis=1, keepdims=True)
            mu = s[0:1, :] * inv_n
            var = jnp.maximum(s[1:2, :] * inv_n - mu * mu, 0.0)
            r = jax.lax.rsqrt(var + eps)                  # EUP
            mean_parts.append(jnp.broadcast_to(mu, (1, l_pad)))
            inv_parts.append(jnp.broadcast_to(r, (1, l_pad)))
        mean_l = jnp.concatenate(mean_parts, axis=1) if nb > 1 else mean_parts[0]
        inv_l = jnp.concatenate(inv_parts, axis=1) if nb > 1 else inv_parts[0]
        return (y - mean_l) * inv_l * g + b

    def conv3_relu_ln(x, w_bf, g, b, c_real, geom):
        """3x3 conv (pad=1, no bias) + ReLU + per-sample LayerNorm.

        x: (Cin_pad, nb*L) channels-on-sublane, flattened spatial on lanes
        (samples concatenated along lanes).  w_bf: (Cout_pad, 9*Cin_pad) bf16
        im2col-packed weights.  g, b: (Cout_pad, nb*L) tiled LN params.
        """
        H, W, l_pad = geom
        mk = masks[H]
        taps, k = [], 0
        for dh, dw in _TAPS:
            d = dh * W + dw
            if d == 0:
                taps.append(x)                            # center tap: mask is identity
            else:
                # out[l] = x[l + d]; border mask gives zero-padding semantics and
                # also kills cross-sample / wrap-around reads.
                t = jnp.roll(x, -d, axis=1)
                taps.append(t * mk[k])
                k += 1
        # 8-row-aligned sublane stack (Cin is padded to a multiple of 8).
        pat = jnp.concatenate(taps, axis=0).astype(bf16)  # (9*Cin_pad, nb*L)
        y = jnp.dot(w_bf, pat, preferred_element_type=f32)  # single MXU matmul
        y = jnp.maximum(y, 0.0)                           # ReLU
        return layer_norm(y, g, b, c_real * H * W, l_pad)

    def trans_pool(x, w_bf, sel_bf, geom_in):
        """1x1 conv (no bias) + 2x2 stride-2 max-pool (lane compaction matmul)."""
        H, W, l_in = geom_in
        total = nb * l_in
        ct = w_bf.shape[0]
        t = jnp.dot(w_bf, x.astype(bf16), preferred_element_type=f32)  # (ct, nb*L)
        m = t
        for d in (1, W, W + 1):                           # max of the 2x2 window
            m = jnp.maximum(m, jnp.roll(t, -d, axis=1))
        # Stack the B per-sample slabs on the sublane (M) axis -> one compaction
        # matmul with a single RHS load and high MXU row utilization.
        if nb > 1:
            ms = jnp.concatenate(
                [m[:, bi * l_in:(bi + 1) * l_in] for bi in range(nb)], axis=0)
        else:
            ms = m
        pooled = jnp.dot(ms.astype(bf16), sel_bf,
                         preferred_element_type=f32)      # (nb*ct, l_out_pad)
        if nb > 1:
            pooled = jnp.concatenate(
                [pooled[bi * ct:(bi + 1) * ct, :] for bi in range(nb)], axis=1)
        return pooled                                      # (ct, nb*l_out_pad)

    h = x_ref[0]                                                          # (8, nb*1024)
    h = conv3_relu_ln(h, w1_ref[...], g1_ref[...], b1_ref[...], 10, _G32)  # (16, nb*1024)
    h = conv3_relu_ln(h, w2_ref[...], g2_ref[...], b2_ref[...], 8, _G32)   # (8,  nb*1024)
    h = trans_pool(h, w3_ref[...], s1_ref[...], _G32)                      # (16, nb*256)
    h = conv3_relu_ln(h, w4_ref[...], g4_ref[...], b4_ref[...], 8, _G16)   # (8,  nb*256)
    h = trans_pool(h, w6_ref[...], s2_ref[...], _G16)                      # (16, nb*128)
    h = conv3_relu_ln(h, w7_ref[...], g7_ref[...], b7_ref[...], 8, _G8)    # (8,  nb*128)
    h = conv3_relu_ln(h, w8_ref[...], g8_ref[...], b8_ref[...], 4, _G8)    # (8,  nb*128)
    h = conv3_relu_ln(h, w9_ref[...], g9_ref[...], b9_ref[...], 10, _G8)   # (16, nb*128)

    # Global average pool over the 64 real spatial positions per sample
    # (pad lanes are exactly zero).
    cols = [jnp.sum(h[:, bi * 128:(bi + 1) * 128], axis=1, keepdims=True) * (1.0 / 64.0)
            for bi in range(nb)]
    gap = jnp.concatenate(cols, axis=1) if nb > 1 else cols[0]             # (16, nb)
    o_ref[0] = jnp.dot(w10_ref[...], gap, preferred_element_type=f32)      # (10, nb) logits


# ---------------------------------------------------------------------------
# pallas_call wrapper
# ---------------------------------------------------------------------------

def _pick_batch_tile(n, max_b=8):
    """Largest divisor of n (<= max_b) that leaves >= 2 grid steps so the
    'parallel' axis can shard across TensorCores (v7x); fall back to the
    largest divisor otherwise (single-TC v5e/v6e: maximize B)."""
    divs = [b for b in range(1, min(n, max_b) + 1) if n % b == 0]
    pref = [b for b in divs if n // b >= 2]
    return max(pref) if pref else max(divs)


def _tap_masks(H, W, l_pad, nb):
    """(8, nb*l_pad) f32: row k = border mask of the k-th non-center 3x3 tap.
    Masks encode zero-padding AND zero out cross-sample / pad-lane reads."""
    pos = jnp.arange(nb * l_pad, dtype=jnp.int32) % l_pad
    row, col = pos // W, pos % W
    valid = pos < H * W
    rows = []
    for dh, dw in _TAPS:
        if dh == 0 and dw == 0:
            continue
        ok = (valid & (row + dh >= 0) & (row + dh < H)
              & (col + dw >= 0) & (col + dw < W))
        rows.append(ok)
    return jnp.stack(rows, axis=0).astype(jnp.float32)


def forward(x_nchw, params):
    """Forward pass of Net_layer_normalization (inference). x: (N,3,32,32) NCHW."""
    N, C, H, W = x_nchw.shape
    assert (C, H, W) == (3, 32, 32), "LayerNorm shapes fix the input to 3x32x32"
    B = _pick_batch_tile(N)
    G = N // B

    # NCHW -> (G, 8, B*1024): channels padded 3->8, B samples concatenated on lanes.
    x = x_nchw.reshape(N, 3, 1024).astype(jnp.float32)
    x = jnp.pad(x, ((0, 0), (0, 5), (0, 0)))
    x = x.reshape(G, B, 8, 1024).transpose(0, 2, 1, 3).reshape(G, 8, B * 1024)

    m32 = _tap_masks(32, 32, 1024, B)
    m16 = _tap_masks(16, 16, 256, B)
    m8 = _tap_masks(8, 8, 128, B)

    def tiled(a):                      # tile LN gamma/beta across the lane-batch
        return jnp.tile(a, (1, B))

    weights = [
        params["w1"], tiled(params["g1"]), tiled(params["b1"]),
        params["w2"], tiled(params["g2"]), tiled(params["b2"]),
        params["w3"], params["s1"],
        params["w4"], tiled(params["g4"]), tiled(params["b4"]),
        params["w6"], params["s2"],
        params["w7"], tiled(params["g7"]), tiled(params["b7"]),
        params["w8"], tiled(params["g8"]), tiled(params["b8"]),
        params["w9"], tiled(params["g9"]), tiled(params["b9"]),
        params["w10"],
    ]

    def resident(a):                   # VMEM-resident (constant index_map)
        zeros = (0,) * a.ndim
        return pl.BlockSpec(a.shape, lambda i, _z=zeros: _z)

    kernel = functools.partial(_net_kernel, nb=B, eps=1e-5)
    logits = pl.pallas_call(
        kernel,
        out_shape=jax.ShapeDtypeStruct((G, 10, B), jnp.float32),
        grid=(G,),
        in_specs=[pl.BlockSpec((1, 8, B * 1024), lambda i: (i, 0, 0))]
                + [resident(a) for a in (m32, m16, m8)]
                + [resident(a) for a in weights],
        out_specs=pl.BlockSpec((1, 10, B), lambda i: (i, 0, 0)),
        compiler_params=pltpu.CompilerParams(
            dimension_semantics=("parallel",)),   # batch tiles shard across TCs (v7x)
    )(x, m32, m16, m8, *weights)

    logits = jnp.transpose(logits, (0, 2, 1)).reshape(N, 10)
    return jax.nn.log_softmax(logits, axis=-1)


# ---------------------------------------------------------------------------
# Parameter init (deterministic; PyTorch-shaped, then packed/padded for the kernel)
# ---------------------------------------------------------------------------

def _conv3(key, cout, cin, cout_pad, cin_pad):
    """3x3 conv weight (PyTorch OIHW), im2col-packed to (cout_pad, 9*cin_pad)
    bf16; pad rows/cols are zero so padded channels stay exactly zero."""
    fan_in = cin * 9
    w = jax.random.normal(key, (cout, cin, 3, 3), jnp.float32) / math.sqrt(fan_in)
    w = jnp.transpose(w, (0, 2, 3, 1))                     # (cout, kh, kw, cin)
    w = jnp.pad(w, ((0, cout_pad - cout), (0, 0), (0, 0), (0, cin_pad - cin)))
    return w.reshape(cout_pad, 9 * cin_pad).astype(jnp.bfloat16)


def _conv1(key, cout, cin, cout_pad, cin_pad, dtype=jnp.bfloat16):
    w = jax.random.normal(key, (cout, cin), jnp.float32) / math.sqrt(cin)
    w = jnp.pad(w, ((0, cout_pad - cout), (0, cin_pad - cin)))
    return w.astype(dtype)


def _ln_p(key, c, h, w, c_pad, l_pad):
    """LayerNorm gamma/beta (C,H,W) flattened to (c_pad, l_pad); pad rows and
    pad lanes are exactly zero (keeps padded channels/lanes at zero)."""
    k1, k2 = jax.random.split(key)
    g = 1.0 + 0.1 * jax.random.normal(k1, (c, h * w), jnp.float32)
    b = 0.1 * jax.random.normal(k2, (c, h * w), jnp.float32)
    g = jnp.pad(g, ((0, c_pad - c), (0, l_pad - h * w)))
    b = jnp.pad(b, ((0, c_pad - c), (0, l_pad - h * w)))
    return g, b


def _pool_select(h, w, out_lanes):
    """0/1 (h*w, out_lanes) bf16: column q selects the top-left element of the
    q-th 2x2 window (lane compaction for the max-pool); extra columns are zero."""
    q = jnp.arange(out_lanes)
    src = 2 * (q // (w // 2)) * w + 2 * (q % (w // 2))
    valid = q < (h // 2) * (w // 2)
    sel = (jnp.arange(h * w)[:, None] == src[None, :]) & valid[None, :]
    return sel.astype(jnp.bfloat16)


def init_params(key):
    ks = jax.random.split(key, 16)
    p = {}
    p["w1"] = _conv3(ks[0], 10, 3, 16, 8)
    p["g1"], p["b1"] = _ln_p(ks[1], 10, 32, 32, 16, 1024)
    p["w2"] = _conv3(ks[2], 8, 10, 8, 16)
    p["g2"], p["b2"] = _ln_p(ks[3], 8, 32, 32, 8, 1024)
    p["w3"] = _conv1(ks[4], 16, 8, 16, 8)
    p["w4"] = _conv3(ks[5], 8, 16, 8, 16)
    p["g4"], p["b4"] = _ln_p(ks[6], 8, 16, 16, 8, 256)
    p["w6"] = _conv1(ks[7], 16, 8, 16, 8)
    p["w7"] = _conv3(ks[8], 8, 16, 8, 16)
    p["g7"], p["b7"] = _ln_p(ks[9], 8, 8, 8, 8, 128)
    p["w8"] = _conv3(ks[10], 4, 8, 8, 8)
    p["g8"], p["b8"] = _ln_p(ks[11], 4, 8, 8, 8, 128)
    p["w9"] = _conv3(ks[12], 10, 4, 16, 8)
    p["g9"], p["b9"] = _ln_p(ks[13], 10, 8, 8, 16, 128)
    p["w10"] = _conv1(ks[14], 10, 10, 10, 16, dtype=jnp.float32)
    p["s1"] = _pool_select(32, 32, 256)    # (1024, 256)
    p["s2"] = _pool_select(16, 16, 128)    # (256, 128), cols >= 64 zero
    return p


if __name__ == "__main__":
    key = jax.random.PRNGKey(0)
    kx, kp = jax.random.split(key)
    # Spatial size is fixed to 32x32 / 3 channels by the LayerNorm shapes.
    x = jax.random.normal(kx, (2, 3, 32, 32), jnp.float32)
    params = init_params(kp)

    out = jax.jit(forward)(x, params)
    out = jax.block_until_ready(out)

    assert out.shape == (2, 10), out.shape
    assert bool(jnp.all(jnp.isfinite(out)))
    # log_softmax rows must exponentiate-sum to ~1
    assert bool(jnp.all(jnp.abs(jnp.sum(jnp.exp(out), axis=1) - 1.0) < 1e-4))
    print("KERNEL_OK")
</pallas_src>

<mosaic_0001>
module attributes {stable_mosaic.version = 11 : i64} {
  func.func @_net_kernel(%arg0: i32, %arg1: memref<1x8x1024xf32, #tpu.memory_space<vmem>>, %arg2: memref<8x1024xf32, #tpu.memory_space<vmem>>, %arg3: memref<8x256xf32, #tpu.memory_space<vmem>>, %arg4: memref<8x128xf32, #tpu.memory_space<vmem>>, %arg5: memref<16x72xbf16, #tpu.memory_space<vmem>>, %arg6: memref<16x1024xf32, #tpu.memory_space<vmem>>, %arg7: memref<16x1024xf32, #tpu.memory_space<vmem>>, %arg8: memref<8x144xbf16, #tpu.memory_space<vmem>>, %arg9: memref<8x1024xf32, #tpu.memory_space<vmem>>, %arg10: memref<8x1024xf32, #tpu.memory_space<vmem>>, %arg11: memref<16x8xbf16, #tpu.memory_space<vmem>>, %arg12: memref<1024x256xbf16, #tpu.memory_space<vmem>>, %arg13: memref<8x144xbf16, #tpu.memory_space<vmem>>, %arg14: memref<8x256xf32, #tpu.memory_space<vmem>>, %arg15: memref<8x256xf32, #tpu.memory_space<vmem>>, %arg16: memref<16x8xbf16, #tpu.memory_space<vmem>>, %arg17: memref<256x128xbf16, #tpu.memory_space<vmem>>, %arg18: memref<8x144xbf16, #tpu.memory_space<vmem>>, %arg19: memref<8x128xf32, #tpu.memory_space<vmem>>, %arg20: memref<8x128xf32, #tpu.memory_space<vmem>>, %arg21: memref<8x72xbf16, #tpu.memory_space<vmem>>, %arg22: memref<8x128xf32, #tpu.memory_space<vmem>>, %arg23: memref<8x128xf32, #tpu.memory_space<vmem>>, %arg24: memref<16x72xbf16, #tpu.memory_space<vmem>>, %arg25: memref<16x128xf32, #tpu.memory_space<vmem>>, %arg26: memref<16x128xf32, #tpu.memory_space<vmem>>, %arg27: memref<10x16xf32, #tpu.memory_space<vmem>>, %arg28: memref<1x10x1xf32, #tpu.memory_space<vmem>>) attributes {dimension_semantics = [#tpu.dimension_semantics<parallel>], iteration_bounds = array<i64: 2>, scalar_prefetch = 0 : i64, scratch_operands = 0 : i64, tpu.core_type = #tpu.core_type<tc>, window_params = [{transform_indices = @transform_0, window_bounds = array<i64: 1, 8, 1024>}, {pipeline_mode = #tpu.pipeline_mode<synchronous>, transform_indices = @transform_1, window_bounds = array<i64: 8, 1024>}, {pipeline_mode = #tpu.pipeline_mode<synchronous>, transform_indices = @transform_2, window_bounds = array<i64: 8, 256>}, {pipeline_mode = #tpu.pipeline_mode<synchronous>, transform_indices = @transform_3, window_bounds = array<i64: 8, 128>}, {pipeline_mode = #tpu.pipeline_mode<synchronous>, transform_indices = @transform_4, window_bounds = array<i64: 16, 72>}, {pipeline_mode = #tpu.pipeline_mode<synchronous>, transform_indices = @transform_5, window_bounds = array<i64: 16, 1024>}, {pipeline_mode = #tpu.pipeline_mode<synchronous>, transform_indices = @transform_6, window_bounds = array<i64: 16, 1024>}, {pipeline_mode = #tpu.pipeline_mode<synchronous>, transform_indices = @transform_7, window_bounds = array<i64: 8, 144>}, {pipeline_mode = #tpu.pipeline_mode<synchronous>, transform_indices = @transform_8, window_bounds = array<i64: 8, 1024>}, {pipeline_mode = #tpu.pipeline_mode<synchronous>, transform_indices = @transform_9, window_bounds = array<i64: 8, 1024>}, {pipeline_mode = #tpu.pipeline_mode<synchronous>, transform_indices = @transform_10, window_bounds = array<i64: 16, 8>}, {pipeline_mode = #tpu.pipeline_mode<synchronous>, transform_indices = @transform_11, window_bounds = array<i64: 1024, 256>}, {pipeline_mode = #tpu.pipeline_mode<synchronous>, transform_indices = @transform_12, window_bounds = array<i64: 8, 144>}, {pipeline_mode = #tpu.pipeline_mode<synchronous>, transform_indices = @transform_13, window_bounds = array<i64: 8, 256>}, {pipeline_mode = #tpu.pipeline_mode<synchronous>, transform_indices = @transform_14, window_bounds = array<i64: 8, 256>}, {pipeline_mode = #tpu.pipeline_mode<synchronous>, transform_indices = @transform_15, window_bounds = array<i64: 16, 8>}, {pipeline_mode = #tpu.pipeline_mode<synchronous>, transform_indices = @transform_16, window_bounds = array<i64: 256, 128>}, {pipeline_mode = #tpu.pipeline_mode<synchronous>, transform_indices = @transform_17, window_bounds = array<i64: 8, 144>}, {pipeline_mode = #tpu.pipeline_mode<synchronous>, transform_indices = @transform_18, window_bounds = array<i64: 8, 128>}, {pipeline_mode = #tpu.pipeline_mode<synchronous>, transform_indices = @transform_19, window_bounds = array<i64: 8, 128>}, {pipeline_mode = #tpu.pipeline_mode<synchronous>, transform_indices = @transform_20, window_bounds = array<i64: 8, 72>}, {pipeline_mode = #tpu.pipeline_mode<synchronous>, transform_indices = @transform_21, window_bounds = array<i64: 8, 128>}, {pipeline_mode = #tpu.pipeline_mode<synchronous>, transform_indices = @transform_22, window_bounds = array<i64: 8, 128>}, {pipeline_mode = #tpu.pipeline_mode<synchronous>, transform_indices = @transform_23, window_bounds = array<i64: 16, 72>}, {pipeline_mode = #tpu.pipeline_mode<synchronous>, transform_indices = @transform_24, window_bounds = array<i64: 16, 128>}, {pipeline_mode = #tpu.pipeline_mode<synchronous>, transform_indices = @transform_25, window_bounds = array<i64: 16, 128>}, {pipeline_mode = #tpu.pipeline_mode<synchronous>, transform_indices = @transform_26, window_bounds = array<i64: 10, 16>}, {transform_indices = @transform_27, window_bounds = array<i64: 1, 10, 1>}]} {
    %c0 = arith.constant 0 : index
    %c0_0 = arith.constant 0 : index
    %0 = vector.load %arg2[%c0, %c0_0] : memref<8x1024xf32, #tpu.memory_space<vmem>>, vector<8x1024xf32>
    %c0_1 = arith.constant 0 : index
    %c0_2 = arith.constant 0 : index
    %1 = vector.load %arg3[%c0_1, %c0_2] : memref<8x256xf32, #tpu.memory_space<vmem>>, vector<8x256xf32>
    %c0_3 = arith.constant 0 : index
    %c0_4 = arith.constant 0 : index
    %2 = vector.load %arg4[%c0_3, %c0_4] : memref<8x128xf32, #tpu.memory_space<vmem>>, vector<8x128xf32>
    %3 = vector.extract_strided_slice %0 {offsets = [0, 0], sizes = [1, 1024], strides = [1, 1]} : vector<8x1024xf32> to vector<1x1024xf32>
    %4 = vector.extract_strided_slice %0 {offsets = [1, 0], sizes = [1, 1024], strides = [1, 1]} : vector<8x1024xf32> to vector<1x1024xf32>
    %5 = vector.extract_strided_slice %0 {offsets = [2, 0], sizes = [1, 1024], strides = [1, 1]} : vector<8x1024xf32> to vector<1x1024xf32>
    %6 = vector.extract_strided_slice %0 {offsets = [3, 0], sizes = [1, 1024], strides = [1, 1]} : vector<8x1024xf32> to vector<1x1024xf32>
    %7 = vector.extract_strided_slice %0 {offsets = [4, 0], sizes = [1, 1024], strides = [1, 1]} : vector<8x1024xf32> to vector<1x1024xf32>
    %8 = vector.extract_strided_slice %0 {offsets = [5, 0], sizes = [1, 1024], strides = [1, 1]} : vector<8x1024xf32> to vector<1x1024xf32>
    %9 = vector.extract_strided_slice %0 {offsets = [6, 0], sizes = [1, 1024], strides = [1, 1]} : vector<8x1024xf32> to vector<1x1024xf32>
    %10 = vector.extract_strided_slice %0 {offsets = [7, 0], sizes = [1, 1024], strides = [1, 1]} : vector<8x1024xf32> to vector<1x1024xf32>
    %11 = vector.extract_strided_slice %1 {offsets = [0, 0], sizes = [1, 256], strides = [1, 1]} : vector<8x256xf32> to vector<1x256xf32>
    %12 = vector.extract_strided_slice %1 {offsets = [1, 0], sizes = [1, 256], strides = [1, 1]} : vector<8x256xf32> to vector<1x256xf32>
    %13 = vector.extract_strided_slice %1 {offsets = [2, 0], sizes = [1, 256], strides = [1, 1]} : vector<8x256xf32> to vector<1x256xf32>
    %14 = vector.extract_strided_slice %1 {offsets = [3, 0], sizes = [1, 256], strides = [1, 1]} : vector<8x256xf32> to vector<1x256xf32>
    %15 = vector.extract_strided_slice %1 {offsets = [4, 0], sizes = [1, 256], strides = [1, 1]} : vector<8x256xf32> to vector<1x256xf32>
    %16 = vector.extract_strided_slice %1 {offsets = [5, 0], sizes = [1, 256], strides = [1, 1]} : vector<8x256xf32> to vector<1x256xf32>
    %17 = vector.extract_strided_slice %1 {offsets = [6, 0], sizes = [1, 256], strides = [1, 1]} : vector<8x256xf32> to vector<1x256xf32>
    %18 = vector.extract_strided_slice %1 {offsets = [7, 0], sizes = [1, 256], strides = [1, 1]} : vector<8x256xf32> to vector<1x256xf32>
    %19 = vector.extract_strided_slice %2 {offsets = [0, 0], sizes = [1, 128], strides = [1, 1]} : vector<8x128xf32> to vector<1x128xf32>
    %20 = vector.extract_strided_slice %2 {offsets = [1, 0], sizes = [1, 128], strides = [1, 1]} : vector<8x128xf32> to vector<1x128xf32>
    %21 = vector.extract_strided_slice %2 {offsets = [2, 0], sizes = [1, 128], strides = [1, 1]} : vector<8x128xf32> to vector<1x128xf32>
    %22 = vector.extract_strided_slice %2 {offsets = [3, 0], sizes = [1, 128], strides = [1, 1]} : vector<8x128xf32> to vector<1x128xf32>
    %23 = vector.extract_strided_slice %2 {offsets = [4, 0], sizes = [1, 128], strides = [1, 1]} : vector<8x128xf32> to vector<1x128xf32>
    %24 = vector.extract_strided_slice %2 {offsets = [5, 0], sizes = [1, 128], strides = [1, 1]} : vector<8x128xf32> to vector<1x128xf32>
    %25 = vector.extract_strided_slice %2 {offsets = [6, 0], sizes = [1, 128], strides = [1, 1]} : vector<8x128xf32> to vector<1x128xf32>
    %26 = vector.extract_strided_slice %2 {offsets = [7, 0], sizes = [1, 128], strides = [1, 1]} : vector<8x128xf32> to vector<1x128xf32>
    %c0_5 = arith.constant 0 : index
    %c0_6 = arith.constant 0 : index
    %c0_7 = arith.constant 0 : index
    %27 = vector.load %arg1[%c0_5, %c0_6, %c0_7] : memref<1x8x1024xf32, #tpu.memory_space<vmem>>, vector<1x8x1024xf32>
    %28 = vector.shape_cast %27 : vector<1x8x1024xf32> to vector<8x1024xf32>
    %c0_8 = arith.constant 0 : index
    %c0_9 = arith.constant 0 : index
    %29 = vector.load %arg5[%c0_8, %c0_9] : memref<16x72xbf16, #tpu.memory_space<vmem>>, vector<16x72xbf16>
    %c0_10 = arith.constant 0 : index
    %c0_11 = arith.constant 0 : index
    %30 = vector.load %arg6[%c0_10, %c0_11] : memref<16x1024xf32, #tpu.memory_space<vmem>>, vector<16x1024xf32>
    %c0_12 = arith.constant 0 : index
    %c0_13 = arith.constant 0 : index
    %31 = vector.load %arg7[%c0_12, %c0_13] : memref<16x1024xf32, #tpu.memory_space<vmem>>, vector<16x1024xf32>
    %32 = vector.extract_strided_slice %28 {offsets = [0, 991], sizes = [8, 33], strides = [1, 1]} : vector<8x1024xf32> to vector<8x33xf32>
    %33 = vector.extract_strided_slice %28 {offsets = [0, 0], sizes = [8, 991], strides = [1, 1]} : vector<8x1024xf32> to vector<8x991xf32>
    %34 = tpu.concatenate %32, %33 in 1 : vector<8x33xf32>, vector<8x991xf32> -> vector<8x1024xf32>
    %35 = vector.broadcast %3 : vector<1x1024xf32> to vector<8x1024xf32>
    %36 = arith.mulf %34, %35 : vector<8x1024xf32>
    %37 = vector.extract_strided_slice %28 {offsets = [0, 992], sizes = [8, 32], strides = [1, 1]} : vector<8x1024xf32> to vector<8x32xf32>
    %38 = vector.extract_strided_slice %28 {offsets = [0, 0], sizes = [8, 992], strides = [1, 1]} : vector<8x1024xf32> to vector<8x992xf32>
    %39 = tpu.concatenate %37, %38 in 1 : vector<8x32xf32>, vector<8x992xf32> -> vector<8x1024xf32>
    %40 = vector.broadcast %4 : vector<1x1024xf32> to vector<8x1024xf32>
    %41 = arith.mulf %39, %40 : vector<8x1024xf32>
    %42 = vector.extract_strided_slice %28 {offsets = [0, 993], sizes = [8, 31], strides = [1, 1]} : vector<8x1024xf32> to vector<8x31xf32>
    %43 = vector.extract_strided_slice %28 {offsets = [0, 0], sizes = [8, 993], strides = [1, 1]} : vector<8x1024xf32> to vector<8x993xf32>
    %44 = tpu.concatenate %42, %43 in 1 : vector<8x31xf32>, vector<8x993xf32> -> vector<8x1024xf32>
    %45 = vector.broadcast %5 : vector<1x1024xf32> to vector<8x1024xf32>
    %46 = arith.mulf %44, %45 : vector<8x1024xf32>
    %47 = vector.extract_strided_slice %28 {offsets = [0, 1023], sizes = [8, 1], strides = [1, 1]} : vector<8x1024xf32> to vector<8x1xf32>
    %48 = vector.extract_strided_slice %28 {offsets = [0, 0], sizes = [8, 1023], strides = [1, 1]} : vector<8x1024xf32> to vector<8x1023xf32>
    %49 = tpu.concatenate %47, %48 in 1 : vector<8x1xf32>, vector<8x1023xf32> -> vector<8x1024xf32>
    %50 = vector.broadcast %6 : vector<1x1024xf32> to vector<8x1024xf32>
    %51 = arith.mulf %49, %50 : vector<8x1024xf32>
    %52 = vector.extract_strided_slice %28 {offsets = [0, 1], sizes = [8, 1023], strides = [1, 1]} : vector<8x1024xf32> to vector<8x1023xf32>
    %53 = vector.extract_strided_slice %28 {offsets = [0, 0], sizes = [8, 1], strides = [1, 1]} : vector<8x1024xf32> to vector<8x1xf32>
    %54 = tpu.concatenate %52, %53 in 1 : vector<8x1023xf32>, vector<8x1xf32> -> vector<8x1024xf32>
    %55 = vector.broadcast %7 : vector<1x1024xf32> to vector<8x1024xf32>
    %56 = arith.mulf %54, %55 : vector<8x1024xf32>
    %57 = vector.extract_strided_slice %28 {offsets = [0, 31], sizes = [8, 993], strides = [1, 1]} : vector<8x1024xf32> to vector<8x993xf32>
    %58 = vector.extract_strided_slice %28 {offsets = [0, 0], sizes = [8, 31], strides = [1, 1]} : vector<8x1024xf32> to vector<8x31xf32>
    %59 = tpu.concatenate %57, %58 in 1 : vector<8x993xf32>, vector<8x31xf32> -> vector<8x1024xf32>
    %60 = vector.broadcast %8 : vector<1x1024xf32> to vector<8x1024xf32>
    %61 = arith.mulf %59, %60 : vector<8x1024xf32>
    %62 = vector.extract_strided_slice %28 {offsets = [0, 32], sizes = [8, 992], strides = [1, 1]} : vector<8x1024xf32> to vector<8x992xf32>
    %63 = vector.extract_strided_slice %28 {offsets = [0, 0], sizes = [8, 32], strides = [1, 1]} : vector<8x1024xf32> to vector<8x32xf32>
    %64 = tpu.concatenate %62, %63 in 1 : vector<8x992xf32>, vector<8x32xf32> -> vector<8x1024xf32>
    %65 = vector.broadcast %9 : vector<1x1024xf32> to vector<8x1024xf32>
    %66 = arith.mulf %64, %65 : vector<8x1024xf32>
    %67 = vector.extract_strided_slice %28 {offsets = [0, 33], sizes = [8, 991], strides = [1, 1]} : vector<8x1024xf32> to vector<8x991xf32>
    %68 = vector.extract_strided_slice %28 {offsets = [0, 0], sizes = [8, 33], strides = [1, 1]} : vector<8x1024xf32> to vector<8x33xf32>
    %69 = tpu.concatenate %67, %68 in 1 : vector<8x991xf32>, vector<8x33xf32> -> vector<8x1024xf32>
    %70 = vector.broadcast %10 : vector<1x1024xf32> to vector<8x1024xf32>
    %71 = arith.mulf %69, %70 : vector<8x1024xf32>
    %72 = tpu.concatenate %36, %41, %46, %51, %28, %56, %61, %66, %71 in 0 : vector<8x1024xf32>, vector<8x1024xf32>, vector<8x1024xf32>, vector<8x1024xf32>, vector<8x1024xf32>, vector<8x1024xf32>, vector<8x1024xf32>, vector<8x1024xf32>, vector<8x1024xf32> -> vector<72x1024xf32>
    %73 = arith.truncf %72 : vector<72x1024xf32> to vector<72x1024xbf16>
    %cst = arith.constant dense<0.000000e+00> : vector<16x1024xf32>
    %74 = tpu.matmul %29, %73, %cst {dimension_numbers = #tpu.dot_dimension_numbers<[1], [0], [0], [1], [0, 0, 1, 1], [], []>} : vector<16x72xbf16>, vector<72x1024xbf16>, vector<16x1024xf32> -> vector<16x1024xf32>
    %cst_14 = arith.constant 0.000000e+00 : f32
    %75 = vector.broadcast %cst_14 : f32 to vector<16x1024xf32>
    %76 = arith.maximumf %74, %75 : vector<16x1024xf32>
    %cst_15 = arith.constant dense<0.000000e+00> : vector<1024xf32>
    %77 = vector.multi_reduction <add>, %76, %cst_15 [0] : vector<16x1024xf32> to vector<1024xf32>
    %78 = vector.shape_cast %77 : vector<1024xf32> to vector<1x1024xf32>
    %79 = arith.mulf %76, %76 : vector<16x1024xf32>
    %cst_16 = arith.constant dense<0.000000e+00> : vector<1024xf32>
    %80 = vector.multi_reduction <add>, %79, %cst_16 [0] : vector<16x1024xf32> to vector<1024xf32>
    %81 = vector.shape_cast %80 : vector<1024xf32> to vector<1x1024xf32>
    %82 = tpu.concatenate %78, %81 in 0 : vector<1x1024xf32>, vector<1x1024xf32> -> vector<2x1024xf32>
    %cst_17 = arith.constant dense<0.000000e+00> : vector<2xf32>
    %83 = vector.multi_reduction <add>, %82, %cst_17 [1] : vector<2x1024xf32> to vector<2xf32>
    %84 = vector.shape_cast %83 : vector<2xf32> to vector<2x1xf32>
    %85 = vector.extract_strided_slice %84 {offsets = [0, 0], sizes = [1, 1], strides = [1, 1]} : vector<2x1xf32> to vector<1x1xf32>
    %cst_18 = arith.constant 9.76562514E-5 : f32
    %86 = vector.broadcast %cst_18 : f32 to vector<1x1xf32>
    %87 = arith.mulf %85, %86 : vector<1x1xf32>
    %88 = vector.extract_strided_slice %84 {offsets = [1, 0], sizes = [1, 1], strides = [1, 1]} : vector<2x1xf32> to vector<1x1xf32>
    %cst_19 = arith.constant 9.76562514E-5 : f32
    %89 = vector.broadcast %cst_19 : f32 to vector<1x1xf32>
    %90 = arith.mulf %88, %89 : vector<1x1xf32>
    %91 = arith.mulf %87, %87 : vector<1x1xf32>
    %92 = arith.subf %90, %91 : vector<1x1xf32>
    %cst_20 = arith.constant 0.000000e+00 : f32
    %93 = vector.broadcast %cst_20 : f32 to vector<1x1xf32>
    %94 = arith.maximumf %92, %93 : vector<1x1xf32>
    %cst_21 = arith.constant 9.99999974E-6 : f32
    %95 = vector.broadcast %cst_21 : f32 to vector<1x1xf32>
    %96 = arith.addf %94, %95 : vector<1x1xf32>
    %97 = math.rsqrt %96 : vector<1x1xf32>
    %98 = vector.shape_cast %87 : vector<1x1xf32> to vector<1x1xf32>
    %99 = vector.broadcast %98 : vector<1x1xf32> to vector<1x1024xf32>
    %100 = vector.shape_cast %97 : vector<1x1xf32> to vector<1x1xf32>
    %101 = vector.broadcast %100 : vector<1x1xf32> to vector<1x1024xf32>
    %102 = vector.broadcast %99 : vector<1x1024xf32> to vector<16x1024xf32>
    %103 = arith.subf %76, %102 : vector<16x1024xf32>
    %104 = vector.broadcast %101 : vector<1x1024xf32> to vector<16x1024xf32>
    %105 = arith.mulf %103, %104 : vector<16x1024xf32>
    %106 = arith.mulf %105, %30 : vector<16x1024xf32>
    %107 = arith.addf %106, %31 : vector<16x1024xf32>
    %c0_22 = arith.constant 0 : index
    %c0_23 = arith.constant 0 : index
    %108 = vector.load %arg8[%c0_22, %c0_23] : memref<8x144xbf16, #tpu.memory_space<vmem>>, vector<8x144xbf16>
    %c0_24 = arith.constant 0 : index
    %c0_25 = arith.constant 0 : index
    %109 = vector.load %arg9[%c0_24, %c0_25] : memref<8x1024xf32, #tpu.memory_space<vmem>>, vector<8x1024xf32>
    %c0_26 = arith.constant 0 : index
    %c0_27 = arith.constant 0 : index
    %110 = vector.load %arg10[%c0_26, %c0_27] : memref<8x1024xf32, #tpu.memory_space<vmem>>, vector<8x1024xf32>
    %111 = vector.extract_strided_slice %107 {offsets = [0, 991], sizes = [16, 33], strides = [1, 1]} : vector<16x1024xf32> to vector<16x33xf32>
    %112 = vector.extract_strided_slice %107 {offsets = [0, 0], sizes = [16, 991], strides = [1, 1]} : vector<16x1024xf32> to vector<16x991xf32>
    %113 = tpu.concatenate %111, %112 in 1 : vector<16x33xf32>, vector<16x991xf32> -> vector<16x1024xf32>
    %114 = vector.broadcast %3 : vector<1x1024xf32> to vector<16x1024xf32>
    %115 = arith.mulf %113, %114 : vector<16x1024xf32>
    %116 = vector.extract_strided_slice %107 {offsets = [0, 992], sizes = [16, 32], strides = [1, 1]} : vector<16x1024xf32> to vector<16x32xf32>
    %117 = vector.extract_strided_slice %107 {offsets = [0, 0], sizes = [16, 992], strides = [1, 1]} : vector<16x1024xf32> to vector<16x992xf32>
    %118 = tpu.concatenate %116, %117 in 1 : vector<16x32xf32>, vector<16x992xf32> -> vector<16x1024xf32>
    %119 = vector.broadcast %4 : vector<1x1024xf32> to vector<16x1024xf32>
    %120 = arith.mulf %118, %119 : vector<16x1024xf32>
    %121 = vector.extract_strided_slice %107 {offsets = [0, 993], sizes = [16, 31], strides = [1, 1]} : vector<16x1024xf32> to vector<16x31xf32>
    %122 = vector.extract_strided_slice %107 {offsets = [0, 0], sizes = [16, 993], strides = [1, 1]} : vector<16x1024xf32> to vector<16x993xf32>
    %123 = tpu.concatenate %121, %122 in 1 : vector<16x31xf32>, vector<16x993xf32> -> vector<16x1024xf32>
    %124 = vector.broadcast %5 : vector<1x1024xf32> to vector<16x1024xf32>
    %125 = arith.mulf %123, %124 : vector<16x1024xf32>
    %126 = vector.extract_strided_slice %107 {offsets = [0, 1023], sizes = [16, 1], strides = [1, 1]} : vector<16x1024xf32> to vector<16x1xf32>
    %127 = vector.extract_strided_slice %107 {offsets = [0, 0], sizes = [16, 1023], strides = [1, 1]} : vector<16x1024xf32> to vector<16x1023xf32>
    %128 = tpu.concatenate %126, %127 in 1 : vector<16x1xf32>, vector<16x1023xf32> -> vector<16x1024xf32>
    %129 = vector.broadcast %6 : vector<1x1024xf32> to vector<16x1024xf32>
    %130 = arith.mulf %128, %129 : vector<16x1024xf32>
    %131 = vector.extract_strided_slice %107 {offsets = [0, 1], sizes = [16, 1023], strides = [1, 1]} : vector<16x1024xf32> to vector<16x1023xf32>
    %132 = vector.extract_strided_slice %107 {offsets = [0, 0], sizes = [16, 1], strides = [1, 1]} : vector<16x1024xf32> to vector<16x1xf32>
    %133 = tpu.concatenate %131, %132 in 1 : vector<16x1023xf32>, vector<16x1xf32> -> vector<16x1024xf32>
    %134 = vector.broadcast %7 : vector<1x1024xf32> to vector<16x1024xf32>
    %135 = arith.mulf %133, %134 : vector<16x1024xf32>
    %136 = vector.extract_strided_slice %107 {offsets = [0, 31], sizes = [16, 993], strides = [1, 1]} : vector<16x1024xf32> to vector<16x993xf32>
    %137 = vector.extract_strided_slice %107 {offsets = [0, 0], sizes = [16, 31], strides = [1, 1]} : vector<16x1024xf32> to vector<16x31xf32>
    %138 = tpu.concatenate %136, %137 in 1 : vector<16x993xf32>, vector<16x31xf32> -> vector<16x1024xf32>
    %139 = vector.broadcast %8 : vector<1x1024xf32> to vector<16x1024xf32>
    %140 = arith.mulf %138, %139 : vector<16x1024xf32>
    %141 = vector.extract_strided_slice %107 {offsets = [0, 32], sizes = [16, 992], strides = [1, 1]} : vector<16x1024xf32> to vector<16x992xf32>
    %142 = vector.extract_strided_slice %107 {offsets = [0, 0], sizes = [16, 32], strides = [1, 1]} : vector<16x1024xf32> to vector<16x32xf32>
    %143 = tpu.concatenate %141, %142 in 1 : vector<16x992xf32>, vector<16x32xf32> -> vector<16x1024xf32>
    %144 = vector.broadcast %9 : vector<1x1024xf32> to vector<16x1024xf32>
    %145 = arith.mulf %143, %144 : vector<16x1024xf32>
    %146 = vector.extract_strided_slice %107 {offsets = [0, 33], sizes = [16, 991], strides = [1, 1]} : vector<16x1024xf32> to vector<16x991xf32>
    %147 = vector.extract_strided_slice %107 {offsets = [0, 0], sizes = [16, 33], strides = [1, 1]} : vector<16x1024xf32> to vector<16x33xf32>
    %148 = tpu.concatenate %146, %147 in 1 : vector<16x991xf32>, vector<16x33xf32> -> vector<16x1024xf32>
    %149 = vector.broadcast %10 : vector<1x1024xf32> to vector<16x1024xf32>
    %150 = arith.mulf %148, %149 : vector<16x1024xf32>
    %151 = tpu.concatenate %115, %120, %125, %130, %107, %135, %140, %145, %150 in 0 : vector<16x1024xf32>, vector<16x1024xf32>, vector<16x1024xf32>, vector<16x1024xf32>, vector<16x1024xf32>, vector<16x1024xf32>, vector<16x1024xf32>, vector<16x1024xf32>, vector<16x1024xf32> -> vector<144x1024xf32>
    %152 = arith.truncf %151 : vector<144x1024xf32> to vector<144x1024xbf16>
    %cst_28 = arith.constant dense<0.000000e+00> : vector<8x1024xf32>
    %153 = tpu.matmul %108, %152, %cst_28 {dimension_numbers = #tpu.dot_dimension_numbers<[1], [0], [0], [1], [0, 0, 1, 1], [], []>} : vector<8x144xbf16>, vector<144x1024xbf16>, vector<8x1024xf32> -> vector<8x1024xf32>
    %cst_29 = arith.constant 0.000000e+00 : f32
    %154 = vector.broadcast %cst_29 : f32 to vector<8x1024xf32>
    %155 = arith.maximumf %153, %154 : vector<8x1024xf32>
    %cst_30 = arith.constant dense<0.000000e+00> : vector<1024xf32>
    %156 = vector.multi_reduction <add>, %155, %cst_30 [0] : vector<8x1024xf32> to vector<1024xf32>
    %157 = vector.shape_cast %156 : vector<1024xf32> to vector<1x1024xf32>
    %158 = arith.mulf %155, %155 : vector<8x1024xf32>
    %cst_31 = arith.constant dense<0.000000e+00> : vector<1024xf32>
    %159 = vector.multi_reduction <add>, %158, %cst_31 [0] : vector<8x1024xf32> to vector<1024xf32>
    %160 = vector.shape_cast %159 : vector<1024xf32> to vector<1x1024xf32>
    %161 = tpu.concatenate %157, %160 in 0 : vector<1x1024xf32>, vector<1x1024xf32> -> vector<2x1024xf32>
    %cst_32 = arith.constant dense<0.000000e+00> : vector<2xf32>
    %162 = vector.multi_reduction <add>, %161, %cst_32 [1] : vector<2x1024xf32> to vector<2xf32>
    %163 = vector.shape_cast %162 : vector<2xf32> to vector<2x1xf32>
    %164 = vector.extract_strided_slice %163 {offsets = [0, 0], sizes = [1, 1], strides = [1, 1]} : vector<2x1xf32> to vector<1x1xf32>
    %cst_33 = arith.constant 1.22070313E-4 : f32
    %165 = vector.broadcast %cst_33 : f32 to vector<1x1xf32>
    %166 = arith.mulf %164, %165 : vector<1x1xf32>
    %167 = vector.extract_strided_slice %163 {offsets = [1, 0], sizes = [1, 1], strides = [1, 1]} : vector<2x1xf32> to vector<1x1xf32>
    %cst_34 = arith.constant 1.22070313E-4 : f32
    %168 = vector.broadcast %cst_34 : f32 to vector<1x1xf32>
    %169 = arith.mulf %167, %168 : vector<1x1xf32>
    %170 = arith.mulf %166, %166 : vector<1x1xf32>
    %171 = arith.subf %169, %170 : vector<1x1xf32>
    %cst_35 = arith.constant 0.000000e+00 : f32
    %172 = vector.broadcast %cst_35 : f32 to vector<1x1xf32>
    %173 = arith.maximumf %171, %172 : vector<1x1xf32>
    %cst_36 = arith.constant 9.99999974E-6 : f32
    %174 = vector.broadcast %cst_36 : f32 to vector<1x1xf32>
    %175 = arith.addf %173, %174 : vector<1x1xf32>
    %176 = math.rsqrt %175 : vector<1x1xf32>
    %177 = vector.shape_cast %166 : vector<1x1xf32> to vector<1x1xf32>
    %178 = vector.broadcast %177 : vector<1x1xf32> to vector<1x1024xf32>
    %179 = vector.shape_cast %176 : vector<1x1xf32> to vector<1x1xf32>
    %180 = vector.broadcast %179 : vector<1x1xf32> to vector<1x1024xf32>
    %181 = vector.broadcast %178 : vector<1x1024xf32> to vector<8x1024xf32>
    %182 = arith.subf %155, %181 : vector<8x1024xf32>
    %183 = vector.broadcast %180 : vector<1x1024xf32> to vector<8x1024xf32>
    %184 = arith.mulf %182, %183 : vector<8x1024xf32>
    %185 = arith.mulf %184, %109 : vector<8x1024xf32>
    %186 = arith.addf %185, %110 : vector<8x1024xf32>
    %c0_37 = arith.constant 0 : index
    %c0_38 = arith.constant 0 : index
    %187 = vector.load %arg11[%c0_37, %c0_38] : memref<16x8xbf16, #tpu.memory_space<vmem>>, vector<16x8xbf16>
    %c0_39 = arith.constant 0 : index
    %c0_40 = arith.constant 0 : index
    %188 = vector.load %arg12[%c0_39, %c0_40] : memref<1024x256xbf16, #tpu.memory_space<vmem>>, vector<1024x256xbf16>
    %189 = arith.truncf %186 : vector<8x1024xf32> to vector<8x1024xbf16>
    %cst_41 = arith.constant dense<0.000000e+00> : vector<16x1024xf32>
    %190 = tpu.matmul %187, %189, %cst_41 {dimension_numbers = #tpu.dot_dimension_numbers<[1], [0], [0], [1], [0, 0, 1, 1], [], []>} : vector<16x8xbf16>, vector<8x1024xbf16>, vector<16x1024xf32> -> vector<16x1024xf32>
    %191 = vector.extract_strided_slice %190 {offsets = [0, 1], sizes = [16, 1023], strides = [1, 1]} : vector<16x1024xf32> to vector<16x1023xf32>
    %192 = vector.extract_strided_slice %190 {offsets = [0, 0], sizes = [16, 1], strides = [1, 1]} : vector<16x1024xf32> to vector<16x1xf32>
    %193 = tpu.concatenate %191, %192 in 1 : vector<16x1023xf32>, vector<16x1xf32> -> vector<16x1024xf32>
    %194 = arith.maximumf %190, %193 : vector<16x1024xf32>
    %195 = vector.extract_strided_slice %190 {offsets = [0, 32], sizes = [16, 992], strides = [1, 1]} : vector<16x1024xf32> to vector<16x992xf32>
    %196 = vector.extract_strided_slice %190 {offsets = [0, 0], sizes = [16, 32], strides = [1, 1]} : vector<16x1024xf32> to vector<16x32xf32>
    %197 = tpu.concatenate %195, %196 in 1 : vector<16x992xf32>, vector<16x32xf32> -> vector<16x1024xf32>
    %198 = arith.maximumf %194, %197 : vector<16x1024xf32>
    %199 = vector.extract_strided_slice %190 {offsets = [0, 33], sizes = [16, 991], strides = [1, 1]} : vector<16x1024xf32> to vector<16x991xf32>
    %200 = vector.extract_strided_slice %190 {offsets = [0, 0], sizes = [16, 33], strides = [1, 1]} : vector<16x1024xf32> to vector<16x33xf32>
    %201 = tpu.concatenate %199, %200 in 1 : vector<16x991xf32>, vector<16x33xf32> -> vector<16x1024xf32>
    %202 = arith.maximumf %198, %201 : vector<16x1024xf32>
    %203 = arith.truncf %202 : vector<16x1024xf32> to vector<16x1024xbf16>
    %cst_42 = arith.constant dense<0.000000e+00> : vector<16x256xf32>
    %204 = tpu.matmul %203, %188, %cst_42 {dimension_numbers = #tpu.dot_dimension_numbers<[1], [0], [0], [1], [0, 0, 1, 1], [], []>} : vector<16x1024xbf16>, vector<1024x256xbf16>, vector<16x256xf32> -> vector<16x256xf32>
    %c0_43 = arith.constant 0 : index
    %c0_44 = arith.constant 0 : index
    %205 = vector.load %arg13[%c0_43, %c0_44] : memref<8x144xbf16, #tpu.memory_space<vmem>>, vector<8x144xbf16>
    %c0_45 = arith.constant 0 : index
    %c0_46 = arith.constant 0 : index
    %206 = vector.load %arg14[%c0_45, %c0_46] : memref<8x256xf32, #tpu.memory_space<vmem>>, vector<8x256xf32>
    %c0_47 = arith.constant 0 : index
    %c0_48 = arith.constant 0 : index
    %207 = vector.load %arg15[%c0_47, %c0_48] : memref<8x256xf32, #tpu.memory_space<vmem>>, vector<8x256xf32>
    %208 = vector.extract_strided_slice %204 {offsets = [0, 239], sizes = [16, 17], strides = [1, 1]} : vector<16x256xf32> to vector<16x17xf32>
    %209 = vector.extract_strided_slice %204 {offsets = [0, 0], sizes = [16, 239], strides = [1, 1]} : vector<16x256xf32> to vector<16x239xf32>
    %210 = tpu.concatenate %208, %209 in 1 : vector<16x17xf32>, vector<16x239xf32> -> vector<16x256xf32>
    %211 = vector.broadcast %11 : vector<1x256xf32> to vector<16x256xf32>
    %212 = arith.mulf %210, %211 : vector<16x256xf32>
    %213 = vector.extract_strided_slice %204 {offsets = [0, 240], sizes = [16, 16], strides = [1, 1]} : vector<16x256xf32> to vector<16x16xf32>
    %214 = vector.extract_strided_slice %204 {offsets = [0, 0], sizes = [16, 240], strides = [1, 1]} : vector<16x256xf32> to vector<16x240xf32>
    %215 = tpu.concatenate %213, %214 in 1 : vector<16x16xf32>, vector<16x240xf32> -> vector<16x256xf32>
    %216 = vector.broadcast %12 : vector<1x256xf32> to vector<16x256xf32>
    %217 = arith.mulf %215, %216 : vector<16x256xf32>
    %218 = vector.extract_strided_slice %204 {offsets = [0, 241], sizes = [16, 15], strides = [1, 1]} : vector<16x256xf32> to vector<16x15xf32>
    %219 = vector.extract_strided_slice %204 {offsets = [0, 0], sizes = [16, 241], strides = [1, 1]} : vector<16x256xf32> to vector<16x241xf32>
    %220 = tpu.concatenate %218, %219 in 1 : vector<16x15xf32>, vector<16x241xf32> -> vector<16x256xf32>
    %221 = vector.broadcast %13 : vector<1x256xf32> to vector<16x256xf32>
    %222 = arith.mulf %220, %221 : vector<16x256xf32>
    %223 = vector.extract_strided_slice %204 {offsets = [0, 255], sizes = [16, 1], strides = [1, 1]} : vector<16x256xf32> to vector<16x1xf32>
    %224 = vector.extract_strided_slice %204 {offsets = [0, 0], sizes = [16, 255], strides = [1, 1]} : vector<16x256xf32> to vector<16x255xf32>
    %225 = tpu.concatenate %223, %224 in 1 : vector<16x1xf32>, vector<16x255xf32> -> vector<16x256xf32>
    %226 = vector.broadcast %14 : vector<1x256xf32> to vector<16x256xf32>
    %227 = arith.mulf %225, %226 : vector<16x256xf32>
    %228 = vector.extract_strided_slice %204 {offsets = [0, 1], sizes = [16, 255], strides = [1, 1]} : vector<16x256xf32> to vector<16x255xf32>
    %229 = vector.extract_strided_slice %204 {offsets = [0, 0], sizes = [16, 1], strides = [1, 1]} : vector<16x256xf32> to vector<16x1xf32>
    %230 = tpu.concatenate %228, %229 in 1 : vector<16x255xf32>, vector<16x1xf32> -> vector<16x256xf32>
    %231 = vector.broadcast %15 : vector<1x256xf32> to vector<16x256xf32>
    %232 = arith.mulf %230, %231 : vector<16x256xf32>
    %233 = vector.extract_strided_slice %204 {offsets = [0, 15], sizes = [16, 241], strides = [1, 1]} : vector<16x256xf32> to vector<16x241xf32>
    %234 = vector.extract_strided_slice %204 {offsets = [0, 0], sizes = [16, 15], strides = [1, 1]} : vector<16x256xf32> to vector<16x15xf32>
    %235 = tpu.concatenate %233, %234 in 1 : vector<16x241xf32>, vector<16x15xf32> -> vector<16x256xf32>
    %236 = vector.broadcast %16 : vector<1x256xf32> to vector<16x256xf32>
    %237 = arith.mulf %235, %236 : vector<16x256xf32>
    %238 = vector.extract_strided_slice %204 {offsets = [0, 16], sizes = [16, 240], strides = [1, 1]} : vector<16x256xf32> to vector<16x240xf32>
    %239 = vector.extract_strided_slice %204 {offsets = [0, 0], sizes = [16, 16], strides = [1, 1]} : vector<16x256xf32> to vector<16x16xf32>
    %240 = tpu.concatenate %238, %239 in 1 : vector<16x240xf32>, vector<16x16xf32> -> vector<16x256xf32>
    %241 = vector.broadcast %17 : vector<1x256xf32> to vector<16x256xf32>
    %242 = arith.mulf %240, %241 : vector<16x256xf32>
    %243 = vector.extract_strided_slice %204 {offsets = [0, 17], sizes = [16, 239], strides = [1, 1]} : vector<16x256xf32> to vector<16x239xf32>
    %244 = vector.extract_strided_slice %204 {offsets = [0, 0], sizes = [16, 17], strides = [1, 1]} : vector<16x256xf32> to vector<16x17xf32>
    %245 = tpu.concatenate %243, %244 in 1 : vector<16x239xf32>, vector<16x17xf32> -> vector<16x256xf32>
    %246 = vector.broadcast %18 : vector<1x256xf32> to vector<16x256xf32>
    %247 = arith.mulf %245, %246 : vector<16x256xf32>
    %248 = tpu.concatenate %212, %217, %222, %227, %204, %232, %237, %242, %247 in 0 : vector<16x256xf32>, vector<16x256xf32>, vector<16x256xf32>, vector<16x256xf32>, vector<16x256xf32>, vector<16x256xf32>, vector<16x256xf32>, vector<16x256xf32>, vector<16x256xf32> -> vector<144x256xf32>
    %249 = arith.truncf %248 : vector<144x256xf32> to vector<144x256xbf16>
    %cst_49 = arith.constant dense<0.000000e+00> : vector<8x256xf32>
    %250 = tpu.matmul %205, %249, %cst_49 {dimension_numbers = #tpu.dot_dimension_numbers<[1], [0], [0], [1], [0, 0, 1, 1], [], []>} : vector<8x144xbf16>, vector<144x256xbf16>, vector<8x256xf32> -> vector<8x256xf32>
    %cst_50 = arith.constant 0.000000e+00 : f32
    %251 = vector.broadcast %cst_50 : f32 to vector<8x256xf32>
    %252 = arith.maximumf %250, %251 : vector<8x256xf32>
    %cst_51 = arith.constant dense<0.000000e+00> : vector<256xf32>
    %253 = vector.multi_reduction <add>, %252, %cst_51 [0] : vector<8x256xf32> to vector<256xf32>
    %254 = vector.shape_cast %253 : vector<256xf32> to vector<1x256xf32>
    %255 = arith.mulf %252, %252 : vector<8x256xf32>
    %cst_52 = arith.constant dense<0.000000e+00> : vector<256xf32>
    %256 = vector.multi_reduction <add>, %255, %cst_52 [0] : vector<8x256xf32> to vector<256xf32>
    %257 = vector.shape_cast %256 : vector<256xf32> to vector<1x256xf32>
    %258 = tpu.concatenate %254, %257 in 0 : vector<1x256xf32>, vector<1x256xf32> -> vector<2x256xf32>
    %cst_53 = arith.constant dense<0.000000e+00> : vector<2xf32>
    %259 = vector.multi_reduction <add>, %258, %cst_53 [1] : vector<2x256xf32> to vector<2xf32>
    %260 = vector.shape_cast %259 : vector<2xf32> to vector<2x1xf32>
    %261 = vector.extract_strided_slice %260 {offsets = [0, 0], sizes = [1, 1], strides = [1, 1]} : vector<2x1xf32> to vector<1x1xf32>
    %cst_54 = arith.constant 4.8828125E-4 : f32
    %262 = vector.broadcast %cst_54 : f32 to vector<1x1xf32>
    %263 = arith.mulf %261, %262 : vector<1x1xf32>
    %264 = vector.extract_strided_slice %260 {offsets = [1, 0], sizes = [1, 1], strides = [1, 1]} : vector<2x1xf32> to vector<1x1xf32>
    %cst_55 = arith.constant 4.8828125E-4 : f32
    %265 = vector.broadcast %cst_55 : f32 to vector<1x1xf32>
    %266 = arith.mulf %264, %265 : vector<1x1xf32>
    %267 = arith.mulf %263, %263 : vector<1x1xf32>
    %268 = arith.subf %266, %267 : vector<1x1xf32>
    %cst_56 = arith.constant 0.000000e+00 : f32
    %269 = vector.broadcast %cst_56 : f32 to vector<1x1xf32>
    %270 = arith.maximumf %268, %269 : vector<1x1xf32>
    %cst_57 = arith.constant 9.99999974E-6 : f32
    %271 = vector.broadcast %cst_57 : f32 to vector<1x1xf32>
    %272 = arith.addf %270, %271 : vector<1x1xf32>
    %273 = math.rsqrt %272 : vector<1x1xf32>
    %274 = vector.shape_cast %263 : vector<1x1xf32> to vector<1x1xf32>
    %275 = vector.broadcast %274 : vector<1x1xf32> to vector<1x256xf32>
    %276 = vector.shape_cast %273 : vector<1x1xf32> to vector<1x1xf32>
    %277 = vector.broadcast %276 : vector<1x1xf32> to vector<1x256xf32>
    %278 = vector.broadcast %275 : vector<1x256xf32> to vector<8x256xf32>
    %279 = arith.subf %252, %278 : vector<8x256xf32>
    %280 = vector.broadcast %277 : vector<1x256xf32> to vector<8x256xf32>
    %281 = arith.mulf %279, %280 : vector<8x256xf32>
    %282 = arith.mulf %281, %206 : vector<8x256xf32>
    %283 = arith.addf %282, %207 : vector<8x256xf32>
    %c0_58 = arith.constant 0 : index
    %c0_59 = arith.constant 0 : index
    %284 = vector.load %arg16[%c0_58, %c0_59] : memref<16x8xbf16, #tpu.memory_space<vmem>>, vector<16x8xbf16>
    %c0_60 = arith.constant 0 : index
    %c0_61 = arith.constant 0 : index
    %285 = vector.load %arg17[%c0_60, %c0_61] : memref<256x128xbf16, #tpu.memory_space<vmem>>, vector<256x128xbf16>
    %286 = arith.truncf %283 : vector<8x256xf32> to vector<8x256xbf16>
    %cst_62 = arith.constant dense<0.000000e+00> : vector<16x256xf32>
    %287 = tpu.matmul %284, %286, %cst_62 {dimension_numbers = #tpu.dot_dimension_numbers<[1], [0], [0], [1], [0, 0, 1, 1], [], []>} : vector<16x8xbf16>, vector<8x256xbf16>, vector<16x256xf32> -> vector<16x256xf32>
    %288 = vector.extract_strided_slice %287 {offsets = [0, 1], sizes = [16, 255], strides = [1, 1]} : vector<16x256xf32> to vector<16x255xf32>
    %289 = vector.extract_strided_slice %287 {offsets = [0, 0], sizes = [16, 1], strides = [1, 1]} : vector<16x256xf32> to vector<16x1xf32>
    %290 = tpu.concatenate %288, %289 in 1 : vector<16x255xf32>, vector<16x1xf32> -> vector<16x256xf32>
    %291 = arith.maximumf %287, %290 : vector<16x256xf32>
    %292 = vector.extract_strided_slice %287 {offsets = [0, 16], sizes = [16, 240], strides = [1, 1]} : vector<16x256xf32> to vector<16x240xf32>
    %293 = vector.extract_strided_slice %287 {offsets = [0, 0], sizes = [16, 16], strides = [1, 1]} : vector<16x256xf32> to vector<16x16xf32>
    %294 = tpu.concatenate %292, %293 in 1 : vector<16x240xf32>, vector<16x16xf32> -> vector<16x256xf32>
    %295 = arith.maximumf %291, %294 : vector<16x256xf32>
    %296 = vector.extract_strided_slice %287 {offsets = [0, 17], sizes = [16, 239], strides = [1, 1]} : vector<16x256xf32> to vector<16x239xf32>
    %297 = vector.extract_strided_slice %287 {offsets = [0, 0], sizes = [16, 17], strides = [1, 1]} : vector<16x256xf32> to vector<16x17xf32>
    %298 = tpu.concatenate %296, %297 in 1 : vector<16x239xf32>, vector<16x17xf32> -> vector<16x256xf32>
    %299 = arith.maximumf %295, %298 : vector<16x256xf32>
    %300 = arith.truncf %299 : vector<16x256xf32> to vector<16x256xbf16>
    %cst_63 = arith.constant dense<0.000000e+00> : vector<16x128xf32>
    %301 = tpu.matmul %300, %285, %cst_63 {dimension_numbers = #tpu.dot_dimension_numbers<[1], [0], [0], [1], [0, 0, 1, 1], [], []>} : vector<16x256xbf16>, vector<256x128xbf16>, vector<16x128xf32> -> vector<16x128xf32>
    %c0_64 = arith.constant 0 : index
    %c0_65 = arith.constant 0 : index
    %302 = vector.load %arg18[%c0_64, %c0_65] : memref<8x144xbf16, #tpu.memory_space<vmem>>, vector<8x144xbf16>
    %c0_66 = arith.constant 0 : index
    %c0_67 = arith.constant 0 : index
    %303 = vector.load %arg19[%c0_66, %c0_67] : memref<8x128xf32, #tpu.memory_space<vmem>>, vector<8x128xf32>
    %c0_68 = arith.constant 0 : index
    %c0_69 = arith.constant 0 : index
    %304 = vector.load %arg20[%c0_68, %c0_69] : memref<8x128xf32, #tpu.memory_space<vmem>>, vector<8x128xf32>
    %305 = vector.extract_strided_slice %301 {offsets = [0, 119], sizes = [16, 9], strides = [1, 1]} : vector<16x128xf32> to vector<16x9xf32>
    %306 = vector.extract_strided_slice %301 {offsets = [0, 0], sizes = [16, 119], strides = [1, 1]} : vector<16x128xf32> to vector<16x119xf32>
    %307 = tpu.concatenate %305, %306 in 1 : vector<16x9xf32>, vector<16x119xf32> -> vector<16x128xf32>
    %308 = vector.broadcast %19 : vector<1x128xf32> to vector<16x128xf32>
    %309 = arith.mulf %307, %308 : vector<16x128xf32>
    %310 = vector.extract_strided_slice %301 {offsets = [0, 120], sizes = [16, 8], strides = [1, 1]} : vector<16x128xf32> to vector<16x8xf32>
    %311 = vector.extract_strided_slice %301 {offsets = [0, 0], sizes = [16, 120], strides = [1, 1]} : vector<16x128xf32> to vector<16x120xf32>
    %312 = tpu.concatenate %310, %311 in 1 : vector<16x8xf32>, vector<16x120xf32> -> vector<16x128xf32>
    %313 = vector.broadcast %20 : vector<1x128xf32> to vector<16x128xf32>
    %314 = arith.mulf %312, %313 : vector<16x128xf32>
    %315 = vector.extract_strided_slice %301 {offsets = [0, 121], sizes = [16, 7], strides = [1, 1]} : vector<16x128xf32> to vector<16x7xf32>
    %316 = vector.extract_strided_slice %301 {offsets = [0, 0], sizes = [16, 121], strides = [1, 1]} : vector<16x128xf32> to vector<16x121xf32>
    %317 = tpu.concatenate %315, %316 in 1 : vector<16x7xf32>, vector<16x121xf32> -> vector<16x128xf32>
    %318 = vector.broadcast %21 : vector<1x128xf32> to vector<16x128xf32>
    %319 = arith.mulf %317, %318 : vector<16x128xf32>
    %320 = vector.extract_strided_slice %301 {offsets = [0, 127], sizes = [16, 1], strides = [1, 1]} : vector<16x128xf32> to vector<16x1xf32>
    %321 = vector.extract_strided_slice %301 {offsets = [0, 0], sizes = [16, 127], strides = [1, 1]} : vector<16x128xf32> to vector<16x127xf32>
    %322 = tpu.concatenate %320, %321 in 1 : vector<16x1xf32>, vector<16x127xf32> -> vector<16x128xf32>
    %323 = vector.broadcast %22 : vector<1x128xf32> to vector<16x128xf32>
    %324 = arith.mulf %322, %323 : vector<16x128xf32>
    %325 = vector.extract_strided_slice %301 {offsets = [0, 1], sizes = [16, 127], strides = [1, 1]} : vector<16x128xf32> to vector<16x127xf32>
    %326 = vector.extract_strided_slice %301 {offsets = [0, 0], sizes = [16, 1], strides = [1, 1]} : vector<16x128xf32> to vector<16x1xf32>
    %327 = tpu.concatenate %325, %326 in 1 : vector<16x127xf32>, vector<16x1xf32> -> vector<16x128xf32>
    %328 = vector.broadcast %23 : vector<1x128xf32> to vector<16x128xf32>
    %329 = arith.mulf %327, %328 : vector<16x128xf32>
    %330 = vector.extract_strided_slice %301 {offsets = [0, 7], sizes = [16, 121], strides = [1, 1]} : vector<16x128xf32> to vector<16x121xf32>
    %331 = vector.extract_strided_slice %301 {offsets = [0, 0], sizes = [16, 7], strides = [1, 1]} : vector<16x128xf32> to vector<16x7xf32>
    %332 = tpu.concatenate %330, %331 in 1 : vector<16x121xf32>, vector<16x7xf32> -> vector<16x128xf32>
    %333 = vector.broadcast %24 : vector<1x128xf32> to vector<16x128xf32>
    %334 = arith.mulf %332, %333 : vector<16x128xf32>
    %335 = vector.extract_strided_slice %301 {offsets = [0, 8], sizes = [16, 120], strides = [1, 1]} : vector<16x128xf32> to vector<16x120xf32>
    %336 = vector.extract_strided_slice %301 {offsets = [0, 0], sizes = [16, 8], strides = [1, 1]} : vector<16x128xf32> to vector<16x8xf32>
    %337 = tpu.concatenate %335, %336 in 1 : vector<16x120xf32>, vector<16x8xf32> -> vector<16x128xf32>
    %338 = vector.broadcast %25 : vector<1x128xf32> to vector<16x128xf32>
    %339 = arith.mulf %337, %338 : vector<16x128xf32>
    %340 = vector.extract_strided_slice %301 {offsets = [0, 9], sizes = [16, 119], strides = [1, 1]} : vector<16x128xf32> to vector<16x119xf32>
    %341 = vector.extract_strided_slice %301 {offsets = [0, 0], sizes = [16, 9], strides = [1, 1]} : vector<16x128xf32> to vector<16x9xf32>
    %342 = tpu.concatenate %340, %341 in 1 : vector<16x119xf32>, vector<16x9xf32> -> vector<16x128xf32>
    %343 = vector.broadcast %26 : vector<1x128xf32> to vector<16x128xf32>
    %344 = arith.mulf %342, %343 : vector<16x128xf32>
    %345 = tpu.concatenate %309, %314, %319, %324, %301, %329, %334, %339, %344 in 0 : vector<16x128xf32>, vector<16x128xf32>, vector<16x128xf32>, vector<16x128xf32>, vector<16x128xf32>, vector<16x128xf32>, vector<16x128xf32>, vector<16x128xf32>, vector<16x128xf32> -> vector<144x128xf32>
    %346 = arith.truncf %345 : vector<144x128xf32> to vector<144x128xbf16>
    %cst_70 = arith.constant dense<0.000000e+00> : vector<8x128xf32>
    %347 = tpu.matmul %302, %346, %cst_70 {dimension_numbers = #tpu.dot_dimension_numbers<[1], [0], [0], [1], [0, 0, 1, 1], [], []>} : vector<8x144xbf16>, vector<144x128xbf16>, vector<8x128xf32> -> vector<8x128xf32>
    %cst_71 = arith.constant 0.000000e+00 : f32
    %348 = vector.broadcast %cst_71 : f32 to vector<8x128xf32>
    %349 = arith.maximumf %347, %348 : vector<8x128xf32>
    %cst_72 = arith.constant dense<0.000000e+00> : vector<128xf32>
    %350 = vector.multi_reduction <add>, %349, %cst_72 [0] : vector<8x128xf32> to vector<128xf32>
    %351 = vector.shape_cast %350 : vector<128xf32> to vector<1x128xf32>
    %352 = arith.mulf %349, %349 : vector<8x128xf32>
    %cst_73 = arith.constant dense<0.000000e+00> : vector<128xf32>
    %353 = vector.multi_reduction <add>, %352, %cst_73 [0] : vector<8x128xf32> to vector<128xf32>
    %354 = vector.shape_cast %353 : vector<128xf32> to vector<1x128xf32>
    %355 = tpu.concatenate %351, %354 in 0 : vector<1x128xf32>, vector<1x128xf32> -> vector<2x128xf32>
    %cst_74 = arith.constant dense<0.000000e+00> : vector<2xf32>
    %356 = vector.multi_reduction <add>, %355, %cst_74 [1] : vector<2x128xf32> to vector<2xf32>
    %357 = vector.shape_cast %356 : vector<2xf32> to vector<2x1xf32>
    %358 = vector.extract_strided_slice %357 {offsets = [0, 0], sizes = [1, 1], strides = [1, 1]} : vector<2x1xf32> to vector<1x1xf32>
    %cst_75 = arith.constant 0.001953125 : f32
    %359 = vector.broadcast %cst_75 : f32 to vector<1x1xf32>
    %360 = arith.mulf %358, %359 : vector<1x1xf32>
    %361 = vector.extract_strided_slice %357 {offsets = [1, 0], sizes = [1, 1], strides = [1, 1]} : vector<2x1xf32> to vector<1x1xf32>
    %cst_76 = arith.constant 0.001953125 : f32
    %362 = vector.broadcast %cst_76 : f32 to vector<1x1xf32>
    %363 = arith.mulf %361, %362 : vector<1x1xf32>
    %364 = arith.mulf %360, %360 : vector<1x1xf32>
    %365 = arith.subf %363, %364 : vector<1x1xf32>
    %cst_77 = arith.constant 0.000000e+00 : f32
    %366 = vector.broadcast %cst_77 : f32 to vector<1x1xf32>
    %367 = arith.maximumf %365, %366 : vector<1x1xf32>
    %cst_78 = arith.constant 9.99999974E-6 : f32
    %368 = vector.broadcast %cst_78 : f32 to vector<1x1xf32>
    %369 = arith.addf %367, %368 : vector<1x1xf32>
    %370 = math.rsqrt %369 : vector<1x1xf32>
    %371 = vector.shape_cast %360 : vector<1x1xf32> to vector<1x1xf32>
    %372 = vector.broadcast %371 : vector<1x1xf32> to vector<1x128xf32>
    %373 = vector.shape_cast %370 : vector<1x1xf32> to vector<1x1xf32>
    %374 = vector.broadcast %373 : vector<1x1xf32> to vector<1x128xf32>
    %375 = vector.broadcast %372 : vector<1x128xf32> to vector<8x128xf32>
    %376 = arith.subf %349, %375 : vector<8x128xf32>
    %377 = vector.broadcast %374 : vector<1x128xf32> to vector<8x128xf32>
    %378 = arith.mulf %376, %377 : vector<8x128xf32>
    %379 = arith.mulf %378, %303 : vector<8x128xf32>
    %380 = arith.addf %379, %304 : vector<8x128xf32>
    %c0_79 = arith.constant 0 : index
    %c0_80 = arith.constant 0 : index
    %381 = vector.load %arg21[%c0_79, %c0_80] : memref<8x72xbf16, #tpu.memory_space<vmem>>, vector<8x72xbf16>
    %c0_81 = arith.constant 0 : index
    %c0_82 = arith.constant 0 : index
    %382 = vector.load %arg22[%c0_81, %c0_82] : memref<8x128xf32, #tpu.memory_space<vmem>>, vector<8x128xf32>
    %c0_83 = arith.constant 0 : index
    %c0_84 = arith.constant 0 : index
    %383 = vector.load %arg23[%c0_83, %c0_84] : memref<8x128xf32, #tpu.memory_space<vmem>>, vector<8x128xf32>
    %384 = vector.extract_strided_slice %380 {offsets = [0, 119], sizes = [8, 9], strides = [1, 1]} : vector<8x128xf32> to vector<8x9xf32>
    %385 = vector.extract_strided_slice %380 {offsets = [0, 0], sizes = [8, 119], strides = [1, 1]} : vector<8x128xf32> to vector<8x119xf32>
    %386 = tpu.concatenate %384, %385 in 1 : vector<8x9xf32>, vector<8x119xf32> -> vector<8x128xf32>
    %387 = vector.broadcast %19 : vector<1x128xf32> to vector<8x128xf32>
    %388 = arith.mulf %386, %387 : vector<8x128xf32>
    %389 = vector.extract_strided_slice %380 {offsets = [0, 120], sizes = [8, 8], strides = [1, 1]} : vector<8x128xf32> to vector<8x8xf32>
    %390 = vector.extract_strided_slice %380 {offsets = [0, 0], sizes = [8, 120], strides = [1, 1]} : vector<8x128xf32> to vector<8x120xf32>
    %391 = tpu.concatenate %389, %390 in 1 : vector<8x8xf32>, vector<8x120xf32> -> vector<8x128xf32>
    %392 = vector.broadcast %20 : vector<1x128xf32> to vector<8x128xf32>
    %393 = arith.mulf %391, %392 : vector<8x128xf32>
    %394 = vector.extract_strided_slice %380 {offsets = [0, 121], sizes = [8, 7], strides = [1, 1]} : vector<8x128xf32> to vector<8x7xf32>
    %395 = vector.extract_strided_slice %380 {offsets = [0, 0], sizes = [8, 121], strides = [1, 1]} : vector<8x128xf32> to vector<8x121xf32>
    %396 = tpu.concatenate %394, %395 in 1 : vector<8x7xf32>, vector<8x121xf32> -> vector<8x128xf32>
    %397 = vector.broadcast %21 : vector<1x128xf32> to vector<8x128xf32>
    %398 = arith.mulf %396, %397 : vector<8x128xf32>
    %399 = vector.extract_strided_slice %380 {offsets = [0, 127], sizes = [8, 1], strides = [1, 1]} : vector<8x128xf32> to vector<8x1xf32>
    %400 = vector.extract_strided_slice %380 {offsets = [0, 0], sizes = [8, 127], strides = [1, 1]} : vector<8x128xf32> to vector<8x127xf32>
    %401 = tpu.concatenate %399, %400 in 1 : vector<8x1xf32>, vector<8x127xf32> -> vector<8x128xf32>
    %402 = vector.broadcast %22 : vector<1x128xf32> to vector<8x128xf32>
    %403 = arith.mulf %401, %402 : vector<8x128xf32>
    %404 = vector.extract_strided_slice %380 {offsets = [0, 1], sizes = [8, 127], strides = [1, 1]} : vector<8x128xf32> to vector<8x127xf32>
    %405 = vector.extract_strided_slice %380 {offsets = [0, 0], sizes = [8, 1], strides = [1, 1]} : vector<8x128xf32> to vector<8x1xf32>
    %406 = tpu.concatenate %404, %405 in 1 : vector<8x127xf32>, vector<8x1xf32> -> vector<8x128xf32>
    %407 = vector.broadcast %23 : vector<1x128xf32> to vector<8x128xf32>
    %408 = arith.mulf %406, %407 : vector<8x128xf32>
    %409 = vector.extract_strided_slice %380 {offsets = [0, 7], sizes = [8, 121], strides = [1, 1]} : vector<8x128xf32> to vector<8x121xf32>
    %410 = vector.extract_strided_slice %380 {offsets = [0, 0], sizes = [8, 7], strides = [1, 1]} : vector<8x128xf32> to vector<8x7xf32>
    %411 = tpu.concatenate %409, %410 in 1 : vector<8x121xf32>, vector<8x7xf32> -> vector<8x128xf32>
    %412 = vector.broadcast %24 : vector<1x128xf32> to vector<8x128xf32>
    %413 = arith.mulf %411, %412 : vector<8x128xf32>
    %414 = vector.extract_strided_slice %380 {offsets = [0, 8], sizes = [8, 120], strides = [1, 1]} : vector<8x128xf32> to vector<8x120xf32>
    %415 = vector.extract_strided_slice %380 {offsets = [0, 0], sizes = [8, 8], strides = [1, 1]} : vector<8x128xf32> to vector<8x8xf32>
    %416 = tpu.concatenate %414, %415 in 1 : vector<8x120xf32>, vector<8x8xf32> -> vector<8x128xf32>
    %417 = vector.broadcast %25 : vector<1x128xf32> to vector<8x128xf32>
    %418 = arith.mulf %416, %417 : vector<8x128xf32>
    %419 = vector.extract_strided_slice %380 {offsets = [0, 9], sizes = [8, 119], strides = [1, 1]} : vector<8x128xf32> to vector<8x119xf32>
    %420 = vector.extract_strided_slice %380 {offsets = [0, 0], sizes = [8, 9], strides = [1, 1]} : vector<8x128xf32> to vector<8x9xf32>
    %421 = tpu.concatenate %419, %420 in 1 : vector<8x119xf32>, vector<8x9xf32> -> vector<8x128xf32>
    %422 = vector.broadcast %26 : vector<1x128xf32> to vector<8x128xf32>
    %423 = arith.mulf %421, %422 : vector<8x128xf32>
    %424 = tpu.concatenate %388, %393, %398, %403, %380, %408, %413, %418, %423 in 0 : vector<8x128xf32>, vector<8x128xf32>, vector<8x128xf32>, vector<8x128xf32>, vector<8x128xf32>, vector<8x128xf32>, vector<8x128xf32>, vector<8x128xf32>, vector<8x128xf32> -> vector<72x128xf32>
    %425 = arith.truncf %424 : vector<72x128xf32> to vector<72x128xbf16>
    %cst_85 = arith.constant dense<0.000000e+00> : vector<8x128xf32>
    %426 = tpu.matmul %381, %425, %cst_85 {dimension_numbers = #tpu.dot_dimension_numbers<[1], [0], [0], [1], [0, 0, 1, 1], [], []>} : vector<8x72xbf16>, vector<72x128xbf16>, vector<8x128xf32> -> vector<8x128xf32>
    %cst_86 = arith.constant 0.000000e+00 : f32
    %427 = vector.broadcast %cst_86 : f32 to vector<8x128xf32>
    %428 = arith.maximumf %426, %427 : vector<8x128xf32>
    %cst_87 = arith.constant dense<0.000000e+00> : vector<128xf32>
    %429 = vector.multi_reduction <add>, %428, %cst_87 [0] : vector<8x128xf32> to vector<128xf32>
    %430 = vector.shape_cast %429 : vector<128xf32> to vector<1x128xf32>
    %431 = arith.mulf %428, %428 : vector<8x128xf32>
    %cst_88 = arith.constant dense<0.000000e+00> : vector<128xf32>
    %432 = vector.multi_reduction <add>, %431, %cst_88 [0] : vector<8x128xf32> to vector<128xf32>
    %433 = vector.shape_cast %432 : vector<128xf32> to vector<1x128xf32>
    %434 = tpu.concatenate %430, %433 in 0 : vector<1x128xf32>, vector<1x128xf32> -> vector<2x128xf32>
    %cst_89 = arith.constant dense<0.000000e+00> : vector<2xf32>
    %435 = vector.multi_reduction <add>, %434, %cst_89 [1] : vector<2x128xf32> to vector<2xf32>
    %436 = vector.shape_cast %435 : vector<2xf32> to vector<2x1xf32>
    %437 = vector.extract_strided_slice %436 {offsets = [0, 0], sizes = [1, 1], strides = [1, 1]} : vector<2x1xf32> to vector<1x1xf32>
    %cst_90 = arith.constant 3.906250e-03 : f32
    %438 = vector.broadcast %cst_90 : f32 to vector<1x1xf32>
    %439 = arith.mulf %437, %438 : vector<1x1xf32>
    %440 = vector.extract_strided_slice %436 {offsets = [1, 0], sizes = [1, 1], strides = [1, 1]} : vector<2x1xf32> to vector<1x1xf32>
    %cst_91 = arith.constant 3.906250e-03 : f32
    %441 = vector.broadcast %cst_91 : f32 to vector<1x1xf32>
    %442 = arith.mulf %440, %441 : vector<1x1xf32>
    %443 = arith.mulf %439, %439 : vector<1x1xf32>
    %444 = arith.subf %442, %443 : vector<1x1xf32>
    %cst_92 = arith.constant 0.000000e+00 : f32
    %445 = vector.broadcast %cst_92 : f32 to vector<1x1xf32>
    %446 = arith.maximumf %444, %445 : vector<1x1xf32>
    %cst_93 = arith.constant 9.99999974E-6 : f32
    %447 = vector.broadcast %cst_93 : f32 to vector<1x1xf32>
    %448 = arith.addf %446, %447 : vector<1x1xf32>
    %449 = math.rsqrt %448 : vector<1x1xf32>
    %450 = vector.shape_cast %439 : vector<1x1xf32> to vector<1x1xf32>
    %451 = vector.broadcast %450 : vector<1x1xf32> to vector<1x128xf32>
    %452 = vector.shape_cast %449 : vector<1x1xf32> to vector<1x1xf32>
    %453 = vector.broadcast %452 : vector<1x1xf32> to vector<1x128xf32>
    %454 = vector.broadcast %451 : vector<1x128xf32> to vector<8x128xf32>
    %455 = arith.subf %428, %454 : vector<8x128xf32>
    %456 = vector.broadcast %453 : vector<1x128xf32> to vector<8x128xf32>
    %457 = arith.mulf %455, %456 : vector<8x128xf32>
    %458 = arith.mulf %457, %382 : vector<8x128xf32>
    %459 = arith.addf %458, %383 : vector<8x128xf32>
    %c0_94 = arith.constant 0 : index
    %c0_95 = arith.constant 0 : index
    %460 = vector.load %arg24[%c0_94, %c0_95] : memref<16x72xbf16, #tpu.memory_space<vmem>>, vector<16x72xbf16>
    %c0_96 = arith.constant 0 : index
    %c0_97 = arith.constant 0 : index
    %461 = vector.load %arg25[%c0_96, %c0_97] : memref<16x128xf32, #tpu.memory_space<vmem>>, vector<16x128xf32>
    %c0_98 = arith.constant 0 : index
    %c0_99 = arith.constant 0 : index
    %462 = vector.load %arg26[%c0_98, %c0_99] : memref<16x128xf32, #tpu.memory_space<vmem>>, vector<16x128xf32>
    %463 = vector.extract_strided_slice %459 {offsets = [0, 119], sizes = [8, 9], strides = [1, 1]} : vector<8x128xf32> to vector<8x9xf32>
    %464 = vector.extract_strided_slice %459 {offsets = [0, 0], sizes = [8, 119], strides = [1, 1]} : vector<8x128xf32> to vector<8x119xf32>
    %465 = tpu.concatenate %463, %464 in 1 : vector<8x9xf32>, vector<8x119xf32> -> vector<8x128xf32>
    %466 = vector.broadcast %19 : vector<1x128xf32> to vector<8x128xf32>
    %467 = arith.mulf %465, %466 : vector<8x128xf32>
    %468 = vector.extract_strided_slice %459 {offsets = [0, 120], sizes = [8, 8], strides = [1, 1]} : vector<8x128xf32> to vector<8x8xf32>
    %469 = vector.extract_strided_slice %459 {offsets = [0, 0], sizes = [8, 120], strides = [1, 1]} : vector<8x128xf32> to vector<8x120xf32>
    %470 = tpu.concatenate %468, %469 in 1 : vector<8x8xf32>, vector<8x120xf32> -> vector<8x128xf32>
    %471 = vector.broadcast %20 : vector<1x128xf32> to vector<8x128xf32>
    %472 = arith.mulf %470, %471 : vector<8x128xf32>
    %473 = vector.extract_strided_slice %459 {offsets = [0, 121], sizes = [8, 7], strides = [1, 1]} : vector<8x128xf32> to vector<8x7xf32>
    %474 = vector.extract_strided_slice %459 {offsets = [0, 0], sizes = [8, 121], strides = [1, 1]} : vector<8x128xf32> to vector<8x121xf32>
    %475 = tpu.concatenate %473, %474 in 1 : vector<8x7xf32>, vector<8x121xf32> -> vector<8x128xf32>
    %476 = vector.broadcast %21 : vector<1x128xf32> to vector<8x128xf32>
    %477 = arith.mulf %475, %476 : vector<8x128xf32>
    %478 = vector.extract_strided_slice %459 {offsets = [0, 127], sizes = [8, 1], strides = [1, 1]} : vector<8x128xf32> to vector<8x1xf32>
    %479 = vector.extract_strided_slice %459 {offsets = [0, 0], sizes = [8, 127], strides = [1, 1]} : vector<8x128xf32> to vector<8x127xf32>
    %480 = tpu.concatenate %478, %479 in 1 : vector<8x1xf32>, vector<8x127xf32> -> vector<8x128xf32>
    %481 = vector.broadcast %22 : vector<1x128xf32> to vector<8x128xf32>
    %482 = arith.mulf %480, %481 : vector<8x128xf32>
    %483 = vector.extract_strided_slice %459 {offsets = [0, 1], sizes = [8, 127], strides = [1, 1]} : vector<8x128xf32> to vector<8x127xf32>
    %484 = vector.extract_strided_slice %459 {offsets = [0, 0], sizes = [8, 1], strides = [1, 1]} : vector<8x128xf32> to vector<8x1xf32>
    %485 = tpu.concatenate %483, %484 in 1 : vector<8x127xf32>, vector<8x1xf32> -> vector<8x128xf32>
    %486 = vector.broadcast %23 : vector<1x128xf32> to vector<8x128xf32>
    %487 = arith.mulf %485, %486 : vector<8x128xf32>
    %488 = vector.extract_strided_slice %459 {offsets = [0, 7], sizes = [8, 121], strides = [1, 1]} : vector<8x128xf32> to vector<8x121xf32>
    %489 = vector.extract_strided_slice %459 {offsets = [0, 0], sizes = [8, 7], strides = [1, 1]} : vector<8x128xf32> to vector<8x7xf32>
    %490 = tpu.concatenate %488, %489 in 1 : vector<8x121xf32>, vector<8x7xf32> -> vector<8x128xf32>
    %491 = vector.broadcast %24 : vector<1x128xf32> to vector<8x128xf32>
    %492 = arith.mulf %490, %491 : vector<8x128xf32>
    %493 = vector.extract_strided_slice %459 {offsets = [0, 8], sizes = [8, 120], strides = [1, 1]} : vector<8x128xf32> to vector<8x120xf32>
    %494 = vector.extract_strided_slice %459 {offsets = [0, 0], sizes = [8, 8], strides = [1, 1]} : vector<8x128xf32> to vector<8x8xf32>
    %495 = tpu.concatenate %493, %494 in 1 : vector<8x120xf32>, vector<8x8xf32> -> vector<8x128xf32>
    %496 = vector.broadcast %25 : vector<1x128xf32> to vector<8x128xf32>
    %497 = arith.mulf %495, %496 : vector<8x128xf32>
    %498 = vector.extract_strided_slice %459 {offsets = [0, 9], sizes = [8, 119], strides = [1, 1]} : vector<8x128xf32> to vector<8x119xf32>
    %499 = vector.extract_strided_slice %459 {offsets = [0, 0], sizes = [8, 9], strides = [1, 1]} : vector<8x128xf32> to vector<8x9xf32>
    %500 = tpu.concatenate %498, %499 in 1 : vector<8x119xf32>, vector<8x9xf32> -> vector<8x128xf32>
    %501 = vector.broadcast %26 : vector<1x128xf32> to vector<8x128xf32>
    %502 = arith.mulf %500, %501 : vector<8x128xf32>
    %503 = tpu.concatenate %467, %472, %477, %482, %459, %487, %492, %497, %502 in 0 : vector<8x128xf32>, vector<8x128xf32>, vector<8x128xf32>, vector<8x128xf32>, vector<8x128xf32>, vector<8x128xf32>, vector<8x128xf32>, vector<8x128xf32>, vector<8x128xf32> -> vector<72x128xf32>
    %504 = arith.truncf %503 : vector<72x128xf32> to vector<72x128xbf16>
    %cst_100 = arith.constant dense<0.000000e+00> : vector<16x128xf32>
    %505 = tpu.matmul %460, %504, %cst_100 {dimension_numbers = #tpu.dot_dimension_numbers<[1], [0], [0], [1], [0, 0, 1, 1], [], []>} : vector<16x72xbf16>, vector<72x128xbf16>, vector<16x128xf32> -> vector<16x128xf32>
    %cst_101 = arith.constant 0.000000e+00 : f32
    %506 = vector.broadcast %cst_101 : f32 to vector<16x128xf32>
    %507 = arith.maximumf %505, %506 : vector<16x128xf32>
    %cst_102 = arith.constant dense<0.000000e+00> : vector<128xf32>
    %508 = vector.multi_reduction <add>, %507, %cst_102 [0] : vector<16x128xf32> to vector<128xf32>
    %509 = vector.shape_cast %508 : vector<128xf32> to vector<1x128xf32>
    %510 = arith.mulf %507, %507 : vector<16x128xf32>
    %cst_103 = arith.constant dense<0.000000e+00> : vector<128xf32>
    %511 = vector.multi_reduction <add>, %510, %cst_103 [0] : vector<16x128xf32> to vector<128xf32>
    %512 = vector.shape_cast %511 : vector<128xf32> to vector<1x128xf32>
    %513 = tpu.concatenate %509, %512 in 0 : vector<1x128xf32>, vector<1x128xf32> -> vector<2x128xf32>
    %cst_104 = arith.constant dense<0.000000e+00> : vector<2xf32>
    %514 = vector.multi_reduction <add>, %513, %cst_104 [1] : vector<2x128xf32> to vector<2xf32>
    %515 = vector.shape_cast %514 : vector<2xf32> to vector<2x1xf32>
    %516 = vector.extract_strided_slice %515 {offsets = [0, 0], sizes = [1, 1], strides = [1, 1]} : vector<2x1xf32> to vector<1x1xf32>
    %cst_105 = arith.constant 1.562500e-03 : f32
    %517 = vector.broadcast %cst_105 : f32 to vector<1x1xf32>
    %518 = arith.mulf %516, %517 : vector<1x1xf32>
    %519 = vector.extract_strided_slice %515 {offsets = [1, 0], sizes = [1, 1], strides = [1, 1]} : vector<2x1xf32> to vector<1x1xf32>
    %cst_106 = arith.constant 1.562500e-03 : f32
    %520 = vector.broadcast %cst_106 : f32 to vector<1x1xf32>
    %521 = arith.mulf %519, %520 : vector<1x1xf32>
    %522 = arith.mulf %518, %518 : vector<1x1xf32>
    %523 = arith.subf %521, %522 : vector<1x1xf32>
    %cst_107 = arith.constant 0.000000e+00 : f32
    %524 = vector.broadcast %cst_107 : f32 to vector<1x1xf32>
    %525 = arith.maximumf %523, %524 : vector<1x1xf32>
    %cst_108 = arith.constant 9.99999974E-6 : f32
    %526 = vector.broadcast %cst_108 : f32 to vector<1x1xf32>
    %527 = arith.addf %525, %526 : vector<1x1xf32>
    %528 = math.rsqrt %527 : vector<1x1xf32>
    %529 = vector.shape_cast %518 : vector<1x1xf32> to vector<1x1xf32>
    %530 = vector.broadcast %529 : vector<1x1xf32> to vector<1x128xf32>
    %531 = vector.shape_cast %528 : vector<1x1xf32> to vector<1x1xf32>
    %532 = vector.broadcast %531 : vector<1x1xf32> to vector<1x128xf32>
    %533 = vector.broadcast %530 : vector<1x128xf32> to vector<16x128xf32>
    %534 = arith.subf %507, %533 : vector<16x128xf32>
    %535 = vector.broadcast %532 : vector<1x128xf32> to vector<16x128xf32>
    %536 = arith.mulf %534, %535 : vector<16x128xf32>
    %537 = arith.mulf %536, %461 : vector<16x128xf32>
    %538 = arith.addf %537, %462 : vector<16x128xf32>
    %cst_109 = arith.constant dense<0.000000e+00> : vector<16xf32>
    %539 = vector.multi_reduction <add>, %538, %cst_109 [1] : vector<16x128xf32> to vector<16xf32>
    %540 = vector.shape_cast %539 : vector<16xf32> to vector<16x1xf32>
    %cst_110 = arith.constant 1.562500e-02 : f32
    %541 = vector.broadcast %cst_110 : f32 to vector<16x1xf32>
    %542 = arith.mulf %540, %541 : vector<16x1xf32>
    %c0_111 = arith.constant 0 : index
    %c0_112 = arith.constant 0 : index
    %543 = vector.load %arg27[%c0_111, %c0_112] : memref<10x16xf32, #tpu.memory_space<vmem>>, vector<10x16xf32>
    %cst_113 = arith.constant dense<0.000000e+00> : vector<10x1xf32>
    %544 = tpu.matmul %543, %542, %cst_113 {dimension_numbers = #tpu.dot_dimension_numbers<[1], [0], [0], [1], [0, 0, 1, 1], [], []>} : vector<10x16xf32>, vector<16x1xf32>, vector<10x1xf32> -> vector<10x1xf32>
    %c0_114 = arith.constant 0 : index
    %c0_115 = arith.constant 0 : index
    %c0_116 = arith.constant 0 : index
    %545 = vector.load %arg28[%c0_114, %c0_115, %c0_116] : memref<1x10x1xf32, #tpu.memory_space<vmem>>, vector<1x10x1xf32>
    %546 = vector.shape_cast %545 : vector<1x10x1xf32> to vector<10x1xf32>
    %547 = vector.shape_cast %544 : vector<10x1xf32> to vector<1x10x1xf32>
    tpu.vector_store %arg28[%c0_114, %c0_115, %c0_116], %547 {strides = array<i32>} : memref<1x10x1xf32, #tpu.memory_space<vmem>>, vector<1x10x1xf32>,
    return
  }
  func.func @transform_0(%arg0: i32) -> (i32, i32, i32) {
    %c0_i32 = arith.constant 0 : i32
    %c0_i32_0 = arith.constant 0 : i32
    %c0_i32_1 = arith.constant 0 : i32
    return %arg0, %c0_i32, %c0_i32_0 : i32, i32, i32
  }
  func.func @transform_1(%arg0: i32) -> (i32, i32) {
    %c0_i32 = arith.constant 0 : i32
    %c0_i32_0 = arith.constant 0 : i32
    %c0_i32_1 = arith.constant 0 : i32
    return %c0_i32, %c0_i32_0 : i32, i32
  }
  func.func @transform_2(%arg0: i32) -> (i32, i32) {
    %c0_i32 = arith.constant 0 : i32
    %c0_i32_0 = arith.constant 0 : i32
    %c0_i32_1 = arith.constant 0 : i32
    return %c0_i32, %c0_i32_0 : i32, i32
  }
  func.func @transform_3(%arg0: i32) -> (i32, i32) {
    %c0_i32 = arith.constant 0 : i32
    %c0_i32_0 = arith.constant 0 : i32
    %c0_i32_1 = arith.constant 0 : i32
    return %c0_i32, %c0_i32_0 : i32, i32
  }
  func.func @transform_4(%arg0: i32) -> (i32, i32) {
    %c0_i32 = arith.constant 0 : i32
    %c0_i32_0 = arith.constant 0 : i32
    %c0_i32_1 = arith.constant 0 : i32
    return %c0_i32, %c0_i32_0 : i32, i32
  }
  func.func @transform_5(%arg0: i32) -> (i32, i32) {
    %c0_i32 = arith.constant 0 : i32
    %c0_i32_0 = arith.constant 0 : i32
    %c0_i32_1 = arith.constant 0 : i32
    return %c0_i32, %c0_i32_0 : i32, i32
  }
  func.func @transform_6(%arg0: i32) -> (i32, i32) {
    %c0_i32 = arith.constant 0 : i32
    %c0_i32_0 = arith.constant 0 : i32
    %c0_i32_1 = arith.constant 0 : i32
    return %c0_i32, %c0_i32_0 : i32, i32
  }
  func.func @transform_7(%arg0: i32) -> (i32, i32) {
    %c0_i32 = arith.constant 0 : i32
    %c0_i32_0 = arith.constant 0 : i32
    %c0_i32_1 = arith.constant 0 : i32
    return %c0_i32, %c0_i32_0 : i32, i32
  }
  func.func @transform_8(%arg0: i32) -> (i32, i32) {
    %c0_i32 = arith.constant 0 : i32
    %c0_i32_0 = arith.constant 0 : i32
    %c0_i32_1 = arith.constant 0 : i32
    return %c0_i32, %c0_i32_0 : i32, i32
  }
  func.func @transform_9(%arg0: i32) -> (i32, i32) {
    %c0_i32 = arith.constant 0 : i32
    %c0_i32_0 = arith.constant 0 : i32
    %c0_i32_1 = arith.constant 0 : i32
    return %c0_i32, %c0_i32_0 : i32, i32
  }
  func.func @transform_10(%arg0: i32) -> (i32, i32) {
    %c0_i32 = arith.constant 0 : i32
    %c0_i32_0 = arith.constant 0 : i32
    %c0_i32_1 = arith.constant 0 : i32
    return %c0_i32, %c0_i32_0 : i32, i32
  }
  func.func @transform_11(%arg0: i32) -> (i32, i32) {
    %c0_i32 = arith.constant 0 : i32
    %c0_i32_0 = arith.constant 0 : i32
    %c0_i32_1 = arith.constant 0 : i32
    return %c0_i32, %c0_i32_0 : i32, i32
  }
  func.func @transform_12(%arg0: i32) -> (i32, i32) {
    %c0_i32 = arith.constant 0 : i32
    %c0_i32_0 = arith.constant 0 : i32
    %c0_i32_1 = arith.constant 0 : i32
    return %c0_i32, %c0_i32_0 : i32, i32
  }
  func.func @transform_13(%arg0: i32) -> (i32, i32) {
    %c0_i32 = arith.constant 0 : i32
    %c0_i32_0 = arith.constant 0 : i32
    %c0_i32_1 = arith.constant 0 : i32
    return %c0_i32, %c0_i32_0 : i32, i32
  }
  func.func @transform_14(%arg0: i32) -> (i32, i32) {
    %c0_i32 = arith.constant 0 : i32
    %c0_i32_0 = arith.constant 0 : i32
    %c0_i32_1 = arith.constant 0 : i32
    return %c0_i32, %c0_i32_0 : i32, i32
  }
  func.func @transform_15(%arg0: i32) -> (i32, i32) {
    %c0_i32 = arith.constant 0 : i32
    %c0_i32_0 = arith.constant 0 : i32
    %c0_i32_1 = arith.constant 0 : i32
    return %c0_i32, %c0_i32_0 : i32, i32
  }
  func.func @transform_16(%arg0: i32) -> (i32, i32) {
    %c0_i32 = arith.constant 0 : i32
    %c0_i32_0 = arith.constant 0 : i32
    %c0_i32_1 = arith.constant 0 : i32
    return %c0_i32, %c0_i32_0 : i32, i32
  }
  func.func @transform_17(%arg0: i32) -> (i32, i32) {
    %c0_i32 = arith.constant 0 : i32
    %c0_i32_0 = arith.constant 0 : i32
    %c0_i32_1 = arith.constant 0 : i32
    return %c0_i32, %c0_i32_0 : i32, i32
  }
  func.func @transform_18(%arg0: i32) -> (i32, i32) {
    %c0_i32 = arith.constant 0 : i32
    %c0_i32_0 = arith.constant 0 : i32
    %c0_i32_1 = arith.constant 0 : i32
    return %c0_i32, %c0_i32_0 : i32, i32
  }
  func.func @transform_19(%arg0: i32) -> (i32, i32) {
    %c0_i32 = arith.constant 0 : i32
    %c0_i32_0 = arith.constant 0 : i32
    %c0_i32_1 = arith.constant 0 : i32
    return %c0_i32, %c0_i32_0 : i32, i32
  }
  func.func @transform_20(%arg0: i32) -> (i32, i32) {
    %c0_i32 = arith.constant 0 : i32
    %c0_i32_0 = arith.constant 0 : i32
    %c0_i32_1 = arith.constant 0 : i32
    return %c0_i32, %c0_i32_0 : i32, i32
  }
  func.func @transform_21(%arg0: i32) -> (i32, i32) {
    %c0_i32 = arith.constant 0 : i32
    %c0_i32_0 = arith.constant 0 : i32
    %c0_i32_1 = arith.constant 0 : i32
    return %c0_i32, %c0_i32_0 : i32, i32
  }
  func.func @transform_22(%arg0: i32) -> (i32, i32) {
    %c0_i32 = arith.constant 0 : i32
    %c0_i32_0 = arith.constant 0 : i32
    %c0_i32_1 = arith.constant 0 : i32
    return %c0_i32, %c0_i32_0 : i32, i32
  }
  func.func @transform_23(%arg0: i32) -> (i32, i32) {
    %c0_i32 = arith.constant 0 : i32
    %c0_i32_0 = arith.constant 0 : i32
    %c0_i32_1 = arith.constant 0 : i32
    return %c0_i32, %c0_i32_0 : i32, i32
  }
  func.func @transform_24(%arg0: i32) -> (i32, i32) {
    %c0_i32 = arith.constant 0 : i32
    %c0_i32_0 = arith.constant 0 : i32
    %c0_i32_1 = arith.constant 0 : i32
    return %c0_i32, %c0_i32_0 : i32, i32
  }
  func.func @transform_25(%arg0: i32) -> (i32, i32) {
    %c0_i32 = arith.constant 0 : i32
    %c0_i32_0 = arith.constant 0 : i32
    %c0_i32_1 = arith.constant 0 : i32
    return %c0_i32, %c0_i32_0 : i32, i32
  }
  func.func @transform_26(%arg0: i32) -> (i32, i32) {
    %c0_i32 = arith.constant 0 : i32
    %c0_i32_0 = arith.constant 0 : i32
    %c0_i32_1 = arith.constant 0 : i32
    return %c0_i32, %c0_i32_0 : i32, i32
  }
  func.func @transform_27(%arg0: i32) -> (i32, i32, i32) {
    %c0_i32 = arith.constant 0 : i32
    %c0_i32_0 = arith.constant 0 : i32
    %c0_i32_1 = arith.constant 0 : i32
    return %arg0, %c0_i32, %c0_i32_0 : i32, i32, i32
  }
}

</mosaic_0001>

<bundles_post_ra>
// kernel: forward.1
= control target key start
LH: loop header
LB: loop body
LE: loop exit
PB: predicated region body
PF: predicated region fallthrough
CT: control target
= control target key end

     0   :  { %s9640_s0 = inlined_call_operand.vmem [shape: f32[2,8,1024], index: 0, kind: input, shape index: {}]   ;;  %s9641_s1 = inlined_call_operand.vmem [shape: f32[8,1024], index: 1, kind: input, shape index: {}]   ;;  %s9642_s2 = inlined_call_operand.vmem [shape: f32[8,256], index: 2, kind: input, shape index: {}]   ;;  %s9643_s3 = inlined_call_operand.vmem [shape: f32[8,128], index: 3, kind: input, shape index: {}]   ;;  %s9644_s4 = inlined_call_operand.vmem [shape: bf16[16,72], index: 4, kind: input, shape index: {}]   ;;  %s9645_s5 = inlined_call_operand.vmem [shape: f32[16,1024], index: 5, kind: input, shape index: {}]   ;;  %s9646_s6 = inlined_call_operand.vmem [shape: f32[16,1024], index: 6, kind: input, shape index: {}]   ;;  %s9647_s7 = inlined_call_operand.vmem [shape: bf16[8,144], index: 7, kind: input, shape index: {}]   ;;  %s9648_s8 = inlined_call_operand.vmem [shape: f32[8,1024], index: 8, kind: input, shape index: {}]   ;;  %s9649_s9 = inlined_call_operand.vmem [shape: f32[8,1024], index: 9, kind: input, shape index: {}]   ;;  %s9650_s10 = inlined_call_operand.vmem [shape: bf16[16,8], index: 10, kind: input, shape index: {}]   ;;  %s9651_s11 = inlined_call_operand.hbm [shape: bf16[1024,256], index: 11, kind: input, shape index: {}]   ;;  %s9652_s12 = inlined_call_operand.vmem [shape: bf16[8,144], index: 12, kind: input, shape index: {}]   ;;  %s9653_s13 = inlined_call_operand.vmem [shape: f32[8,256], index: 13, kind: input, shape index: {}]   ;;  %s9654_s14 = inlined_call_operand.vmem [shape: f32[8,256], index: 14, kind: input, shape index: {}]   ;;  %s9655_s15 = inlined_call_operand.vmem [shape: bf16[16,8], index: 15, kind: input, shape index: {}]   ;;  %s9656_s16 = inlined_call_operand.vmem [shape: bf16[256,128], index: 16, kind: input, shape index: {}]   ;;  %s9657_s17 = inlined_call_operand.vmem [shape: bf16[8,144], index: 17, kind: input, shape index: {}]   ;;  %s9658_s18 = inlined_call_operand.vmem [shape: f32[8,128], index: 18, kind: input, shape index: {}]   ;;  %s9659_s19 = inlined_call_operand.vmem [shape: f32[8,128], index: 19, kind: input, shape index: {}]   ;;  %s9660_s20 = inlined_call_operand.vmem [shape: bf16[8,72], index: 20, kind: input, shape index: {}]   ;;  %s9661_s21 = inlined_call_operand.vmem [shape: f32[8,128], index: 21, kind: input, shape index: {}]   ;;  %s9662_s22 = inlined_call_operand.vmem [shape: f32[8,128], index: 22, kind: input, shape index: {}]   ;;  %s9663_s23 = inlined_call_operand.vmem [shape: bf16[16,72], index: 23, kind: input, shape index: {}]   ;;  %s9664_s24 = inlined_call_operand.vmem [shape: f32[16,128], index: 24, kind: input, shape index: {}]   ;;  %s9665_s25 = inlined_call_operand.vmem [shape: f32[16,128], index: 25, kind: input, shape index: {}]   ;;  %s9666_s26 = inlined_call_operand.vmem [shape: f32[10,16], index: 26, kind: input, shape index: {}]   ;;  %s9667_s27 = inlined_call_operand.vmem [shape: f32[2,10,1], index: 27, kind: output, shape index: {}]  }
   0x1   :  { %9857 = sst [smem:[#allocation87_spill]] %s9640_s0 }
   0x2   :  { %9858 = sst [smem:[#allocation88_spill]] %s9641_s1 }
   0x3   :  { %9859 = sst [smem:[#allocation89_spill]] %s9642_s2 }
   0x4   :  { %9860 = sst [smem:[#allocation90_spill]] %s9643_s3 }
   0x5   :  { %9861 = sst [smem:[#allocation91_spill]] %s9644_s4 }
   0x6   :  { %9862 = sst [smem:[#allocation92_spill]] %s9645_s5 }
   0x7   :  { %9863 = sst [smem:[#allocation93_spill]] %s9646_s6 }
   0x8   :  { %9864 = sst [smem:[#allocation94_spill]] %s9647_s7 }
   0x9   :  { %9865 = sst [smem:[#allocation95_spill]] %s9648_s8 }
   0xa   :  { %9866 = sst [smem:[#allocation96_spill]] %s9649_s9 }
   0xb   :  { %9867 = sst [smem:[#allocation97_spill]] %s9650_s10 }
   0xc   :  { %9868 = sst [smem:[#allocation98_spill]] %s9651_s11 }
   0xd   :  { %9869 = sst [smem:[#allocation99_spill]] %s9665_s25 }
   0xe   :  { %9870 = sst [smem:[#allocation100_spill]] %s9666_s26 }
   0xf   :  { %9871 = sst [smem:[#allocation101_spill]] %s9667_s27 }
  0x10   :  { %32 = vsyncpa [#allocation3], 0  ;;  %s6671_s7 = smov 0  }
  0x11 LB: > { %9872 = sst [smem:[#allocation5_spill]] %s6506_s7  ;;  %s5461_s5 = sadd.s32 4294967295, %s6506_s7   ;;  %s6506_s7 = sphi %s6671_s7, %s38_s7  }
  0x12   : > { %s9873_s30 = sld [smem:[#allocation98_spill]]  ;;  %p5463_p0 = scmp.ge.s32.totalorder %s6506_s7, 1 }
  0x13   : > { %p641_p1 = scmp.lt.s32.totalorder %s6506_s7, 3  ;;  %p6271_p2 = scmp.eq.s32.totalorder %s5461_s5, 0 }
  0x14   : > { %s6508_s28 = smov [#allocation2]   ;;  %s6509_s10 = smov 128  }
  0x15   : > { %p642_p3 = pnand %p5463_p0, %p641_p1  ;;  %s684_s0 = sshll.u32 %s6508_s28, 4  ;;  %s685_s0 = int_to_ptr.vmem [resolvable:$true] %s684_s0 }
  0x16   : > { %s6510_s29 = smov 8  }
  0x17   : > { %p6267_p4 = pneg %p642_p3  ;;  %753 = sbr.rel (%p642_p3) target bundleno = 4778 (0x12aa), region = 128 }
  0x18   : > { %s682_s9 = sshll.u32 %s9873_s30, 4  ;;  %s683_s9 = int_to_ptr.hbm [resolvable:$true] %s682_s9 }
  0x19   : > { %p6268_p5 = pnand %p6271_p2, %p6267_p4 }
  0x1b   : > { %6270 = dma.hbm_to_vmem [thread:$0]  (!%p6268_p5), %s683_s9, 16384, %s685_s0, [#allocation3], %s6509_s10, %s6509_s10, %s6510_s29  }
  0x1c   : > { %6501 = dma.done.wait (%p6271_p2), [#allocation3], 16384  }
  0x1d   : > { %6503 = vsyncadd (%p6271_p2), [#allocation3], 4294950912  ;;  %p826_p6 = scmp.lt.s32.totalorder %s5461_s5, 1  ;;  %s9875_s2 = sld [smem:[#allocation87_spill]]  ;;  %vm1264_vm0 = vcmask 777216   ;;  %vm1214_vm1 = vcmask 785408  }
  0x1e   : > { %s9674_s4 = smov 95   ;;  %s9788_s8 = smov 97   ;;  %vm1347_vm2 = vcmask 1043456   ;;  %vm1164_vm3 = vcmask 793600   ;;  %vm1114_vm4 = vcmask 1039360   ;;  %vm1065_vm5 = vcmask 7168  }
  0x1f   : > { %s10100_s5 = smov (!%p826_p6, %s5461_s5), 1  ;;  %s9792_s30 = smov 96   ;;  %vm1015_vm6 = vcmask 252928   ;;  %vm915_vm7 = vcmask 269312   ;;  %vm965_vm8 = vcmask 261120   ;;  %vm1343_vm9 = vcmask 588800  }
  0x20   : > { %9874 = sst [smem:[#allocation6_spill]] %s10100_s5  ;;  %s6099_s1 = sshll.u32 %s10100_s5, 6  ;;  %vm1628_vm10 = vcmask 1040384   ;;  %vm1637_vm11 = vcmask 1041408   ;;  %vm2510_vm15 = vcmask 130048  }
  0x21   : > { %s9794_s9 = smov 127   ;;  %s9790_s28 = smov 31  }
  0x22   : > { %s9680_s0 = smov 1   ;;  %s9678_s10 = smov 33  }
  0x23   : > { %s6688_s3 = scalar_lea.vmem %s9875_s2, %s6099_s1  ;;  %s9676_s29 = smov 32  }
  0x24   : > { %v6691_v0 = vld [vmem:[%s6688_s3 + $0x20] sm:$0xff]  ;;  %v6694_v1 = vld [vmem:[%s6688_s3 + $0x10] sm:$0xff]  ;;  %v6706_v3 = vld [vmem:[%s6688_s3 + $0x18] sm:$0xff]  ;;  %s9876_s11 = sld [smem:[#allocation88_spill]]  ;;  %s9939_s6 = smov 31  }
  0x25   : > { %v6697_v2 = vld [vmem:[%s6688_s3] sm:$0xff]  ;;  %1256 = vrot.lane.b32.xlu2 %v6691_v0, %s9674_s4  ;;  %1252 = vrot.lane.b32.xlu0 %v6694_v1, %s9674_s4  ;;  %v6709_v4 = vld [vmem:[%s6688_s3 + $0x8] sm:$0xff]  ;;  %s9941_s2 = smov 95   ;;  %s6522_s7 = smov 15  }
  0x26   : > { %1248 = vrot.lane.b32.xlu1 %v6697_v2, %s9674_s4  ;;  %v6754_v5 = vld [vmem:[%s6688_s3 + $0x38] sm:$0xff]  ;;  %v6769_v6 = vld [vmem:[%s6688_s3 + $0x30] sm:$0xff]  ;;  %v6786_v8 = vld [vmem:[%s6688_s3 + $0x28] sm:$0xff]  ;;  %s9934_s3 = sld [smem:[#allocation92_spill]]  ;;  %s6525_s27 = smov 120  }
  0x27   : > { %s6526_s26 = smov 8   ;;  %s6530_s25 = smov 7  }
  0x2a   : > { %v6815_v14 = vld [vmem:[%s9876_s11 + $0x10] sm:$0xff]  ;;  %v6820_v15 = vld [vmem:[%s9876_s11 + $0x18] sm:$0xff]  ;;  %v6825_v16 = vld [vmem:[%s9876_s11] sm:$0xff] }
  0x2b   : > { %v6830_v17 = vld [vmem:[%s9876_s11 + $0x8] sm:$0xff]  ;;  %v6837_v18 = vperm.slane %v6815_v14, 7  ;;  %v6840_v19 = vperm.slane %v6820_v15, 7  ;;  %v6845_v20 = vperm.slane %v6825_v16, 7  ;;  %v6863_v35 = vperm.slane %v6820_v15, 6 }
  0x2c   : > { %v6848_v21 = vperm.slane %v6830_v17, 7  ;;  %v6874_v41 = vperm.slane %v6815_v14, 5  ;;  %v6877_v42 = vperm.slane %v6820_v15, 5  ;;  %v6884_v45 = vperm.slane %v6815_v14, 6 }
  0x2d   : > { %1152 = vrot.lane.b32.xlu2 %v6694_v1, %s9788_s8  ;;  %1254 = vrot.lane.b32.xlu0 %v6706_v3, %s9674_s4  ;;  %9877 = vst [vmem:[#allocation7_spill] sm:$0xff] %v6840_v19  ;;  %v6914_v61 = vperm.slane %v6825_v16, 5  ;;  %v6917_v62 = vperm.slane %v6825_v16, 6  ;;  %v6920_v63 = vperm.slane %v6830_v17, 5 }
  0x2e   : > { %1250 = vrot.lane.b32.xlu1 %v6709_v4, %s9674_s4  ;;  %9878 = vst [vmem:[#allocation8_spill] sm:$0xff] %v6845_v20 }
  0x2f   : > { %9879 = vst [vmem:[#allocation9_spill] sm:$0xff] %v6863_v35 }
  0x30   : > { %9880 = vst [vmem:[#allocation10_spill] sm:$0xff] %v6874_v41 }
  0x31   : > { %9881 = vst [vmem:[#allocation11_spill] sm:$0xff] %v6877_v42 }
  0x32   : > { %9882 = vst [vmem:[#allocation12_spill] sm:$0xff] %v6884_v45 }
  0x35   : > { %1204 = vrot.lane.b32.xlu2 %v6706_v3, %s9792_s30  ;;  %1154 = vrot.lane.b32.xlu0 %v6706_v3, %s9788_s8 }
  0x36   : > { %1202 = vrot.lane.b32.xlu1 %v6694_v1, %s9792_s30 }
  0x3d   : > { %1156 = vrot.lane.b32.xlu2 %v6691_v0, %s9788_s8  ;;  %1148 = vrot.lane.b32.xlu0 %v6697_v2, %s9788_s8 }
  0x3e   : > { %1150 = vrot.lane.b32.xlu1 %v6709_v4, %s9788_s8 }
  0x45   : > { %1206 = vrot.lane.b32.xlu2 %v6691_v0, %s9792_s30  ;;  %1198 = vrot.lane.b32.xlu0 %v6697_v2, %s9792_s30 }
  0x46   : > { %1200 = vrot.lane.b32.xlu1 %v6709_v4, %s9792_s30 }
  0x4d   : > { %1098 = vrot.lane.b32.xlu2 %v6697_v2, %s9794_s9  ;;  %1102 = vrot.lane.b32.xlu0 %v6694_v1, %s9794_s9 }
  0x4e   : > { %1104 = vrot.lane.b32.xlu1 %v6706_v3, %s9794_s9 }
  0x55   : > { %1003 = vrot.lane.b32.xlu2 %v6709_v4, %s9790_s28  ;;  %1100 = vrot.lane.b32.xlu0 %v6709_v4, %s9794_s9 }
  0x56   : > { %1106 = vrot.lane.b32.xlu1 %v6691_v0, %s9794_s9 }
  0x5d   : > { %1055 = vrot.lane.b32.xlu2 %v6694_v1, %s9680_s0  ;;  %1005 = vrot.lane.b32.xlu0 %v6694_v1, %s9790_s28 }
  0x5e   : > { %1053 = vrot.lane.b32.xlu1 %v6709_v4, %s9680_s0 }
  0x65   : > { %1007 = vrot.lane.b32.xlu2 %v6706_v3, %s9790_s28  ;;  %998 = vrot.lane.b32.xlu0 %v6754_v5, %s9790_s28 }
  0x66   : > { %1001 = vrot.lane.b32.xlu1 %v6697_v2, %s9790_s28 }
  0x6d   : > { %1057 = vrot.lane.b32.xlu2 %v6706_v3, %s9680_s0  ;;  %1048 = vrot.lane.b32.xlu0 %v6754_v5, %s9680_s0 }
  0x6e   : > { %1051 = vrot.lane.b32.xlu1 %v6697_v2, %s9680_s0  ;;  %s9884_s0 = smov 33  }
  0x75   : > { %903 = vrot.lane.b32.xlu2 %v6709_v4, %s9678_s10  ;;  %1260 = vrot.lane.b32.xlu0 %v6769_v6, %s9674_s4 }
  0x76   : > { %1262 = vrot.lane.b32.xlu1 %v6754_v5, %s9674_s4 }
  0x7d   : > { %955 = vrot.lane.b32.xlu2 %v6694_v1, %s9676_s29  ;;  %905 = vrot.lane.b32.xlu0 %v6694_v1, %s9678_s10 }
  0x7e   : > { %953 = vrot.lane.b32.xlu1 %v6709_v4, %s9676_s29 }
  0x7f   : > { %v6783_v7 = vpop.permute.xlu2 %1256 }
  0x85   : > { %901 = vrot.lane.b32.xlu2 %v6697_v2, %s9678_s10  ;;  %1258 = vrot.lane.b32.xlu0 %v6786_v8, %s9674_s4  ;;  %s9883_s4 = smov 1  }
  0x86   : > { %891 = vrot.lane.b32.xlu1 %v6754_v5, %s9678_s10 }
  0x87   : > { %v6794_v9 = vpop.permute.xlu2 %1152 }
  0x8d   : > { %951 = vrot.lane.b32.xlu2 %v6697_v2, %s9676_s29  ;;  %907 = vrot.lane.b32.xlu0 %v6706_v3, %s9678_s10  ;;  %s9886_s10 = smov 32  }
  0x8e   : > { %948 = vrot.lane.b32.xlu1 %v6754_v5, %s9676_s29 }
  0x8f   : > { %v1205_v10 = vpop.permute.xlu2 %1204 }
  0x95   : > { %1162 = vrot.lane.b32.xlu2 %v6754_v5, %s9788_s8  ;;  %957 = vrot.lane.b32.xlu0 %v6706_v3, %s9676_s29  ;;  %s9903_s29 = sld [smem:[#allocation91_spill]] }
  0x96   : > { %1160 = vrot.lane.b32.xlu1 %v6769_v6, %s9788_s8 }
  0x97   : > { %v6808_v11 = vpop.permute.xlu2 %1156  ;;  %v1253_v12 = vpop.permute.xlu0 %1252 }
  0x98   : > { %v6810_v13 = vpop.permute.xlu1 %1248 }
  0x9d   : > { %1158 = vrot.lane.b32.xlu2 %v6786_v8, %s9788_s8  ;;  %1210 = vrot.lane.b32.xlu0 %v6769_v6, %s9792_s30  ;;  %s9966_s8 = sld [smem:[#allocation94_spill]] }
  0x9e   : > { %1212 = vrot.lane.b32.xlu1 %v6754_v5, %s9792_s30 }
  0x9f   : > { %v6850_v22 = vpop.permute.xlu2 %1206  ;;  %v1255_v23 = vpop.permute.xlu0 %1254 }
  0xa0   : > { %v1251_v24 = vpop.permute.xlu1 %1250  ;;  %v1267_v25 = vsel %vm1264_vm0, %v1253_v12, %v1255_v23  ;;  %v1268_v26 = vsel %vm1264_vm0, %v1255_v23, %v6783_v7  ;;  %v1218_v36 = vsel %vm1214_vm1, %v1205_v10, %v6850_v22 }
  0xa1   : > { %v1265_v27 = vsel %vm1264_vm0, %v6810_v13, %v1251_v24  ;;  %v1266_v28 = vsel %vm1264_vm0, %v1251_v24, %v1253_v12  ;;  %v1292_v29 = vmul.f32 %v6837_v18, %v1267_v25  ;;  %v1293_v30 = vmul.f32 %v6840_v19, %v1268_v26 }
  0xa2   : > { %v1290_v31 = vmul.f32 %v6845_v20, %v1265_v27  ;;  %v1291_v32 = vmul.f32 %v6848_v21, %v1266_v28  ;;  %v1243_v48 = vmul.f32 %v6863_v35, %v1218_v36  ;;  %v7128_v35 = vperm.slane %v6820_v15, 0 }
  0xa3   : > { %v1332_v33 = vpack.c.bf16 %v1292_v29, %v1292_v29  ;;  %v1333_v34 = vpack.c.bf16 %v1293_v30, %v1293_v30 }
  0xa4   : > { %v1330_v37 = vpack.c.bf16 %v1290_v31, %v1290_v31  ;;  %v1331_v38 = vpack.c.bf16 %v1291_v32, %v1291_v32  ;;  %9904 = vst [vmem:[#allocation30_spill] sm:$0xff] %v7128_v35 }
  0xa5   : > { %1112 = vrot.lane.b32.xlu2 %v6754_v5, %s9794_s9  ;;  %1208 = vrot.lane.b32.xlu0 %v6786_v8, %s9792_s30  ;;  %v1355_v39 = vsel %vm1347_vm2, %v1332_v33, 0  ;;  %v1358_v40 = vsel %vm1347_vm2, %v1333_v34, 0  ;;  %s10079_s30 = sld [smem:[#allocation97_spill]] }
  0xa6   : > { %1110 = vrot.lane.b32.xlu1 %v6769_v6, %s9794_s9  ;;  %v1349_v43 = vsel %vm1347_vm2, %v1330_v37, 0  ;;  %v1352_v44 = vsel %vm1347_vm2, %v1331_v38, 0  ;;  %1403 = vmatpush.bf16.msra.mxu2 %v1355_v39 }
  0xa7   : > { %1375 = vmatpush.bf16.msra.mxu0 %v1349_v43  ;;  %1389 = vmatpush.bf16.msra.mxu1 %v1352_v44  ;;  %v1155_v46 = vpop.permute.xlu0 %1154  ;;  %v6886_v47 = vpop.permute.xlu2 %1098  ;;  %v6957_v44 = vperm.slane %v6825_v16, 4 }
  0xa8   : > { %1417 = vmatpush.bf16.msra.mxu3 %v1358_v40  ;;  %v1167_v49 = vsel %vm1164_vm3, %v6794_v9, %v1155_v46  ;;  %v1168_v50 = vsel %vm1164_vm3, %v1155_v46, %v6808_v11  ;;  %v1203_v51 = vpop.permute.xlu1 %1202  ;;  %v6960_v46 = vperm.slane %v6830_v17, 4 }
  0xa9   : > { %v1217_v52 = vsel %vm1214_vm1, %v1203_v51, %v1205_v10  ;;  %v1192_v53 = vmul.f32 %v6874_v41, %v1167_v49  ;;  %v1193_v54 = vmul.f32 %v6877_v42, %v1168_v50  ;;  %v6923_v10 = vperm.slane %v6830_v17, 6  ;;  %9887 = vst [vmem:[#allocation14_spill] sm:$0xff] %v6957_v44 }
  0xaa   : > { %v1242_v55 = vmul.f32 %v6884_v45, %v1217_v52 }
  0xab   : > { %v1325_v56 = vpack.c.bf16 %v1243_v48, %v1193_v54  ;;  %v6965_v48 = vperm.slane %v6820_v15, 4 }
  0xac   : > { %v1324_v57 = vpack.c.bf16 %v1242_v55, %v1192_v53 }
  0xad   : > { %1013 = vrot.lane.b32.xlu2 %v6769_v6, %s9790_s28  ;;  %1108 = vrot.lane.b32.xlu0 %v6786_v8, %s9794_s9  ;;  %9888 = vst [vmem:[#allocation15_spill] sm:$0xff] %v6965_v48  ;;  %s6521_s9 = smov 16  }
  0xae   : > { %1011 = vrot.lane.b32.xlu1 %v6786_v8, %s9790_s28  ;;  %1404 = vmatpush.bf16.msra.mxu2 %v1324_v57 }
  0xaf   : > { %1418 = vmatpush.bf16.msra.mxu3 %v1325_v56  ;;  %v6903_v58 = vpop.permute.xlu2 %1003  ;;  %v6905_v59 = vpop.permute.xlu0 %1148 }
  0xb0   : > { %v1151_v60 = vpop.permute.xlu1 %1150 }
  0xb1   : > { %v1165_v12 = vsel %vm1164_vm3, %v6905_v59, %v1151_v60  ;;  %v1166_v23 = vsel %vm1164_vm3, %v1151_v60, %v6794_v9  ;;  %v6945_v9 = vperm.slane %v6815_v14, 4 }
  0xb2   : > { %v1190_v29 = vmul.f32 %v6914_v61, %v1165_v12  ;;  %v1191_v31 = vmul.f32 %v6920_v63, %v1166_v23  ;;  %v6982_v12 = vperm.slane %v6820_v15, 3 }
  0xb3   : > { %9885 = vst [vmem:[#allocation13_spill] sm:$0xff] %v6945_v9 }
  0xb4   : > { %9889 = vst [vmem:[#allocation16_spill] sm:$0xff] %v6982_v12 }
  0xb5   : > { %1009 = vrot.lane.b32.xlu2 %v6691_v0, %s9790_s28  ;;  %1061 = vrot.lane.b32.xlu0 %v6786_v8, %s9883_s4  ;;  %s9937_s28 = smov 127  }
  0xb6   : > { %1063 = vrot.lane.b32.xlu1 %v6769_v6, %s9883_s4 }
  0xb7   : > { %v1056_v24 = vpop.permute.xlu2 %1055  ;;  %v6929_v25 = vpop.permute.xlu0 %1198 }
  0xb8   : > { %v1201_v26 = vpop.permute.xlu1 %1200 }
  0xb9   : > { %v1215_v27 = vsel %vm1214_vm1, %v6929_v25, %v1201_v26  ;;  %v1216_v28 = vsel %vm1214_vm1, %v1201_v26, %v1203_v51 }
  0xba   : > { %v1240_v30 = vmul.f32 %v6917_v62, %v1215_v27  ;;  %v1241_v32 = vmul.f32 %v6923_v10, %v1216_v28  ;;  %v6990_v27 = vperm.slane %v6815_v14, 2 }
  0xbc   : > { %v1322_v33 = vpack.c.bf16 %v1240_v30, %v1190_v29  ;;  %v1323_v34 = vpack.c.bf16 %v1241_v32, %v1191_v31  ;;  %9890 = vst [vmem:[#allocation17_spill] sm:$0xff] %v6990_v27 }
  0xbd   : > { %913 = vrot.lane.b32.xlu2 %v6769_v6, %s9884_s0  ;;  %1059 = vrot.lane.b32.xlu0 %v6691_v0, %s9883_s4 }
  0xbe   : > { %911 = vrot.lane.b32.xlu1 %v6786_v8, %s9884_s0  ;;  %1376 = vmatpush.bf16.msra.mxu0 %v1322_v33 }
  0xbf   : > { %1390 = vmatpush.bf16.msra.mxu1 %v1323_v34  ;;  %v6947_v36 = vpop.permute.xlu2 %1007  ;;  %v1103_v37 = vpop.permute.xlu0 %1102 }
  0xc0   : > { %v1105_v38 = vpop.permute.xlu1 %1104 }
  0xc1   : > { %v1117_v39 = vsel %vm1114_vm4, %v1103_v37, %v1105_v38 }
  0xc2   : > { %v1142_v40 = vmul.f32 %v6945_v9, %v1117_v39 }
  0xc4   : > { %v1316_v43 = vpack.c.bf16 %v1142_v40, %v6694_v1 }
  0xc5   : > { %909 = vrot.lane.b32.xlu2 %v6691_v0, %s9884_s0  ;;  %961 = vrot.lane.b32.xlu0 %v6786_v8, %s9886_s10 }
  0xc6   : > { %963 = vrot.lane.b32.xlu1 %v6769_v6, %s9886_s10  ;;  %1405 = vmatpush.bf16.msra.mxu2 %v1316_v43 }
  0xc7   : > { %v1101_v1 = vpop.permute.xlu0 %1100  ;;  %v6967_v49 = vpop.permute.xlu2 %1057 }
  0xc8   : > { %v1115_v50 = vsel %vm1114_vm4, %v6886_v47, %v1101_v1  ;;  %v1116_v51 = vsel %vm1114_vm4, %v1101_v1, %v1103_v37  ;;  %v6972_v52 = vpop.permute.xlu1 %1106  ;;  %v1068_v23 = vsel %vm1065_vm5, %v1056_v24, %v6967_v49 }
  0xc9   : > { %v1118_v53 = vsel %vm1114_vm4, %v1105_v38, %v6972_v52  ;;  %v1140_v54 = vmul.f32 %v6957_v44, %v1115_v50  ;;  %v1141_v55 = vmul.f32 %v6960_v46, %v1116_v51  ;;  %v1093_v29 = vmul.f32 %v6982_v12, %v1068_v23 }
  0xca   : > { %v1143_v56 = vmul.f32 %v6965_v48, %v1118_v53  ;;  %v7012_v51 = vperm.slane %v6825_v16, 2  ;;  %v7018_v53 = vperm.slane %v6830_v17, 2 }
  0xcb   : > { %v1314_v57 = vpack.c.bf16 %v1140_v54, %v6697_v2  ;;  %v1315_v60 = vpack.c.bf16 %v1141_v55, %v6709_v4  ;;  %v6993_v2 = vperm.slane %v6820_v15, 2  ;;  %v6996_v4 = vperm.slane %v6815_v14, 3 }
  0xcc   : > { %v1317_v26 = vpack.c.bf16 %v1143_v56, %v6706_v3  ;;  %9893 = vst [vmem:[#allocation20_spill] sm:$0xff] %v7012_v51  ;;  %v7021_v54 = vperm.slane %v6830_v17, 3 }
  0xcd   : > { %959 = vrot.lane.b32.xlu0 %v6691_v0, %s9886_s10  ;;  %1377 = vmatpush.bf16.msra.mxu0 %v1314_v57  ;;  %9891 = vst [vmem:[#allocation18_spill] sm:$0xff] %v6993_v2 }
  0xce   : > { %1391 = vmatpush.bf16.msra.mxu1 %v1315_v60  ;;  %1419 = vmatpush.bf16.msra.mxu3 %v1317_v26  ;;  %9892 = vst [vmem:[#allocation19_spill] sm:$0xff] %v6996_v4 }
  0xcf   : > { %v1006_v28 = vpop.permute.xlu0 %1005  ;;  %v904_v37 = vpop.permute.xlu2 %903 }
  0xd0   : > { %v1017_v3 = vsel %vm1015_vm6, %v6903_v58, %v1006_v28  ;;  %v1018_v30 = vsel %vm1015_vm6, %v1006_v28, %v6947_v36  ;;  %v1054_v31 = vpop.permute.xlu1 %1053 }
  0xd1   : > { %v1067_v32 = vsel %vm1065_vm5, %v1054_v31, %v1056_v24  ;;  %v1042_v33 = vmul.f32 %v6990_v27, %v1017_v3  ;;  %v1043_v34 = vmul.f32 %v6993_v2, %v1018_v30  ;;  %v7015_v24 = vperm.slane %v6825_v16, 3 }
  0xd2   : > { %v1092_v38 = vmul.f32 %v6996_v4, %v1067_v32 }
  0xd3   : > { %v1309_v39 = vpack.c.bf16 %v1093_v29, %v1043_v34  ;;  %9894 = vst [vmem:[#allocation21_spill] sm:$0xff] %v7015_v24 }
  0xd4   : > { %v1308_v40 = vpack.c.bf16 %v1092_v38, %v1042_v33 }
  0xd5   : > { %1420 = vmatpush.bf16.msra.mxu3 %v1309_v39 }
  0xd6   : > { %1406 = vmatpush.bf16.msra.mxu2 %v1308_v40 }
  0xd7   : > { %v7007_v43 = vpop.permute.xlu0 %998  ;;  %v7009_v50 = vpop.permute.xlu2 %955 }
  0xd8   : > { %v1002_v1 = vpop.permute.xlu1 %1001 }
  0xd9   : > { %v1016_v55 = vsel %vm1015_vm6, %v1002_v1, %v6903_v58  ;;  %v1031_v56 = vsel %vm1015_vm6, %v7007_v43, %v1002_v1  ;;  %v7046_v1 = vperm.slane %v6830_v17, 0 }
  0xda   : > { %v1040_v28 = vmul.f32 %v7012_v51, %v1031_v56  ;;  %v1041_v3 = vmul.f32 %v7018_v53, %v1016_v55  ;;  %v7050_v56 = vperm.slane %v6815_v14, 0 }
  0xdc   : > { %9896 = vst [vmem:[#allocation23_spill] sm:$0xff] %v7050_v56 }
  0xdf   : > { %v7027_v57 = vpop.permute.xlu0 %1048  ;;  %v902_v33 = vpop.permute.xlu2 %901 }
  0xe0   : > { %v1052_v60 = vpop.permute.xlu1 %1051  ;;  %v916_v55 = vsel %vm915_vm7, %v902_v33, %v904_v37 }
  0xe1   : > { %v1066_v23 = vsel %vm1065_vm5, %v1052_v60, %v1054_v31  ;;  %v1081_v26 = vsel %vm1065_vm5, %v7027_v57, %v1052_v60  ;;  %v7039_v31 = vld [vmem:[%s9876_s11 + $0x30] sm:$0xff]  ;;  %v7053_v60 = vperm.slane %v6830_v17, 1 }
  0xe2   : > { %v1090_v29 = vmul.f32 %v7015_v24, %v1081_v26  ;;  %v1091_v30 = vmul.f32 %v7021_v54, %v1066_v23  ;;  %v7042_v39 = vperm.slane %v7039_v31, 7  ;;  %v7056_v23 = vperm.slane %v6815_v14, 1 }
  0xe4   : > { %v1306_v58 = vpack.c.bf16 %v1090_v29, %v1040_v28  ;;  %v1307_v32 = vpack.c.bf16 %v1091_v30, %v1041_v3  ;;  %9895 = vst [vmem:[#allocation22_spill] sm:$0xff] %v7042_v39 }
  0xe5   : > { %9897 = vst [vmem:[#allocation24_spill] sm:$0xff] %v7056_v23 }
  0xe6   : > { %1378 = vmatpush.bf16.msra.mxu0 %v1306_v58  ;;  %1392 = vmatpush.bf16.msra.mxu1 %v1307_v32  ;;  %v941_v58 = vmul.f32 %v7046_v1, %v916_v55 }
  0xe7   : > { %v1261_v34 = vpop.permute.xlu0 %1260  ;;  %v952_v29 = vpop.permute.xlu2 %951 }
  0xe8   : > { %v1263_v38 = vpop.permute.xlu1 %1262 }
  0xe9   : > { %v1271_v40 = vsel %vm1264_vm0, %v1261_v34, %v1263_v38 }
  0xea   : > { %v1296_v26 = vmul.f32 %v7042_v39, %v1271_v40  ;;  %v7070_v40 = vld [vmem:[%s9876_s11 + $0x28] sm:$0xff] }
  0xeb   : > { %v7073_v55 = vperm.slane %v7070_v40, 7 }
  0xec   : > { %v1336_v48 = vpack.c.bf16 %v1296_v26, %v1296_v26 }
  0xed   : > { %9898 = vst [vmem:[#allocation25_spill] sm:$0xff] %v7073_v55 }
  0xef   : > { %v906_v28 = vpop.permute.xlu0 %905 }
  0xf0   : > { %v917_v3 = vsel %vm915_vm7, %v904_v37, %v906_v28  ;;  %v954_v30 = vpop.permute.xlu1 %953 }
  0xf1   : > { %v966_v32 = vsel %vm965_vm8, %v952_v29, %v954_v30  ;;  %v967_v2 = vsel %vm965_vm8, %v954_v30, %v7009_v50  ;;  %v942_v17 = vmul.f32 %v7050_v56, %v917_v3  ;;  %v1367_v30 = vsel %vm1347_vm2, %v1336_v48, 0 }
  0xf2   : > { %v991_v12 = vmul.f32 %v7053_v60, %v966_v32  ;;  %v992_v14 = vmul.f32 %v7056_v23, %v967_v2  ;;  %v7079_v2 = vld [vmem:[%s9876_s11 + $0x20] sm:$0xff]  ;;  %v7131_v56 = vperm.slane %v6820_v15, 1 }
  0xf3   : > { %v7178_v51 = vperm.slane %v7079_v2, 5 }
  0xf4   : > { %v1299_v37 = vpack.c.bf16 %v991_v12, %v941_v58  ;;  %v1300_v39 = vpack.c.bf16 %v992_v14, %v942_v17  ;;  %v1163_v58 = vpop.permute.xlu2 %1162  ;;  %v7086_v17 = vperm.slane %v7079_v2, 7  ;;  %9905 = vst [vmem:[#allocation31_spill] sm:$0xff] %v7131_v56 }
  0xf5   : > { %9911 = vst [vmem:[#allocation37_spill] sm:$0xff] %v7178_v51 }
  0xf6   : > { %1393 = vmatpush.bf16.msra.mxu1 %v1299_v37  ;;  %1407 = vmatpush.bf16.msra.mxu2 %v1300_v39  ;;  %9899 = vst [vmem:[#allocation26_spill] sm:$0xff] %v7086_v17  ;;  %v7092_v37 = vperm.slane %v6825_v16, 0 }
  0xf7   : > { %v1259_v3 = vpop.permute.xlu0 %1258 }
  0xf8   : > { %v1270_v26 = vsel %vm1264_vm0, %v1259_v3, %v1261_v34  ;;  %v7082_v32 = vpop.permute.xlu1 %891  ;;  %v1269_v48 = vsel %vm1264_vm0, %v6783_v7, %v1259_v3  ;;  %9900 = vst [vmem:[#allocation27_spill] sm:$0xff] %v7092_v37  ;;  %v7095_v34 = vperm.slane %v6825_v16, 1 }
  0xf9   : > { %v1295_v12 = vmul.f32 %v7073_v55, %v1270_v26  ;;  %v7101_v26 = vld [vmem:[%s9876_s11 + $0x38] sm:$0xff]  ;;  %v931_v7 = vsel %vm915_vm7, %v7082_v32, %v902_v33  ;;  %s9935_s11 = sld [smem:[#allocation93_spill]] }
  0xfa   : > { %1459 = vmatpush.bf16.msrb.mxu2 %v1367_v30  ;;  %9901 = vst [vmem:[#allocation28_spill] sm:$0xff] %v7095_v34  ;;  %v1294_v30 = vmul.f32 %v7086_v17, %v1269_v48  ;;  %v7112_v16 = vperm.slane %v7101_v26, 7  ;;  %v7117_v48 = vld [vmem:[%s9903_s29] sm:$0xff]  ;;  %v940_v33 = vmul.f32 %v7092_v37, %v931_v7  ;;  %s9940_s29 = smov 97  }
  0xfb   : > { %v1335_v39 = vpack.c.bf16 %v1295_v12, %v1295_v12  ;;  %5478 = vmatmul.msk.bf16.vlgmr.msra.gmra.mxu2 %vm1343_vm9, %v7117_v48  ;;  %5477 = vmatmul.msk.bf16.vlgmr.msra.gmra.mxu1 %vm1343_vm9, %v7117_v48 }
  0xfc   : > { %9902 = vst [vmem:[#allocation29_spill] sm:$0xff] %v7112_v16  ;;  %v1334_v17 = vpack.c.bf16 %v1294_v30, %v1294_v30 }
  0xfd   : > { %v1364_v14 = vsel %vm1347_vm2, %v1335_v39, 0 }
  0xfe   : > { %1445 = vmatpush.bf16.msrb.mxu1 %v1364_v14  ;;  %v1281_v14 = vsel %vm1264_vm0, %v1263_v38, %v6810_v13  ;;  %v1361_v30 = vsel %vm1347_vm2, %v1334_v17, 0 }
  0xff   : > { %v7105_v3 = vpop.permute.xlu0 %907  ;;  %v1297_v13 = vmul.f32 %v7112_v16, %v1281_v14  ;;  %v7148_v14 = vperm.slane %v7039_v31, 5 }
 0x100   : > { %v7107_v12 = vpop.permute.xlu1 %948  ;;  %v918_v38 = vsel %vm915_vm7, %v906_v28, %v7105_v3 }
 0x101   : > { %v981_v39 = vsel %vm965_vm8, %v7107_v12, %v952_v29  ;;  %v1159_v29 = vpop.permute.xlu2 %1158  ;;  %v1337_v37 = vpack.c.bf16 %v1297_v13, %v1297_v13  ;;  %9906 = vst [vmem:[#allocation32_spill] sm:$0xff] %v7148_v14  ;;  %v7157_v13 = vperm.slane %v7101_v26, 6 }
 0x102   : > { %v990_v55 = vmul.f32 %v7095_v34, %v981_v39 }
 0x103   : > { %9909 = vst [vmem:[#allocation35_spill] sm:$0xff] %v7157_v13 }
 0x104   : > { %v1298_v42 = vpack.c.bf16 %v990_v55, %v940_v33  ;;  %v943_v33 = vmul.f32 %v7128_v35, %v918_v38  ;;  %v7154_v38 = vperm.slane %v7101_v26, 5 }
 0x106   : > { %1379 = vmatpush.bf16.msra.mxu0 %v1298_v42  ;;  %v1370_v42 = vsel %vm1347_vm2, %v1337_v37, 0  ;;  %9908 = vst [vmem:[#allocation34_spill] sm:$0xff] %v7154_v38 }
 0x107   : > { %v7137_v7 = vpop.permute.xlu0 %957 }
 0x108   : > { %v968_v55 = vsel %vm965_vm8, %v7009_v50, %v7137_v7  ;;  %v1161_v39 = vpop.permute.xlu1 %1160  ;;  %v7151_v50 = vperm.slane %v7039_v31, 6 }
 0x109   : > { %v993_v15 = vmul.f32 %v7131_v56, %v968_v55  ;;  %5476 = vmatmul.msk.bf16.vlgmr.msra.gmra.mxu0 %vm1343_vm9, %v7117_v48  ;;  %v1113_v17 = vpop.permute.xlu2 %1112  ;;  %v1171_v55 = vsel %vm1164_vm3, %v1161_v39, %v1163_v58 }
 0x10a   : > { %1431 = vmatpush.bf16.msrb.mxu0 %v1361_v30  ;;  %9907 = vst [vmem:[#allocation33_spill] sm:$0xff] %v7151_v50  ;;  %v1181_v30 = vsel %vm1164_vm3, %v1163_v58, %v6905_v59  ;;  %v1196_v59 = vmul.f32 %v7148_v14, %v1171_v55  ;;  %v7186_v55 = vperm.slane %v7070_v40, 5 }
 0x10b   : > { %v1301_v28 = vpack.c.bf16 %v993_v15, %v943_v33  ;;  %v7163_v15 = vperm.slane %v7101_v26, 4  ;;  %v1197_v35 = vmul.f32 %v7154_v38, %v1181_v30  ;;  %v7189_v30 = vperm.slane %v7070_v40, 6 }
 0x10c   : > { %9913 = vst [vmem:[#allocation39_spill] sm:$0xff] %v7186_v55 }
 0x10d   : > { %1421 = vmatpush.bf16.msra.mxu3 %v1301_v28  ;;  %9910 = vst [vmem:[#allocation36_spill] sm:$0xff] %v7163_v15  ;;  %v1131_v28 = vsel %vm1114_vm4, %v1113_v17, %v6886_v47  ;;  %v1169_v47 = vsel %vm1164_vm3, %v6808_v11, %v1159_v29 }
 0x10e   : > { %v1147_v27 = vmul.f32 %v7163_v15, %v1131_v28  ;;  %9914 = vst [vmem:[#allocation40_spill] sm:$0xff] %v7189_v30 }
 0x10f   : > { %v1211_v37 = vpop.permute.xlu0 %1210 }
 0x110   : > { %v1213_v33 = vpop.permute.xlu1 %1212  ;;  %5479 = vmatmul.msk.bf16.vlgmr.msra.gmra.mxu3 %vm1343_vm9, %v7117_v48 }
 0x111   : > { %1473 = vmatpush.bf16.msrb.mxu3 %v1370_v42  ;;  %v1221_v42 = vsel %vm1214_vm1, %v1211_v37, %v1213_v33  ;;  %v1231_v16 = vsel %vm1214_vm1, %v1213_v33, %v6929_v25  ;;  %v7183_v25 = vperm.slane %v7079_v2, 6  ;;  %v1014_v38 = vpop.permute.xlu2 %1013 }
 0x112   : > { %v1246_v58 = vmul.f32 %v7151_v50, %v1221_v42  ;;  %v1247_v56 = vmul.f32 %v7157_v13, %v1231_v16  ;;  %v1170_v16 = vsel %vm1164_vm3, %v1159_v29, %v1161_v39  ;;  %v1321_v42 = vpack.c.bf16 %v1147_v27, %v6754_v5 }
 0x113   : > { %9912 = vst [vmem:[#allocation38_spill] sm:$0xff] %v7183_v25  ;;  %v7207_v5 = vperm.slane %v7079_v2, 4  ;;  %v7210_v27 = vperm.slane %v7070_v40, 4 }
 0x114   : > { %v1328_v34 = vpack.c.bf16 %v1246_v58, %v1196_v59  ;;  %v1329_v23 = vpack.c.bf16 %v1247_v56, %v1197_v35  ;;  %v7193_v35 = vperm.slane %v7039_v31, 4  ;;  %v1194_v59 = vmul.f32 %v7178_v51, %v1169_v47 }
 0x115   : > { %9916 = vst [vmem:[#allocation42_spill] sm:$0xff] %v7207_v5 }
 0x116   : > { %1460 = vmatpush.bf16.msrb.mxu2 %v1328_v34  ;;  %1474 = vmatpush.bf16.msrb.mxu3 %v1329_v23  ;;  %9915 = vst [vmem:[#allocation41_spill] sm:$0xff] %v7193_v35  ;;  %v1195_v23 = vmul.f32 %v7186_v55, %v1170_v16 }
 0x117   : > { %v1209_v56 = vpop.permute.xlu0 %1208  ;;  %9917 = vst [vmem:[#allocation43_spill] sm:$0xff] %v7210_v27 }
 0x118   : > { %v1219_v11 = vsel %vm1214_vm1, %v6850_v22, %v1209_v56  ;;  %v1220_v33 = vsel %vm1214_vm1, %v1209_v56, %v1211_v37  ;;  %v1111_v28 = vpop.permute.xlu1 %1110 }
 0x119   : > { %v1121_v58 = vsel %vm1114_vm4, %v1111_v28, %v1113_v17  ;;  %v1244_v29 = vmul.f32 %v7183_v25, %v1219_v11  ;;  %v1245_v34 = vmul.f32 %v7189_v30, %v1220_v33 }
 0x11a   : > { %1475 = vmatpush.bf16.msrb.mxu3 %v1321_v42  ;;  %v1146_v39 = vmul.f32 %v7193_v35, %v1121_v58  ;;  %v1010_v42 = vpop.permute.xlu2 %1009  ;;  %v7223_v58 = vperm.slane %v7039_v31, 3 }
 0x11b   : > { %v1326_v15 = vpack.c.bf16 %v1244_v29, %v1194_v59  ;;  %v1327_v22 = vpack.c.bf16 %v1245_v34, %v1195_v23  ;;  %v7220_v59 = vperm.slane %v7039_v31, 2 }
 0x11c   : > { %v1320_v37 = vpack.c.bf16 %v1146_v39, %v6769_v6  ;;  %9919 = vst [vmem:[#allocation45_spill] sm:$0xff] %v7223_v58 }
 0x11d   : > { %1432 = vmatpush.bf16.msrb.mxu0 %v1326_v15  ;;  %1446 = vmatpush.bf16.msrb.mxu1 %v1327_v22  ;;  %9918 = vst [vmem:[#allocation44_spill] sm:$0xff] %v7220_v59 }
 0x11e   : > { %1461 = vmatpush.bf16.msrb.mxu2 %v1320_v37 }
 0x11f   : > { %v1109_v17 = vpop.permute.xlu0 %1108 }
 0x120   : > { %v1119_v47 = vsel %vm1114_vm4, %v6972_v52, %v1109_v17  ;;  %v1120_v16 = vsel %vm1114_vm4, %v1109_v17, %v1111_v28  ;;  %v1012_v56 = vpop.permute.xlu1 %1011  ;;  %v7226_v52 = vperm.slane %v7101_v26, 2  ;;  %v7229_v28 = vperm.slane %v7101_v26, 3 }
 0x121   : > { %v1144_v11 = vmul.f32 %v7207_v5, %v1119_v47  ;;  %v1145_v6 = vmul.f32 %v7210_v27, %v1120_v16 }
 0x122   : > { %9920 = vst [vmem:[#allocation46_spill] sm:$0xff] %v7226_v52 }
 0x123   : > { %v1318_v15 = vpack.c.bf16 %v1144_v11, %v6691_v0  ;;  %v1319_v33 = vpack.c.bf16 %v1145_v6, %v6786_v8  ;;  %9921 = vst [vmem:[#allocation47_spill] sm:$0xff] %v7229_v28  ;;  %v1022_v0 = vsel %vm1015_vm6, %v1014_v38, %v7007_v43  ;;  %v1021_v8 = vsel %vm1015_vm6, %v1012_v56, %v1014_v38 }
 0x124   : > { %v1046_v22 = vmul.f32 %v7220_v59, %v1021_v8  ;;  %v1047_v17 = vmul.f32 %v7226_v52, %v1022_v0  ;;  %v7242_v43 = vperm.slane %v7079_v2, 2  ;;  %v7245_v38 = vperm.slane %v7079_v2, 3  ;;  %v914_v8 = vpop.permute.xlu2 %913 }
 0x125   : > { %1433 = vmatpush.bf16.msrb.mxu0 %v1318_v15  ;;  %1447 = vmatpush.bf16.msrb.mxu1 %v1319_v33  ;;  %v7248_v6 = vperm.slane %v7070_v40, 2  ;;  %v1019_v15 = vsel %vm1015_vm6, %v6947_v36, %v1010_v42  ;;  %v1020_v33 = vsel %vm1015_vm6, %v1010_v42, %v1012_v56  ;;  %v7264_v42 = vperm.slane %v7039_v31, 0 }
 0x126   : > { %9922 = vst [vmem:[#allocation48_spill] sm:$0xff] %v7242_v43 }
 0x127   : > { %v1062_v29 = vpop.permute.xlu0 %1061  ;;  %9923 = vst [vmem:[#allocation49_spill] sm:$0xff] %v7245_v38 }
 0x128   : > { %v1064_v23 = vpop.permute.xlu1 %1063  ;;  %9924 = vst [vmem:[#allocation50_spill] sm:$0xff] %v7248_v6 }
 0x129   : > { %v1071_v34 = vsel %vm1065_vm5, %v1062_v29, %v1064_v23  ;;  %v1072_v39 = vsel %vm1065_vm5, %v1064_v23, %v7027_v57  ;;  %v7251_v57 = vperm.slane %v7070_v40, 3  ;;  %9926 = vst [vmem:[#allocation52_spill] sm:$0xff] %v7264_v42 }
 0x12a   : > { %v1096_v37 = vmul.f32 %v7223_v58, %v1071_v34  ;;  %v1097_v47 = vmul.f32 %v7229_v28, %v1072_v39 }
 0x12b   : > { %9925 = vst [vmem:[#allocation51_spill] sm:$0xff] %v7251_v57 }
 0x12c   : > { %v1312_v16 = vpack.c.bf16 %v1096_v37, %v1046_v22  ;;  %v1313_v11 = vpack.c.bf16 %v1097_v47, %v1047_v17  ;;  %v1044_v22 = vmul.f32 %v7242_v43, %v1019_v15  ;;  %v1045_v17 = vmul.f32 %v7248_v6, %v1020_v33 }
 0x12e   : > { %1462 = vmatpush.bf16.msrb.mxu2 %v1312_v16  ;;  %1476 = vmatpush.bf16.msrb.mxu3 %v1313_v11  ;;  %v7273_v16 = vperm.slane %v7101_v26, 1  ;;  %v922_v11 = vsel %vm915_vm7, %v914_v8, %v7082_v32 }
 0x12f   : > { %v1060_v0 = vpop.permute.xlu0 %1059 }
 0x130   : > { %v1069_v23 = vsel %vm1065_vm5, %v6967_v49, %v1060_v0  ;;  %v1070_v34 = vsel %vm1065_vm5, %v1060_v0, %v1062_v29  ;;  %v912_v39 = vpop.permute.xlu1 %911  ;;  %v7267_v49 = vperm.slane %v7039_v31, 1  ;;  %v7270_v29 = vperm.slane %v7101_v26, 0  ;;  %9929 = vst [vmem:[#allocation55_spill] sm:$0xff] %v7273_v16  ;;  %v910_v31 = vpop.permute.xlu2 %909 }
 0x131   : > { %v1094_v37 = vmul.f32 %v7245_v38, %v1069_v23  ;;  %v1095_v36 = vmul.f32 %v7251_v57, %v1070_v34  ;;  %v921_v15 = vsel %vm915_vm7, %v912_v39, %v914_v8  ;;  %v7286_v8 = vperm.slane %v7079_v2, 0 }
 0x132   : > { %9927 = vst [vmem:[#allocation53_spill] sm:$0xff] %v7267_v49  ;;  %v947_v26 = vmul.f32 %v7270_v29, %v922_v11  ;;  %v920_v11 = vsel %vm915_vm7, %v910_v31, %v912_v39 }
 0x133   : > { %v1310_v47 = vpack.c.bf16 %v1094_v37, %v1044_v22  ;;  %v1311_v56 = vpack.c.bf16 %v1095_v36, %v1045_v17  ;;  %9928 = vst [vmem:[#allocation54_spill] sm:$0xff] %v7270_v29  ;;  %v946_v22 = vmul.f32 %v7264_v42, %v921_v15  ;;  %v7297_v15 = vperm.slane %v7070_v40, 1 }
 0x134   : > { %9930 = vst [vmem:[#allocation56_spill] sm:$0xff] %v7286_v8 }
 0x135   : > { %1434 = vmatpush.bf16.msrb.mxu0 %v1310_v47  ;;  %1448 = vmatpush.bf16.msrb.mxu1 %v1311_v56  ;;  %v919_v47 = vsel %vm915_vm7, %v7105_v3, %v910_v31  ;;  %v7291_v56 = vperm.slane %v7079_v2, 1  ;;  %9933 = vst [vmem:[#allocation59_spill] sm:$0xff] %v7297_v15 }
 0x136   : > { %v944_v3 = vmul.f32 %v7286_v8, %v919_v47 }
 0x137   : > { %v962_v33 = vpop.permute.xlu0 %961  ;;  %9931 = vst [vmem:[#allocation57_spill] sm:$0xff] %v7291_v56 }
 0x138   : > { %v964_v0 = vpop.permute.xlu1 %963 }
 0x139   : > { %v971_v23 = vsel %vm965_vm8, %v962_v33, %v964_v0  ;;  %v972_v34 = vsel %vm965_vm8, %v964_v0, %v7107_v12  ;;  %v7294_v12 = vperm.slane %v7070_v40, 0 }
 0x13a   : > { %v996_v37 = vmul.f32 %v7267_v49, %v971_v23  ;;  %v997_v17 = vmul.f32 %v7273_v16, %v972_v34 }
 0x13b   : > { %9932 = vst [vmem:[#allocation58_spill] sm:$0xff] %v7294_v12  ;;  %v945_v2 = vmul.f32 %v7294_v12, %v920_v11 }
 0x13c   : > { %v1304_v36 = vpack.c.bf16 %v996_v37, %v946_v22  ;;  %v1305_v32 = vpack.c.bf16 %v997_v17, %v947_v26 }
 0x13e   : > { %1463 = vmatpush.bf16.msrb.mxu2 %v1304_v36  ;;  %1477 = vmatpush.bf16.msrb.mxu3 %v1305_v32 }
 0x13f   : > { %v960_v0 = vpop.permute.xlu0 %959 }
 0x140   : > { %v969_v23 = vsel %vm965_vm8, %v7137_v7, %v960_v0  ;;  %v970_v34 = vsel %vm965_vm8, %v960_v0, %v962_v33 }
 0x141   : > { %5482 = vmatmul.msk.bf16.vlgmr.msrb.gmra.mxu2 %vm1343_vm9, %v7117_v48  ;;  %5483 = vmatmul.msk.bf16.vlgmr.msrb.gmra.mxu3 %vm1343_vm9, %v7117_v48  ;;  %v994_v40 = vmul.f32 %v7291_v56, %v969_v23  ;;  %v995_v39 = vmul.f32 %v7297_v15, %v970_v34 }
 0x143   : > { %v1302_v31 = vpack.c.bf16 %v994_v40, %v944_v3  ;;  %v1303_v22 = vpack.c.bf16 %v995_v39, %v945_v2 }
 0x145   : > { %1435 = vmatpush.bf16.msrb.mxu0 %v1302_v31  ;;  %1449 = vmatpush.bf16.msrb.mxu1 %v1303_v22 }
 0x148   : > { %5480 = vmatmul.msk.bf16.vlgmr.msrb.gmra.mxu0 %vm1343_vm9, %v7117_v48  ;;  %5481 = vmatmul.msk.bf16.vlgmr.msrb.gmra.mxu1 %vm1343_vm9, %v7117_v48 }
 0x178   : > { %v1395_v7 = vpop.f32.mrf.mxu1 }
 0x179   : > { %v7317_v11 = vmax.f32 %v1395_v7, 0.0 }
 0x17b   : > { %v1557_v40 = vmul.f32 %v7317_v11, %v7317_v11 }
 0x17e   : > { %v1409_v37 = vpop.f32.mrf.mxu2 }
 0x17f   : > { %v7323_v34 = vmax.f32 %v1409_v37, 0.0 }
 0x180   : > { %v1397_v26 = vpop.f32.mrf.mxu1 }
 0x181   : > { %v7321_v23 = vmax.f32 %v1397_v26, 0.0  ;;  %v1558_v31 = vmul.f32 %v7323_v34, %v7323_v34 }
 0x183   : > { %v1565_v39 = vmul.f32 %v7321_v23, %v7321_v23  ;;  %v1507_v26 = vadd.f32 %v7321_v23, %v7317_v11 }
 0x185   : > { %v1508_v59 = vrot.slane %v1507_v26, 4 }
 0x186   : > { %v1381_v33 = vpop.f32.mrf.mxu0  ;;  %v1411_v32 = vpop.f32.mrf.mxu2 }
 0x187   : > { %v7315_v47 = vmax.f32 %v1381_v33, 0.0  ;;  %v7325_v3 = vmax.f32 %v1411_v32, 0.0  ;;  %v1509_v35 = vadd.f32 %v1508_v59, %v1507_v26 }
 0x189   : > { %v1556_v48 = vmul.f32 %v7315_v47, %v7315_v47  ;;  %v1566_v22 = vmul.f32 %v7325_v3, %v7325_v3  ;;  %v1514_v29 = vadd.f32 %v7325_v3, %v7323_v34  ;;  %v1510_v56 = vrot.slane %v1509_v35, 2 }
 0x18b   : > { %v1586_v42 = vadd.f32 %v1566_v22, %v1558_v31 }
 0x18e   : > { %v1383_v36 = vpop.f32.mrf.mxu0 }
 0x18f   : > { %v7319_v0 = vmax.f32 %v1383_v36, 0.0  ;;  %v1579_v36 = vadd.f32 %v1565_v39, %v1557_v40 }
 0x191   : > { %v1564_v2 = vmul.f32 %v7319_v0, %v7319_v0  ;;  %v1500_v33 = vadd.f32 %v7319_v0, %v7315_v47  ;;  %v1580_v28 = vrot.slane %v1579_v36, 4 }
 0x193   : > { %v1423_v17 = vpop.f32.mrf.mxu3  ;;  %v1572_v37 = vadd.f32 %v1564_v2, %v1556_v48  ;;  %v1501_v49 = vrot.slane %v1500_v33, 4  ;;  %v1515_v48 = vrot.slane %v1514_v29, 4  ;;  %v1587_v2 = vrot.slane %v1586_v42, 4 }
 0x194   : > { %v7343_v32 = vmax.f32 %v1423_v17, 0.0  ;;  %v1581_v13 = vadd.f32 %v1580_v28, %v1579_v36 }
 0x195   : > { %v1573_v52 = vrot.slane %v1572_v37, 4  ;;  %v1502_v17 = vadd.f32 %v1501_v49, %v1500_v33  ;;  %v1516_v14 = vadd.f32 %v1515_v48, %v1514_v29  ;;  %v1588_v31 = vadd.f32 %v1587_v2, %v1586_v42 }
 0x196   : > { %v1559_v58 = vmul.f32 %v7343_v32, %v7343_v32  ;;  %v1582_v43 = vrot.slane %v1581_v13, 2  ;;  %v1511_v49 = vadd.f32 %v1510_v56, %v1509_v35 }
 0x197   : > { %v1574_v39 = vadd.f32 %v1573_v52, %v1572_v37  ;;  %v1503_v50 = vrot.slane %v1502_v17, 2  ;;  %v1517_v38 = vrot.slane %v1516_v14, 2  ;;  %v1589_v12 = vrot.slane %v1588_v31, 2 }
 0x198   : > { %v1583_v52 = vadd.f32 %v1582_v43, %v1581_v13  ;;  %v1512_v26 = vrot.slane %v1511_v49, 1 }
 0x199   : > { %v1575_v8 = vrot.slane %v1574_v39, 2  ;;  %v1504_v24 = vadd.f32 %v1503_v50, %v1502_v17  ;;  %v1518_v59 = vadd.f32 %v1517_v38, %v1516_v14  ;;  %v1590_v28 = vadd.f32 %v1589_v12, %v1588_v31 }
 0x19a   : > { %v1513_v41 = vadd.f32 %v1512_v26, %v1511_v49 }
 0x19b   : > { %v1425_v7 = vpop.f32.mrf.mxu3  ;;  %v1576_v6 = vadd.f32 %v1575_v8, %v1574_v39  ;;  %v1505_v33 = vrot.slane %v1504_v24, 1  ;;  %v1519_v36 = vrot.slane %v1518_v59, 1  ;;  %v1591_v48 = vrot.slane %v1590_v28, 1 }
 0x19c   : > { %v7347_v16 = vmax.f32 %v1425_v7, 0.0 }
 0x19d   : > { %v1577_v37 = vrot.slane %v1576_v6, 1  ;;  %v1506_v4 = vadd.f32 %v1505_v33, %v1504_v24  ;;  %v1520_v50 = vadd.f32 %v1519_v36, %v1518_v59  ;;  %v1592_v35 = vadd.f32 %v1591_v48, %v1590_v28 }
 0x19e   : > { %v1567_v40 = vmul.f32 %v7347_v16, %v7347_v16  ;;  %v1521_v22 = vadd.f32 %v7347_v16, %v7343_v32 }
 0x19f   : > { %v1578_v9 = vadd.f32 %v1577_v37, %v1576_v6  ;;  %v1631_v24 = vsel %vm1628_vm10, %v1520_v50, %v1592_v35 }
 0x1a0   : > { %v1593_v7 = vadd.f32 %v1567_v40, %v1559_v58  ;;  %v1522_v15 = vrot.slane %v1521_v22, 4  ;;  %v1584_v58 = vrot.slane %v1583_v52, 1  ;;  %v1641_v59 = vsel %vm1637_vm11, %v1631_v24, 0.0 }
 0x1a1   : > { %v1629_v56 = vsel %vm1628_vm10, %v1506_v4, %v1578_v9 }
 0x1a2   : > { %v1594_v5 = vrot.slane %v1593_v7, 4  ;;  %v1523_v29 = vadd.f32 %v1522_v15, %v1521_v22  ;;  %v1585_v20 = vadd.f32 %v1584_v58, %v1583_v52  ;;  %v1638_v31 = vsel %vm1637_vm11, %v1629_v56, 0.0 }
 0x1a4   : > { %v1595_v42 = vadd.f32 %v1594_v5, %v1593_v7  ;;  %v1524_v2 = vrot.slane %v1523_v29, 2  ;;  %v1630_v12 = vsel %vm1628_vm10, %v1513_v41, %v1585_v20 }
 0x1a5   : > { %v1639_v22 = vsel %vm1637_vm11, %v1630_v12, 0.0 }
 0x1a6   : > { %v1596_v40 = vrot.slane %v1595_v42, 2  ;;  %v1525_v13 = vadd.f32 %v1524_v2, %v1523_v29  ;;  %v1640_v52 = vadd.f32 %v1639_v22, %v1638_v31 }
 0x1a8   : > { %v1597_v14 = vadd.f32 %v1596_v40, %v1595_v42  ;;  %v1526_v15 = vrot.slane %v1525_v13, 1 }
 0x1aa   : > { %v1598_v17 = vrot.slane %v1597_v14, 1  ;;  %v1527_v9 = vadd.f32 %v1526_v15, %v1525_v13 }
 0x1ac   : > { %v1599_v4 = vadd.f32 %v1598_v17, %v1597_v14 }
 0x1c4   : > { %v1465_v43 = vpop.f32.mrf.mxu2  ;;  %v1479_v38 = vpop.f32.mrf.mxu3 }
 0x1c5   : > { %v1437_v5 = vpop.f32.mrf.mxu0  ;;  %v1451_v8 = vpop.f32.mrf.mxu1  ;;  %v7358_v6 = vmax.f32 %v1465_v43, 0.0  ;;  %v7360_v39 = vmax.f32 %v1479_v38, 0.0 }
 0x1c6   : > { %v7364_v7 = vmax.f32 %v1437_v5, 0.0  ;;  %v7366_v49 = vmax.f32 %v1451_v8, 0.0 }
 0x1c7   : > { %v1562_v28 = vmul.f32 %v7358_v6, %v7358_v6  ;;  %v1563_v29 = vmul.f32 %v7360_v39, %v7360_v39 }
 0x1c8   : > { %v1560_v58 = vmul.f32 %v7364_v7, %v7364_v7  ;;  %v1561_v36 = vmul.f32 %v7366_v49, %v7366_v49 }
 0x1cc   : > { %v1467_v20 = vpop.f32.mrf.mxu2  ;;  %v1481_v41 = vpop.f32.mrf.mxu3 }
 0x1cd   : > { %v7373_v42 = vmax.f32 %v1467_v20, 0.0  ;;  %v7375_v33 = vmax.f32 %v1481_v41, 0.0  ;;  %v1439_v37 = vpop.f32.mrf.mxu0  ;;  %v1453_v26 = vpop.f32.mrf.mxu1 }
 0x1ce   : > { %v7381_v48 = vmax.f32 %v1439_v37, 0.0  ;;  %v7383_v2 = vmax.f32 %v1453_v26, 0.0 }
 0x1cf   : > { %v1542_v40 = vadd.f32 %v7373_v42, %v7358_v6  ;;  %v1570_v50 = vmul.f32 %v7373_v42, %v7373_v42  ;;  %v1549_v35 = vadd.f32 %v7375_v33, %v7360_v39  ;;  %v1571_v13 = vmul.f32 %v7375_v33, %v7375_v33 }
 0x1d0   : > { %v1528_v14 = vadd.f32 %v7381_v48, %v7364_v7  ;;  %v1568_v43 = vmul.f32 %v7381_v48, %v7381_v48  ;;  %v1535_v38 = vadd.f32 %v7383_v2, %v7366_v49  ;;  %v1569_v5 = vmul.f32 %v7383_v2, %v7383_v2 }
 0x1d1   : > { %v1543_v8 = vrot.slane %v1542_v40, 4  ;;  %v1614_v56 = vadd.f32 %v1570_v50, %v1562_v28  ;;  %v1550_v12 = vrot.slane %v1549_v35, 4  ;;  %v1621_v15 = vadd.f32 %v1571_v13, %v1563_v29 }
 0x1d2   : > { %v1529_v17 = vrot.slane %v1528_v14, 4  ;;  %v1600_v24 = vadd.f32 %v1568_v43, %v1560_v58  ;;  %v1536_v31 = vrot.slane %v1535_v38, 4  ;;  %v1607_v22 = vadd.f32 %v1569_v5, %v1561_v36 }
 0x1d3   : > { %v1544_v20 = vadd.f32 %v1543_v8, %v1542_v40  ;;  %v1615_v41 = vrot.slane %v1614_v56, 4  ;;  %v1551_v37 = vadd.f32 %v1550_v12, %v1549_v35  ;;  %v1622_v26 = vrot.slane %v1621_v15, 4 }
 0x1d4   : > { %v1530_v45 = vadd.f32 %v1529_v17, %v1528_v14  ;;  %v1601_v57 = vrot.slane %v1600_v24, 4  ;;  %v1537_v51 = vadd.f32 %v1536_v31, %v1535_v38  ;;  %v1608_v25 = vrot.slane %v1607_v22, 4 }
 0x1d5   : > { %v1545_v44 = vrot.slane %v1544_v20, 2  ;;  %v1616_v27 = vadd.f32 %v1615_v41, %v1614_v56  ;;  %v1552_v55 = vrot.slane %v1551_v37, 2  ;;  %v1623_v19 = vadd.f32 %v1622_v26, %v1621_v15 }
 0x1d6   : > { %v1531_v30 = vrot.slane %v1530_v45, 2  ;;  %v1602_v28 = vadd.f32 %v1601_v57, %v1600_v24  ;;  %v1538_v50 = vrot.slane %v1537_v51, 2  ;;  %v1609_v29 = vadd.f32 %v1608_v25, %v1607_v22 }
 0x1d7   : > { %v1546_v13 = vadd.f32 %v1545_v44, %v1544_v20  ;;  %v1617_v58 = vrot.slane %v1616_v27, 2  ;;  %v1624_v43 = vrot.slane %v1623_v19, 2  ;;  %v1632_v36 = vsel %vm1628_vm10, %v1527_v9, %v1599_v4 }
 0x1d8   : > { %v1532_v40 = vadd.f32 %v1531_v30, %v1530_v45  ;;  %v1603_v35 = vrot.slane %v1602_v28, 2  ;;  %v1539_v5 = vadd.f32 %v1538_v50, %v1537_v51  ;;  %v1610_v14 = vrot.slane %v1609_v29, 2 }
 0x1d9   : > { %v1553_v8 = vadd.f32 %v1552_v55, %v1551_v37  ;;  %v1618_v38 = vadd.f32 %v1617_v58, %v1616_v27  ;;  %v1625_v12 = vadd.f32 %v1624_v43, %v1623_v19  ;;  %v1642_v57 = vadd.f32 %v1641_v59, %v1640_v52 }
 0x1da   : > { %v1533_v17 = vrot.slane %v1532_v40, 1  ;;  %v1604_v56 = vadd.f32 %v1603_v35, %v1602_v28  ;;  %v1540_v31 = vrot.slane %v1539_v5, 1  ;;  %v1611_v15 = vadd.f32 %v1610_v14, %v1609_v29 }
 0x1db   : > { %v1619_v41 = vrot.slane %v1618_v38, 1  ;;  %v1643_v25 = vsel %vm1637_vm11, %v1632_v36, 0.0  ;;  %v1547_v24 = vrot.slane %v1546_v13, 1  ;;  %v1626_v20 = vrot.slane %v1625_v12, 1 }
 0x1dc   : > { %v1605_v44 = vrot.slane %v1604_v56, 1  ;;  %v1612_v22 = vrot.slane %v1611_v15, 1  ;;  %v1534_v9 = vadd.f32 %v1533_v17, %v1532_v40  ;;  %v1554_v45 = vrot.slane %v1553_v8, 1 }
 0x1dd   : > { %v1541_v51 = vadd.f32 %v1540_v31, %v1539_v5  ;;  %v1620_v55 = vadd.f32 %v1619_v41, %v1618_v38  ;;  %v1644_v27 = vadd.f32 %v1643_v25, %v1642_v57  ;;  %v1548_v19 = vadd.f32 %v1547_v24, %v1546_v13 }
 0x1de   : > { %v1606_v30 = vadd.f32 %v1605_v44, %v1604_v56  ;;  %v1613_v4 = vadd.f32 %v1612_v22, %v1611_v15  ;;  %v1627_v37 = vadd.f32 %v1626_v20, %v1625_v12  ;;  %v1555_v59 = vadd.f32 %v1554_v45, %v1553_v8 }
 0x1df   : > { %v1635_v50 = vsel %vm1628_vm10, %v1548_v19, %v1620_v55  ;;  %v868_v55 = vld [vmem:[%s9934_s3 + $0x50] sm:$0xff] }
 0x1e0   : > { %v1633_v26 = vsel %vm1628_vm10, %v1534_v9, %v1606_v30  ;;  %v1634_v28 = vsel %vm1628_vm10, %v1541_v51, %v1613_v4  ;;  %v1636_v43 = vsel %vm1628_vm10, %v1555_v59, %v1627_v37  ;;  %v1649_v40 = vsel %vm1637_vm11, %v1635_v50, 0.0  ;;  %v884_v37 = vld [vmem:[%s9935_s11 + $0x50] sm:$0xff] }
 0x1e1   : > { %v1645_v52 = vsel %vm1637_vm11, %v1633_v26, 0.0  ;;  %v1647_v58 = vsel %vm1637_vm11, %v1634_v28, 0.0  ;;  %v1651_v13 = vsel %vm1637_vm11, %v1636_v43, 0.0  ;;  %v876_v26 = vld [vmem:[%s9935_s11 + $0x10] sm:$0xff]  ;;  %v875_v28 = vld [vmem:[%s9935_s11 + $0x8] sm:$0xff] }
 0x1e2   : > { %v1646_v29 = vadd.f32 %v1645_v52, %v1644_v27  ;;  %v860_v27 = vld [vmem:[%s9934_s3 + $0x10] sm:$0xff] }
 0x1e4   : > { %v1648_v36 = vadd.f32 %v1647_v58, %v1646_v29 }
 0x1e6   : > { %v1650_v35 = vadd.f32 %v1649_v40, %v1648_v36 }
 0x1e8   : > { %v1652_v5 = vadd.f32 %v1651_v13, %v1650_v35 }
 0x1ea   : > { %1653 = vadd.xlane.f32.xlu1 %v1652_v5 }
 0x25d   : > { %v1654_v14 = vpop.xlane.xlu1 %1653 }
 0x25e   : > { %v1655_v38 = vmul.f32 9.765625e-05, %v1654_v14 }
 0x260   : > { %v1656_v12 = vmul.f32 %v1655_v38, %v1655_v38  ;;  %v7411_v9 = vperm.slane %v1655_v38, 0 }
 0x262   : > { %v1658_v17 = vrot.slane %v1656_v12, 7  ;;  %v1684_v45 = vsub.f32 %v7325_v3, %v7411_v9  ;;  %v1676_v30 = vsub.f32 %v7323_v34, %v7411_v9  ;;  %v1675_v51 = vsub.f32 %v7317_v11, %v7411_v9  ;;  %v859_v3 = vld [vmem:[%s9934_s3 + $0x8] sm:$0xff] }
 0x263   : > { %v1682_v29 = vsub.f32 %v7319_v0, %v7411_v9  ;;  %v1683_v58 = vsub.f32 %v7321_v23, %v7411_v9  ;;  %v1685_v43 = vsub.f32 %v7347_v16, %v7411_v9  ;;  %v1679_v36 = vsub.f32 %v7366_v49, %v7411_v9  ;;  %v866_v0 = vld [vmem:[%s9934_s3 + $0x40] sm:$0xff] }
 0x264   : > { %v1660_v8 = vsub.f32 %v1655_v38, %v1658_v17  ;;  %v1688_v16 = vsub.f32 %v7373_v42, %v7411_v9  ;;  %v1686_v49 = vsub.f32 %v7381_v48, %v7411_v9  ;;  %v1678_v14 = vsub.f32 %v7364_v7, %v7411_v9  ;;  %v867_v38 = vld [vmem:[%s9934_s3 + $0x48] sm:$0xff] }
 0x265   : > { %v1689_v48 = vsub.f32 %v7375_v33, %v7411_v9  ;;  %v882_v33 = vld [vmem:[%s9935_s11 + $0x40] sm:$0xff] }
 0x266   : > { %v1661_v56 = vmax.f32 %v1660_v8, 0.0 }
 0x268   : > { %v1662_v31 = vadd.f32 1e-05, %v1661_v56  ;;  %v1681_v56 = vsub.f32 %v7360_v39, %v7411_v9  ;;  %v1674_v39 = vsub.f32 %v7315_v47, %v7411_v9  ;;  %v874_v47 = vld [vmem:[%s9935_s11] sm:$0xff] }
 0x26a   : > { %6454 = vrsqrt.f32 %v1662_v31  ;;  %vm1669_vm13 = vweird.f32 %v1662_v31 }
 0x270   : > { %v6455_v15 = vpop.eup %6454 }
 0x271   : > { %v1664_v41 = vmul.f32 %v6455_v15, %v1662_v31  ;;  %vm1670_vm12 = vweird.f32 %v6455_v15 }
 0x272   : > { %vm1671_vm14 = vmor %vm1669_vm13, %vm1670_vm12  ;;  %vm4400_vm12 = vcmask 121856   ;;  %vm4351_vm13 = vcmask 138240  }
 0x273   : > { %v1665_v57 = vmul.f32 %v6455_v15, %v1664_v41 }
 0x275   : > { %v1666_v25 = vmul.f32 0.5, %v1665_v57 }
 0x277   : > { %v1667_v44 = vsub.f32 1.5, %v1666_v25  ;;  %v883_v25 = vld [vmem:[%s9935_s11 + $0x48] sm:$0xff] }
 0x279   : > { %v1668_v24 = vmul.f32 %v6455_v15, %v1667_v44 }
 0x27b   : > { %v1672_v22 = vsel %vm1671_vm14, %v6455_v15, %v1668_v24  ;;  %vm4521_vm14 = vcmask 908288  }
 0x27c   : > { %v1691_v20 = vrot.slane %v1672_v22, 1 }
 0x27e   : > { %6251 = vpush %v1691_v20  ;;  %v858_v20 = vld [vmem:[%s9934_s3] sm:$0xff] }
 0x2af   : > { %s6252_s1 = spop %6251 }
 0x2b0   : > { %v7419_v4 = vstv %s6252_s1  ;;  %s9938_s1 = smov 96  }
 0x2b1   : > { %v1705_v19 = vmul.f32 %v7419_v4, %v1684_v45  ;;  %v1697_v34 = vmul.f32 %v7419_v4, %v1676_v30  ;;  %v1696_v11 = vmul.f32 %v7419_v4, %v1675_v51  ;;  %v1703_v5 = vmul.f32 %v7419_v4, %v1682_v29 }
 0x2b2   : > { %v1704_v23 = vmul.f32 %v7419_v4, %v1683_v58  ;;  %v7475_v12 = vmul.f32 %v7419_v4, %v1685_v43  ;;  %v7478_v42 = vmul.f32 %v7419_v4, %v1679_v36  ;;  %v7485_v7 = vmul.f32 %v7419_v4, %v1688_v16  ;;  %v885_v43 = vld [vmem:[%s9935_s11 + $0x58] sm:$0xff] }
 0x2b3   : > { %v1721_v52 = vmul.f32 %v1705_v19, %v868_v55  ;;  %v1713_v59 = vmul.f32 %v1697_v34, %v860_v27  ;;  %v1712_v50 = vmul.f32 %v1696_v11, %v859_v3  ;;  %v7488_v17 = vmul.f32 %v7419_v4, %v1686_v49  ;;  %v871_v27 = vld [vmem:[%s9934_s3 + $0x68] sm:$0xff]  ;;  %v872_v49 = vld [vmem:[%s9934_s3 + $0x70] sm:$0xff] }
 0x2b4   : > { %v7491_v8 = vmul.f32 %v7419_v4, %v1678_v14  ;;  %v1719_v31 = vmul.f32 %v1703_v5, %v866_v0  ;;  %v7496_v15 = vmul.f32 %v7419_v4, %v1689_v48  ;;  %v1720_v41 = vmul.f32 %v1704_v23, %v867_v38  ;;  %v863_v5 = vld [vmem:[%s9934_s3 + $0x28] sm:$0xff] }
 0x2b5   : > { %v7450_v40 = vadd.f32 %v1721_v52, %v884_v37  ;;  %v7452_v35 = vadd.f32 %v1713_v59, %v876_v26  ;;  %v7454_v13 = vadd.f32 %v1712_v50, %v875_v28  ;;  %v7502_v57 = vmul.f32 %v7419_v4, %v1681_v56  ;;  %v864_v37 = vld [vmem:[%s9934_s3 + $0x30] sm:$0xff]  ;;  %v861_v50 = vld [vmem:[%s9934_s3 + $0x18] sm:$0xff]  ;;  %v879_v23 = vld [vmem:[%s9935_s11 + $0x28] sm:$0xff] }
 0x2b6   : > { %v7507_v44 = vadd.f32 %v1719_v31, %v882_v33  ;;  %v7509_v24 = vadd.f32 %v1720_v41, %v883_v25  ;;  %v1695_v22 = vmul.f32 %v7419_v4, %v1674_v39  ;;  %v1687_v51 = vsub.f32 %v7383_v2, %v7411_v9  ;;  %v887_v2 = vld [vmem:[%s9935_s11 + $0x68] sm:$0xff]  ;;  %v886_v33 = vld [vmem:[%s9935_s11 + $0x60] sm:$0xff] }
 0x2b7   : > { %9936 = vst [vmem:[#allocation60_spill] sm:$0xff] %v7450_v40  ;;  %2124 = vrot.lane.b32.xlu1 %v7450_v40, %s9937_s28  ;;  %2272 = vrot.lane.b32.xlu0 %v7452_v35, %s9938_s1  ;;  %v1680_v19 = vsub.f32 %v7358_v6, %v7411_v9  ;;  %v880_v6 = vld [vmem:[%s9935_s11 + $0x30] sm:$0xff]  ;;  %v1677_v28 = vsub.f32 %v7343_v32, %v7411_v9  ;;  %v877_v32 = vld [vmem:[%s9935_s11 + $0x18] sm:$0xff] }
 0x2b8   : > { %2270 = vrot.lane.b32.xlu2 %v7454_v13, %s9938_s1  ;;  %v1711_v45 = vmul.f32 %v1695_v22, %v858_v20  ;;  %v1708_v55 = vmul.f32 %v7419_v4, %v1687_v51  ;;  %v1716_v0 = vmul.f32 %v7478_v42, %v863_v5  ;;  %v1725_v14 = vmul.f32 %v7485_v7, %v872_v49  ;;  %v870_v7 = vld [vmem:[%s9934_s3 + $0x60] sm:$0xff] }
 0x2b9   : > { %v1701_v11 = vmul.f32 %v7419_v4, %v1680_v19  ;;  %v1698_v59 = vmul.f32 %v7419_v4, %v1677_v28  ;;  %v869_v4 = vld [vmem:[%s9934_s3 + $0x58] sm:$0xff]  ;;  %v1723_v56 = vmul.f32 %v7488_v17, %v870_v7  ;;  %v862_v25 = vld [vmem:[%s9934_s3 + $0x20] sm:$0xff] }
 0x2ba   : > { %v7532_v30 = vadd.f32 %v1711_v45, %v874_v47  ;;  %v1724_v3 = vmul.f32 %v1708_v55, %v871_v27  ;;  %v1722_v58 = vmul.f32 %v7475_v12, %v869_v4  ;;  %v7631_v16 = vadd.f32 %v1716_v0, %v879_v23  ;;  %v888_v12 = vld [vmem:[%s9935_s11 + $0x70] sm:$0xff]  ;;  %v878_v45 = vld [vmem:[%s9935_s11 + $0x20] sm:$0xff] }
 0x2bb   : > { %v1717_v26 = vmul.f32 %v1701_v11, %v864_v37  ;;  %v1714_v29 = vmul.f32 %v1698_v59, %v861_v50  ;;  %v7648_v42 = vadd.f32 %v1725_v14, %v888_v12  ;;  %v7673_v41 = vadd.f32 %v1723_v56, %v886_v33 }
 0x2bc   : > { %v7557_v34 = vadd.f32 %v1724_v3, %v887_v2  ;;  %v7616_v36 = vadd.f32 %v1722_v58, %v885_v43  ;;  %v1715_v22 = vmul.f32 %v7491_v8, %v862_v25  ;;  %v2465_v33 = vpack.c.bf16 %v7509_v24, %v7454_v13 }
 0x2bd   : > { %v7574_v52 = vadd.f32 %v1717_v26, %v880_v6  ;;  %v7589_v9 = vadd.f32 %v1714_v29, %v877_v32  ;;  %9942 = vst [vmem:[#allocation61_spill] sm:$0xff] %v7648_v42 }
 0x2be   : > { %9943 = vst [vmem:[#allocation62_spill] sm:$0xff] %v7673_v41  ;;  %v7694_v47 = vadd.f32 %v1715_v22, %v878_v45 }
 0x2bf   : > { %1960 = vrot.lane.b32.xlu1 %v7507_v44, %s9939_s6  ;;  %2288 = vrot.lane.b32.xlu0 %v7450_v40, %s9938_s1 }
 0x2c0   : > { %2286 = vrot.lane.b32.xlu2 %v7509_v24, %s9938_s1  ;;  %9944 = vst [vmem:[#allocation63_spill] sm:$0xff] %v7694_v47 }
 0x2c7   : > { %2190 = vrot.lane.b32.xlu0 %v7452_v35, %s9940_s29  ;;  %1866 = vrot.lane.b32.xlu1 %v7454_v13, %s9886_s10 }
 0x2c8   : > { %2188 = vrot.lane.b32.xlu2 %v7454_v13, %s9940_s29 }
 0x2cf   : > { %2206 = vrot.lane.b32.xlu0 %v7450_v40, %s9940_s29  ;;  %1782 = vrot.lane.b32.xlu1 %v7532_v30, %s9884_s0 }
 0x2d0   : > { %2204 = vrot.lane.b32.xlu2 %v7509_v24, %s9940_s29 }
 0x2d7   : > { %2108 = vrot.lane.b32.xlu0 %v7452_v35, %s9937_s28  ;;  %1798 = vrot.lane.b32.xlu1 %v7509_v24, %s9884_s0 }
 0x2d8   : > { %2106 = vrot.lane.b32.xlu2 %v7454_v13, %s9937_s28 }
 0x2df   : > { %2294 = vrot.lane.b32.xlu1 %v7557_v34, %s9938_s1  ;;  %2028 = vrot.lane.b32.xlu0 %v7532_v30, %s9883_s4 }
 0x2e0   : > { %2122 = vrot.lane.b32.xlu2 %v7509_v24, %s9937_s28 }
 0x2e7   : > { %2198 = vrot.lane.b32.xlu1 %v7574_v52, %s9940_s29  ;;  %2042 = vrot.lane.b32.xlu0 %v7507_v44, %s9883_s4 }
 0x2e8   : > { %2030 = vrot.lane.b32.xlu2 %v7454_v13, %s9883_s4 }
 0x2ef   : > { %2274 = vrot.lane.b32.xlu1 %v7589_v9, %s9938_s1  ;;  %1946 = vrot.lane.b32.xlu0 %v7532_v30, %s9939_s6 }
 0x2f0   : > { %2044 = vrot.lane.b32.xlu2 %v7509_v24, %s9883_s4 }
 0x2f7   : > { %2284 = vrot.lane.b32.xlu1 %v7507_v44, %s9938_s1  ;;  %1962 = vrot.lane.b32.xlu0 %v7509_v24, %s9939_s6 }
 0x2f8   : > { %1948 = vrot.lane.b32.xlu2 %v7454_v13, %s9939_s6 }
 0x2ff   : > { %2130 = vrot.lane.b32.xlu1 %v7557_v34, %s9937_s28  ;;  %1878 = vrot.lane.b32.xlu0 %v7507_v44, %s9886_s10 }
 0x300   : > { %1864 = vrot.lane.b32.xlu2 %v7532_v30, %s9886_s10 }
 0x307   : > { %2208 = vrot.lane.b32.xlu1 %v7616_v36, %s9940_s29  ;;  %1784 = vrot.lane.b32.xlu0 %v7454_v13, %s9884_s0 }
 0x308   : > { %1880 = vrot.lane.b32.xlu2 %v7509_v24, %s9886_s10 }
 0x30f   : > { %2352 = vrot.lane.b32.xlu1 %v7454_v13, %s9941_s2  ;;  %2278 = vrot.lane.b32.xlu0 %v7631_v16, %s9938_s1 }
 0x310   : > { %1796 = vrot.lane.b32.xlu2 %v7507_v44, %s9884_s0 }
 0x312   : > { %v7643_v38 = vpop.permute.xlu2 %2270 }
 0x317   : > { %2370 = vrot.lane.b32.xlu1 %v7450_v40, %s9941_s2  ;;  %2296 = vrot.lane.b32.xlu0 %v7648_v42, %s9938_s1 }
 0x318   : > { %2280 = vrot.lane.b32.xlu2 %v7574_v52, %s9938_s1 }
 0x31a   : > { %v7656_v48 = vpop.permute.xlu2 %2286 }
 0x31f   : > { %2356 = vrot.lane.b32.xlu1 %v7589_v9, %s9941_s2  ;;  %2212 = vrot.lane.b32.xlu0 %v7557_v34, %s9940_s29 }
 0x320   : > { %2196 = vrot.lane.b32.xlu2 %v7631_v16, %s9940_s29 }
 0x322   : > { %v7668_v31 = vpop.permute.xlu2 %2188 }
 0x327   : > { %2374 = vrot.lane.b32.xlu1 %v7673_v41, %s9941_s2  ;;  %2290 = vrot.lane.b32.xlu0 %v7616_v36, %s9938_s1 }
 0x328   : > { %2214 = vrot.lane.b32.xlu2 %v7648_v42, %s9940_s29 }
 0x329   : > { %v7684_v17 = vpop.permute.xlu1 %2124  ;;  %v7686_v39 = vpop.permute.xlu0 %2272 }
 0x32a   : > { %v7689_v20 = vpop.permute.xlu2 %2204  ;;  %v2301_v51 = vsel %vm1214_vm1, %v7643_v38, %v7686_v39 }
 0x32b   : > { %v2335_v2 = vmul.f32 %v2301_v51, %v6923_v10 }
 0x32f   : > { %2276 = vrot.lane.b32.xlu1 %v7694_v47, %s9938_s1  ;;  %2114 = vrot.lane.b32.xlu0 %v7631_v16, %s9937_s28 }
 0x330   : > { %2268 = vrot.lane.b32.xlu2 %v7532_v30, %s9938_s1 }
 0x331   : > { %v7705_v8 = vpop.permute.xlu1 %1960  ;;  %v7707_v55 = vpop.permute.xlu0 %2288 }
 0x332   : > { %9945 = vst [vmem:[#allocation64_spill] sm:$0xff] %v7705_v8  ;;  %v2308_v27 = vsel %vm1214_vm1, %v7656_v48, %v7707_v55  ;;  %v7712_v3 = vpop.permute.xlu2 %2106 }
 0x333   : > { %v2343_v19 = vmul.f32 %v2308_v27, %v6923_v10 }
 0x335   : > { %v2489_v11 = vpack.c.bf16 %v2343_v19, %v2335_v2 }
 0x337   : > { %2540 = vmatpush.bf16.msra.mxu2 %v2489_v11  ;;  %2038 = vrot.lane.b32.xlu1 %v7631_v16, %s9883_s4 }
 0x338   : > { %2116 = vrot.lane.b32.xlu2 %v7574_v52, %s9937_s28  ;;  %2132 = vrot.lane.b32.xlu0 %v7648_v42, %s9937_s28 }
 0x339   : > { %v7722_v37 = vpop.permute.xlu0 %2190  ;;  %v7724_v26 = vpop.permute.xlu1 %1866 }
 0x33a   : > { %9946 = vst [vmem:[#allocation65_spill] sm:$0xff] %v7724_v26  ;;  %v7726_v6 = vpop.permute.xlu2 %2122  ;;  %v2219_v10 = vsel %vm1164_vm3, %v7668_v31, %v7722_v37 }
 0x33b   : > { %v2253_v32 = vmul.f32 %v2219_v10, %v6920_v63  ;;  %v2144_v43 = vsel %vm1114_vm4, %v7726_v6, %v7684_v17 }
 0x33c   : > { %v2179_v49 = vmul.f32 %v2144_v43, %v6960_v46 }
 0x33f   : > { %2350 = vrot.lane.b32.xlu1 %v7532_v30, %s9941_s2 }
 0x340   : > { %2192 = vrot.lane.b32.xlu2 %v7589_v9, %s9940_s29  ;;  %2186 = vrot.lane.b32.xlu0 %v7532_v30, %s9940_s29 }
 0x341   : > { %v7737_v28 = vpop.permute.xlu0 %2206  ;;  %v7739_v59 = vpop.permute.xlu1 %1782 }
 0x342   : > { %9947 = vst [vmem:[#allocation66_spill] sm:$0xff] %v7739_v59  ;;  %v2226_v50 = vsel %vm1164_vm3, %v7689_v20, %v7737_v28  ;;  %v7744_v29 = vpop.permute.xlu2 %2030 }
 0x343   : > { %v2261_v4 = vmul.f32 %v2226_v50, %v6920_v63 }
 0x345   : > { %v2481_v58 = vpack.c.bf16 %v2261_v4, %v2253_v32 }
 0x347   : > { %2541 = vmatpush.bf16.msra.mxu2 %v2481_v58  ;;  %2210 = vrot.lane.b32.xlu1 %v7673_v41, %s9940_s29 }
 0x348   : > { %2202 = vrot.lane.b32.xlu2 %v7507_v44, %s9940_s29  ;;  %2354 = vrot.lane.b32.xlu0 %v7452_v35, %s9941_s2 }
 0x349   : > { %v7757_v5 = vpop.permute.xlu0 %2108  ;;  %v7759_v0 = vpop.permute.xlu1 %1798 }
 0x34a   : > { %9948 = vst [vmem:[#allocation67_spill] sm:$0xff] %v7759_v0  ;;  %v2137_v63 = vsel %vm1114_vm4, %v7712_v3, %v7757_v5  ;;  %v7764_v23 = vpop.permute.xlu2 %2044 }
 0x34b   : > { %v2171_v14 = vmul.f32 %v2137_v63, %v6960_v46 }
 0x34d   : > { %v2473_v12 = vpack.c.bf16 %v2179_v49, %v2171_v14  ;;  %v873_v14 = vld [vmem:[%s9934_s3 + $0x78] sm:$0xff] }
 0x34f   : > { %2542 = vmatpush.bf16.msra.mxu2 %v2473_v12  ;;  %1968 = vrot.lane.b32.xlu1 %v7673_v41, %s9939_s6 }
 0x350   : > { %2368 = vrot.lane.b32.xlu2 %v7509_v24, %s9941_s2  ;;  %2110 = vrot.lane.b32.xlu0 %v7589_v9, %s9937_s28 }
 0x351   : > { %v7774_v7 = vpop.permute.xlu1 %2294  ;;  %v7776_v56 = vpop.permute.xlu0 %2028 }
 0x352   : > { %9949 = vst [vmem:[#allocation68_spill] sm:$0xff] %v7776_v56  ;;  %v7780_v25 = vpop.permute.xlu2 %1948  ;;  %v2056_v46 = vsel %vm1065_vm5, %v7776_v56, %v7744_v29 }
 0x353   : > { %9950 = vst [vmem:[#allocation69_spill] sm:$0xff] %v7780_v25  ;;  %2543 = vmatpush.bf16.msra.mxu2 %v2465_v33  ;;  %v2089_v51 = vmul.f32 %v2056_v46, %v7021_v54  ;;  %v1726_v46 = vmul.f32 %v7496_v15, %v873_v14 }
 0x357   : > { %2046 = vrot.lane.b32.xlu1 %v7450_v40, %s9883_s4 }
 0x358   : > { %2126 = vrot.lane.b32.xlu2 %v7616_v36, %s9937_s28  ;;  %2358 = vrot.lane.b32.xlu0 %v7694_v47, %s9941_s2 }
 0x359   : > { %v7791_v22 = vpop.permute.xlu1 %2198  ;;  %v7793_v45 = vpop.permute.xlu0 %2042 }
 0x35a   : > { %9951 = vst [vmem:[#allocation70_spill] sm:$0xff] %v7793_v45  ;;  %v7795_v13 = vpop.permute.xlu2 %1864  ;;  %v2063_v24 = vsel %vm1065_vm5, %v7793_v45, %v7764_v23  ;;  %v9971_v45 = vld [vmem:[#allocation39_spill] sm:$0xff] }
 0x35b   : > { %9952 = vst [vmem:[#allocation71_spill] sm:$0xff] %v7795_v13  ;;  %v2097_v27 = vmul.f32 %v2063_v24, %v7021_v54  ;;  %v1892_v12 = vsel %vm965_vm8, %v7795_v13, %v7724_v26  ;;  %v881_v13 = vld [vmem:[%s9935_s11 + $0x38] sm:$0xff] }
 0x35d   : > { %v2457_v2 = vpack.c.bf16 %v2097_v27, %v2089_v51  ;;  %v889_v27 = vld [vmem:[%s9935_s11 + $0x78] sm:$0xff]  ;;  %s6524_s11 = smov 17  }
 0x35f   : > { %2112 = vrot.lane.b32.xlu1 %v7694_v47, %s9937_s28  ;;  %2544 = vmatpush.bf16.msra.mxu2 %v2457_v2  ;;  %v1925_v2 = vmul.f32 %v1892_v12, %v7053_v60 }
 0x360   : > { %2372 = vrot.lane.b32.xlu2 %v7616_v36, %s9941_s2  ;;  %2104 = vrot.lane.b32.xlu0 %v7532_v30, %s9937_s28 }
 0x361   : > { %v7808_v19 = vpop.permute.xlu1 %2274  ;;  %v7810_v11 = vpop.permute.xlu0 %1946 }
 0x362   : > { %9953 = vst [vmem:[#allocation72_spill] sm:$0xff] %v7810_v11  ;;  %v7812_v10 = vpop.permute.xlu2 %1880  ;;  %v1974_v54 = vsel %vm1015_vm6, %v7810_v11, %v7780_v25 }
 0x363   : > { %9954 = vst [vmem:[#allocation73_spill] sm:$0xff] %v7812_v10  ;;  %v2007_v43 = vmul.f32 %v1974_v54, %v7018_v53 }
 0x367   : > { %1874 = vrot.lane.b32.xlu1 %v7631_v16, %s9886_s10 }
 0x368   : > { %2120 = vrot.lane.b32.xlu2 %v7507_v44, %s9937_s28  ;;  %2292 = vrot.lane.b32.xlu0 %v7673_v41, %s9938_s1 }
 0x369   : > { %v7823_v50 = vpop.permute.xlu1 %2284  ;;  %v7825_v32 = vpop.permute.xlu0 %1962 }
 0x36a   : > { %9955 = vst [vmem:[#allocation74_spill] sm:$0xff] %v7823_v50  ;;  %v7827_v4 = vpop.permute.xlu2 %1796  ;;  %v1981_v58 = vsel %vm1015_vm6, %v7705_v8, %v7825_v32 }
 0x36b   : > { %9956 = vst [vmem:[#allocation75_spill] sm:$0xff] %v7825_v32  ;;  %v2015_v63 = vmul.f32 %v1981_v58, %v7018_v53  ;;  %v7861_v58 = vadd.f32 %v1726_v46, %v889_v27  ;;  %v1817_v15 = vsel %vm915_vm7, %v7827_v4, %v7759_v0  ;;  %v1743_v0 = vld [vmem:[%s9966_s8] sm:$0xff]  ;;  %s6523_s8 = smov 111  }
 0x36c   : > { %9957 = vst [vmem:[#allocation76_spill] sm:$0xff] %v7827_v4  ;;  %v1851_v12 = vmul.f32 %v1817_v15, %v7046_v1  ;;  %v2505_v26 = vunpack.c.l.b16 %v1743_v0 }
 0x36d   : > { %v2449_v49 = vpack.c.bf16 %v2015_v63, %v2007_v43 }
 0x36f   : > { %1950 = vrot.lane.b32.xlu1 %v7452_v35, %s9939_s6  ;;  %2545 = vmatpush.bf16.msra.mxu2 %v2449_v49 }
 0x370   : > { %2036 = vrot.lane.b32.xlu2 %v7694_v47, %s9883_s4  ;;  %2050 = vrot.lane.b32.xlu0 %v7673_v41, %s9883_s4 }
 0x371   : > { %v7846_v53 = vpop.permute.xlu1 %2130  ;;  %v7848_v33 = vpop.permute.xlu0 %1878 }
 0x372   : > { %9958 = vst [vmem:[#allocation77_spill] sm:$0xff] %v7848_v33  ;;  %v7851_v24 = vpop.permute.xlu2 %2280  ;;  %v1899_v51 = vsel %vm965_vm8, %v7848_v33, %v7812_v10 }
 0x373   : > { %9959 = vst [vmem:[#allocation78_spill] sm:$0xff] %v7851_v24  ;;  %v1933_v54 = vmul.f32 %v1899_v51, %v7053_v60 }
 0x375   : > { %v2441_v43 = vpack.c.bf16 %v1933_v54, %v1925_v2 }
 0x377   : > { %1942 = vrot.lane.b32.xlu1 %v7861_v58, %s9939_s6  ;;  %2546 = vmatpush.bf16.msra.mxu2 %v2441_v43  ;;  %v2307_v43 = vsel %vm1214_vm1, %v7823_v50, %v7656_v48 }
 0x378   : > { %2052 = vrot.lane.b32.xlu2 %v7557_v34, %s9883_s4  ;;  %2366 = vrot.lane.b32.xlu0 %v7507_v44, %s9941_s2 }
 0x379   : > { %v7872_v63 = vpop.permute.xlu1 %2208  ;;  %v7874_v60 = vpop.permute.xlu0 %1784 }
 0x37a   : > { %9960 = vst [vmem:[#allocation79_spill] sm:$0xff] %v7874_v60  ;;  %v7876_v49 = vpop.permute.xlu2 %2196  ;;  %v1810_v14 = vsel %vm915_vm7, %v7739_v59, %v7874_v60  ;;  %v2342_v59 = vmul.f32 %v2307_v43, %v6917_v62 }
 0x37b   : > { %v1843_v46 = vmul.f32 %v1810_v14, %v7046_v1  ;;  %v865_v1 = vld [vmem:[%s9934_s3 + $0x38] sm:$0xff] }
 0x37d   : > { %v2433_v51 = vpack.c.bf16 %v1851_v12, %v1843_v46 }
 0x37f   : > { %1804 = vrot.lane.b32.xlu1 %v7673_v41, %s9884_s0  ;;  %2547 = vmatpush.bf16.msra.mxu2 %v2433_v51  ;;  %v1718_v51 = vmul.f32 %v7502_v57, %v865_v1 }
 0x380   : > { %2194 = vrot.lane.b32.xlu2 %v7694_v47, %s9940_s29  ;;  %1954 = vrot.lane.b32.xlu0 %v7694_v47, %s9939_s6 }
 0x381   : > { %v7889_v27 = vpop.permute.xlu1 %2352  ;;  %v7891_v2 = vpop.permute.xlu0 %2278  ;;  %v7922_v50 = vadd.f32 %v1718_v51, %v881_v13 }
 0x382   : > { %v7893_v54 = vpop.permute.xlu2 %2214 }
 0x387   : > { %1882 = vrot.lane.b32.xlu1 %v7450_v40, %s9886_s10 }
 0x388   : > { %1956 = vrot.lane.b32.xlu2 %v7631_v16, %s9939_s6  ;;  %1970 = vrot.lane.b32.xlu0 %v7557_v34, %s9939_s6 }
 0x389   : > { %v2371_v15 = vpop.permute.xlu1 %2370  ;;  %v7907_v14 = vpop.permute.xlu0 %2296 }
 0x38a   : > { %9961 = vst [vmem:[#allocation80_spill] sm:$0xff] %v7907_v14  ;;  %v7909_v12 = vpop.permute.xlu2 %2268 }
 0x38b   : > { %9962 = vst [vmem:[#allocation81_spill] sm:$0xff] %v7909_v12  ;;  %v2300_v46 = vsel %vm1214_vm1, %v7909_v12, %v7643_v38 }
 0x38c   : > { %v2334_v4 = vmul.f32 %v2300_v46, %v6917_v62 }
 0x38e   : > { %v2488_v48 = vpack.c.bf16 %v2342_v59, %v2334_v4 }
 0x38f   : > { %2034 = vrot.lane.b32.xlu1 %v7589_v9, %s9883_s4 }
 0x390   : > { %2032 = vrot.lane.b32.xlu2 %v7452_v35, %s9883_s4  ;;  %2514 = vmatpush.bf16.msra.mxu0 %v2488_v48 }
 0x391   : > { %2022 = vrot.lane.b32.xlu0 %v7922_v50, %s9883_s4  ;;  %v7928_v57 = vpop.permute.xlu1 %2356  ;;  %v7930_v62 = vpop.permute.xlu0 %2212 }
 0x392   : > { %v7932_v38 = vpop.permute.xlu2 %2116 }
 0x397   : > { %1800 = vrot.lane.b32.xlu1 %v7450_v40, %s9884_s0 }
 0x398   : > { %2024 = vrot.lane.b32.xlu2 %v7861_v58, %s9883_s4 }
 0x399   : > { %2128 = vrot.lane.b32.xlu0 %v7673_v41, %s9937_s28  ;;  %v7940_v59 = vpop.permute.xlu1 %2374  ;;  %v7942_v13 = vpop.permute.xlu0 %2290 }
 0x39a   : > { %9963 = vst [vmem:[#allocation82_spill] sm:$0xff] %v7940_v59  ;;  %v7944_v4 = vpop.permute.xlu2 %2192 }
 0x39f   : > { %1952 = vrot.lane.b32.xlu1 %v7589_v9, %s9939_s6 }
 0x3a0   : > { %1872 = vrot.lane.b32.xlu2 %v7694_v47, %s9886_s10 }
 0x3a1   : > { %1886 = vrot.lane.b32.xlu0 %v7673_v41, %s9886_s10  ;;  %v7952_v1 = vpop.permute.xlu1 %2276  ;;  %v7954_v43 = vpop.permute.xlu0 %2114  ;;  %v7993_v41 = vpack.c.b16 %v2505_v26, %v2505_v26 }
 0x3a2   : > { %v7956_v46 = vpop.permute.xlu2 %2202 }
 0x3a3   : > { %9964 = vst [vmem:[#allocation83_spill] sm:$0xff] %v7956_v46  ;;  %v2225_v33 = vsel %vm1164_vm3, %v7956_v46, %v7689_v20  ;;  %2548 = vmatmul.bf16.vlgmr.msra.gmra.mxu2 %v7993_v41 }
 0x3a4   : > { %v2260_v20 = vmul.f32 %v2225_v33, %v6914_v61  ;;  %9968 = vst [vmem:[#allocation86_spill] sm:$0xff] %v7993_v41 }
 0x3a7   : > { %2298 = vrot.lane.b32.xlu1 %v7861_v58, %s9938_s1 }
 0x3a8   : > { %1888 = vrot.lane.b32.xlu2 %v7557_v34, %s9886_s10 }
 0x3a9   : > { %1964 = vrot.lane.b32.xlu0 %v7450_v40, %s9939_s6  ;;  %v7964_v51 = vpop.permute.xlu1 %2038 }
 0x3aa   : > { %9965 = vst [vmem:[#allocation84_spill] sm:$0xff] %v7964_v51  ;;  %v7966_v48 = vpop.permute.xlu2 %2368  ;;  %v7968_v12 = vpop.permute.xlu0 %2132 }
 0x3af   : > { %2200 = vrot.lane.b32.xlu1 %v7922_v50, %s9940_s29 }
 0x3b0   : > { %1940 = vrot.lane.b32.xlu2 %v7922_v50, %s9939_s6 }
 0x3b1   : > { %1790 = vrot.lane.b32.xlu0 %v7694_v47, %s9884_s0  ;;  %v7979_v60 = vpop.permute.xlu1 %2350 }
 0x3b2   : > { %v7984_v10 = vpop.permute.xlu2 %2126  ;;  %v7986_v32 = vpop.permute.xlu0 %2186 }
 0x3b3   : > { %9967 = vst [vmem:[#allocation85_spill] sm:$0xff] %v7986_v32  ;;  %v2218_v25 = vsel %vm1164_vm3, %v7986_v32, %v7668_v31 }
 0x3b4   : > { %v2252_v46 = vmul.f32 %v2218_v25, %v6914_v61  ;;  %v2390_v61 = vsel %vm1264_vm0, %v7966_v48, %v2371_v15 }
 0x3b5   : > { %v2425_v32 = vmul.f32 %v2390_v61, %v6848_v21 }
 0x3b6   : > { %v2480_v47 = vpack.c.bf16 %v2260_v20, %v2252_v46 }
 0x3b7   : > { %1802 = vrot.lane.b32.xlu1 %v7616_v36, %s9884_s0 }
 0x3b8   : > { %1792 = vrot.lane.b32.xlu2 %v7631_v16, %s9884_s0  ;;  %2515 = vmatpush.bf16.msra.mxu0 %v2480_v47 }
 0x3b9   : > { %1806 = vrot.lane.b32.xlu0 %v7557_v34, %s9884_s0  ;;  %v8002_v31 = vpop.permute.xlu1 %2210 }
 0x3ba   : > { %v2373_v26 = vpop.permute.xlu2 %2372  ;;  %v2355_v25 = vpop.permute.xlu0 %2354 }
 0x3bb   : > { %v2391_v33 = vsel %vm1264_vm0, %v2371_v15, %v2373_v26  ;;  %v2383_v20 = vsel %vm1264_vm0, %v7889_v27, %v2355_v25  ;;  %v2384_v47 = vsel %vm1264_vm0, %v2355_v25, %v7928_v57  ;;  %v2506_v25 = vunpack.c.h.b16 %v1743_v0 }
 0x3bc   : > { %v2426_v46 = vmul.f32 %v2391_v33, %v6837_v18  ;;  %v2417_v41 = vmul.f32 %v2383_v20, %v6848_v21  ;;  %v2418_v11 = vmul.f32 %v2384_v47, %v6837_v18  ;;  %v9969_v33 = vld [vmem:[#allocation40_spill] sm:$0xff]  ;;  %v9970_v47 = vld [vmem:[#allocation7_spill] sm:$0xff] }
 0x3bd   : > { %v8027_v18 = vpack.c.b16 %v2506_v25, %v2506_v25 }
 0x3be   : > { %v2497_v8 = vpack.c.bf16 %v2425_v32, %v2417_v41  ;;  %v2498_v56 = vpack.c.bf16 %v2426_v46, %v2418_v11  ;;  %v2312_v41 = vsel %vm1214_vm1, %v7774_v7, %v7907_v14 }
 0x3bf   : > { %2360 = vrot.lane.b32.xlu1 %v7631_v16, %s9941_s2  ;;  %v2347_v46 = vmul.f32 %v2312_v41, %v9969_v33 }
 0x3c0   : > { %1868 = vrot.lane.b32.xlu2 %v7452_v35, %s9886_s10  ;;  %2560 = vmatpush.bf16.msra.mxu3 %v2497_v8  ;;  %v2392_v8 = vsel %vm1264_vm0, %v2373_v26, %v7940_v59  ;;  %v2230_v26 = vsel %vm1164_vm3, %v7930_v62, %v7893_v54 }
 0x3c1   : > { %1858 = vrot.lane.b32.xlu0 %v7922_v50, %s9886_s10  ;;  %v8021_v15 = vpop.permute.xlu1 %1968  ;;  %v2427_v25 = vmul.f32 %v2392_v8, %v9970_v47  ;;  %v2265_v40 = vmul.f32 %v2230_v26, %v9971_v45 }
 0x3c2   : > { %v8023_v61 = vpop.permute.xlu2 %2120  ;;  %v8025_v21 = vpop.permute.xlu0 %2110 }
 0x3c3   : > { %5485 = vmatmul.msk.bf16.vlgmr.msra.gmra.mxu3 %vm2510_vm15, %v8027_v18 }
 0x3c4   : > { %2586 = vmatpush.bf16.msrb.mxu3 %v2498_v56  ;;  %v2305_v56 = vsel %vm1214_vm1, %v7891_v2, %v7851_v24  ;;  %v2223_v24 = vsel %vm1164_vm3, %v7876_v49, %v7791_v22 }
 0x3c5   : > { %v2339_v14 = vmul.f32 %v2305_v56, %v9969_v33  ;;  %v2257_v8 = vmul.f32 %v2223_v24, %v9971_v45  ;;  %v2141_v56 = vsel %vm1114_vm4, %v7954_v43, %v7932_v38 }
 0x3c7   : > { %2378 = vrot.lane.b32.xlu1 %v7648_v42, %s9941_s2  ;;  %v2493_v41 = vpack.c.bf16 %v2347_v46, %v2339_v14  ;;  %v2485_v24 = vpack.c.bf16 %v2265_v40, %v2257_v8  ;;  %v2304_v40 = vsel %vm1214_vm1, %v7952_v1, %v7891_v2 }
 0x3c8   : > { %1860 = vrot.lane.b32.xlu2 %v7861_v58, %s9886_s10 }
 0x3c9   : > { %2048 = vrot.lane.b32.xlu0 %v7616_v36, %s9883_s4  ;;  %v8042_v0 = vpop.permute.xlu1 %2046 }
 0x3ca   : > { %v8047_v11 = vpop.permute.xlu2 %2036  ;;  %v8049_v32 = vpop.permute.xlu0 %2358 }
 0x3cb   : > { %v2385_v20 = vsel %vm1264_vm0, %v7928_v57, %v8049_v32  ;;  %v2148_v57 = vsel %vm1114_vm4, %v7846_v53, %v7968_v12 }
 0x3cc   : > { %v2419_v59 = vmul.f32 %v2385_v20, %v9970_v47  ;;  %v9974_v20 = vld [vmem:[#allocation14_spill] sm:$0xff] }
 0x3ce   : > { %v2499_v42 = vpack.c.bf16 %v2427_v25, %v2419_v59  ;;  %v2143_v59 = vsel %vm1114_vm4, %v8023_v61, %v7726_v6 }
 0x3cf   : > { %1958 = vrot.lane.b32.xlu1 %v7574_v52, %s9939_s6  ;;  %v2178_v26 = vmul.f32 %v2143_v59, %v9974_v20 }
 0x3d0   : > { %1786 = vrot.lane.b32.xlu2 %v7452_v35, %s9884_s0  ;;  %2612 = vmatpush.bf16.msrb.mxu2 %v2499_v42  ;;  %v9973_v42 = vld [vmem:[#allocation43_spill] sm:$0xff] }
 0x3d1   : > { %1762 = vrot.lane.b32.xlu0 %v7922_v50, %s9884_s0  ;;  %v8078_v14 = vpop.permute.xlu1 %2112  ;;  %v2183_v45 = vmul.f32 %v2148_v57, %v9973_v42  ;;  %v2175_v25 = vmul.f32 %v2141_v56, %v9973_v42  ;;  %v2464_v56 = vpack.c.bf16 %v7507_v44, %v7532_v30  ;;  %v2229_v44 = vsel %vm1164_vm3, %v8002_v31, %v7930_v62  ;;  %v9977_v30 = vld [vmem:[#allocation37_spill] sm:$0xff] }
 0x3d2   : > { %v8083_v33 = vpop.permute.xlu2 %2052  ;;  %v8085_v46 = vpop.permute.xlu0 %2104 }
 0x3d3   : > { %9972 = vst [vmem:[#allocation40_spill] sm:$0xff] %v8083_v33  ;;  %v2136_v6 = vsel %vm1114_vm4, %v8085_v46, %v7712_v3  ;;  %5487 = vmatmul.msk.bf16.vlgmr.msrb.gmra.mxu2 %vm2510_vm15, %v8027_v18  ;;  %5486 = vmatmul.msk.bf16.vlgmr.msrb.gmra.mxu3 %vm2510_vm15, %v8027_v18  ;;  %v2477_v57 = vpack.c.bf16 %v2183_v45, %v2175_v25 }
 0x3d4   : > { %2644 = vmatpush.bf16.msra.mxu2 %v2493_v41  ;;  %v2170_v47 = vmul.f32 %v2136_v6, %v9974_v20  ;;  %v2469_v45 = vpack.c.bf16 %v7557_v34, %v7631_v16  ;;  %v9976_v6 = vld [vmem:[#allocation38_spill] sm:$0xff]  ;;  %v2060_v16 = vsel %vm1065_vm5, %v8047_v11, %v7964_v51 }
 0x3d6   : > { %v2472_v41 = vpack.c.bf16 %v2178_v26, %v2170_v47 }
 0x3d7   : > { %2380 = vrot.lane.b32.xlu1 %v7861_v58, %s9941_s2 }
 0x3d8   : > { %2645 = vmatpush.bf16.msra.mxu2 %v2485_v24  ;;  %1764 = vrot.lane.b32.xlu2 %v7861_v58, %s9884_s0  ;;  %v2338_v24 = vmul.f32 %v2304_v40, %v9976_v6  ;;  %v9979_v40 = vld [vmem:[#allocation51_spill] sm:$0xff] }
 0x3d9   : > { %2516 = vmatpush.bf16.msra.mxu0 %v2472_v41  ;;  %1966 = vrot.lane.b32.xlu0 %v7616_v36, %s9939_s6  ;;  %v8107_v3 = vpop.permute.xlu1 %1874 }
 0x3da   : > { %9975 = vst [vmem:[#allocation7_spill] sm:$0xff] %v8107_v3  ;;  %v8109_v8 = vpop.permute.xlu2 %2194  ;;  %v8111_v59 = vpop.permute.xlu0 %2292 }
 0x3db   : > { %v2222_v42 = vsel %vm1164_vm3, %v8109_v8, %v7876_v49  ;;  %v2311_v2 = vsel %vm1214_vm1, %v8111_v59, %v7774_v7  ;;  %v2264_v7 = vmul.f32 %v2229_v44, %v9977_v30 }
 0x3dc   : > { %2646 = vmatpush.bf16.msra.mxu2 %v2477_v57  ;;  %v2346_v20 = vmul.f32 %v2311_v2, %v9976_v6  ;;  %v2256_v26 = vmul.f32 %v2222_v42, %v9977_v30  ;;  %v2382_v6 = vsel %vm1264_vm0, %v7979_v60, %v7889_v27  ;;  %v2220_v27 = vsel %vm1164_vm3, %v7722_v37, %v7944_v4 }
 0x3dd   : > { %2517 = vmatpush.bf16.msra.mxu0 %v2464_v56  ;;  %v2093_v56 = vmul.f32 %v2060_v16, %v9979_v40  ;;  %v2138_v37 = vsel %vm1114_vm4, %v7757_v5, %v8025_v21 }
 0x3de   : > { %v2492_v49 = vpack.c.bf16 %v2346_v20, %v2338_v24  ;;  %v2484_v25 = vpack.c.bf16 %v2264_v7, %v2256_v26  ;;  %v2302_v24 = vsel %vm1214_vm1, %v7686_v39, %v7808_v19 }
 0x3df   : > { %1794 = vrot.lane.b32.xlu1 %v7574_v52, %s9884_s0 }
 0x3e0   : > { %2647 = vmatpush.bf16.msra.mxu2 %v2469_v45  ;;  %2282 = vrot.lane.b32.xlu2 %v7922_v50, %s9938_s1  ;;  %v2309_v45 = vsel %vm1214_vm1, %v7707_v55, %v7942_v13  ;;  %v9980_v55 = vld [vmem:[#allocation12_spill] sm:$0xff] }
 0x3e1   : > { %2618 = vmatpush.bf16.msra.mxu3 %v2492_v49  ;;  %1870 = vrot.lane.b32.xlu0 %v7589_v9, %s9886_s10  ;;  %v8143_v41 = vpop.permute.xlu1 %1950  ;;  %v2344_v30 = vmul.f32 %v2309_v45, %v9980_v55  ;;  %v9981_v49 = vld [vmem:[#allocation8_spill] sm:$0xff]  ;;  %v2336_v39 = vmul.f32 %v2302_v24, %v9980_v55  ;;  %v9985_v24 = vld [vmem:[#allocation13_spill] sm:$0xff] }
 0x3e2   : > { %v8139_v62 = vpop.permute.xlu2 %1956  ;;  %v8141_v47 = vpop.permute.xlu0 %2050  ;;  %v2416_v7 = vmul.f32 %v2382_v6, %v9981_v49  ;;  %v2172_v5 = vmul.f32 %v2138_v37, %v9985_v24 }
 0x3e3   : > { %9978 = vst [vmem:[#allocation39_spill] sm:$0xff] %v8139_v62  ;;  %v2067_v57 = vsel %vm1065_vm5, %v8141_v47, %v8083_v33 }
 0x3e4   : > { %v2101_v42 = vmul.f32 %v2067_v57, %v9979_v40  ;;  %v2227_v57 = vsel %vm1164_vm3, %v7737_v28, %v7872_v63  ;;  %v2145_v28 = vsel %vm1114_vm4, %v7684_v17, %v7984_v10 }
 0x3e5   : > { %2619 = vmatpush.bf16.msra.mxu3 %v2484_v25 }
 0x3e6   : > { %v2461_v2 = vpack.c.bf16 %v2101_v42, %v2093_v56  ;;  %v9983_v56 = vld [vmem:[#allocation10_spill] sm:$0xff] }
 0x3e7   : > { %v2254_v42 = vmul.f32 %v2220_v27, %v9983_v56 }
 0x3e8   : > { %1884 = vrot.lane.b32.xlu2 %v7616_v36, %s9886_s10  ;;  %2648 = vmatpush.bf16.msra.mxu2 %v2461_v2  ;;  %v2262_v2 = vmul.f32 %v2227_v57, %v9983_v56  ;;  %v9988_v56 = vld [vmem:[#allocation60_spill] sm:$0xff] }
 0x3e9   : > { %2216 = vrot.lane.b32.xlu0 %v7861_v58, %s9940_s29  ;;  %v8177_v25 = vpop.permute.xlu1 %1942  ;;  %s10077_s29 = sld [smem:[#allocation95_spill]] }
 0x3ea   : > { %v8163_v20 = vpop.permute.xlu2 %2032  ;;  %v8165_v44 = vpop.permute.xlu0 %2366  ;;  %9982 = vst [vmem:[#allocation43_spill] sm:$0xff] %v8177_v25  ;;  %v2482_v55 = vpack.c.bf16 %v2262_v2, %v2254_v42  ;;  %v2466_v42 = vpack.c.bf16 %v9988_v56, %v7452_v35  ;;  %v9990_v35 = vld [vmem:[#allocation70_spill] sm:$0xff]  ;;  %v9996_v56 = vld [vmem:[#allocation64_spill] sm:$0xff] }
 0x3eb   : > { %v2389_v26 = vsel %vm1264_vm0, %v8165_v44, %v7966_v48  ;;  %v2490_v48 = vpack.c.bf16 %v2344_v30, %v2336_v39  ;;  %v2180_v30 = vmul.f32 %v2145_v28, %v9985_v24  ;;  %v2057_v17 = vsel %vm1065_vm5, %v7744_v29, %v8163_v20  ;;  %v9987_v29 = vld [vmem:[#allocation19_spill] sm:$0xff] }
 0x3ec   : > { %v2424_v16 = vmul.f32 %v2389_v26, %v9981_v49  ;;  %v2090_v57 = vmul.f32 %v2057_v17, %v9987_v29  ;;  %v9993_v17 = vld [vmem:[#allocation68_spill] sm:$0xff] }
 0x3ed   : > { %v2474_v27 = vpack.c.bf16 %v2180_v30, %v2172_v5 }
 0x3ee   : > { %v2496_v40 = vpack.c.bf16 %v2424_v16, %v2416_v7  ;;  %v2064_v7 = vsel %vm1065_vm5, %v7764_v23, %v8042_v0 }
 0x3ef   : > { %v2098_v28 = vmul.f32 %v2064_v7, %v9987_v29 }
 0x3f0   : > { %1788 = vrot.lane.b32.xlu2 %v7589_v9, %s9884_s0  ;;  %2534 = vmatpush.bf16.msra.mxu1 %v2496_v40 }
 0x3f1   : > { %2118 = vrot.lane.b32.xlu0 %v7922_v50, %s9937_s28  ;;  %v8202_v26 = vpop.permute.xlu1 %1804  ;;  %v2458_v24 = vpack.c.bf16 %v2098_v28, %v2090_v57  ;;  %v9998_v28 = vld [vmem:[#allocation72_spill] sm:$0xff] }
 0x3f2   : > { %v8194_v45 = vpop.permute.xlu2 %2024  ;;  %v8196_v6 = vpop.permute.xlu0 %1954 }
 0x3f3   : > { %9984 = vst [vmem:[#allocation14_spill] sm:$0xff] %v8194_v45  ;;  %5484 = vmatmul.msk.bf16.vlgmr.msra.gmra.mxu1 %vm2510_vm15, %v8027_v18  ;;  %v1978_v49 = vsel %vm1015_vm6, %v8196_v6, %v8139_v62 }
 0x3f4   : > { %2566 = vmatpush.bf16.msrb.mxu1 %v2490_v48  ;;  %v9989_v48 = vld [vmem:[#allocation50_spill] sm:$0xff] }
 0x3f5   : > { %v2011_v37 = vmul.f32 %v1978_v49, %v9989_v48 }
 0x3f8   : > { %2567 = vmatpush.bf16.msrb.mxu1 %v2482_v55  ;;  %2134 = vrot.lane.b32.xlu2 %v7861_v58, %s9937_s28  ;;  %v2087_v55 = vsel %vm1065_vm5, %v8194_v45, %v9990_v35  ;;  %v9999_v35 = vld [vmem:[#allocation20_spill] sm:$0xff]  ;;  %v10017_v45 = vld [vmem:[#allocation77_spill] sm:$0xff] }
 0x3f9   : > { %2362 = vrot.lane.b32.xlu0 %v7574_v52, %s9941_s2  ;;  %v8232_v5 = vpop.permute.xlu1 %1882 }
 0x3fa   : > { %v8217_v16 = vpop.permute.xlu2 %1872  ;;  %v8219_v39 = vpop.permute.xlu0 %1970 }
 0x3fb   : > { %9986 = vst [vmem:[#allocation38_spill] sm:$0xff] %v8219_v39  ;;  %v1985_v40 = vsel %vm1015_vm6, %v8021_v15, %v8219_v39 }
 0x3fc   : > { %2568 = vmatpush.bf16.msrb.mxu1 %v2474_v27  ;;  %v2019_v2 = vmul.f32 %v1985_v40, %v9989_v48  ;;  %v9995_v40 = vld [vmem:[#allocation61_spill] sm:$0xff]  ;;  %v2140_v48 = vsel %vm1114_vm4, %v8078_v14, %v7954_v43 }
 0x3fe   : > { %v2453_v23 = vpack.c.bf16 %v2019_v2, %v2011_v37 }
 0x400   : > { %2569 = vmatpush.bf16.msrb.mxu1 %v2466_v42  ;;  %2376 = vrot.lane.b32.xlu2 %v7557_v34, %s9941_s2  ;;  %v9994_v34 = vld [vmem:[#allocation21_spill] sm:$0xff]  ;;  %v2005_v42 = vsel %vm1015_vm6, %v8177_v25, %v9996_v56  ;;  %v1896_v56 = vsel %vm965_vm8, %v8217_v16, %v8107_v3 }
 0x401   : > { %2649 = vmatpush.bf16.msra.mxu2 %v2453_v23  ;;  %2040 = vrot.lane.b32.xlu0 %v7574_v52, %s9883_s4  ;;  %v2096_v7 = vmul.f32 %v2087_v55, %v9994_v34  ;;  %v8260_v2 = vpop.permute.xlu1 %2034  ;;  %v2014_v55 = vmul.f32 %v2005_v42, %v9999_v35 }
 0x402   : > { %v8239_v30 = vpop.permute.xlu2 %1888 }
 0x403   : > { %9991 = vst [vmem:[#allocation37_spill] sm:$0xff] %v8239_v30  ;;  %v8241_v27 = vpop.permute.xlu0 %2022 }
 0x404   : > { %2570 = vmatpush.bf16.msrb.mxu1 %v2458_v24  ;;  %9992 = vst [vmem:[#allocation51_spill] sm:$0xff] %v8241_v27  ;;  %v2086_v49 = vsel %vm1065_vm5, %v8241_v27, %v9993_v17 }
 0x405   : > { %v2088_v29 = vmul.f32 %v2086_v49, %v9994_v34  ;;  %v10000_v34 = vld [vmem:[#allocation42_spill] sm:$0xff] }
 0x406   : > { %v2174_v43 = vmul.f32 %v2140_v48, %v10000_v34  ;;  %v10002_v48 = vld [vmem:[#allocation63_spill] sm:$0xff] }
 0x407   : > { %v2456_v57 = vpack.c.bf16 %v2096_v7, %v2088_v29 }
 0x408   : > { %2054 = vrot.lane.b32.xlu2 %v9995_v40, %s9883_s4 }
 0x409   : > { %1972 = vrot.lane.b32.xlu0 %v9995_v40, %s9939_s6  ;;  %2518 = vmatpush.bf16.msra.mxu0 %v2456_v57  ;;  %s10078_s6 = sld [smem:[#allocation96_spill]] }
 0x40a   : > { %v8258_v37 = vpop.permute.xlu2 %1940 }
 0x40b   : > { %9997 = vst [vmem:[#allocation12_spill] sm:$0xff] %v8258_v37  ;;  %v2004_v23 = vsel %vm1015_vm6, %v8258_v37, %v9998_v28  ;;  %v8265_v24 = vpop.permute.xlu0 %2128  ;;  %v10003_v28 = vld [vmem:[#allocation62_spill] sm:$0xff] }
 0x40c   : > { %v2006_v17 = vmul.f32 %v2004_v23, %v9999_v35  ;;  %v2147_v49 = vsel %vm1114_vm4, %v8265_v24, %v7846_v53  ;;  %v2468_v23 = vpack.c.bf16 %v10003_v28, %v10002_v48  ;;  %v10006_v48 = vld [vmem:[#allocation65_spill] sm:$0xff] }
 0x40d   : > { %v2182_v7 = vmul.f32 %v2147_v49, %v10000_v34  ;;  %v8291_v49 = vpop.permute.xlu1 %1800 }
 0x40e   : > { %v2448_v29 = vpack.c.bf16 %v2014_v55, %v2006_v17  ;;  %v10004_v55 = vld [vmem:[#allocation59_spill] sm:$0xff] }
 0x40f   : > { %v2476_v57 = vpack.c.bf16 %v2182_v7, %v2174_v43  ;;  %v1929_v17 = vmul.f32 %v1896_v56, %v10004_v55  ;;  %v10005_v7 = vld [vmem:[#allocation69_spill] sm:$0xff] }
 0x410   : > { %2364 = vrot.lane.b32.xlu2 %v7922_v50, %s9941_s2  ;;  %2519 = vmatpush.bf16.msra.mxu0 %v2448_v29  ;;  %v1975_v29 = vsel %vm1015_vm6, %v10005_v7, %v8143_v41 }
 0x411   : > { %1876 = vrot.lane.b32.xlu0 %v7574_v52, %s9886_s10  ;;  %2620 = vmatpush.bf16.msra.mxu3 %v2476_v57 }
 0x412   : > { %v8281_v42 = vpop.permute.xlu2 %1792 }
 0x413   : > { %10001 = vst [vmem:[#allocation8_spill] sm:$0xff] %v8281_v42  ;;  %v8283_v53 = vpop.permute.xlu0 %1886 }
 0x414   : > { %v1903_v35 = vsel %vm965_vm8, %v8283_v53, %v8239_v30  ;;  %v10010_v30 = vld [vmem:[#allocation24_spill] sm:$0xff] }
 0x415   : > { %v1937_v34 = vmul.f32 %v1903_v35, %v10004_v55  ;;  %2621 = vmatpush.bf16.msra.mxu3 %v2468_v23  ;;  %v10007_v23 = vld [vmem:[#allocation75_spill] sm:$0xff]  ;;  %v10008_v55 = vld [vmem:[#allocation17_spill] sm:$0xff]  ;;  %v8316_v3 = vpop.permute.xlu1 %1952 }
 0x417   : > { %v2445_v43 = vpack.c.bf16 %v1937_v34, %v1929_v17  ;;  %v2008_v17 = vmul.f32 %v1975_v29, %v10008_v55  ;;  %v10012_v29 = vld [vmem:[#allocation67_spill] sm:$0xff] }
 0x418   : > { %1890 = vrot.lane.b32.xlu2 %v9995_v40, %s9886_s10  ;;  %s6529_s10 = smov 9  }
 0x419   : > { %1808 = vrot.lane.b32.xlu0 %v9995_v40, %s9884_s0  ;;  %2650 = vmatpush.bf16.msra.mxu2 %v2445_v43  ;;  %v10009_v43 = vld [vmem:[#allocation73_spill] sm:$0xff] }
 0x41a   : > { %v8301_v57 = vpop.permute.xlu2 %1868  ;;  %v1900_v7 = vsel %vm965_vm8, %v10009_v43, %v8232_v5 }
 0x41b   : > { %v8303_v56 = vpop.permute.xlu0 %1964  ;;  %v1893_v28 = vsel %vm965_vm8, %v10006_v48, %v8301_v57  ;;  %v1934_v37 = vmul.f32 %v1900_v7, %v10010_v30 }
 0x41c   : > { %v1982_v35 = vsel %vm1015_vm6, %v10007_v23, %v8303_v56  ;;  %v1926_v25 = vmul.f32 %v1893_v28, %v10010_v30 }
 0x41d   : > { %v2016_v34 = vmul.f32 %v1982_v35, %v10008_v55  ;;  %v1818_v35 = vsel %vm915_vm7, %v10012_v29, %v8291_v49  ;;  %v8327_v55 = vpop.permute.xlu1 %2298 }
 0x41e   : > { %v2442_v23 = vpack.c.bf16 %v1934_v37, %v1926_v25  ;;  %v10015_v25 = vld [vmem:[#allocation23_spill] sm:$0xff] }
 0x41f   : > { %v2450_v39 = vpack.c.bf16 %v2016_v34, %v2008_v17  ;;  %v1852_v37 = vmul.f32 %v1818_v35, %v10015_v25 }
 0x421   : > { %2571 = vmatpush.bf16.msrb.mxu1 %v2450_v39  ;;  %v10013_v39 = vld [vmem:[#allocation79_spill] sm:$0xff] }
 0x422   : > { %v8320_v48 = vpop.permute.xlu2 %1860 }
 0x423   : > { %10011 = vst [vmem:[#allocation10_spill] sm:$0xff] %v8320_v48  ;;  %v8322_v62 = vpop.permute.xlu0 %1790 }
 0x424   : > { %v1814_v28 = vsel %vm915_vm7, %v8322_v62, %v8281_v42 }
 0x425   : > { %2572 = vmatpush.bf16.msrb.mxu1 %v2442_v23  ;;  %v10016_v23 = vld [vmem:[#allocation58_spill] sm:$0xff]  ;;  %v8351_v35 = vpop.permute.xlu1 %2200 }
 0x426   : > { %v1847_v29 = vmul.f32 %v1814_v28, %v10016_v23 }
 0x42a   : > { %v8332_v17 = vpop.permute.xlu2 %1786 }
 0x42b   : > { %v1811_v30 = vsel %vm915_vm7, %v10013_v39, %v8332_v17  ;;  %v8337_v34 = vpop.permute.xlu0 %1806  ;;  %v1923_v39 = vsel %vm965_vm8, %v8320_v48, %v10017_v45  ;;  %v2059_v45 = vsel %vm1065_vm5, %v8260_v2, %v8047_v11 }
 0x42c   : > { %10014 = vst [vmem:[#allocation13_spill] sm:$0xff] %v8337_v34  ;;  %v1844_v43 = vmul.f32 %v1811_v30, %v10015_v25  ;;  %v1821_v7 = vsel %vm915_vm7, %v8202_v26, %v8337_v34  ;;  %v10020_v25 = vld [vmem:[#allocation86_spill] sm:$0xff]  ;;  %v10021_v34 = vld [vmem:[#allocation71_spill] sm:$0xff] }
 0x42d   : > { %v1855_v42 = vmul.f32 %v1821_v7, %v10016_v23 }
 0x42e   : > { %v2434_v27 = vpack.c.bf16 %v1852_v37, %v1844_v43 }
 0x42f   : > { %v2437_v51 = vpack.c.bf16 %v1855_v42, %v1847_v29  ;;  %v10023_v29 = vld [vmem:[#allocation49_spill] sm:$0xff] }
 0x430   : > { %2573 = vmatpush.bf16.msrb.mxu1 %v2434_v27  ;;  %v10022_v27 = vld [vmem:[#allocation28_spill] sm:$0xff] }
 0x431   : > { %2651 = vmatpush.bf16.msra.mxu2 %v2437_v51  ;;  %v1932_v51 = vmul.f32 %v1923_v39, %v10022_v27 }
 0x432   : > { %v8349_v33 = vpop.permute.xlu2 %1764 }
 0x433   : > { %10018 = vst [vmem:[#allocation19_spill] sm:$0xff] %v8349_v33  ;;  %v8353_v30 = vpop.permute.xlu0 %1858  ;;  %2574 = vmatmul.bf16.vlgmr.msrb.gmra.mxu1 %v10020_v25 }
 0x434   : > { %10019 = vst [vmem:[#allocation60_spill] sm:$0xff] %v8353_v30  ;;  %v1922_v28 = vsel %vm965_vm8, %v8353_v30, %v10021_v34  ;;  %2652 = vmatmul.bf16.vlgmr.msra.gmra.mxu2 %v10020_v25  ;;  %v2092_v34 = vmul.f32 %v2059_v45, %v10023_v29  ;;  %v8370_v30 = vpop.permute.xlu1 %1802 }
 0x435   : > { %v1924_v42 = vmul.f32 %v1922_v28, %v10022_v27  ;;  %v2310_v28 = vsel %vm1214_vm1, %v7942_v13, %v8111_v59  ;;  %v10024_v27 = vld [vmem:[#allocation76_spill] sm:$0xff]  ;;  %v2221_v13 = vsel %vm1164_vm3, %v7944_v4, %v8109_v8  ;;  %v10027_v59 = vld [vmem:[#allocation27_spill] sm:$0xff]  ;;  %v2146_v4 = vsel %vm1114_vm4, %v7984_v10, %v8265_v24 }
 0x436   : > { %v1841_v11 = vsel %vm915_vm7, %v8349_v33, %v10024_v27  ;;  %v10028_v27 = vld [vmem:[#allocation11_spill] sm:$0xff]  ;;  %v10030_v24 = vld [vmem:[#allocation48_spill] sm:$0xff] }
 0x437   : > { %v2440_v37 = vpack.c.bf16 %v1932_v51, %v1924_v42  ;;  %v2255_v33 = vmul.f32 %v2221_v13, %v10028_v27 }
 0x439   : > { %2520 = vmatpush.bf16.msra.mxu0 %v2440_v37  ;;  %v10025_v37 = vld [vmem:[#allocation9_spill] sm:$0xff] }
 0x43a   : > { %v8365_v43 = vpop.permute.xlu2 %2282  ;;  %v2345_v45 = vmul.f32 %v2310_v28, %v10025_v37 }
 0x43b   : > { %v2049_v7 = vpop.permute.xlu0 %2048 }
 0x43c   : > { %v2066_v23 = vsel %vm1065_vm5, %v2049_v7, %v8141_v47  ;;  %v2303_v47 = vsel %vm1214_vm1, %v7808_v19, %v7952_v1  ;;  %v2228_v19 = vsel %vm1164_vm3, %v7872_v63, %v8002_v31  ;;  %v8399_v1 = vpop.permute.xlu1 %2360  ;;  %v2139_v63 = vsel %vm1114_vm4, %v8025_v21, %v8078_v14 }
 0x43d   : > { %v2100_v39 = vmul.f32 %v2066_v23, %v10023_v29  ;;  %v10026_v23 = vld [vmem:[#allocation66_spill] sm:$0xff]  ;;  %v2263_v8 = vmul.f32 %v2228_v19, %v10028_v27  ;;  %v2065_v21 = vsel %vm1065_vm5, %v8042_v0, %v2049_v7  ;;  %v2467_v7 = vpack.c.bf16 %v7616_v36, %v7589_v9  ;;  %v10033_v36 = vld [vmem:[#allocation56_spill] sm:$0xff] }
 0x43e   : > { %v2386_v9 = vsel %vm1264_vm0, %v8049_v32, %v8399_v1  ;;  %v10036_v32 = vld [vmem:[#allocation80_spill] sm:$0xff] }
 0x43f   : > { %v2460_v48 = vpack.c.bf16 %v2100_v39, %v2092_v34  ;;  %v2337_v39 = vmul.f32 %v2303_v47, %v10025_v37  ;;  %v10029_v37 = vld [vmem:[#allocation15_spill] sm:$0xff]  ;;  %v2483_v10 = vpack.c.bf16 %v2263_v8, %v2255_v33  ;;  %v2058_v33 = vsel %vm1065_vm5, %v8163_v20, %v8260_v2 }
 0x440   : > { %v1820_v2 = vsel %vm915_vm7, %v8370_v30, %v8202_v26 }
 0x441   : > { %2622 = vmatpush.bf16.msra.mxu3 %v2460_v48  ;;  %v1850_v48 = vmul.f32 %v1841_v11, %v10027_v59  ;;  %v1977_v11 = vsel %vm1015_vm6, %v8316_v3, %v8196_v6  ;;  %v2173_v6 = vmul.f32 %v2139_v63, %v10029_v37  ;;  %v10034_v63 = vld [vmem:[#allocation78_spill] sm:$0xff]  ;;  %v1854_v26 = vmul.f32 %v1820_v2, %v10033_v36 }
 0x442   : > { %v8379_v51 = vpop.permute.xlu2 %1884  ;;  %v2010_v13 = vmul.f32 %v1977_v11, %v10030_v24 }
 0x443   : > { %v8384_v42 = vpop.permute.xlu0 %1762 }
 0x444   : > { %v1840_v29 = vsel %vm915_vm7, %v8384_v42, %v10026_v23  ;;  %v2491_v23 = vpack.c.bf16 %v2345_v45, %v2337_v39  ;;  %v2181_v45 = vmul.f32 %v2146_v4, %v10029_v37  ;;  %v8419_v39 = vpop.permute.xlu1 %2378  ;;  %v10035_v37 = vld [vmem:[#allocation18_spill] sm:$0xff] }
 0x445   : > { %v1842_v34 = vmul.f32 %v1840_v29, %v10027_v59 }
 0x447   : > { %v2432_v28 = vpack.c.bf16 %v1850_v48, %v1842_v34  ;;  %v2475_v34 = vpack.c.bf16 %v2181_v45, %v2173_v6  ;;  %v10038_v6 = vld [vmem:[#allocation33_spill] sm:$0xff] }
 0x449   : > { %2521 = vmatpush.bf16.msra.mxu0 %v2432_v28  ;;  %v10031_v28 = vld [vmem:[#allocation16_spill] sm:$0xff] }
 0x44a   : > { %v1789_v47 = vpop.permute.xlu2 %1788  ;;  %v2099_v27 = vmul.f32 %v2065_v21, %v10031_v28  ;;  %v2091_v20 = vmul.f32 %v2058_v33, %v10031_v28  ;;  %v1901_v21 = vsel %vm965_vm8, %v8232_v5, %v8379_v51  ;;  %v10040_v28 = vld [vmem:[#allocation31_spill] sm:$0xff]  ;;  %v2224_v5 = vsel %vm1164_vm3, %v7791_v22, %v8351_v35  ;;  %v10044_v22 = vld [vmem:[#allocation30_spill] sm:$0xff] }
 0x44b   : > { %v1967_v31 = vpop.permute.xlu0 %1966 }
 0x44c   : > { %v1984_v29 = vsel %vm1015_vm6, %v1967_v31, %v8021_v15  ;;  %2522 = vmatmul.bf16.vlgmr.msra.gmra.mxu0 %v10020_v25  ;;  %v1902_v15 = vsel %vm965_vm8, %v8379_v51, %v8283_v53  ;;  %v10032_v53 = vld [vmem:[#allocation57_spill] sm:$0xff]  ;;  %v1983_v8 = vsel %vm1015_vm6, %v8303_v56, %v1967_v31  ;;  %v2306_v31 = vsel %vm1214_vm1, %v10034_v63, %v8365_v43 }
 0x44d   : > { %2592 = vmatpush.bf16.msrb.mxu0 %v2491_v23  ;;  %v2018_v59 = vmul.f32 %v1984_v29, %v10030_v24  ;;  %v1813_v23 = vsel %vm915_vm7, %v1789_v47, %v8322_v62  ;;  %v1936_v4 = vmul.f32 %v1902_v15, %v10032_v53  ;;  %v1976_v62 = vsel %vm1015_vm6, %v8143_v41, %v8316_v3  ;;  %v10037_v24 = vld [vmem:[#allocation26_spill] sm:$0xff]  ;;  %v10041_v51 = vld [vmem:[#allocation81_spill] sm:$0xff] }
 0x44e   : > { %v2017_v45 = vmul.f32 %v1983_v8, %v10035_v37  ;;  %v2459_v29 = vpack.c.bf16 %v2099_v27, %v2091_v20  ;;  %v2009_v3 = vmul.f32 %v1976_v62, %v10035_v37  ;;  %v2313_v41 = vsel %vm1214_vm1, %v10036_v32, %v8327_v55  ;;  %v10042_v62 = vld [vmem:[#allocation32_spill] sm:$0xff] }
 0x44f   : > { %v2452_v48 = vpack.c.bf16 %v2018_v59, %v2010_v13  ;;  %v2420_v13 = vmul.f32 %v2386_v9, %v10037_v24  ;;  %v2332_v8 = vsel %vm1214_vm1, %v8365_v43, %v10041_v51  ;;  %v2258_v43 = vmul.f32 %v2224_v5, %v10042_v62  ;;  %v10052_v51 = vld [vmem:[#allocation29_spill] sm:$0xff] }
 0x451   : > { %2593 = vmatpush.bf16.msrb.mxu0 %v2483_v10  ;;  %2623 = vmatpush.bf16.msra.mxu3 %v2452_v48  ;;  %v2340_v48 = vmul.f32 %v2306_v31, %v10038_v6  ;;  %v10046_v31 = vld [vmem:[#allocation83_spill] sm:$0xff] }
 0x452   : > { %v8426_v14 = vpop.permute.xlu2 %2134 }
 0x453   : > { %v1871_v19 = vpop.permute.xlu0 %1870 }
 0x454   : > { %v1895_v0 = vsel %vm965_vm8, %v1871_v19, %v8217_v16  ;;  %v1846_v16 = vmul.f32 %v1813_v23, %v10033_v36  ;;  %v1894_v10 = vsel %vm965_vm8, %v8301_v57, %v1871_v19  ;;  %v10039_v57 = vld [vmem:[#allocation82_spill] sm:$0xff] }
 0x455   : > { %2594 = vmatpush.bf16.msrb.mxu0 %v2475_v34  ;;  %v1928_v11 = vmul.f32 %v1895_v0, %v10032_v53  ;;  %v8466_v34 = vpop.permute.xlu1 %1958  ;;  %v1927_v27 = vmul.f32 %v1894_v10, %v10040_v28  ;;  %v2348_v53 = vmul.f32 %v2313_v41, %v10038_v6  ;;  %v10047_v10 = vld [vmem:[#allocation85_spill] sm:$0xff] }
 0x456   : > { %v2436_v19 = vpack.c.bf16 %v1854_v26, %v1846_v16 }
 0x457   : > { %v2444_v56 = vpack.c.bf16 %v1936_v4, %v1928_v11  ;;  %v1812_v4 = vsel %vm915_vm7, %v8332_v17, %v1789_v47  ;;  %v1935_v11 = vmul.f32 %v1901_v21, %v10040_v28  ;;  %v2494_v2 = vpack.c.bf16 %v2348_v53, %v2340_v48  ;;  %v10043_v47 = vld [vmem:[#allocation74_spill] sm:$0xff] }
 0x458   : > { %v2333_v9 = vsel %vm1214_vm1, %v8327_v55, %v10043_v47  ;;  %v1845_v36 = vmul.f32 %v1812_v4, %v10044_v22  ;;  %v10049_v48 = vld [vmem:[#allocation34_spill] sm:$0xff] }
 0x459   : > { %2595 = vmatpush.bf16.msrb.mxu0 %v2467_v7  ;;  %2624 = vmatpush.bf16.msra.mxu3 %v2444_v56  ;;  %v2451_v7 = vpack.c.bf16 %v2017_v45, %v2009_v3  ;;  %v2443_v16 = vpack.c.bf16 %v1935_v11, %v1927_v27  ;;  %v10045_v56 = vld [vmem:[#allocation35_spill] sm:$0xff]  ;;  %v2250_v3 = vsel %vm1164_vm3, %v8351_v35, %v10047_v10  ;;  %v10050_v27 = vld [vmem:[#allocation36_spill] sm:$0xff]  ;;  %v10051_v53 = vld [vmem:[#allocation22_spill] sm:$0xff] }
 0x45a   : > { %v2377_v59 = vpop.permute.xlu2 %2376  ;;  %v2341_v63 = vmul.f32 %v2332_v8, %v10045_v56  ;;  %v2349_v45 = vmul.f32 %v2333_v9, %v10045_v56 }
 0x45b   : > { %v2393_v15 = vsel %vm1264_vm0, %v10039_v57, %v2377_v59  ;;  %v2217_v33 = vpop.permute.xlu0 %2216 }
 0x45c   : > { %v2428_v23 = vmul.f32 %v2393_v15, %v10037_v24  ;;  %v2231_v0 = vsel %vm1164_vm3, %v7893_v54, %v2217_v33  ;;  %v1819_v54 = vsel %vm915_vm7, %v8291_v49, %v8370_v30  ;;  %v2149_v30 = vsel %vm1114_vm4, %v7968_v12, %v8426_v14 }
 0x45d   : > { %2596 = vmatpush.bf16.msrb.mxu0 %v2459_v29  ;;  %2625 = vmatpush.bf16.msra.mxu3 %v2436_v19  ;;  %v2266_v17 = vmul.f32 %v2231_v0, %v10042_v62  ;;  %v1853_v49 = vmul.f32 %v1819_v54, %v10044_v22  ;;  %v2251_v55 = vsel %vm1164_vm3, %v2217_v33, %v10046_v31  ;;  %v2381_v24 = vpop.permute.xlu1 %2380  ;;  %v10055_v22 = vld [vmem:[#allocation14_spill] sm:$0xff] }
 0x45e   : > { %v2500_v20 = vpack.c.bf16 %v2428_v23, %v2420_v13  ;;  %v2495_v41 = vpack.c.bf16 %v2349_v45, %v2341_v63  ;;  %v10048_v13 = vld [vmem:[#allocation41_spill] sm:$0xff]  ;;  %v2267_v21 = vmul.f32 %v2251_v55, %v10049_v48  ;;  %v2259_v33 = vmul.f32 %v2250_v3, %v10049_v48  ;;  %v10057_v63 = vld [vmem:[#allocation51_spill] sm:$0xff]  ;;  %v10062_v48 = vld [vmem:[#allocation38_spill] sm:$0xff] }
 0x45f   : > { %v2486_v26 = vpack.c.bf16 %v2266_v17, %v2258_v43  ;;  %v2435_v12 = vpack.c.bf16 %v1853_v49, %v1845_v36  ;;  %v2184_v6 = vmul.f32 %v2149_v30, %v10048_v13  ;;  %v2169_v19 = vsel %vm1114_vm4, %v8426_v14, %v8023_v61  ;;  %v10056_v43 = vld [vmem:[#allocation84_spill] sm:$0xff]  ;;  %v10059_v55 = vld [vmem:[#allocation47_spill] sm:$0xff] }
 0x460   : > { %2638 = vmatpush.bf16.msra.mxu1 %v2500_v20  ;;  %2626 = vmatmul.bf16.vlgmr.msra.gmra.mxu3 %v10020_v25  ;;  %v2415_v28 = vsel %vm1264_vm0, %v2381_v24, %v8165_v44  ;;  %v2394_v0 = vsel %vm1264_vm0, %v2377_v59, %v8419_v39  ;;  %v2185_v5 = vmul.f32 %v2169_v19, %v10050_v27  ;;  %v10053_v20 = vld [vmem:[#allocation25_spill] sm:$0xff] }
 0x461   : > { %2597 = vmatpush.bf16.msrb.mxu0 %v2451_v7  ;;  %v2470_v44 = vpack.c.bf16 %v9995_v40, %v7574_v52  ;;  %v2431_v8 = vmul.f32 %v2415_v28, %v10052_v51  ;;  %v2429_v54 = vmul.f32 %v2394_v0, %v10053_v20  ;;  %v2471_v40 = vpack.c.bf16 %v7861_v58, %v7922_v50  ;;  %v2562_v50 = vpop.f32.mrf.mxu3  ;;  %v10058_v58 = vld [vmem:[#allocation45_spill] sm:$0xff]  ;;  %v10065_v28 = vld [vmem:[#allocation46_spill] sm:$0xff] }
 0x462   : > { %v2055_v37 = vpop.permute.xlu2 %2054 }
 0x463   : > { %v2119_v29 = vpop.permute.xlu0 %2118  ;;  %5488 = vmatmul.msk.bf16.vlgmr.msra.gmra.mxu1 %vm2510_vm15, %v8027_v18  ;;  %v2069_v36 = vsel %vm1065_vm5, %v2055_v37, %v10055_v22  ;;  %v10073_v22 = vld [vmem:[#allocation13_spill] sm:$0xff] }
 0x464   : > { %2670 = vmatpush.bf16.msrb.mxu1 %v2494_v2  ;;  %v2142_v32 = vsel %vm1114_vm4, %v7932_v38, %v2119_v29  ;;  %v2168_v15 = vsel %vm1114_vm4, %v2119_v29, %v8085_v46  ;;  %v2395_v38 = vsel %vm1264_vm0, %v8419_v39, %v2381_v24  ;;  %v2487_v46 = vpack.c.bf16 %v2267_v21, %v2259_v33  ;;  %v10061_v24 = vld [vmem:[#allocation12_spill] sm:$0xff] }
 0x465   : > { %2598 = vmatpush.bf16.msrb.mxu0 %v2443_v16  ;;  %v2176_v57 = vmul.f32 %v2142_v32, %v10048_v13  ;;  %v2177_v23 = vmul.f32 %v2168_v15, %v10050_v27  ;;  %v2430_v4 = vmul.f32 %v2395_v38, %v10051_v53  ;;  %v2103_v45 = vmul.f32 %v2069_v36, %v10059_v55  ;;  %v10064_v38 = vld [vmem:[#allocation44_spill] sm:$0xff] }
 0x466   : > { %v1980_v13 = vsel %vm1015_vm6, %v8466_v34, %v10061_v24 }
 0x467   : > { %v2478_v35 = vpack.c.bf16 %v2184_v6, %v2176_v57  ;;  %v2479_v62 = vpack.c.bf16 %v2185_v5, %v2177_v23  ;;  %v10063_v57 = vld [vmem:[#allocation43_spill] sm:$0xff]  ;;  %v2013_v27 = vmul.f32 %v1980_v13, %v10065_v28 }
 0x468   : > { %2671 = vmatpush.bf16.msrb.mxu1 %v2486_v26  ;;  %v2549_v26 = vpop.f32.mrf.mxu2 }
 0x469   : > { %2599 = vmatpush.bf16.msrb.mxu0 %v2435_v12  ;;  %v8563_v10 = vadd.f32 %v2562_v50, %v2549_v26  ;;  %v10060_v12 = vld [vmem:[#allocation39_spill] sm:$0xff] }
 0x46a   : > { %v2365_v7 = vpop.permute.xlu2 %2364 }
 0x46b   : > { %v2414_v61 = vsel %vm1264_vm0, %v2365_v7, %v7979_v60  ;;  %v2363_v14 = vpop.permute.xlu0 %2362 }
 0x46c   : > { %2600 = vmatmul.bf16.vlgmr.msrb.gmra.mxu0 %v10020_v25  ;;  %2672 = vmatpush.bf16.msrb.mxu1 %v2478_v35  ;;  %v2423_v11 = vmul.f32 %v2414_v61, %v10052_v51  ;;  %v2387_v39 = vsel %vm1264_vm0, %v8399_v1, %v2363_v14  ;;  %v2388_v59 = vsel %vm1264_vm0, %v2363_v14, %v2365_v7  ;;  %v10054_v1 = vld [vmem:[#allocation40_spill] sm:$0xff]  ;;  %v2564_v35 = vpop.f32.mrf.mxu3  ;;  %v10067_v61 = vld [vmem:[#allocation10_spill] sm:$0xff]  ;;  %v10068_v51 = vld [vmem:[#allocation7_spill] sm:$0xff] }
 0x46d   : > { %2696 = vmatpush.bf16.msra.mxu0 %v2495_v41  ;;  %v2421_v2 = vmul.f32 %v2387_v39, %v10053_v20  ;;  %v2422_v60 = vmul.f32 %v2388_v59, %v10051_v53  ;;  %v2068_v9 = vsel %vm1065_vm5, %v10054_v1, %v2055_v37  ;;  %v1979_v41 = vsel %vm1015_vm6, %v10060_v12, %v8466_v34  ;;  %v10070_v59 = vld [vmem:[#allocation53_spill] sm:$0xff] }
 0x46e   : > { %v2503_v17 = vpack.c.bf16 %v2431_v8, %v2423_v11  ;;  %v2102_v31 = vmul.f32 %v2068_v9, %v10058_v58  ;;  %v2012_v19 = vmul.f32 %v1979_v41, %v10064_v38  ;;  %v10069_v11 = vld [vmem:[#allocation60_spill] sm:$0xff] }
 0x46f   : > { %v2501_v47 = vpack.c.bf16 %v2429_v54, %v2421_v2  ;;  %v2502_v52 = vpack.c.bf16 %v2430_v4, %v2422_v60  ;;  %v10066_v4 = vld [vmem:[#allocation37_spill] sm:$0xff]  ;;  %v10071_v54 = vld [vmem:[#allocation55_spill] sm:$0xff] }
 0x470   : > { %2673 = vmatpush.bf16.msrb.mxu1 %v2470_v44  ;;  %v8555_v30 = vpop.f32.mrf.mxu1  ;;  %v2551_v0 = vpop.f32.mrf.mxu2 }
 0x471   : > { %2697 = vmatpush.bf16.msra.mxu0 %v2487_v46  ;;  %2664 = vmatpush.bf16.msrb.mxu2 %v2501_v47 }
 0x472   : > { %2690 = vmatpush.bf16.msrb.mxu3 %v2502_v52  ;;  %v1891_v7 = vpop.permute.xlu2 %1890 }
 0x473   : > { %v2041_v16 = vpop.permute.xlu0 %2040  ;;  %v1904_v5 = vsel %vm965_vm8, %v10066_v4, %v1891_v7  ;;  %v1905_v14 = vsel %vm965_vm8, %v1891_v7, %v10067_v61 }
 0x474   : > { %v2061_v56 = vsel %vm1065_vm5, %v10056_v43, %v2041_v16  ;;  %v2062_v49 = vsel %vm1065_vm5, %v2041_v16, %v10057_v63  ;;  %5489 = vmatmul.msk.bf16.vlgmr.msrb.gmra.mxu2 %vm2510_vm15, %v8027_v18  ;;  %v1938_v20 = vmul.f32 %v1904_v5, %v10070_v59  ;;  %v1939_v2 = vmul.f32 %v1905_v14, %v10071_v54  ;;  %v10074_v16 = vld [vmem:[#allocation19_spill] sm:$0xff] }
 0x475   : > { %2698 = vmatpush.bf16.msra.mxu0 %v2479_v62  ;;  %2716 = vmatpush.bf16.msra.mxu2 %v2503_v17  ;;  %v2094_v37 = vmul.f32 %v2061_v56, %v10058_v58  ;;  %v2095_v29 = vmul.f32 %v2062_v49, %v10059_v55  ;;  %v1795_v17 = vpop.permute.xlu1 %1794  ;;  %v10075_v56 = vld [vmem:[#allocation52_spill] sm:$0xff]  ;;  %v10076_v49 = vld [vmem:[#allocation54_spill] sm:$0xff] }
 0x476   : > { %5490 = vmatmul.msk.bf16.vlgmr.msrb.gmra.mxu3 %vm2510_vm15, %v8027_v18  ;;  %v1816_v9 = vsel %vm915_vm7, %v1795_v17, %v8384_v42 }
 0x477   : > { %v2462_v3 = vpack.c.bf16 %v2102_v31, %v2094_v37  ;;  %v2463_v32 = vpack.c.bf16 %v2103_v45, %v2095_v29  ;;  %v1849_v50 = vmul.f32 %v1816_v9, %v10076_v49  ;;  %v2588_v37 = vpop.f32.mrf.mxu3 }
 0x478   : > { %v2538_v33 = vpop.f32.mrf.mxu1  ;;  %v2614_v29 = vpop.f32.mrf.mxu2 }
 0x479   : > { %2699 = vmatpush.bf16.msra.mxu0 %v2471_v40  ;;  %2674 = vmatpush.bf16.msrb.mxu1 %v2462_v3  ;;  %v10072_v40 = vld [vmem:[#allocation8_spill] sm:$0xff] }
 0x47a   : > { %v1815_v1 = vsel %vm915_vm7, %v10072_v40, %v1795_v17 }
 0x47b   : > { %v1973_v6 = vpop.permute.xlu0 %1972  ;;  %v1848_v63 = vmul.f32 %v1815_v1, %v10075_v56 }
 0x47c   : > { %v1986_v21 = vsel %vm1015_vm6, %v10062_v48, %v1973_v6  ;;  %v1987_v15 = vsel %vm1015_vm6, %v1973_v6, %v10063_v57 }
 0x47d   : > { %2700 = vmatpush.bf16.msra.mxu0 %v2463_v32  ;;  %v2020_v23 = vmul.f32 %v1986_v21, %v10064_v38  ;;  %v2021_v46 = vmul.f32 %v1987_v15, %v10065_v28 }
 0x47f   : > { %v2454_v34 = vpack.c.bf16 %v2020_v23, %v2012_v19  ;;  %v2455_v53 = vpack.c.bf16 %v2021_v46, %v2013_v27  ;;  %v2590_v3 = vpop.f32.mrf.mxu3 }
 0x480   : > { %v2616_v32 = vpop.f32.mrf.mxu2 }
 0x481   : > { %2675 = vmatpush.bf16.msrb.mxu1 %v2454_v34  ;;  %2701 = vmatpush.bf16.msra.mxu0 %v2455_v53 }
 0x483   : > { %v1877_v44 = vpop.permute.xlu0 %1876 }
 0x484   : > { %v1897_v8 = vsel %vm965_vm8, %v10068_v51, %v1877_v44  ;;  %v1898_v39 = vsel %vm965_vm8, %v1877_v44, %v10069_v11  ;;  %5491 = vmatmul.msk.bf16.vlgmr.msra.gmra.mxu2 %vm2510_vm15, %v8027_v18  ;;  %vm3058_vm8 = vcmask 64512  }
 0x485   : > { %v1930_v60 = vmul.f32 %v1897_v8, %v10070_v59  ;;  %v1931_v62 = vmul.f32 %v1898_v39, %v10071_v54 }
 0x487   : > { %v2446_v47 = vpack.c.bf16 %v1938_v20, %v1930_v60  ;;  %v2447_v52 = vpack.c.bf16 %v1939_v2, %v1931_v62 }
 0x489   : > { %2676 = vmatpush.bf16.msrb.mxu1 %v2446_v47  ;;  %2702 = vmatpush.bf16.msra.mxu0 %v2447_v52 }
 0x48b   : > { %v1809_v18 = vpop.permute.xlu0 %1808 }
 0x48c   : > { %v1822_v36 = vsel %vm915_vm7, %v10073_v22, %v1809_v18  ;;  %v1823_v43 = vsel %vm915_vm7, %v1809_v18, %v10074_v16 }
 0x48d   : > { %v1856_v58 = vmul.f32 %v1822_v36, %v10075_v56  ;;  %v1857_v31 = vmul.f32 %v1823_v43, %v10076_v49 }
 0x48f   : > { %v2438_v55 = vpack.c.bf16 %v1856_v58, %v1848_v63  ;;  %v2439_v45 = vpack.c.bf16 %v1857_v31, %v1849_v50 }
 0x491   : > { %2677 = vmatpush.bf16.msrb.mxu1 %v2438_v55  ;;  %2703 = vmatpush.bf16.msra.mxu0 %v2439_v45 }
 0x494   : > { %2678 = vmatmul.bf16.vlgmr.msrb.gmra.mxu1 %v10020_v25  ;;  %2704 = vmatmul.bf16.vlgmr.msra.gmra.mxu0 %v10020_v25  ;;  %v8609_v25 = vmax.f32 %v8563_v10, 0.0 }
 0x496   : > { %v2779_v27 = vmul.f32 %v8609_v25, %v8609_v25 }
 0x498   : > { %v2792_v34 = vrot.slane %v2779_v27, 4 }
 0x49a   : > { %v2793_v11 = vadd.f32 %v2792_v34, %v2779_v27 }
 0x49c   : > { %v2794_v47 = vrot.slane %v2793_v11, 2 }
 0x49e   : > { %v2795_v50 = vadd.f32 %v2794_v47, %v2793_v11 }
 0x4b0   : > { %v2575_v42 = vpop.f32.mrf.mxu1 }
 0x4b1   : > { %v2589_v19 = vadd.f32 %v2588_v37, %v2575_v42 }
 0x4b3   : > { %v8617_v46 = vmax.f32 %v2589_v19, 0.0 }
 0x4b5   : > { %v2780_v5 = vmul.f32 %v8617_v46, %v8617_v46  ;;  %v2742_v20 = vrot.slane %v8617_v46, 4 }
 0x4b7   : > { %v2653_v41 = vpop.f32.mrf.mxu2  ;;  %v2798_v54 = vrot.slane %v2780_v5, 4  ;;  %v2743_v18 = vadd.f32 %v2742_v20, %v8617_v46 }
 0x4b8   : > { %v2577_v26 = vpop.f32.mrf.mxu1 }
 0x4b9   : > { %v2799_v22 = vadd.f32 %v2798_v54, %v2780_v5  ;;  %v2744_v45 = vrot.slane %v2743_v18, 2 }
 0x4bb   : > { %v2800_v42 = vrot.slane %v2799_v22, 2 }
 0x4bf   : > { %v2655_v13 = vpop.f32.mrf.mxu2 }
 0x4c9   : > { %v2523_v12 = vpop.f32.mrf.mxu0 }
 0x4ca   : > { %v2537_v33 = vadd.f32 %v8555_v30, %v2523_v12  ;;  %v2736_v30 = vrot.slane %v8609_v25, 4  ;;  %v2796_v12 = vrot.slane %v2795_v50, 1 }
 0x4cc   : > { %v8611_v38 = vmax.f32 %v2537_v33, 0.0  ;;  %v2737_v8 = vadd.f32 %v2736_v30, %v8609_v25  ;;  %v2797_v27 = vadd.f32 %v2796_v12, %v2795_v50 }
 0x4ce   : > { %v2778_v23 = vmul.f32 %v8611_v38, %v8611_v38  ;;  %v2730_v53 = vrot.slane %v8611_v38, 4  ;;  %v2738_v17 = vrot.slane %v2737_v8, 2 }
 0x4d0   : > { %v2786_v4 = vrot.slane %v2778_v23, 4  ;;  %v2731_v39 = vadd.f32 %v2730_v53, %v8611_v38  ;;  %v2739_v49 = vadd.f32 %v2738_v17, %v2737_v8 }
 0x4d1   : > { %v2525_v24 = vpop.f32.mrf.mxu0 }
 0x4d2   : > { %v2787_v59 = vadd.f32 %v2786_v4, %v2778_v23  ;;  %v2732_v1 = vrot.slane %v2731_v39, 2  ;;  %v2740_v32 = vrot.slane %v2739_v49, 1 }
 0x4d4   : > { %v2788_v9 = vrot.slane %v2787_v59, 2  ;;  %v2733_v31 = vadd.f32 %v2732_v1, %v2731_v39 }
 0x4d6   : > { %v2789_v55 = vadd.f32 %v2788_v9, %v2787_v59 }
 0x4e0   : > { %v2640_v6 = vpop.f32.mrf.mxu1 }
 0x4e3   : > { %v2627_v48 = vpop.f32.mrf.mxu3 }
 0x4e4   : > { %v2641_v7 = vadd.f32 %v2640_v6, %v2627_v48  ;;  %v2734_v6 = vrot.slane %v2733_v31, 1  ;;  %v2790_v48 = vrot.slane %v2789_v55, 1 }
 0x4e6   : > { %v8629_v44 = vmax.f32 %v2641_v7, 0.0  ;;  %v2735_v30 = vadd.f32 %v2734_v6, %v2733_v31  ;;  %v2791_v34 = vadd.f32 %v2790_v48, %v2789_v55 }
 0x4e8   : > { %v2642_v57 = vpop.f32.mrf.mxu1  ;;  %v2782_v60 = vmul.f32 %v8629_v44, %v8629_v44  ;;  %v2754_v43 = vrot.slane %v8629_v44, 4  ;;  %v2834_v20 = vsel %vm1628_vm10, %v2735_v30, %v2791_v34 }
 0x4e9   : > { %v2601_v21 = vpop.f32.mrf.mxu0  ;;  %v2801_v57 = vadd.f32 %v2800_v42, %v2799_v22 }
 0x4ea   : > { %v2615_v28 = vadd.f32 %v2614_v29, %v2601_v21  ;;  %v2810_v56 = vrot.slane %v2782_v60, 4  ;;  %v2755_v29 = vadd.f32 %v2754_v43, %v8629_v44  ;;  %v2745_v21 = vadd.f32 %v2744_v45, %v2743_v18 }
 0x4eb   : > { %v2629_v15 = vpop.f32.mrf.mxu3  ;;  %v2802_v53 = vrot.slane %v2801_v57, 1 }
 0x4ec   : > { %v8619_v0 = vmax.f32 %v2615_v28, 0.0  ;;  %v2811_v26 = vadd.f32 %v2810_v56, %v2782_v60  ;;  %v2756_v33 = vrot.slane %v2755_v29, 2  ;;  %v2741_v28 = vadd.f32 %v2740_v32, %v2739_v49 }
 0x4ed   : > { %v2842_v49 = vsel %vm1637_vm11, %v2834_v20, 0.0 }
 0x4ee   : > { %v2781_v14 = vmul.f32 %v8619_v0, %v8619_v0  ;;  %v2748_v52 = vrot.slane %v8619_v0, 4  ;;  %v2757_v5 = vadd.f32 %v2756_v33, %v2755_v29  ;;  %v2835_v59 = vsel %vm1628_vm10, %v2741_v28, %v2797_v27 }
 0x4f0   : > { %v2804_v2 = vrot.slane %v2781_v14, 4  ;;  %v2749_v58 = vadd.f32 %v2748_v52, %v8619_v0  ;;  %v2758_v17 = vrot.slane %v2757_v5, 1 }
 0x4f1   : > { %v2603_v35 = vpop.f32.mrf.mxu0 }
 0x4f2   : > { %v2805_v16 = vadd.f32 %v2804_v2, %v2781_v14  ;;  %v2812_v35 = vrot.slane %v2811_v26, 2  ;;  %v2803_v2 = vadd.f32 %v2802_v53, %v2801_v57  ;;  %v2759_v50 = vadd.f32 %v2758_v17, %v2757_v5 }
 0x4f4   : > { %v2806_v37 = vrot.slane %v2805_v16, 2  ;;  %v2813_v14 = vadd.f32 %v2812_v35, %v2811_v26 }
 0x4f6   : > { %v2807_v15 = vadd.f32 %v2806_v37, %v2805_v16  ;;  %v2814_v47 = vrot.slane %v2813_v14, 1  ;;  %v2843_v16 = vsel %vm1637_vm11, %v2835_v59, 0.0 }
 0x4f7   : > { %v2666_v10 = vpop.f32.mrf.mxu2  ;;  %v2844_v26 = vadd.f32 %v2843_v16, %v2842_v49 }
 0x4f8   : > { %v2667_v51 = vadd.f32 %v2666_v10, %v2653_v41  ;;  %v2750_v41 = vrot.slane %v2749_v58, 2  ;;  %v2746_v10 = vrot.slane %v2745_v21, 1  ;;  %v2808_v4 = vrot.slane %v2807_v15, 1 }
 0x4f9   : > { %v8625_v61 = vpop.f32.mrf.mxu3 }
 0x4fa   : > { %v8636_v62 = vmax.f32 %v2667_v51, 0.0  ;;  %v2751_v23 = vadd.f32 %v2750_v41, %v2749_v58  ;;  %v2747_v54 = vadd.f32 %v2746_v10, %v2745_v21  ;;  %v2809_v60 = vadd.f32 %v2808_v4, %v2807_v15 }
 0x4fb   : > { %v2815_v58 = vadd.f32 %v2814_v47, %v2813_v14 }
 0x4fc   : > { %v2783_v63 = vmul.f32 %v8636_v62, %v8636_v62  ;;  %v2760_v24 = vrot.slane %v8636_v62, 4  ;;  %v2752_v8 = vrot.slane %v2751_v23, 1 }
 0x4fd   : > { %v2838_v21 = vsel %vm1628_vm10, %v2759_v50, %v2815_v58 }
 0x4fe   : > { %v2816_v3 = vrot.slane %v2783_v63, 4  ;;  %v2761_v7 = vadd.f32 %v2760_v24, %v8636_v62  ;;  %v2753_v22 = vadd.f32 %v2752_v8, %v2751_v23  ;;  %v2849_v4 = vsel %vm1637_vm11, %v2838_v21, 0.0 }
 0x4ff   : > { %v2668_v40 = vpop.f32.mrf.mxu2 }
 0x500   : > { %v2817_v19 = vadd.f32 %v2816_v3, %v2783_v63  ;;  %v2762_v11 = vrot.slane %v2761_v7, 2  ;;  %v2836_v63 = vsel %vm1628_vm10, %v2747_v54, %v2803_v2  ;;  %v2837_v55 = vsel %vm1628_vm10, %v2753_v22, %v2809_v60 }
 0x501   : > { %v2694_v36 = vpop.f32.mrf.mxu3  ;;  %v2845_v3 = vsel %vm1637_vm11, %v2836_v63, 0.0  ;;  %v2847_v57 = vsel %vm1637_vm11, %v2837_v55, 0.0 }
 0x502   : > { %v2818_v51 = vrot.slane %v2817_v19, 2  ;;  %v2763_v36 = vadd.f32 %v2762_v11, %v2761_v7  ;;  %v2846_v27 = vadd.f32 %v2845_v3, %v2844_v26 }
 0x504   : > { %v2819_v52 = vadd.f32 %v2818_v51, %v2817_v19  ;;  %v2764_v29 = vrot.slane %v2763_v36, 1  ;;  %v2848_v53 = vadd.f32 %v2847_v57, %v2846_v27 }
 0x506   : > { %v2820_v31 = vrot.slane %v2819_v52, 1  ;;  %v2765_v28 = vadd.f32 %v2764_v29, %v2763_v36  ;;  %v2850_v59 = vadd.f32 %v2849_v4, %v2848_v53 }
 0x507   : > { %v2718_v13 = vpop.f32.mrf.mxu2 }
 0x508   : > { %v2821_v48 = vadd.f32 %v2820_v31, %v2819_v52 }
 0x50a   : > { %v2839_v10 = vsel %vm1628_vm10, %v2765_v28, %v2821_v48 }
 0x50b   : > { %v2851_v20 = vsel %vm1637_vm11, %v2839_v10, 0.0 }
 0x50f   : > { %v2720_v39 = vpop.f32.mrf.mxu2 }
 0x511   : > { %v2679_v40 = vpop.f32.mrf.mxu1  ;;  %v2705_v1 = vpop.f32.mrf.mxu0 }
 0x512   : > { %v2693_v9 = vadd.f32 %v8625_v61, %v2679_v40  ;;  %v2719_v18 = vadd.f32 %v2718_v13, %v2705_v1  ;;  %v2852_v40 = vadd.f32 %v2851_v20, %v2850_v59  ;;  %v1758_v59 = vld [vmem:[%s10078_s6 + $0x30] sm:$0xff]  ;;  %v1759_v20 = vld [vmem:[%s10078_s6 + $0x38] sm:$0xff] }
 0x514   : > { %v8651_v43 = vmax.f32 %v2693_v9, 0.0  ;;  %v8653_v56 = vmax.f32 %v2719_v18, 0.0 }
 0x516   : > { %v2766_v61 = vrot.slane %v8651_v43, 4  ;;  %v2784_v45 = vmul.f32 %v8651_v43, %v8651_v43  ;;  %v2772_v42 = vrot.slane %v8653_v56, 4  ;;  %v2785_v37 = vmul.f32 %v8653_v56, %v8653_v56 }
 0x518   : > { %v2767_v32 = vadd.f32 %v2766_v61, %v8651_v43  ;;  %v2822_v12 = vrot.slane %v2784_v45, 4  ;;  %v2773_v41 = vadd.f32 %v2772_v42, %v8653_v56  ;;  %v2828_v24 = vrot.slane %v2785_v37, 4 }
 0x519   : > { %v2681_v13 = vpop.f32.mrf.mxu1  ;;  %v2707_v6 = vpop.f32.mrf.mxu0 }
 0x51a   : > { %v2768_v15 = vrot.slane %v2767_v32, 2  ;;  %v2823_v33 = vadd.f32 %v2822_v12, %v2784_v45  ;;  %v2774_v35 = vrot.slane %v2773_v41, 2  ;;  %v2829_v19 = vadd.f32 %v2828_v24, %v2785_v37  ;;  %v1745_v24 = vld [vmem:[%s10077_s29 + $0x8] sm:$0xff]  ;;  %v1746_v6 = vld [vmem:[%s10077_s29 + $0x10] sm:$0xff] }
 0x51c   : > { %v2769_v23 = vadd.f32 %v2768_v15, %v2767_v32  ;;  %v2824_v7 = vrot.slane %v2823_v33, 2  ;;  %v2775_v30 = vadd.f32 %v2774_v35, %v2773_v41  ;;  %v2830_v34 = vrot.slane %v2829_v19, 2  ;;  %v1744_v41 = vld [vmem:[%s10077_s29] sm:$0xff] }
 0x51d   : > { %v1752_v15 = vld [vmem:[%s10078_s6] sm:$0xff] }
 0x51e   : > { %v2770_v5 = vrot.slane %v2769_v23, 1  ;;  %v2825_v14 = vadd.f32 %v2824_v7, %v2823_v33  ;;  %v2776_v51 = vrot.slane %v2775_v30, 1  ;;  %v2831_v8 = vadd.f32 %v2830_v34, %v2829_v19  ;;  %v1753_v33 = vld [vmem:[%s10078_s6 + $0x8] sm:$0xff]  ;;  %v1755_v34 = vld [vmem:[%s10078_s6 + $0x18] sm:$0xff] }
 0x51f   : > { %v1749_v7 = vld [vmem:[%s10077_s29 + $0x28] sm:$0xff] }
 0x520   : > { %v2826_v11 = vrot.slane %v2825_v14, 1  ;;  %v2832_v39 = vrot.slane %v2831_v8, 1  ;;  %v2771_v54 = vadd.f32 %v2770_v5, %v2769_v23  ;;  %v2777_v2 = vadd.f32 %v2776_v51, %v2775_v30  ;;  %v1750_v30 = vld [vmem:[%s10077_s29 + $0x30] sm:$0xff] }
 0x522   : > { %v2827_v60 = vadd.f32 %v2826_v11, %v2825_v14  ;;  %v2833_v17 = vadd.f32 %v2832_v39, %v2831_v8  ;;  %v1757_v39 = vld [vmem:[%s10078_s6 + $0x28] sm:$0xff] }
 0x524   : > { %v2840_v47 = vsel %vm1628_vm10, %v2771_v54, %v2827_v60  ;;  %v2841_v52 = vsel %vm1628_vm10, %v2777_v2, %v2833_v17 }
 0x525   : > { %v2853_v1 = vsel %vm1637_vm11, %v2840_v47, 0.0  ;;  %v2855_v18 = vsel %vm1637_vm11, %v2841_v52, 0.0 }
 0x526   : > { %v2854_v9 = vadd.f32 %v2853_v1, %v2852_v40 }
 0x528   : > { %v2856_v22 = vadd.f32 %v2855_v18, %v2854_v9 }
 0x52a   : > { %2857 = vadd.xlane.f32.xlu2 %v2856_v22 }
 0x59d   : > { %v2858_v36 = vpop.xlane.xlu2 %2857 }
 0x59e   : > { %v2859_v16 = vmul.f32 0.00012207031, %v2858_v36 }
 0x5a0   : > { %v2860_v63 = vmul.f32 %v2859_v16, %v2859_v16  ;;  %v2877_v32 = vperm.slane %v2859_v16, 0 }
 0x5a2   : > { %v2862_v49 = vrot.slane %v2860_v63, 7  ;;  %v2878_v12 = vsub.f32 %v8611_v38, %v2877_v32  ;;  %v2879_v13 = vsub.f32 %v8609_v25, %v2877_v32  ;;  %v2880_v48 = vsub.f32 %v8617_v46, %v2877_v32  ;;  %v1748_v25 = vld [vmem:[%s10077_s29 + $0x20] sm:$0xff]  ;;  %v1747_v46 = vld [vmem:[%s10077_s29 + $0x18] sm:$0xff] }
 0x5a3   : > { %v2882_v21 = vsub.f32 %v8629_v44, %v2877_v32  ;;  %v2881_v38 = vsub.f32 %v8619_v0, %v2877_v32  ;;  %v2883_v44 = vsub.f32 %v8636_v62, %v2877_v32  ;;  %v2884_v0 = vsub.f32 %v8651_v43, %v2877_v32  ;;  %v1751_v62 = vld [vmem:[%s10077_s29 + $0x38] sm:$0xff]  ;;  %v1754_v43 = vld [vmem:[%s10078_s6 + $0x10] sm:$0xff] }
 0x5a4   : > { %v2864_v50 = vsub.f32 %v2859_v16, %v2862_v49  ;;  %v2885_v35 = vsub.f32 %v8653_v56, %v2877_v32  ;;  %v1756_v56 = vld [vmem:[%s10078_s6 + $0x20] sm:$0xff] }
 0x5a6   : > { %v2865_v58 = vmax.f32 %v2864_v50, 0.0 }
 0x5a8   : > { %v2866_v31 = vadd.f32 1e-05, %v2865_v58 }
 0x5aa   : > { %6456 = vrsqrt.f32 %v2866_v31  ;;  %vm2873_vm6 = vweird.f32 %v2866_v31 }
 0x5b0   : > { %v6457_v55 = vpop.eup %6456 }
 0x5b1   : > { %v2868_v61 = vmul.f32 %v6457_v55, %v2866_v31  ;;  %vm2874_vm3 = vweird.f32 %v6457_v55 }
 0x5b2   : > { %vm2875_vm7 = vmor %vm2873_vm6, %vm2874_vm3 }
 0x5b3   : > { %v2869_v45 = vmul.f32 %v6457_v55, %v2868_v61 }
 0x5b5   : > { %v2870_v42 = vmul.f32 0.5, %v2869_v45 }
 0x5b7   : > { %v2871_v37 = vsub.f32 1.5, %v2870_v42 }
 0x5b9   : > { %v2872_v29 = vmul.f32 %v6457_v55, %v2871_v37 }
 0x5bb   : > { %v2876_v26 = vsel %vm2875_vm7, %v6457_v55, %v2872_v29  ;;  %v6102_v29 = vld [vmem:[%s10079_s30] sm:$0xff] }
 0x5bc   : > { %v2887_v3 = vrot.slane %v2876_v26, 1 }
 0x5be   : > { %6253 = vpush %v2887_v3 }
 0x5ef   : > { %s6254_s0 = spop %6253 }
 0x5f0   : > { %v2889_v57 = vstv %s6254_s0  ;;  %s10091_s0 = sld [smem:[#allocation89_spill]] }
 0x5f1   : > { %v2891_v19 = vmul.f32 %v2889_v57, %v2878_v12  ;;  %v2892_v28 = vmul.f32 %v2889_v57, %v2879_v13  ;;  %v2893_v27 = vmul.f32 %v2889_v57, %v2880_v48  ;;  %v2895_v23 = vmul.f32 %v2889_v57, %v2882_v21 }
 0x5f2   : > { %v2894_v10 = vmul.f32 %v2889_v57, %v2881_v38  ;;  %v2896_v53 = vmul.f32 %v2889_v57, %v2883_v44  ;;  %v2897_v4 = vmul.f32 %v2889_v57, %v2884_v0  ;;  %v2898_v5 = vmul.f32 %v2889_v57, %v2885_v35 }
 0x5f3   : > { %v2899_v14 = vmul.f32 %v2891_v19, %v1744_v41  ;;  %v2900_v51 = vmul.f32 %v2892_v28, %v1745_v24  ;;  %v2901_v8 = vmul.f32 %v2893_v27, %v1746_v6  ;;  %v2903_v11 = vmul.f32 %v2895_v23, %v1748_v25 }
 0x5f4   : > { %v2902_v54 = vmul.f32 %v2894_v10, %v1747_v46  ;;  %v2904_v2 = vmul.f32 %v2896_v53, %v1749_v7  ;;  %v2905_v60 = vmul.f32 %v2897_v4, %v1750_v30  ;;  %v2906_v17 = vmul.f32 %v2898_v5, %v1751_v62  ;;  %v5562_v62 = vld [vmem:[#allocation2 + $0x70] sm:$0xf]  ;;  %v6116_v10 = vld [vmem:[#allocation2 + $0x64] sm:$0xf0]  ;;  %v6114_v5 = vld [vmem:[#allocation2 + $0x54] sm:$0xf0] }
 0x5f5   : > { %v2907_v47 = vadd.f32 %v2899_v14, %v1752_v15  ;;  %v2908_v52 = vadd.f32 %v2900_v51, %v1753_v33  ;;  %v2909_v40 = vadd.f32 %v2901_v8, %v1754_v43  ;;  %v2911_v1 = vadd.f32 %v2903_v11, %v1756_v56  ;;  %v6118_v43 = vld [vmem:[#allocation2 + $0x74] sm:$0xf0]  ;;  %v5554_v56 = vld [vmem:[#allocation2 + $0x60] sm:$0xf]  ;;  %v5546_v4 = vld [vmem:[#allocation2 + $0x50] sm:$0xf] }
 0x5f6   : > { %v2910_v9 = vadd.f32 %v2902_v54, %v1755_v34  ;;  %v2912_v18 = vadd.f32 %v2904_v2, %v1757_v39  ;;  %v2913_v22 = vadd.f32 %v2905_v60, %v1758_v59  ;;  %v2914_v36 = vadd.f32 %v2906_v17, %v1759_v20  ;;  %v5538_v51 = vld [vmem:[#allocation2 + $0x40] sm:$0xf]  ;;  %v6112_v8 = vld [vmem:[#allocation2 + $0x44] sm:$0xf0]  ;;  %v5530_v2 = vld [vmem:[#allocation2 + $0x30] sm:$0xf] }
 0x5f7   : > { %v3045_v16 = vpack.c.bf16 %v2907_v47, %v2907_v47  ;;  %v3046_v63 = vpack.c.bf16 %v2908_v52, %v2908_v52  ;;  %v3047_v49 = vpack.c.bf16 %v2909_v40, %v2909_v40  ;;  %v3049_v50 = vpack.c.bf16 %v2911_v1, %v2911_v1  ;;  %v6110_v60 = vld [vmem:[#allocation2 + $0x34] sm:$0xf0]  ;;  %v5626_v17 = vld [vmem:[#allocation2 + $0xf0] sm:$0xf] }
 0x5f8   : > { %v3048_v58 = vpack.c.bf16 %v2910_v9, %v2910_v9  ;;  %v3050_v31 = vpack.c.bf16 %v2912_v18, %v2912_v18  ;;  %v3051_v55 = vpack.c.bf16 %v2913_v22, %v2913_v22  ;;  %v3052_v12 = vpack.c.bf16 %v2914_v36, %v2914_v36  ;;  %v6134_v52 = vld [vmem:[#allocation2 + $0xf4] sm:$0xf0]  ;;  %v5690_v40 = vld [vmem:[#allocation2 + $0x170] sm:$0xf] }
 0x5f9   : > { %v3063_v61 = vsel %vm1347_vm2, %v3045_v16, 0  ;;  %v3066_v45 = vsel %vm1347_vm2, %v3046_v63, 0  ;;  %v3069_v42 = vsel %vm1347_vm2, %v3047_v49, 0  ;;  %v3075_v37 = vsel %vm1347_vm2, %v3049_v50, 0  ;;  %v6150_v1 = vld [vmem:[#allocation2 + $0x174] sm:$0xf0] }
 0x5fa   : > { %3093 = vmatpush.bf16.msra.mxu3 %v3063_v61  ;;  %3107 = vmatpush.bf16.msra.mxu1 %v3066_v45  ;;  %v3072_v26 = vsel %vm1347_vm2, %v3048_v58, 0  ;;  %v3078_v3 = vsel %vm1347_vm2, %v3050_v31, 0  ;;  %v3081_v32 = vsel %vm1347_vm2, %v3051_v55, 0  ;;  %v3084_v41 = vsel %vm1347_vm2, %v3052_v12, 0  ;;  %v5754_v22 = vld [vmem:[#allocation2 + $0x1f0] sm:$0xf] }
 0x5fb   : > { %3121 = vmatpush.bf16.msrb.mxu2 %v3069_v42  ;;  %3149 = vmatpush.bf16.msrb.mxu0 %v3075_v37  ;;  %v5563_v34 = vor.u32 %v6118_v43, %v5562_v62  ;;  %v5555_v53 = vor.u32 %v6116_v10, %v5554_v56  ;;  %v5547_v14 = vor.u32 %v6114_v5, %v5546_v4  ;;  %v6166_v36 = vld [vmem:[#allocation2 + $0x1f4] sm:$0xf0]  ;;  %v5522_v16 = vld [vmem:[#allocation2 + $0x20] sm:$0xf]  ;;  %v6108_v49 = vld [vmem:[#allocation2 + $0x24] sm:$0xf0] }
 0x5fc   : > { %v5539_v59 = vor.u32 %v6112_v8, %v5538_v51  ;;  %v5531_v47 = vor.u32 %v6110_v60, %v5530_v2  ;;  %v5627_v9 = vor.u32 %v6134_v52, %v5626_v17  ;;  %v5691_v18 = vor.u32 %v6150_v1, %v5690_v40  ;;  %v5618_v50 = vld [vmem:[#allocation2 + $0xe0] sm:$0xf]  ;;  %v6132_v58 = vld [vmem:[#allocation2 + $0xe4] sm:$0xf0]  ;;  %v5610_v12 = vld [vmem:[#allocation2 + $0xd0] sm:$0xf] }
 0x5fd   : > { %5496 = vmatmul.msk.bf16.vlgmr.msra.gmra.mxu3 %vm3058_vm8, %v6102_v29  ;;  %5497 = vmatmul.msk.bf16.vlgmr.msra.gmra.mxu1 %vm3058_vm8, %v6102_v29  ;;  %v5755_v63 = vor.u32 %v6166_v36, %v5754_v22  ;;  %v5523_v31 = vor.u32 %v6108_v49, %v5522_v16  ;;  %v5619_v55 = vor.u32 %v6132_v58, %v5618_v50  ;;  %v5682_v61 = vld [vmem:[#allocation2 + $0x160] sm:$0xf]  ;;  %v6148_v45 = vld [vmem:[#allocation2 + $0x164] sm:$0xf0]  ;;  %v6162_v62 = vld [vmem:[#allocation2 + $0x1d4] sm:$0xf0] }
 0x5fe   : > { %3135 = vmatpush.bf16.msrb.mxu3 %v3072_v26  ;;  %3163 = vmatpush.bf16.msrb.mxu1 %v3078_v3  ;;  %v5746_v42 = vld [vmem:[#allocation2 + $0x1e0] sm:$0xf]  ;;  %v5683_v37 = vor.u32 %v6148_v45, %v5682_v61  ;;  %v5514_v3 = vld [vmem:[#allocation2 + $0x10] sm:$0xf]  ;;  %v6144_v51 = vld [vmem:[#allocation2 + $0x144] sm:$0xf0] }
 0x5ff   : > { %3177 = vmatpush.bf16.msra.mxu2 %v3081_v32  ;;  %5500 = vmatmul.msk.bf16.vlgmr.msrb.gmra.mxu0 %vm3058_vm8, %v6102_v29  ;;  %v6106_v32 = vld [vmem:[#allocation2 + $0x14] sm:$0xf0]  ;;  %v5506_v43 = vld [vmem:[#allocation2] sm:$0xf]  ;;  %v5658_v40 = vld [vmem:[#allocation2 + $0x130] sm:$0xf] }
 0x600   : > { %5498 = vmatmul.msk.bf16.vlgmr.msrb.gmra.mxu2 %vm3058_vm8, %v6102_v29  ;;  %4108 = vmatpush.bf16.msra.mxu0 %v5563_v34  ;;  %v6104_v34 = vld [vmem:[#allocation2 + $0x4] sm:$0xf0]  ;;  %v5602_v10 = vld [vmem:[#allocation2 + $0xc0] sm:$0xf]  ;;  %v6182_v2 = vld [vmem:[#allocation2 + $0x274] sm:$0xf0] }
 0x601   : > { %v5507_v4 = vor.u32 %v6104_v34, %v5506_v43  ;;  %v5730_v8 = vld [vmem:[#allocation2 + $0x1c0] sm:$0xf]  ;;  %v6126_v52 = vld [vmem:[#allocation2 + $0xb4] sm:$0xf0]  ;;  %v6180_v49 = vld [vmem:[#allocation2 + $0x264] sm:$0xf0] }
 0x602   : > { %3191 = vmatpush.bf16.msra.mxu3 %v3084_v41  ;;  %4122 = vmatpush.bf16.msra.mxu1 %v5627_v9  ;;  %v5515_v41 = vor.u32 %v6106_v32, %v5514_v3  ;;  %v6142_v9 = vld [vmem:[#allocation2 + $0x134] sm:$0xf0]  ;;  %v5586_v50 = vld [vmem:[#allocation2 + $0xa0] sm:$0xf]  ;;  %v6140_v61 = vld [vmem:[#allocation2 + $0x124] sm:$0xf0] }
 0x603   : > { %4136 = vmatpush.bf16.msrb.mxu2 %v5691_v18  ;;  %v5722_v18 = vld [vmem:[#allocation2 + $0x1b0] sm:$0xf]  ;;  %v6158_v22 = vld [vmem:[#allocation2 + $0x1b4] sm:$0xf0]  ;;  %v5659_v36 = vor.u32 %v6142_v9, %v5658_v40  ;;  %v6176_v34 = vld [vmem:[#allocation2 + $0x244] sm:$0xf0] }
 0x604   : > { %4109 = vmatpush.bf16.msra.mxu0 %v5555_v53  ;;  %v6128_v53 = vld [vmem:[#allocation2 + $0xc4] sm:$0xf0]  ;;  %v5723_v16 = vor.u32 %v6158_v22, %v5722_v18  ;;  %v6178_v32 = vld [vmem:[#allocation2 + $0x254] sm:$0xf0]  ;;  %v5946_v9 = vld [vmem:[#allocation2 + $0x370] sm:$0xf] }
 0x605   : > { %v5603_v5 = vor.u32 %v6128_v53, %v5602_v10  ;;  %v5570_v10 = vld [vmem:[#allocation2 + $0x80] sm:$0xf]  ;;  %v6214_v18 = vld [vmem:[#allocation2 + $0x374] sm:$0xf0]  ;;  %v6010_v22 = vld [vmem:[#allocation2 + $0x3f0] sm:$0xf] }
 0x606   : > { %4123 = vmatpush.bf16.msra.mxu1 %v5619_v55  ;;  %v5650_v55 = vld [vmem:[#allocation2 + $0x120] sm:$0xf] }
 0x607   : > { %4137 = vmatpush.bf16.msrb.mxu2 %v5683_v37  ;;  %v5714_v37 = vld [vmem:[#allocation2 + $0x1a0] sm:$0xf] }
 0x608   : > { %4110 = vmatpush.bf16.msra.mxu0 %v5547_v14  ;;  %v5666_v14 = vld [vmem:[#allocation2 + $0x140] sm:$0xf] }
 0x60c   : > { %4111 = vmatpush.bf16.msra.mxu0 %v5539_v59  ;;  %v5667_v59 = vor.u32 %v6144_v51, %v5666_v14  ;;  %v6136_v14 = vld [vmem:[#allocation2 + $0x104] sm:$0xf0] }
 0x60d   : > { %5499 = vmatmul.msk.bf16.vlgmr.msrb.gmra.mxu3 %vm3058_vm8, %v6102_v29  ;;  %5501 = vmatmul.msk.bf16.vlgmr.msrb.gmra.mxu1 %vm3058_vm8, %v6102_v29 }
 0x60e   : > { %4150 = vmatpush.bf16.msrb.mxu3 %v5755_v63  ;;  %v5810_v63 = vld [vmem:[#allocation2 + $0x260] sm:$0xf] }
 0x60f   : > { %v5811_v58 = vor.u32 %v6180_v49, %v5810_v63  ;;  %v6230_v63 = vld [vmem:[#allocation2 + $0x3f4] sm:$0xf0] }
 0x610   : > { %5502 = vmatmul.msk.bf16.vlgmr.msra.gmra.mxu2 %vm3058_vm8, %v6102_v29  ;;  %4112 = vmatpush.bf16.msra.mxu0 %v5531_v47  ;;  %v5594_v47 = vld [vmem:[#allocation2 + $0xb0] sm:$0xf]  ;;  %v6011_v49 = vor.u32 %v6230_v63, %v6010_v22 }
 0x611   : > { %v5595_v1 = vor.u32 %v6126_v52, %v5594_v47  ;;  %v5882_v47 = vld [vmem:[#allocation2 + $0x2f0] sm:$0xf]  ;;  %v6198_v52 = vld [vmem:[#allocation2 + $0x2f4] sm:$0xf0] }
 0x612   : > { %v5850_v22 = vld [vmem:[#allocation2 + $0x2b0] sm:$0xf] }
 0x613   : > { %v5914_v63 = vld [vmem:[#allocation2 + $0x330] sm:$0xf] }
 0x614   : > { %4113 = vmatpush.bf16.msra.mxu0 %v5523_v31  ;;  %v6124_v31 = vld [vmem:[#allocation2 + $0xa4] sm:$0xf0] }
 0x615   : > { %v5587_v45 = vor.u32 %v6124_v31, %v5586_v50  ;;  %v5778_v50 = vld [vmem:[#allocation2 + $0x220] sm:$0xf] }
 0x616   : > { %v5874_v31 = vld [vmem:[#allocation2 + $0x2e0] sm:$0xf] }
 0x618   : > { %4114 = vmatpush.bf16.msra.mxu0 %v5515_v41  ;;  %v5578_v41 = vld [vmem:[#allocation2 + $0x90] sm:$0xf] }
 0x61c   : > { %4115 = vmatpush.bf16.msra.mxu0 %v5507_v4  ;;  %v6120_v4 = vld [vmem:[#allocation2 + $0x84] sm:$0xf0] }
 0x61d   : > { %5503 = vmatmul.msk.bf16.vlgmr.msra.gmra.mxu3 %vm3058_vm8, %v6102_v29  ;;  %v6164_v29 = vld [vmem:[#allocation2 + $0x1e4] sm:$0xf0] }
 0x61e   : > { %v5747_v26 = vor.u32 %v6164_v29, %v5746_v42  ;;  %v5651_v42 = vor.u32 %v6140_v61, %v5650_v55  ;;  %v6156_v29 = vld [vmem:[#allocation2 + $0x1a4] sm:$0xf0] }
 0x61f   : > { %v5715_v3 = vor.u32 %v6156_v29, %v5714_v37  ;;  %v6212_v37 = vld [vmem:[#allocation2 + $0x364] sm:$0xf0] }
 0x620   : > { %4151 = vmatpush.bf16.msrb.mxu3 %v5747_v26  ;;  %v5802_v26 = vld [vmem:[#allocation2 + $0x250] sm:$0xf] }
 0x67a   : > { %v8751_v24 = vpop.f32.mrf.mxu1 }
 0x67c   : > { %v8753_v13 = vpop.f32.mrf.mxu0 }
 0x680   : > { %v8755_v6 = vpop.f32.mrf.mxu3 }
 0x681   : > { %v6309_v48 = vpack.i.bf16 %v8751_v24, %v8755_v6 }
 0x682   : > { %v8759_v21 = vpop.f32.mrf.mxu1 }
 0x683   : > { %6310 = vrot.lane.b32.xlu0 %v6309_v48, %s9938_s1  ;;  %6305 = vrot.lane.b32.xlu1 %v6309_v48, %s9937_s28  ;;  %v8773_v25 = vpop.f32.mrf.mxu2 }
 0x684   : > { %v8763_v38 = vpop.f32.mrf.mxu0 }
 0x685   : > { %v6319_v15 = vpack.i.bf16 %v8763_v38, %v8759_v21 }
 0x688   : > { %v8765_v57 = vpop.f32.mrf.mxu3 }
 0x689   : > { %v6339_v44 = vpack.i.bf16 %v8765_v57, %v8753_v13 }
 0x68a   : > { %v8771_v33 = vpop.f32.mrf.mxu1 }
 0x68b   : > { %6315 = vrot.lane.b32.xlu0 %v6309_v48, %s9941_s2  ;;  %6320 = vrot.lane.b32.xlu1 %v6319_v15, %s9937_s28  ;;  %v8791_v28 = vpop.f32.mrf.mxu2  ;;  %v6130_v48 = vld [vmem:[#allocation2 + $0xd4] sm:$0xf0] }
 0x690   : > { %v8775_v46 = vpop.f32.mrf.mxu3 }
 0x691   : > { %v6359_v0 = vpack.i.bf16 %v8775_v46, %v8773_v25 }
 0x692   : > { %v8784_v35 = vpop.f32.mrf.mxu1 }
 0x693   : > { %6325 = vrot.lane.b32.xlu0 %v6319_v15, %s9938_s1  ;;  %6340 = vrot.lane.b32.xlu1 %v6339_v44, %s9938_s1  ;;  %v6364_v19 = vpack.i.bf16 %v8784_v35, %v8771_v33  ;;  %v8800_v7 = vpop.f32.mrf.mxu2 }
 0x694   : > { %6360 = vrot.lane.b32.xlu2 %v6359_v0, %s9941_s2 }
 0x698   : > { %v8793_v27 = vpop.f32.mrf.mxu3 }
 0x699   : > { %v6379_v23 = vpack.i.bf16 %v8793_v27, %v8791_v28 }
 0x69b   : > { %6330 = vrot.lane.b32.xlu0 %v6319_v15, %s9941_s2  ;;  %6345 = vrot.lane.b32.xlu1 %v6339_v44, %s9941_s2  ;;  %v8809_v11 = vpop.f32.mrf.mxu2  ;;  %v5674_v15 = vld [vmem:[#allocation2 + $0x150] sm:$0xf] }
 0x69c   : > { %6365 = vrot.lane.b32.xlu2 %v6364_v19, %s9937_s28 }
 0x6a0   : > { %v8802_v30 = vpop.f32.mrf.mxu3 }
 0x6a1   : > { %v6389_v20 = vpack.i.bf16 %v8802_v30, %v8800_v7 }
 0x6a3   : > { %6335 = vrot.lane.b32.xlu0 %v6339_v44, %s9937_s28  ;;  %6350 = vrot.lane.b32.xlu1 %v6359_v0, %s9937_s28  ;;  %v6146_v44 = vld [vmem:[#allocation2 + $0x154] sm:$0xf0] }
 0x6a4   : > { %6370 = vrot.lane.b32.xlu2 %v6364_v19, %s9938_s1 }
 0x6a8   : > { %v8811_v39 = vpop.f32.mrf.mxu3 }
 0x6a9   : > { %v6404_v54 = vpack.i.bf16 %v8811_v39, %v8809_v11 }
 0x6ab   : > { %6355 = vrot.lane.b32.xlu0 %v6359_v0, %s9938_s1  ;;  %6380 = vrot.lane.b32.xlu1 %v6379_v23, %s9938_s1  ;;  %v5611_v0 = vor.u32 %v6130_v48, %v5610_v12  ;;  %v5803_v12 = vor.u32 %v6178_v32, %v5802_v26  ;;  %v6122_v48 = vld [vmem:[#allocation2 + $0x94] sm:$0xf0] }
 0x6ac   : > { %6420 = vrot.lane.b32.xlu2 %v6364_v19, %s9941_s2  ;;  %v5675_v19 = vor.u32 %v6146_v44, %v5674_v15  ;;  %v5642_v15 = vld [vmem:[#allocation2 + $0x110] sm:$0xf]  ;;  %v5579_v44 = vor.u32 %v6122_v48, %v5578_v41  ;;  %v6228_v41 = vld [vmem:[#allocation2 + $0x3e4] sm:$0xf0] }
 0x6ad   : > { %4124 = vmatpush.bf16.msra.mxu1 %v5611_v0  ;;  %v6138_v0 = vld [vmem:[#allocation2 + $0x114] sm:$0xf0]  ;;  %v5770_v48 = vld [vmem:[#allocation2 + $0x210] sm:$0xf] }
 0x6ae   : > { %4138 = vmatpush.bf16.msrb.mxu2 %v5675_v19  ;;  %v5706_v19 = vld [vmem:[#allocation2 + $0x190] sm:$0xf] }
 0x6b1   : > { %4125 = vmatpush.bf16.msra.mxu1 %v5603_v5  ;;  %v5634_v5 = vld [vmem:[#allocation2 + $0x100] sm:$0xf] }
 0x6b2   : > { %4139 = vmatpush.bf16.msrb.mxu2 %v5667_v59  ;;  %v5571_v59 = vor.u32 %v6120_v4, %v5570_v10  ;;  %v6226_v10 = vld [vmem:[#allocation2 + $0x3d4] sm:$0xf0] }
 0x6b3   : > { %6375 = vrot.lane.b32.xlu0 %v6379_v23, %s9937_s28  ;;  %6385 = vrot.lane.b32.xlu1 %v6379_v23, %s9941_s2  ;;  %v5738_v23 = vld [vmem:[#allocation2 + $0x1d0] sm:$0xf] }
 0x6b4   : > { %v5739_v56 = vor.u32 %v6162_v62, %v5738_v23  ;;  %v6154_v23 = vld [vmem:[#allocation2 + $0x194] sm:$0xf0]  ;;  %v5643_v62 = vor.u32 %v6138_v0, %v5642_v15 }
 0x6b5   : > { %4126 = vmatpush.bf16.msra.mxu1 %v5595_v1  ;;  %v5707_v43 = vor.u32 %v6154_v23, %v5706_v19  ;;  %v6170_v15 = vld [vmem:[#allocation2 + $0x214] sm:$0xf0] }
 0x6b6   : > { %4152 = vmatpush.bf16.msrb.mxu3 %v5739_v56  ;;  %4140 = vmatpush.bf16.msrb.mxu2 %v5659_v36  ;;  %v5794_v56 = vld [vmem:[#allocation2 + $0x240] sm:$0xf]  ;;  %v5883_v36 = vor.u32 %v6198_v52, %v5882_v47  ;;  %v6194_v0 = vld [vmem:[#allocation2 + $0x2d4] sm:$0xf0]  ;;  %v5771_v23 = vor.u32 %v6170_v15, %v5770_v48 }
 0x6b7   : > { %v5795_v53 = vor.u32 %v6176_v34, %v5794_v56  ;;  %v5994_v56 = vld [vmem:[#allocation2 + $0x3d0] sm:$0xf] }
 0x6b8   : > { %v5995_v4 = vor.u32 %v6226_v10, %v5994_v56  ;;  %v6186_v56 = vld [vmem:[#allocation2 + $0x294] sm:$0xf0] }
 0x6b9   : > { %4127 = vmatpush.bf16.msra.mxu1 %v5587_v45  ;;  %v6196_v45 = vld [vmem:[#allocation2 + $0x2e4] sm:$0xf0]  ;;  %v6202_v10 = vld [vmem:[#allocation2 + $0x314] sm:$0xf0] }
 0x6ba   : > { %4141 = vmatpush.bf16.msrb.mxu2 %v5651_v42  ;;  %v5938_v42 = vld [vmem:[#allocation2 + $0x360] sm:$0xf] }
 0x6bb   : > { %6405 = vrot.lane.b32.xlu0 %v6404_v54, %s9937_s28  ;;  %6390 = vrot.lane.b32.xlu1 %v6389_v20, %s9937_s28  ;;  %v5939_v32 = vor.u32 %v6212_v37, %v5938_v42  ;;  %v5842_v42 = vld [vmem:[#allocation2 + $0x2a0] sm:$0xf]  ;;  %v6188_v37 = vld [vmem:[#allocation2 + $0x2a4] sm:$0xf0] }
 0x6bc   : > { %v5843_v15 = vor.u32 %v6188_v37, %v5842_v42 }
 0x6bd   : > { %4128 = vmatpush.bf16.msra.mxu1 %v5579_v44  ;;  %v5866_v44 = vld [vmem:[#allocation2 + $0x2d0] sm:$0xf] }
 0x6be   : > { %4142 = vmatpush.bf16.msrb.mxu2 %v5643_v62  ;;  %v5930_v62 = vld [vmem:[#allocation2 + $0x350] sm:$0xf]  ;;  %v5867_v34 = vor.u32 %v6194_v0, %v5866_v44  ;;  %v6204_v44 = vld [vmem:[#allocation2 + $0x324] sm:$0xf0]  ;;  %v5970_v0 = vld [vmem:[#allocation2 + $0x3a0] sm:$0xf] }
 0x6c1   : > { %4129 = vmatpush.bf16.msra.mxu1 %v5571_v59  ;;  %v5858_v59 = vld [vmem:[#allocation2 + $0x2c0] sm:$0xf] }
 0x6c3   : > { %6410 = vrot.lane.b32.xlu0 %v6404_v54, %s9938_s1  ;;  %6395 = vrot.lane.b32.xlu1 %v6389_v20, %s9938_s1  ;;  %s6519_s1 = smov 113  }
 0x6c5   : > { %4178 = vmatpush.bf16.msrb.mxu1 %v5883_v36  ;;  %v6190_v36 = vld [vmem:[#allocation2 + $0x2b4] sm:$0xf0] }
 0x6cb   : > { %6415 = vrot.lane.b32.xlu0 %v6404_v54, %s9941_s2  ;;  %6400 = vrot.lane.b32.xlu1 %v6389_v20, %s9941_s2  ;;  %v6160_v20 = vld [vmem:[#allocation2 + $0x1c4] sm:$0xf0]  ;;  %v5818_v54 = vld [vmem:[#allocation2 + $0x270] sm:$0xf]  ;;  %s6520_s2 = smov 112  }
 0x6cc   : > { %v5731_v60 = vor.u32 %v6160_v20, %v5730_v8  ;;  %v5819_v17 = vor.u32 %v6182_v2, %v5818_v54  ;;  %v5635_v20 = vor.u32 %v6136_v14, %v5634_v5  ;;  %v5698_v54 = vld [vmem:[#allocation2 + $0x180] sm:$0xf]  ;;  %v6152_v2 = vld [vmem:[#allocation2 + $0x184] sm:$0xf0] }
 0x6cd   : > { %v5699_v40 = vor.u32 %v6152_v2, %v5698_v54  ;;  %v5762_v5 = vld [vmem:[#allocation2 + $0x200] sm:$0xf]  ;;  %v6168_v14 = vld [vmem:[#allocation2 + $0x204] sm:$0xf0] }
 0x6ce   : > { %4153 = vmatpush.bf16.msrb.mxu3 %v5731_v60  ;;  %4164 = vmatpush.bf16.msrb.mxu0 %v5819_v17  ;;  %v5786_v60 = vld [vmem:[#allocation2 + $0x230] sm:$0xf]  ;;  %v6174_v17 = vld [vmem:[#allocation2 + $0x234] sm:$0xf0]  ;;  %v6192_v54 = vld [vmem:[#allocation2 + $0x2c4] sm:$0xf0] }
 0x6cf   : > { %v5787_v1 = vor.u32 %v6174_v17, %v5786_v60  ;;  %4143 = vmatpush.bf16.msrb.mxu2 %v5635_v20  ;;  %v5763_v20 = vor.u32 %v6168_v14, %v5762_v5  ;;  %v5922_v2 = vld [vmem:[#allocation2 + $0x340] sm:$0xf]  ;;  %v6208_v60 = vld [vmem:[#allocation2 + $0x344] sm:$0xf0]  ;;  %v5859_v52 = vor.u32 %v6192_v54, %v5858_v59  ;;  %v6218_v5 = vld [vmem:[#allocation2 + $0x394] sm:$0xf0] }
 0x6d2   : > { %4154 = vmatpush.bf16.msrb.mxu3 %v5723_v16  ;;  %4165 = vmatpush.bf16.msrb.mxu0 %v5811_v58  ;;  %v5947_v16 = vor.u32 %v6214_v18, %v5946_v9  ;;  %v6172_v58 = vld [vmem:[#allocation2 + $0x224] sm:$0xf0] }
 0x6d3   : > { %v5779_v61 = vor.u32 %v6172_v58, %v5778_v50  ;;  %v6224_v9 = vld [vmem:[#allocation2 + $0x3c4] sm:$0xf0]  ;;  %v5978_v50 = vld [vmem:[#allocation2 + $0x3b0] sm:$0xf]  ;;  %v5851_v58 = vor.u32 %v6190_v36, %v5850_v22 }
 0x6d4   : > { %4192 = vmatpush.bf16.msra.mxu2 %v5947_v16  ;;  %v6200_v36 = vld [vmem:[#allocation2 + $0x304] sm:$0xf0] }
 0x6d6   : > { %4155 = vmatpush.bf16.msrb.mxu3 %v5715_v3  ;;  %4166 = vmatpush.bf16.msrb.mxu0 %v5803_v12  ;;  %v5875_v3 = vor.u32 %v6196_v45, %v5874_v31  ;;  %v6002_v12 = vld [vmem:[#allocation2 + $0x3e0] sm:$0xf]  ;;  %v6222_v31 = vld [vmem:[#allocation2 + $0x3b4] sm:$0xf0] }
 0x6d7   : > { %v6003_v19 = vor.u32 %v6228_v41, %v6002_v12  ;;  %v5979_v45 = vor.u32 %v6222_v31, %v5978_v50 }
 0x6d8   : > { %4179 = vmatpush.bf16.msrb.mxu1 %v5875_v3  ;;  %4193 = vmatpush.bf16.msra.mxu2 %v5939_v32  ;;  %v5906_v3 = vld [vmem:[#allocation2 + $0x320] sm:$0xf] }
 0x6da   : > { %4156 = vmatpush.bf16.msrb.mxu3 %v5707_v43  ;;  %4167 = vmatpush.bf16.msrb.mxu0 %v5795_v53  ;;  %v6210_v43 = vld [vmem:[#allocation2 + $0x354] sm:$0xf0] }
 0x6db   : > { %v5931_v53 = vor.u32 %v6210_v43, %v5930_v62  ;;  %v5907_v62 = vor.u32 %v6204_v44, %v5906_v3 }
 0x6dc   : > { %4180 = vmatpush.bf16.msrb.mxu1 %v5867_v34  ;;  %v5898_v34 = vld [vmem:[#allocation2 + $0x310] sm:$0xf] }
 0x6dd   : > { %4194 = vmatpush.bf16.msra.mxu2 %v5931_v53 }
 0x6de   : > { %4157 = vmatpush.bf16.msrb.mxu3 %v5699_v40  ;;  %4168 = vmatpush.bf16.msrb.mxu0 %v5787_v1  ;;  %v5923_v40 = vor.u32 %v6208_v60, %v5922_v2  ;;  %v5986_v1 = vld [vmem:[#allocation2 + $0x3c0] sm:$0xf]  ;;  %v6184_v60 = vld [vmem:[#allocation2 + $0x284] sm:$0xf0] }
 0x6df   : > { %v5987_v16 = vor.u32 %v6224_v9, %v5986_v1  ;;  %v5826_v2 = vld [vmem:[#allocation2 + $0x280] sm:$0xf] }
 0x6e0   : > { %4181 = vmatpush.bf16.msrb.mxu1 %v5859_v52  ;;  %v5890_v52 = vld [vmem:[#allocation2 + $0x300] sm:$0xf]  ;;  %v5827_v22 = vor.u32 %v6184_v60, %v5826_v2  ;;  %v6117_v60 = vld [vmem:[#allocation2 + $0x74] sm:$0xf] }
 0x6e1   : > { %4195 = vmatpush.bf16.msra.mxu2 %v5923_v40 }
 0x6e2   : > { %4206 = vmatpush.bf16.msra.mxu3 %v6011_v49  ;;  %4169 = vmatpush.bf16.msrb.mxu0 %v5779_v61  ;;  %v6206_v49 = vld [vmem:[#allocation2 + $0x334] sm:$0xf0] }
 0x6e3   : > { %v5915_v61 = vor.u32 %v6206_v49, %v5914_v63  ;;  %v6216_v63 = vld [vmem:[#allocation2 + $0x384] sm:$0xf0] }
 0x6e4   : > { %4182 = vmatpush.bf16.msrb.mxu1 %v5851_v58 }
 0x6e5   : > { %4196 = vmatpush.bf16.msra.mxu2 %v5915_v61 }
 0x6e6   : > { %4207 = vmatpush.bf16.msra.mxu3 %v6003_v19  ;;  %4170 = vmatpush.bf16.msrb.mxu0 %v5771_v23  ;;  %v6220_v19 = vld [vmem:[#allocation2 + $0x3a4] sm:$0xf0]  ;;  %v5834_v23 = vld [vmem:[#allocation2 + $0x290] sm:$0xf] }
 0x6e7   : > { %v5971_v43 = vor.u32 %v6220_v19, %v5970_v0  ;;  %v5835_v59 = vor.u32 %v6186_v56, %v5834_v23 }
 0x6e8   : > { %4183 = vmatpush.bf16.msrb.mxu1 %v5843_v15 }
 0x6e9   : > { %4197 = vmatpush.bf16.msra.mxu2 %v5907_v62 }
 0x6ea   : > { %4208 = vmatpush.bf16.msra.mxu3 %v5995_v4  ;;  %4171 = vmatpush.bf16.msrb.mxu0 %v5763_v20  ;;  %v5962_v4 = vld [vmem:[#allocation2 + $0x390] sm:$0xf]  ;;  %v5899_v20 = vor.u32 %v6202_v10, %v5898_v34 }
 0x6eb   : > { %v5963_v54 = vor.u32 %v6218_v5, %v5962_v4 }
 0x6ec   : > { %4184 = vmatpush.bf16.msrb.mxu1 %v5835_v59 }
 0x6ed   : > { %4198 = vmatpush.bf16.msra.mxu2 %v5899_v20 }
 0x6ee   : > { %v8827_v55 = vpop.permute.xlu2 %6360  ;;  %4209 = vmatpush.bf16.msra.mxu3 %v5987_v16  ;;  %v5954_v16 = vld [vmem:[#allocation2 + $0x380] sm:$0xf] }
 0x6ef   : > { %v5955_v3 = vor.u32 %v6216_v63, %v5954_v16  ;;  %v6362_v20 = vunpack.i.l.bf16 %v8827_v55 }
 0x6f0   : > { %4185 = vmatpush.bf16.msrb.mxu1 %v5827_v22 }
 0x6f2   : > { %4210 = vmatpush.bf16.msra.mxu3 %v5979_v45  ;;  %v5891_v45 = vor.u32 %v6200_v36, %v5890_v52  ;;  %v5564_v52 = vld [vmem:[#allocation2 + $0x78] sm:$0xf0] }
 0x6f4   : > { %4199 = vmatpush.bf16.msra.mxu2 %v5891_v45 }
 0x6f5   : > { %v8823_v51 = vpop.permute.xlu0 %6310  ;;  %v8825_v8 = vpop.permute.xlu1 %6305 }
 0x6f6   : > { %v8837_v18 = vpop.permute.xlu2 %6365  ;;  %v6308_v32 = vunpack.i.h.bf16 %v8825_v8  ;;  %v9851_v12 = vunpack.i.l.bf16 %v8825_v8  ;;  %4211 = vmatpush.bf16.msra.mxu3 %v5971_v43  ;;  %v6313_v40 = vunpack.i.h.bf16 %v8823_v51  ;;  %v9848_v1 = vunpack.i.l.bf16 %v8823_v51 }
 0x6f7   : > { %v9853_v15 = vunpack.i.h.bf16 %v8837_v18  ;;  %v6363_v43 = vunpack.i.h.bf16 %v8827_v55  ;;  %v9850_v4 = vunpack.i.l.bf16 %v8837_v18 }
 0x6f8   : > { %v3246_v14 = vsel %vm1114_vm4, %v9851_v12, %v6308_v32  ;;  %v3328_v62 = vsel %vm1214_vm1, %v9848_v1, %v6313_v40 }
 0x6f9   : > { %v3280_v9 = vmax.f32 %v8755_v6, %v3246_v14 }
 0x6fa   : > { %4212 = vmatpush.bf16.msra.mxu3 %v5963_v54 }
 0x6fb   : > { %v3362_v10 = vmax.f32 %v3280_v9, %v3328_v62 }
 0x6fd   : > { %v8829_v29 = vpop.permute.xlu0 %6315  ;;  %v8831_v26 = vpop.permute.xlu1 %6320 }
 0x6fe   : > { %v8845_v53 = vpop.permute.xlu2 %6370  ;;  %v6318_v49 = vunpack.i.h.bf16 %v8829_v29  ;;  %v9846_v50 = vunpack.i.l.bf16 %v8829_v29  ;;  %v6322_v58 = vunpack.i.l.bf16 %v8831_v26  ;;  %v6323_v44 = vunpack.i.h.bf16 %v8831_v26  ;;  %4213 = vmatpush.bf16.msra.mxu3 %v5955_v3 }
 0x6ff   : > { %v9854_v54 = vunpack.i.h.bf16 %v8845_v53  ;;  %v6372_v36 = vunpack.i.l.bf16 %v8845_v53 }
 0x700   : > { %v3410_v56 = vsel %vm1264_vm0, %v9846_v50, %v6318_v49  ;;  %v3257_v22 = vsel %vm1114_vm4, %v6323_v44, %v9853_v15  ;;  %v8931_v15 = vsel %vm1264_vm0, %v6318_v49, %v6362_v20 }
 0x701   : > { %v3444_v9 = vmax.f32 %v3362_v10, %v3410_v56 }
 0x705   : > { %v8833_v17 = vpop.permute.xlu0 %6325  ;;  %v8835_v47 = vpop.permute.xlu1 %6340 }
 0x706   : > { %v6327_v42 = vunpack.i.l.bf16 %v8833_v17  ;;  %v9849_v6 = vunpack.i.h.bf16 %v8835_v47  ;;  %v8890_v14 = vpop.permute.xlu2 %6420  ;;  %v6342_v16 = vunpack.i.l.bf16 %v8835_v47 }
 0x707   : > { %v9855_v63 = vunpack.i.h.bf16 %v8890_v14  ;;  %v9856_v45 = vunpack.i.l.bf16 %v8890_v14 }
 0x708   : > { %v3335_v5 = vsel %vm1214_vm1, %v9849_v6, %v6327_v42  ;;  %v5556_v6 = vld [vmem:[#allocation2 + $0x68] sm:$0xf0] }
 0x70d   : > { %v8841_v41 = vpop.permute.xlu0 %6330  ;;  %v8843_v48 = vpop.permute.xlu1 %6345 }
 0x70e   : > { %v6332_v0 = vunpack.i.l.bf16 %v8841_v41  ;;  %v9847_v19 = vunpack.i.h.bf16 %v8843_v48  ;;  %v6347_v1 = vunpack.i.l.bf16 %v8843_v48 }
 0x710   : > { %v3417_v55 = vsel %vm1264_vm0, %v9847_v19, %v6332_v0  ;;  %v6333_v19 = vunpack.i.h.bf16 %v8841_v41  ;;  %v9017_v41 = vld [vmem:[#allocation2 + $0x28] sm:$0xf0] }
 0x715   : > { %v8858_v31 = vpop.permute.xlu0 %6335  ;;  %v8860_v61 = vpop.permute.xlu1 %6350 }
 0x716   : > { %v9852_v37 = vunpack.i.h.bf16 %v8858_v31  ;;  %v6337_v59 = vunpack.i.l.bf16 %v8858_v31  ;;  %v6352_v10 = vunpack.i.l.bf16 %v8860_v61 }
 0x718   : > { %v3253_v23 = vsel %vm1114_vm4, %v9852_v37, %v6322_v58  ;;  %v3250_v56 = vsel %vm1114_vm4, %v6337_v59, %v9850_v4  ;;  %v3292_v4 = vmax.f32 %v8763_v38, %v3257_v22  ;;  %v8940_v38 = vld [vmem:[#allocation2 + $0x48] sm:$0xf0] }
 0x719   : > { %v3288_v34 = vmax.f32 %v8765_v57, %v3253_v23  ;;  %v6328_v57 = vunpack.i.h.bf16 %v8833_v17 }
 0x71b   : > { %v3370_v2 = vmax.f32 %v3288_v34, %v3335_v5  ;;  %v6353_v34 = vunpack.i.h.bf16 %v8860_v61  ;;  %v5567_v5 = vor.u32 %v6117_v60, %v5564_v52  ;;  %v3339_v50 = vsel %vm1214_vm1, %v6328_v57, %v9854_v54  ;;  %v6113_v61 = vld [vmem:[#allocation2 + $0x54] sm:$0xf]  ;;  %v5548_v60 = vld [vmem:[#allocation2 + $0x58] sm:$0xf0] }
 0x71c   : > { %v8928_v52 = vsel %vm1264_vm0, %v6362_v20, %v6363_v43  ;;  %v3332_v54 = vsel %vm1214_vm1, %v6342_v16, %v6372_v36  ;;  %v8942_v22 = vmax.f32 %v3292_v4, %v3339_v50  ;;  %v8961_v50 = vsel %vm1264_vm0, %v6347_v1, %v9856_v45 }
 0x71d   : > { %v6356_v3 = vpop.permute.xlu0 %6355  ;;  %v8910_v23 = vpop.permute.xlu1 %6380  ;;  %v3452_v62 = vmax.f32 %v3370_v2, %v3417_v55  ;;  %v6115_v55 = vld [vmem:[#allocation2 + $0x64] sm:$0xf]  ;;  %v3248_v49 = vsel %vm1114_vm4, %v6352_v10, %v6353_v34  ;;  %v3249_v4 = vsel %vm1114_vm4, %v6353_v34, %v6337_v59 }
 0x71e   : > { %v6358_v12 = vunpack.i.h.bf16 %v6356_v3  ;;  %v6357_v37 = vunpack.i.l.bf16 %v6356_v3  ;;  %v3247_v3 = vsel %vm1114_vm4, %v6308_v32, %v6352_v10  ;;  %v5559_v20 = vor.u32 %v6115_v55, %v5556_v6 }
 0x71f   : > { %v8924_v2 = vpack.c.bf16 %v3452_v62, %v3444_v9  ;;  %v3284_v9 = vmax.f32 %v8753_v13, %v3250_v56  ;;  %v8938_v62 = vld [vmem:[#allocation2 + $0x44] sm:$0xf]  ;;  %v8953_v13 = vsel %vm1264_vm0, %v6333_v19, %v9855_v63  ;;  %v8956_v56 = vsel %vm1264_vm0, %v6363_v43, %v6347_v1 }
 0x720   : > { %v5551_v32 = vor.u32 %v6113_v61, %v5548_v60  ;;  %v3329_v6 = vsel %vm1214_vm1, %v6313_v40, %v6357_v37  ;;  %v3330_v10 = vsel %vm1214_vm1, %v6357_v37, %v6358_v12  ;;  %v3281_v43 = vmax.f32 %v8751_v24, %v3247_v3 }
 0x721   : > { %4116 = vmatmul.bf16.vlgmr.msra.gmra.mxu0 %v8924_v2  ;;  %v8970_v55 = vmax.f32 %v3284_v9, %v3332_v54  ;;  %v3282_v63 = vmax.f32 %v8773_v25, %v3248_v49  ;;  %v6383_v1 = vunpack.i.h.bf16 %v8910_v23  ;;  %v3331_v59 = vsel %vm1214_vm1, %v6358_v12, %v6342_v16 }
 0x722   : > { %4220 = vmatpush.bf16.msra.mxu0 %v5567_v5  ;;  %v5543_v5 = vor.u32 %v8938_v62, %v8940_v38  ;;  %v6382_v34 = vunpack.i.l.bf16 %v8910_v23  ;;  %v3283_v37 = vmax.f32 %v8775_v46, %v3249_v4  ;;  %v3363_v62 = vmax.f32 %v3281_v43, %v3329_v6  ;;  %v5628_v4 = vld [vmem:[#allocation2 + $0xf8] sm:$0xf0] }
 0x723   : > { %v3364_v54 = vmax.f32 %v3282_v63, %v3330_v10  ;;  %v3338_v63 = vsel %vm1214_vm1, %v6383_v1, %v6328_v57  ;;  %v6133_v57 = vld [vmem:[#allocation2 + $0xf4] sm:$0xf]  ;;  %v5692_v6 = vld [vmem:[#allocation2 + $0x178] sm:$0xf0] }
 0x724   : > { %v3365_v23 = vmax.f32 %v3283_v37, %v3331_v59  ;;  %v3337_v26 = vsel %vm1214_vm1, %v6382_v34, %v6383_v1  ;;  %v6165_v10 = vld [vmem:[#allocation2 + $0x1f4] sm:$0xf]  ;;  %v5756_v59 = vld [vmem:[#allocation2 + $0x1f8] sm:$0xf0]  ;;  %v9027_v37 = vld [vmem:[#allocation2 + $0x168] sm:$0xf0] }
 0x725   : > { %v6376_v61 = vpop.permute.xlu0 %6375  ;;  %v6386_v60 = vpop.permute.xlu1 %6385  ;;  %v3446_v17 = vmax.f32 %v3364_v54, %v8928_v52 }
 0x726   : > { %v6378_v40 = vunpack.i.h.bf16 %v6376_v61  ;;  %v6377_v45 = vunpack.i.l.bf16 %v6376_v61  ;;  %4221 = vmatpush.bf16.msra.mxu0 %v5559_v20  ;;  %v6388_v9 = vunpack.i.h.bf16 %v6386_v60  ;;  %v6387_v16 = vunpack.i.l.bf16 %v6386_v60  ;;  %v9000_v20 = vld [vmem:[#allocation2 + $0x38] sm:$0xf0] }
 0x728   : > { %v3254_v24 = vsel %vm1114_vm4, %v6322_v58, %v6377_v45  ;;  %v3255_v25 = vsel %vm1114_vm4, %v6377_v45, %v6378_v40  ;;  %v3256_v12 = vsel %vm1114_vm4, %v6378_v40, %v6323_v44  ;;  %v3336_v58 = vsel %vm1214_vm1, %v6327_v42, %v6382_v34  ;;  %v9021_v34 = vld [vmem:[#allocation2 + $0xe4] sm:$0xf]  ;;  %v9023_v40 = vld [vmem:[#allocation2 + $0xe8] sm:$0xf0] }
 0x729   : > { %v3289_v38 = vmax.f32 %v8759_v21, %v3254_v24  ;;  %v3290_v3 = vmax.f32 %v8791_v28, %v3255_v25  ;;  %v3291_v46 = vmax.f32 %v8793_v27, %v3256_v12  ;;  %v3448_v44 = vmax.f32 %v8970_v55, %v8961_v50  ;;  %v8998_v27 = vld [vmem:[#allocation2 + $0x34] sm:$0xf]  ;;  %v9035_v25 = vld [vmem:[#allocation2 + $0x1e4] sm:$0xf]  ;;  %v9037_v12 = vld [vmem:[#allocation2 + $0x1e8] sm:$0xf0] }
 0x72a   : > { %4222 = vmatpush.bf16.msra.mxu0 %v5551_v32  ;;  %v3445_v21 = vmax.f32 %v3363_v62, %v8931_v15  ;;  %v3420_v42 = vsel %vm1264_vm0, %v6388_v9, %v6333_v19  ;;  %v3418_v50 = vsel %vm1264_vm0, %v6332_v0, %v6387_v16  ;;  %v3419_v15 = vsel %vm1264_vm0, %v6387_v16, %v6388_v9  ;;  %v6149_v32 = vld [vmem:[#allocation2 + $0x174] sm:$0xf]  ;;  %v9015_v19 = vld [vmem:[#allocation2 + $0x24] sm:$0xf]  ;;  %v9045_v16 = vld [vmem:[#allocation2 + $0xd8] sm:$0xf0] }
 0x72b   : > { %v3371_v45 = vmax.f32 %v3289_v38, %v3336_v58  ;;  %v3372_v28 = vmax.f32 %v3290_v3, %v3337_v26  ;;  %v3373_v49 = vmax.f32 %v3291_v46, %v3338_v63  ;;  %v3447_v55 = vmax.f32 %v3365_v23, %v8956_v56  ;;  %v9025_v56 = vld [vmem:[#allocation2 + $0x164] sm:$0xf]  ;;  %v9049_v3 = vld [vmem:[#allocation2 + $0x154] sm:$0xf]  ;;  %v9051_v46 = vld [vmem:[#allocation2 + $0x158] sm:$0xf0] }
 0x72c   : > { %v3456_v0 = vmax.f32 %v8942_v22, %v8953_v13  ;;  %v5631_v24 = vor.u32 %v6133_v57, %v5628_v4  ;;  %v9039_v22 = vld [vmem:[#allocation2 + $0x14] sm:$0xf]  ;;  %v9041_v13 = vld [vmem:[#allocation2 + $0x18] sm:$0xf0]  ;;  %v5535_v23 = vor.u32 %v8998_v27, %v9000_v20  ;;  %v5695_v38 = vor.u32 %v6149_v32, %v5692_v6  ;;  %v9070_v20 = vld [vmem:[#allocation2 + $0xc8] sm:$0xf0] }
 0x72d   : > { %v3453_v43 = vmax.f32 %v3371_v45, %v3418_v50  ;;  %v3454_v1 = vmax.f32 %v3372_v28, %v3419_v15  ;;  %v3455_v61 = vmax.f32 %v3373_v49, %v3420_v42  ;;  %v9011_v60 = vpop.permute.xlu0 %6405  ;;  %v9013_v52 = vpop.permute.xlu1 %6390  ;;  %v9053_v63 = vld [vmem:[#allocation2 + $0x1d4] sm:$0xf]  ;;  %v9055_v58 = vld [vmem:[#allocation2 + $0x1d8] sm:$0xf0]  ;;  %v9060_v45 = vld [vmem:[#allocation2 + $0x4] sm:$0xf]  ;;  %v5527_v27 = vor.u32 %v9015_v19, %v9017_v41 }
 0x72e   : > { %4223 = vmatpush.bf16.msra.mxu0 %v5543_v5  ;;  %v9043_v5 = vld [vmem:[#allocation2 + $0xd4] sm:$0xf]  ;;  %v9058_v26 = vpack.c.bf16 %v3456_v0, %v3448_v44  ;;  %v9062_v28 = vld [vmem:[#allocation2 + $0x8] sm:$0xf0]  ;;  %v9064_v49 = vld [vmem:[#allocation2 + $0xc4] sm:$0xf]  ;;  %v6408_v4 = vunpack.i.h.bf16 %v9011_v60  ;;  %v5623_v42 = vor.u32 %v9021_v34, %v9023_v40  ;;  %v5687_v50 = vor.u32 %v9025_v56, %v9027_v37 }
 0x72f   : > { %v9029_v62 = vpack.c.bf16 %v3453_v43, %v3445_v21  ;;  %v9031_v54 = vpack.c.bf16 %v3454_v1, %v3446_v17  ;;  %v9033_v9 = vpack.c.bf16 %v3455_v61, %v3447_v55  ;;  %v5759_v21 = vor.u32 %v6165_v10, %v5756_v59  ;;  %v9072_v57 = vld [vmem:[#allocation2 + $0x144] sm:$0xf]  ;;  %v9074_v44 = vld [vmem:[#allocation2 + $0x148] sm:$0xf0]  ;;  %v9087_v6 = vld [vmem:[#allocation2 + $0x274] sm:$0xf] }
 0x730   : > { %v6407_v17 = vunpack.i.l.bf16 %v9011_v60  ;;  %v9083_v15 = vld [vmem:[#allocation2 + $0x1c4] sm:$0xf]  ;;  %v9085_v32 = vld [vmem:[#allocation2 + $0x1c8] sm:$0xf0]  ;;  %v6393_v10 = vunpack.i.h.bf16 %v9013_v52  ;;  %v5751_v55 = vor.u32 %v9035_v25, %v9037_v12  ;;  %v5519_v43 = vor.u32 %v9039_v22, %v9041_v13  ;;  %v9096_v61 = vld [vmem:[#allocation2 + $0x278] sm:$0xf0] }
 0x731   : > { %4130 = vmatmul.bf16.vlgmr.msra.gmra.mxu1 %v9029_v62  ;;  %4144 = vmatmul.bf16.vlgmr.msrb.gmra.mxu2 %v9031_v54  ;;  %v5615_v1 = vor.u32 %v9043_v5, %v9045_v16  ;;  %v9098_v60 = vld [vmem:[#allocation2 + $0xb4] sm:$0xf]  ;;  %v9100_v59 = vld [vmem:[#allocation2 + $0xb8] sm:$0xf0]  ;;  %v5679_v0 = vor.u32 %v9049_v3, %v9051_v46  ;;  %v5743_v34 = vor.u32 %v9053_v63, %v9055_v58  ;;  %v6392_v12 = vunpack.i.l.bf16 %v9013_v52 }
 0x732   : > { %4158 = vmatmul.bf16.vlgmr.msrb.gmra.mxu3 %v9033_v9  ;;  %4172 = vmatmul.bf16.vlgmr.msrb.gmra.mxu0 %v9058_v26  ;;  %v5511_v40 = vor.u32 %v9060_v45, %v9062_v28  ;;  %v5607_v56 = vor.u32 %v9064_v49, %v9070_v20  ;;  %v9110_v37 = vld [vmem:[#allocation2 + $0x134] sm:$0xf]  ;;  %v5671_v5 = vor.u32 %v9072_v57, %v9074_v44  ;;  %v9119_v16 = vld [vmem:[#allocation2 + $0x1b8] sm:$0xf0]  ;;  %v10080_v3 = vunpack.i.h.bf16 %v8837_v18  ;;  %v6155_v45 = vld [vmem:[#allocation2 + $0x1a4] sm:$0xf] }
 0x733   : > { %4234 = vmatpush.bf16.msra.mxu1 %v5631_v24  ;;  %4224 = vmatpush.bf16.msra.mxu0 %v5535_v23  ;;  %v9112_v24 = vld [vmem:[#allocation2 + $0x138] sm:$0xf0]  ;;  %v9114_v25 = vld [vmem:[#allocation2 + $0x1b4] sm:$0xf]  ;;  %v9121_v23 = vld [vmem:[#allocation2 + $0x264] sm:$0xf]  ;;  %v3259_v63 = vsel %vm1114_vm4, %v6407_v17, %v6408_v4  ;;  %v5735_v52 = vor.u32 %v9083_v15, %v9085_v32  ;;  %v5823_v58 = vor.u32 %v9087_v6, %v9096_v61  ;;  %v10082_v20 = vunpack.i.l.bf16 %v8825_v8 }
 0x734   : > { %4248 = vmatpush.bf16.msrb.mxu2 %v5695_v38  ;;  %4262 = vmatpush.bf16.msrb.mxu3 %v5759_v21  ;;  %v9123_v38 = vld [vmem:[#allocation2 + $0x268] sm:$0xf0]  ;;  %v3258_v46 = vsel %vm1114_vm4, %v10080_v3, %v6407_v17  ;;  %v10081_v21 = vunpack.i.h.bf16 %v8858_v31  ;;  %v5599_v17 = vor.u32 %v9098_v60, %v9100_v59  ;;  %v5727_v15 = vor.u32 %v9114_v25, %v9119_v16  ;;  %v6119_v16 = vld [vmem:[#allocation2 + $0x84] sm:$0xf] }
 0x735   : > { %v6411_v19 = vpop.permute.xlu0 %6410  ;;  %v6396_v41 = vpop.permute.xlu1 %6395  ;;  %v3278_v57 = vsel %vm1114_vm4, %v6393_v10, %v10082_v20  ;;  %v5815_v31 = vor.u32 %v9121_v23, %v9123_v38  ;;  %v10083_v8 = vunpack.i.l.bf16 %v8837_v18  ;;  %v3252_v32 = vsel %vm1114_vm4, %v6392_v12, %v6393_v10  ;;  %v6135_v38 = vld [vmem:[#allocation2 + $0x104] sm:$0xf] }
 0x736   : > { %v6413_v22 = vunpack.i.h.bf16 %v6411_v19  ;;  %v6412_v13 = vunpack.i.l.bf16 %v6411_v19  ;;  %v3279_v49 = vsel %vm1114_vm4, %v6408_v4, %v10081_v21  ;;  %v6398_v44 = vunpack.i.h.bf16 %v6396_v41 }
 0x737   : > { %4235 = vmatpush.bf16.msra.mxu1 %v5623_v42  ;;  %v6397_v19 = vunpack.i.l.bf16 %v6396_v41  ;;  %4225 = vmatpush.bf16.msra.mxu0 %v5527_v27  ;;  %v5663_v42 = vor.u32 %v9110_v37, %v9112_v24  ;;  %v3251_v4 = vsel %vm1114_vm4, %v10083_v8, %v6392_v12  ;;  %v10084_v27 = vunpack.i.h.bf16 %v8845_v53  ;;  %v5708_v37 = vld [vmem:[#allocation2 + $0x198] sm:$0xf0]  ;;  %v6175_v24 = vld [vmem:[#allocation2 + $0x244] sm:$0xf] }
 0x738   : > { %4249 = vmatpush.bf16.msrb.mxu2 %v5687_v50  ;;  %v3341_v6 = vsel %vm1214_vm1, %v6412_v13, %v6413_v22  ;;  %4263 = vmatpush.bf16.msrb.mxu3 %v5751_v55  ;;  %v3293_v61 = vmax.f32 %v8784_v35, %v3258_v46  ;;  %v3294_v60 = vmax.f32 %v8809_v11, %v3259_v63  ;;  %v10085_v18 = vunpack.i.h.bf16 %v8835_v47 }
 0x739   : > { %v3340_v50 = vsel %vm1214_vm1, %v10084_v27, %v6412_v13  ;;  %v3295_v59 = vmax.f32 %v8811_v39, %v3279_v49  ;;  %v3287_v41 = vmax.f32 %v8802_v30, %v3278_v57  ;;  %v10086_v12 = vunpack.i.l.bf16 %v8823_v51 }
 0x73a   : > { %v3361_v10 = vsel %vm1214_vm1, %v6413_v22, %v10085_v18  ;;  %v3333_v55 = vsel %vm1214_vm1, %v6372_v36, %v6397_v19  ;;  %v3334_v35 = vsel %vm1214_vm1, %v6397_v19, %v6398_v44  ;;  %v3285_v11 = vmax.f32 %v8771_v33, %v3251_v4  ;;  %v6121_v18 = vld [vmem:[#allocation2 + $0x94] sm:$0xf] }
 0x73b   : > { %4236 = vmatpush.bf16.msra.mxu1 %v5615_v1  ;;  %v3360_v3 = vsel %vm1214_vm1, %v6398_v44, %v10086_v12  ;;  %4226 = vmatpush.bf16.msra.mxu0 %v5519_v43  ;;  %v3286_v30 = vmax.f32 %v8800_v7, %v3252_v32  ;;  %v3375_v39 = vmax.f32 %v3293_v61, %v3340_v50  ;;  %v10087_v43 = vunpack.i.h.bf16 %v8890_v14  ;;  %v6123_v32 = vld [vmem:[#allocation2 + $0xa4] sm:$0xf]  ;;  %v5652_v61 = vld [vmem:[#allocation2 + $0x128] sm:$0xf0]  ;;  %v6137_v12 = vld [vmem:[#allocation2 + $0x114] sm:$0xf] }
 0x73c   : > { %v3376_v1 = vmax.f32 %v3294_v60, %v3341_v6  ;;  %4250 = vmatpush.bf16.msrb.mxu2 %v5679_v0  ;;  %4264 = vmatpush.bf16.msrb.mxu3 %v5743_v34  ;;  %v3377_v53 = vmax.f32 %v3295_v59, %v3361_v10  ;;  %v3367_v21 = vmax.f32 %v3285_v11, %v3333_v55  ;;  %v10088_v0 = vunpack.i.h.bf16 %v8843_v48  ;;  %v5588_v48 = vld [vmem:[#allocation2 + $0xa8] sm:$0xf0]  ;;  %v6139_v6 = vld [vmem:[#allocation2 + $0x124] sm:$0xf]  ;;  %v5804_v60 = vld [vmem:[#allocation2 + $0x258] sm:$0xf0] }
 0x73d   : > { %v6416_v47 = vpop.permute.xlu0 %6415  ;;  %v6401_v22 = vpop.permute.xlu1 %6400  ;;  %v3368_v36 = vmax.f32 %v3286_v30, %v3334_v35  ;;  %v3369_v49 = vmax.f32 %v3287_v41, %v3360_v3  ;;  %v10089_v34 = vunpack.i.l.bf16 %v8829_v29  ;;  %v10090_v8 = vunpack.i.l.bf16 %v8890_v14  ;;  %v6177_v14 = vld [vmem:[#allocation2 + $0x254] sm:$0xf]  ;;  %v5580_v10 = vld [vmem:[#allocation2 + $0x98] sm:$0xf0]  ;;  %v6151_v35 = vld [vmem:[#allocation2 + $0x184] sm:$0xf] }
 0x73e   : > { %v6418_v51 = vunpack.i.h.bf16 %v6416_v47  ;;  %v6417_v13 = vunpack.i.l.bf16 %v6416_v47  ;;  %v6403_v46 = vunpack.i.h.bf16 %v6401_v22  ;;  %v6402_v63 = vunpack.i.l.bf16 %v6401_v22  ;;  %v5644_v3 = vld [vmem:[#allocation2 + $0x118] sm:$0xf0]  ;;  %v6153_v55 = vld [vmem:[#allocation2 + $0x194] sm:$0xf] }
 0x73f   : > { %4237 = vmatpush.bf16.msra.mxu1 %v5607_v56  ;;  %4227 = vmatpush.bf16.msra.mxu0 %v5511_v40  ;;  %v5716_v40 = vld [vmem:[#allocation2 + $0x1a8] sm:$0xf0]  ;;  %v5591_v41 = vor.u32 %v6123_v32, %v5588_v48  ;;  %v5583_v25 = vor.u32 %v6121_v18, %v5580_v10  ;;  %v5647_v23 = vor.u32 %v6137_v12, %v5644_v3  ;;  %v5884_v47 = vld [vmem:[#allocation2 + $0x2f8] sm:$0xf0]  ;;  %v6173_v22 = vld [vmem:[#allocation2 + $0x234] sm:$0xf] }
 0x740   : > { %v3422_v33 = vsel %vm1264_vm0, %v10087_v43, %v6417_v13  ;;  %v3423_v7 = vsel %vm1264_vm0, %v6417_v13, %v6418_v51  ;;  %v3443_v20 = vsel %vm1264_vm0, %v6418_v51, %v10088_v0  ;;  %v3442_v57 = vsel %vm1264_vm0, %v6403_v46, %v10089_v34  ;;  %4251 = vmatpush.bf16.msrb.mxu2 %v5671_v5  ;;  %v5788_v51 = vld [vmem:[#allocation2 + $0x238] sm:$0xf0]  ;;  %v6213_v13 = vld [vmem:[#allocation2 + $0x374] sm:$0xf]  ;;  %v5876_v0 = vld [vmem:[#allocation2 + $0x2e8] sm:$0xf0] }
 0x741   : > { %v3457_v44 = vmax.f32 %v3375_v39, %v3422_v33  ;;  %v3458_v56 = vmax.f32 %v3376_v1, %v3423_v7  ;;  %v3459_v19 = vmax.f32 %v3377_v53, %v3443_v20  ;;  %v3415_v4 = vsel %vm1264_vm0, %v10090_v8, %v6402_v63  ;;  %4265 = vmatpush.bf16.msrb.mxu3 %v5735_v52  ;;  %v5700_v39 = vld [vmem:[#allocation2 + $0x188] sm:$0xf0]  ;;  %v6197_v1 = vld [vmem:[#allocation2 + $0x2f4] sm:$0xf]  ;;  %v6195_v7 = vld [vmem:[#allocation2 + $0x2e4] sm:$0xf] }
 0x742   : > { %v3416_v27 = vsel %vm1264_vm0, %v6402_v63, %v6403_v46  ;;  %v3449_v50 = vmax.f32 %v3367_v21, %v3415_v4  ;;  %v3451_v29 = vmax.f32 %v3369_v49, %v3442_v57  ;;  %4228 = vmatmul.bf16.vlgmr.msra.gmra.mxu0 %v8924_v2  ;;  %v5719_v2 = vor.u32 %v6155_v45, %v5716_v40  ;;  %v5948_v63 = vld [vmem:[#allocation2 + $0x378] sm:$0xf0]  ;;  %v6229_v53 = vld [vmem:[#allocation2 + $0x3f4] sm:$0xf]  ;;  %v6171_v57 = vld [vmem:[#allocation2 + $0x224] sm:$0xf] }
 0x743   : > { %4276 = vmatpush.bf16.msrb.mxu0 %v5823_v58  ;;  %v3450_v28 = vmax.f32 %v3368_v36, %v3416_v27  ;;  %4238 = vmatpush.bf16.msra.mxu1 %v5599_v17  ;;  %v5655_v58 = vor.u32 %v6139_v6, %v5652_v61  ;;  %v5807_v17 = vor.u32 %v6177_v14, %v5804_v60  ;;  %v6012_v21 = vld [vmem:[#allocation2 + $0x3f8] sm:$0xf0]  ;;  %v6227_v8 = vld [vmem:[#allocation2 + $0x3e4] sm:$0xf]  ;;  %v6004_v4 = vld [vmem:[#allocation2 + $0x3e8] sm:$0xf0] }
 0x744   : > { %v9189_v59 = vpack.c.bf16 %v3457_v44, %v3449_v50  ;;  %v9191_v5 = vpack.c.bf16 %v3459_v19, %v3451_v29  ;;  %4252 = vmatpush.bf16.msrb.mxu2 %v5663_v42  ;;  %v5796_v42 = vld [vmem:[#allocation2 + $0x248] sm:$0xf0]  ;;  %v5711_v11 = vor.u32 %v6153_v55, %v5708_v37  ;;  %v5887_v49 = vor.u32 %v6197_v1, %v5884_v47  ;;  %v6193_v27 = vld [vmem:[#allocation2 + $0x2d4] sm:$0xf]  ;;  %v5868_v50 = vld [vmem:[#allocation2 + $0x2d8] sm:$0xf0] }
 0x745   : > { %v9196_v52 = vpack.c.bf16 %v3458_v56, %v3450_v28  ;;  %4266 = vmatpush.bf16.msrb.mxu3 %v5727_v15  ;;  %v5572_v15 = vld [vmem:[#allocation2 + $0x88] sm:$0xf0]  ;;  %v5799_v30 = vor.u32 %v6175_v24, %v5796_v42  ;;  %v5703_v43 = vor.u32 %v6151_v35, %v5700_v39  ;;  %v5791_v33 = vor.u32 %v6173_v22, %v5788_v51  ;;  %v6211_v56 = vld [vmem:[#allocation2 + $0x364] sm:$0xf]  ;;  %v6169_v61 = vld [vmem:[#allocation2 + $0x214] sm:$0xf] }
 0x746   : > { %4186 = vmatmul.bf16.vlgmr.msrb.gmra.mxu1 %v9189_v59  ;;  %4214 = vmatmul.bf16.vlgmr.msra.gmra.mxu3 %v9191_v5  ;;  %v5575_v46 = vor.u32 %v6119_v16, %v5572_v15  ;;  %v5951_v20 = vor.u32 %v6213_v13, %v5948_v63  ;;  %v6015_v34 = vor.u32 %v6229_v53, %v6012_v21  ;;  %v5780_v44 = vld [vmem:[#allocation2 + $0x228] sm:$0xf0]  ;;  %v5772_v45 = vld [vmem:[#allocation2 + $0x218] sm:$0xf0]  ;;  %v6209_v28 = vld [vmem:[#allocation2 + $0x354] sm:$0xf] }
 0x747   : > { %4277 = vmatpush.bf16.msrb.mxu0 %v5815_v31  ;;  %4200 = vmatmul.bf16.vlgmr.msra.gmra.mxu2 %v9196_v52  ;;  %v5636_v31 = vld [vmem:[#allocation2 + $0x108] sm:$0xf0]  ;;  %v5879_v32 = vor.u32 %v6195_v7, %v5876_v0  ;;  %v5783_v48 = vor.u32 %v6171_v57, %v5780_v44  ;;  %v6007_v6 = vor.u32 %v6227_v8, %v6004_v4  ;;  %v5932_v40 = vld [vmem:[#allocation2 + $0x358] sm:$0xf0]  ;;  %v6225_v14 = vld [vmem:[#allocation2 + $0x3d4] sm:$0xf] }
 0x748   : > { %4239 = vmatpush.bf16.msra.mxu1 %v5591_v41  ;;  %4253 = vmatpush.bf16.msrb.mxu2 %v5655_v58  ;;  %v5639_v36 = vor.u32 %v6135_v38, %v5636_v31  ;;  %v5940_v19 = vld [vmem:[#allocation2 + $0x368] sm:$0xf0]  ;;  %v5996_v60 = vld [vmem:[#allocation2 + $0x3d8] sm:$0xf0]  ;;  %v5871_v41 = vor.u32 %v6193_v27, %v5868_v50  ;;  %v5775_v58 = vor.u32 %v6169_v61, %v5772_v45  ;;  %v6191_v18 = vld [vmem:[#allocation2 + $0x2c4] sm:$0xf] }
 0x749   : > { %4267 = vmatpush.bf16.msrb.mxu3 %v5719_v2  ;;  %v5943_v29 = vor.u32 %v6211_v56, %v5940_v19  ;;  %v5860_v10 = vld [vmem:[#allocation2 + $0x2c8] sm:$0xf0]  ;;  %v5935_v2 = vor.u32 %v6209_v28, %v5932_v40  ;;  %v6167_v12 = vld [vmem:[#allocation2 + $0x204] sm:$0xf]  ;;  %v6189_v15 = vld [vmem:[#allocation2 + $0x2b4] sm:$0xf] }
 0x74a   : > { %v5764_v3 = vld [vmem:[#allocation2 + $0x208] sm:$0xf0]  ;;  %v6207_v55 = vld [vmem:[#allocation2 + $0x344] sm:$0xf]  ;;  %v6205_v35 = vld [vmem:[#allocation2 + $0x334] sm:$0xf] }
 0x74b   : > { %4278 = vmatpush.bf16.msrb.mxu0 %v5807_v17  ;;  %v5999_v17 = vor.u32 %v6225_v14, %v5996_v60  ;;  %v5924_v37 = vld [vmem:[#allocation2 + $0x348] sm:$0xf0]  ;;  %v6223_v24 = vld [vmem:[#allocation2 + $0x3c4] sm:$0xf]  ;;  %v5767_v16 = vor.u32 %v6167_v12, %v5764_v3  ;;  %v6185_v53 = vld [vmem:[#allocation2 + $0x294] sm:$0xf] }
 0x74c   : > { %4240 = vmatpush.bf16.msra.mxu1 %v5583_v25  ;;  %4254 = vmatpush.bf16.msrb.mxu2 %v5647_v23  ;;  %v5988_v42 = vld [vmem:[#allocation2 + $0x3c8] sm:$0xf0]  ;;  %v5863_v25 = vor.u32 %v6191_v18, %v5860_v10  ;;  %v5852_v23 = vld [vmem:[#allocation2 + $0x2b8] sm:$0xf0]  ;;  %v5927_v38 = vor.u32 %v6207_v55, %v5924_v37  ;;  %v6187_v39 = vld [vmem:[#allocation2 + $0x2a4] sm:$0xf] }
 0x74d   : > { %4268 = vmatpush.bf16.msrb.mxu3 %v5711_v11  ;;  %v5991_v31 = vor.u32 %v6223_v24, %v5988_v42  ;;  %v5916_v11 = vld [vmem:[#allocation2 + $0x338] sm:$0xf0]  ;;  %v5844_v1 = vld [vmem:[#allocation2 + $0x2a8] sm:$0xf0]  ;;  %v6203_v22 = vld [vmem:[#allocation2 + $0x324] sm:$0xf] }
 0x74e   : > { %v5908_v51 = vld [vmem:[#allocation2 + $0x328] sm:$0xf0]  ;;  %v6219_v13 = vld [vmem:[#allocation2 + $0x3a4] sm:$0xf]  ;;  %v5847_v63 = vor.u32 %v6187_v39, %v5844_v1  ;;  %v5836_v21 = vld [vmem:[#allocation2 + $0x298] sm:$0xf0] }
 0x74f   : > { %4279 = vmatpush.bf16.msrb.mxu0 %v5799_v30  ;;  %v5980_v30 = vld [vmem:[#allocation2 + $0x3b8] sm:$0xf0]  ;;  %v6217_v7 = vld [vmem:[#allocation2 + $0x394] sm:$0xf]  ;;  %v5828_v57 = vld [vmem:[#allocation2 + $0x288] sm:$0xf0] }
 0x750   : > { %4241 = vmatpush.bf16.msra.mxu1 %v5575_v46  ;;  %4255 = vmatpush.bf16.msrb.mxu2 %v5639_v36  ;;  %v5972_v46 = vld [vmem:[#allocation2 + $0x3a8] sm:$0xf0]  ;;  %v5911_v36 = vor.u32 %v6203_v22, %v5908_v51  ;;  %v5964_v0 = vld [vmem:[#allocation2 + $0x398] sm:$0xf0]  ;;  %v6199_v56 = vld [vmem:[#allocation2 + $0x304] sm:$0xf] }
 0x751   : > { %4269 = vmatpush.bf16.msrb.mxu3 %v5703_v43  ;;  %v6201_v43 = vld [vmem:[#allocation2 + $0x314] sm:$0xf]  ;;  %v5892_v19 = vld [vmem:[#allocation2 + $0x308] sm:$0xf0]  ;;  %v6215_v8 = vld [vmem:[#allocation2 + $0x384] sm:$0xf] }
 0x752   : > { %v5956_v4 = vld [vmem:[#allocation2 + $0x388] sm:$0xf0]  ;;  %vm4496_vm0 = vcmask 916480   ;;  %vm4471_vm1 = vcmask 924672  }
 0x753   : > { %4280 = vmatpush.bf16.msrb.mxu0 %v5791_v33  ;;  %v5900_v33 = vld [vmem:[#allocation2 + $0x318] sm:$0xf0]  ;;  %v5959_v27 = vor.u32 %v6215_v8, %v5956_v4 }
 0x754   : > { %4290 = vmatpush.bf16.msrb.mxu1 %v5887_v49  ;;  %4304 = vmatpush.bf16.msra.mxu2 %v5951_v20  ;;  %v5975_v49 = vor.u32 %v6219_v13, %v5972_v46  ;;  %v5839_v20 = vor.u32 %v6185_v53, %v5836_v21  ;;  %v5903_v44 = vor.u32 %v6201_v43, %v5900_v33 }
 0x755   : > { %4318 = vmatpush.bf16.msra.mxu3 %v6015_v34  ;;  %v6183_v34 = vld [vmem:[#allocation2 + $0x284] sm:$0xf] }
 0x756   : > { %4242 = vmatmul.bf16.vlgmr.msra.gmra.mxu1 %v9029_v62  ;;  %4270 = vmatmul.bf16.vlgmr.msrb.gmra.mxu3 %v9033_v9  ;;  %v6221_v62 = vld [vmem:[#allocation2 + $0x3b4] sm:$0xf]  ;;  %v5919_v9 = vor.u32 %v6205_v35, %v5916_v11 }
 0x757   : > { %4281 = vmatpush.bf16.msrb.mxu0 %v5783_v48  ;;  %4256 = vmatmul.bf16.vlgmr.msrb.gmra.mxu2 %v9031_v54  ;;  %v5855_v54 = vor.u32 %v6189_v15, %v5852_v23  ;;  %v5983_v47 = vor.u32 %v6221_v62, %v5980_v30  ;;  %v5895_v48 = vor.u32 %v6199_v56, %v5892_v19 }
 0x758   : > { %4291 = vmatpush.bf16.msrb.mxu1 %v5879_v32  ;;  %4305 = vmatpush.bf16.msra.mxu2 %v5943_v29  ;;  %v5831_v32 = vor.u32 %v6183_v34, %v5828_v57 }
 0x759   : > { %4319 = vmatpush.bf16.msra.mxu3 %v6007_v6 }
 0x75b   : > { %4282 = vmatpush.bf16.msrb.mxu0 %v5775_v58 }
 0x75c   : > { %4292 = vmatpush.bf16.msrb.mxu1 %v5871_v41  ;;  %4306 = vmatpush.bf16.msra.mxu2 %v5935_v2 }
 0x75d   : > { %4320 = vmatpush.bf16.msra.mxu3 %v5999_v17 }
 0x75f   : > { %4283 = vmatpush.bf16.msrb.mxu0 %v5767_v16 }
 0x760   : > { %4293 = vmatpush.bf16.msrb.mxu1 %v5863_v25  ;;  %4307 = vmatpush.bf16.msra.mxu2 %v5927_v38 }
 0x761   : > { %4321 = vmatpush.bf16.msra.mxu3 %v5991_v31 }
 0x762   : > { %4284 = vmatmul.bf16.vlgmr.msrb.gmra.mxu0 %v9058_v26  ;;  %v5967_v26 = vor.u32 %v6217_v7, %v5964_v0 }
 0x764   : > { %4294 = vmatpush.bf16.msrb.mxu1 %v5855_v54  ;;  %4308 = vmatpush.bf16.msra.mxu2 %v5919_v9 }
 0x765   : > { %4322 = vmatpush.bf16.msra.mxu3 %v5983_v47 }
 0x768   : > { %4295 = vmatpush.bf16.msrb.mxu1 %v5847_v63  ;;  %4309 = vmatpush.bf16.msra.mxu2 %v5911_v36 }
 0x769   : > { %4323 = vmatpush.bf16.msra.mxu3 %v5975_v49 }
 0x76c   : > { %4296 = vmatpush.bf16.msrb.mxu1 %v5839_v20  ;;  %4310 = vmatpush.bf16.msra.mxu2 %v5903_v44 }
 0x76d   : > { %4324 = vmatpush.bf16.msra.mxu3 %v5967_v26 }
 0x770   : > { %4297 = vmatpush.bf16.msrb.mxu1 %v5831_v32  ;;  %4311 = vmatpush.bf16.msra.mxu2 %v5895_v48 }
 0x771   : > { %4325 = vmatpush.bf16.msra.mxu3 %v5959_v27 }
 0x773   : > { %4298 = vmatmul.bf16.vlgmr.msrb.gmra.mxu1 %v9189_v59  ;;  %4312 = vmatmul.bf16.vlgmr.msra.gmra.mxu2 %v9196_v52 }
 0x774   : > { %4326 = vmatmul.bf16.vlgmr.msra.gmra.mxu3 %v9191_v5 }
 0x79e   : > { %v4117_v50 = vpop.f32.mrf.mxu0 }
 0x7a6   : > { %v4119_v45 = vpop.f32.mrf.mxu0 }
 0x7ae   : > { %v4131_v29 = vpop.f32.mrf.mxu1 }
 0x7af   : > { %v4132_v28 = vadd.f32 %v4131_v29, %v4117_v50  ;;  %v4173_v18 = vpop.f32.mrf.mxu0 }
 0x7b4   : > { %v4145_v6 = vpop.f32.mrf.mxu2 }
 0x7b5   : > { %v4159_v61 = vpop.f32.mrf.mxu3  ;;  %v4146_v14 = vadd.f32 %v4145_v6, %v4132_v28 }
 0x7b6   : > { %v4133_v40 = vpop.f32.mrf.mxu1 }
 0x7b7   : > { %v4160_v41 = vadd.f32 %v4159_v61, %v4146_v14  ;;  %v4134_v12 = vadd.f32 %v4133_v40, %v4119_v45  ;;  %v4175_v24 = vpop.f32.mrf.mxu0 }
 0x7b9   : > { %v4174_v2 = vadd.f32 %v4173_v18, %v4160_v41 }
 0x7bc   : > { %v4147_v60 = vpop.f32.mrf.mxu2 }
 0x7bd   : > { %v4161_v58 = vpop.f32.mrf.mxu3  ;;  %v4148_v5 = vadd.f32 %v4147_v60, %v4134_v12  ;;  %v9303_v12 = vld [vmem:[%s10091_s0] sm:$0xff] }
 0x7bf   : > { %v4162_v37 = vadd.f32 %v4161_v58, %v4148_v5  ;;  %v4229_v31 = vpop.f32.mrf.mxu0 }
 0x7c1   : > { %v4176_v25 = vadd.f32 %v4175_v24, %v4162_v37 }
 0x7c3   : > { %v4187_v10 = vpop.f32.mrf.mxu1 }
 0x7c4   : > { %v4188_v17 = vadd.f32 %v4187_v10, %v4174_v2 }
 0x7c7   : > { %v4231_v54 = vpop.f32.mrf.mxu0 }
 0x7c9   : > { %v4215_v3 = vpop.f32.mrf.mxu3 }
 0x7ca   : > { %v4201_v59 = vpop.f32.mrf.mxu2 }
 0x7cb   : > { %v4202_v52 = vadd.f32 %v4201_v59, %v4188_v17  ;;  %v4189_v42 = vpop.f32.mrf.mxu1 }
 0x7cc   : > { %v4190_v15 = vadd.f32 %v4189_v42, %v4176_v25  ;;  %v4482_v42 = vperm.slane %v9303_v12, 5 }
 0x7cd   : > { %v9214_v55 = vadd.f32 %v4215_v3, %v4202_v52  ;;  %v9308_v52 = vld [vmem:[%s10091_s0 + $0x8] sm:$0xff]  ;;  %v4507_v3 = vperm.slane %v9303_v12, 6 }
 0x7ce   : > { %v4508_v5 = vperm.slane %v9308_v52, 6 }
 0x7cf   : > { %4439 = vrot.lane.b32.xlu2 %v9214_v55, %s9937_s28  ;;  %4463 = vrot.lane.b32.xlu0 %v9214_v55, %s6519_s1 }
 0x7d0   : > { %4488 = vrot.lane.b32.xlu1 %v9214_v55, %s6520_s2 }
 0x7d1   : > { %v4217_v38 = vpop.f32.mrf.mxu3 }
 0x7d2   : > { %v4203_v16 = vpop.f32.mrf.mxu2 }
 0x7d3   : > { %v4204_v23 = vadd.f32 %v4203_v16, %v4190_v15  ;;  %v4243_v11 = vpop.f32.mrf.mxu1 }
 0x7d4   : > { %v4244_v1 = vadd.f32 %v4243_v11, %v4229_v31 }
 0x7d5   : > { %v9228_v35 = vadd.f32 %v4217_v38, %v4204_v23 }
 0x7d7   : > { %4421 = vrot.lane.b32.xlu2 %v9214_v55, %s9883_s4  ;;  %4372 = vrot.lane.b32.xlu0 %v9214_v55, %s6521_s9 }
 0x7d8   : > { %4396 = vrot.lane.b32.xlu1 %v9214_v55, %s6522_s7 }
 0x7d9   : > { %v4271_v30 = vpop.f32.mrf.mxu3 }
 0x7da   : > { %v4257_v62 = vpop.f32.mrf.mxu2 }
 0x7db   : > { %v4245_v39 = vpop.f32.mrf.mxu1  ;;  %v4258_v9 = vadd.f32 %v4257_v62, %v4244_v1 }
 0x7dc   : > { %v4246_v63 = vadd.f32 %v4245_v39, %v4231_v54  ;;  %v4483_v39 = vperm.slane %v9308_v52, 5 }
 0x7dd   : > { %v4272_v51 = vadd.f32 %v4271_v30, %v4258_v9 }
 0x7df   : > { %4443 = vrot.lane.b32.xlu0 %v9228_v35, %s9937_s28  ;;  %4492 = vrot.lane.b32.xlu2 %v9228_v35, %s6520_s2  ;;  %v4285_v13 = vpop.f32.mrf.mxu0 }
 0x7e0   : > { %4467 = vrot.lane.b32.xlu1 %v9228_v35, %s6519_s1  ;;  %v4286_v53 = vadd.f32 %v4285_v13, %v4272_v51 }
 0x7e1   : > { %v4273_v22 = vpop.f32.mrf.mxu3 }
 0x7e2   : > { %v4259_v47 = vpop.f32.mrf.mxu2 }
 0x7e3   : > { %v4260_v21 = vadd.f32 %v4259_v47, %v4246_v63 }
 0x7e5   : > { %v4274_v33 = vadd.f32 %v4273_v22, %v4260_v21  ;;  %v4457_v21 = vperm.slane %v9303_v12, 4 }
 0x7e7   : > { %4398 = vrot.lane.b32.xlu0 %v9228_v35, %s6522_s7  ;;  %4374 = vrot.lane.b32.xlu2 %v9228_v35, %s6521_s9  ;;  %v4287_v20 = vpop.f32.mrf.mxu0 }
 0x7e8   : > { %4423 = vrot.lane.b32.xlu1 %v9228_v35, %s9883_s4  ;;  %v4288_v57 = vadd.f32 %v4287_v20, %v4274_v33 }
 0x7f0   : > { %v4299_v46 = vpop.f32.mrf.mxu1 }
 0x7f1   : > { %v4300_v36 = vadd.f32 %v4299_v46, %v4286_v53 }
 0x7f6   : > { %v4313_v49 = vpop.f32.mrf.mxu2 }
 0x7f7   : > { %v4327_v43 = vpop.f32.mrf.mxu3  ;;  %v4314_v7 = vadd.f32 %v4313_v49, %v4300_v36 }
 0x7f8   : > { %v4301_v34 = vpop.f32.mrf.mxu1 }
 0x7f9   : > { %v9242_v0 = vadd.f32 %v4327_v43, %v4314_v7  ;;  %v4302_v44 = vadd.f32 %v4301_v34, %v4288_v57  ;;  %v4458_v43 = vperm.slane %v9308_v52, 4 }
 0x7fb   : > { %4490 = vrot.lane.b32.xlu0 %v9242_v0, %s6520_s2  ;;  %4441 = vrot.lane.b32.xlu1 %v9242_v0, %s9937_s28 }
 0x7fc   : > { %4465 = vrot.lane.b32.xlu2 %v9242_v0, %s6519_s1 }
 0x7fe   : > { %v4315_v26 = vpop.f32.mrf.mxu2 }
 0x7ff   : > { %v4316_v56 = vadd.f32 %v4315_v26, %v4302_v44  ;;  %v4329_v19 = vpop.f32.mrf.mxu3 }
 0x801   : > { %v9250_v8 = vadd.f32 %v4329_v19, %v4316_v56 }
 0x803   : > { %4390 = vrot.lane.b32.xlu0 %v9242_v0, %s6522_s7  ;;  %4415 = vrot.lane.b32.xlu1 %v9242_v0, %s9883_s4  ;;  %v4547_v4 = vpack.c.bf16 %v9250_v8, %v9242_v0 }
 0x804   : > { %4366 = vrot.lane.b32.xlu2 %v9242_v0, %s6521_s9 }
 0x80b   : > { %4469 = vrot.lane.b32.xlu0 %v9250_v8, %s6519_s1  ;;  %4494 = vrot.lane.b32.xlu1 %v9250_v8, %s6520_s2  ;;  %s10092_s1 = sld [smem:[#allocation90_spill]] }
 0x80c   : > { %4445 = vrot.lane.b32.xlu2 %v9250_v8, %s9937_s28 }
 0x813   : > { %4513 = vrot.lane.b32.xlu0 %v9214_v55, %s6523_s8  ;;  %4339 = vrot.lane.b32.xlu1 %v9242_v0, %s6524_s11 }
 0x814   : > { %4347 = vrot.lane.b32.xlu2 %v9214_v55, %s6524_s11 }
 0x81b   : > { %4417 = vrot.lane.b32.xlu0 %v9250_v8, %s9883_s4  ;;  %4349 = vrot.lane.b32.xlu1 %v9228_v35, %s6524_s11 }
 0x81c   : > { %4392 = vrot.lane.b32.xlu2 %v9250_v8, %s6522_s7  ;;  %s10093_s7 = sld [smem:[#allocation99_spill]] }
 0x823   : > { %4341 = vrot.lane.b32.xlu0 %v9250_v8, %s6524_s11  ;;  %4368 = vrot.lane.b32.xlu1 %v9250_v8, %s6521_s9 }
 0x824   : > { %4515 = vrot.lane.b32.xlu2 %v9242_v0, %s6523_s8 }
 0x829   : > { %v4440_v32 = vpop.permute.xlu2 %4439 }
 0x82b   : > { %4519 = vrot.lane.b32.xlu0 %v9250_v8, %s6523_s8  ;;  %4517 = vrot.lane.b32.xlu1 %v9228_v35, %s6523_s8 }
 0x831   : > { %v9284_v48 = vpop.permute.xlu2 %4421 }
 0x839   : > { %v4493_v29 = vpop.permute.xlu2 %4492 }
 0x841   : > { %v4464_v27 = vpop.permute.xlu0 %4463  ;;  %v9290_v45 = vpop.permute.xlu2 %4374 }
 0x842   : > { %v4489_v50 = vpop.permute.xlu1 %4488 }
 0x849   : > { %v9286_v6 = vpop.permute.xlu0 %4372 }
 0x84a   : > { %v9288_v61 = vpop.permute.xlu1 %4396 }
 0x851   : > { %v4444_v28 = vpop.permute.xlu0 %4443 }
 0x852   : > { %v4468_v40 = vpop.permute.xlu1 %4467 }
 0x856   : > { %v4466_v14 = vpop.permute.xlu2 %4465 }
 0x857   : > { %v4472_v1 = vsel %vm4471_vm1, %v4464_v27, %v4466_v14  ;;  %v4480_v9 = vsel %vm4471_vm1, %v4466_v14, %v4464_v27 }
 0x858   : > { %v4484_v53 = vmul.f32 %v4482_v42, %v4472_v1  ;;  %v4485_v49 = vmul.f32 %v4483_v39, %v4480_v9 }
 0x859   : > { %v9292_v60 = vpop.permute.xlu0 %4398 }
 0x85a   : > { %v9294_v41 = vpop.permute.xlu1 %4423 }
 0x85e   : > { %v9296_v58 = vpop.permute.xlu2 %4366 }
 0x866   : > { %v4446_v59 = vpop.permute.xlu2 %4445 }
 0x867   : > { %v4448_v33 = vsel %vm1114_vm4, %v4444_v28, %v4446_v59  ;;  %v4456_v7 = vsel %vm1114_vm4, %v4446_v59, %v4444_v28  ;;  %v4409_v59 = vperm.slane %v9303_v12, 2 }
 0x868   : > { %v4461_v19 = vmul.f32 %v4457_v21, %v4448_v33 }
 0x86d   : > { %v4491_v18 = vpop.permute.xlu0 %4490  ;;  %v4442_v10 = vpop.permute.xlu1 %4441 }
 0x86e   : > { %v4497_v37 = vsel %vm4496_vm0, %v4489_v50, %v4491_v18  ;;  %v4505_v24 = vsel %vm4496_vm0, %v4491_v18, %v4489_v50  ;;  %v9318_v47 = vpop.permute.xlu2 %4347  ;;  %v4447_v46 = vsel %vm1114_vm4, %v4440_v32, %v4442_v10  ;;  %v4455_v36 = vsel %vm1114_vm4, %v4442_v10, %v4440_v32 }
 0x86f   : > { %v4509_v15 = vmul.f32 %v4507_v3, %v4497_v37  ;;  %v4510_v11 = vmul.f32 %v4508_v5, %v4505_v24  ;;  %v4459_v20 = vmul.f32 %v4457_v21, %v4447_v46  ;;  %v4460_v26 = vmul.f32 %v4458_v43, %v4455_v36 }
 0x870   : > { %v4462_v32 = vmul.f32 %v4458_v43, %v4456_v7  ;;  %v4433_v50 = vperm.slane %v9303_v12, 3  ;;  %v4546_v10 = vpack.c.bf16 %v9228_v35, %v9214_v55  ;;  %v4361_v21 = vperm.slane %v9308_v52, 0 }
 0x871   : > { %v4548_v27 = vpack.c.bf16 %v4461_v19, %v4459_v20 }
 0x875   : > { %v9298_v2 = vpop.permute.xlu0 %4390  ;;  %v4416_v17 = vpop.permute.xlu1 %4415 }
 0x876   : > { %v4431_v28 = vsel %vm1065_vm5, %v4416_v17, %v9284_v48  ;;  %v4393_v14 = vpop.permute.xlu2 %4392  ;;  %v4425_v18 = vsel %vm1065_vm5, %v9284_v48, %v4416_v17  ;;  %v4407_v37 = vsel %vm4400_vm12, %v9298_v2, %v9288_v61 }
 0x877   : > { %v4408_v48 = vsel %vm4400_vm12, %v4393_v14, %v9292_v60 }
 0x87d   : > { %v4470_v25 = vpop.permute.xlu0 %4469  ;;  %v4495_v16 = vpop.permute.xlu1 %4494 }
 0x87e   : > { %v4473_v23 = vsel %vm4471_vm1, %v4468_v40, %v4470_v25  ;;  %v4498_v38 = vsel %vm4496_vm0, %v4493_v29, %v4495_v16  ;;  %v4506_v31 = vsel %vm4496_vm0, %v4495_v16, %v4493_v29  ;;  %v4481_v62 = vsel %vm4471_vm1, %v4470_v25, %v4468_v40 }
 0x87f   : > { %v4511_v30 = vmul.f32 %v4507_v3, %v4498_v38  ;;  %v4512_v54 = vmul.f32 %v4508_v5, %v4506_v31  ;;  %v4486_v22 = vmul.f32 %v4482_v42, %v4473_v23  ;;  %v4487_v63 = vmul.f32 %v4483_v39, %v4481_v62 }
 0x880   : > { %v4549_v29 = vpack.c.bf16 %v4462_v32, %v4460_v26  ;;  %v4434_v40 = vperm.slane %v9308_v52, 3  ;;  %v4410_v3 = vperm.slane %v9308_v52, 2  ;;  %v4401_v5 = vsel %vm4400_vm12, %v9288_v61, %v9298_v2 }
 0x881   : > { %v4552_v51 = vpack.c.bf16 %v4511_v30, %v4509_v15  ;;  %v4553_v13 = vpack.c.bf16 %v4512_v54, %v4510_v11  ;;  %v4550_v44 = vpack.c.bf16 %v4486_v22, %v4484_v53  ;;  %v4551_v56 = vpack.c.bf16 %v4487_v63, %v4485_v49  ;;  %v4332_v53 = vld [vmem:[%s9652_s12] sm:$0xff] }
 0x882   : > { %v4435_v25 = vmul.f32 %v4433_v50, %v4431_v28  ;;  %v4436_v17 = vmul.f32 %v4434_v40, %v4425_v18  ;;  %v4402_v16 = vsel %vm4400_vm12, %v9292_v60, %v4393_v14  ;;  %v4384_v61 = vperm.slane %v9303_v12, 1 }
 0x883   : > { %4565 = vmatpush.bf16.msra.mxu0 %v4552_v51  ;;  %4591 = vmatpush.bf16.msrb.mxu2 %v4553_v13  ;;  %v4385_v2 = vperm.slane %v9308_v52, 1  ;;  %v4411_v38 = vmul.f32 %v4409_v59, %v4407_v37  ;;  %v4413_v31 = vmul.f32 %v4409_v59, %v4408_v48  ;;  %v4382_v60 = vsel %vm2510_vm15, %v9296_v58, %v9286_v6 }
 0x884   : > { %v4412_v30 = vmul.f32 %v4410_v3, %v4401_v5  ;;  %v4414_v54 = vmul.f32 %v4410_v3, %v4402_v16  ;;  %v4386_v39 = vmul.f32 %v4384_v61, %v4382_v60  ;;  %v4557_v20 = vunpack.c.l.b16 %v4332_v53 }
 0x885   : > { %v9326_v34 = vpop.permute.xlu0 %4513  ;;  %v9328_v57 = vpop.permute.xlu1 %4339  ;;  %v4532_v26 = vperm.slane %v9303_v12, 7 }
 0x886   : > { %v4543_v13 = vpack.c.bf16 %v4414_v54, %v4412_v30  ;;  %v4358_v36 = vsel %vm4351_vm13, %v9328_v57, %v9318_v47 }
 0x887   : > { %4566 = vmatpush.bf16.msra.mxu0 %v4550_v44  ;;  %4592 = vmatpush.bf16.msrb.mxu2 %v4551_v56  ;;  %v4516_v44 = vpop.permute.xlu2 %4515  ;;  %v4533_v56 = vperm.slane %v9308_v52, 7  ;;  %v4559_v52 = vpack.c.b16 %v4557_v20, %v4557_v20 }
 0x888   : > { %v4522_v32 = vsel %vm4521_vm14, %v9326_v34, %v4516_v44 }
 0x889   : > { %v4534_v18 = vmul.f32 %v4532_v26, %v4522_v32 }
 0x88b   : > { %4567 = vmatpush.bf16.msra.mxu0 %v4548_v27  ;;  %4593 = vmatpush.bf16.msrb.mxu2 %v4549_v29  ;;  %v4530_v27 = vsel %vm4521_vm14, %v4516_v44, %v9326_v34 }
 0x88d   : > { %v4418_v24 = vpop.permute.xlu0 %4417  ;;  %v4350_v42 = vpop.permute.xlu1 %4349 }
 0x88e   : > { %v4426_v55 = vsel %vm1065_vm5, %v9294_v41, %v4418_v24  ;;  %v4432_v35 = vsel %vm1065_vm5, %v4418_v24, %v9294_v41  ;;  %v4376_v41 = vsel %vm2510_vm15, %v9286_v6, %v9296_v58  ;;  %v4360_v6 = vperm.slane %v9303_v12, 0 }
 0x88f   : > { %v4437_v15 = vmul.f32 %v4433_v50, %v4432_v35  ;;  %v4438_v23 = vmul.f32 %v4434_v40, %v4426_v55  ;;  %4568 = vmatpush.bf16.msra.mxu0 %v4546_v10  ;;  %4594 = vmatpush.bf16.msrb.mxu2 %v4547_v4  ;;  %v4387_v1 = vmul.f32 %v4385_v2, %v4376_v41  ;;  %v4558_v40 = vunpack.c.h.b16 %v4332_v53 }
 0x890   : > { %v4542_v4 = vpack.c.bf16 %v4413_v31, %v4411_v38  ;;  %v4362_v19 = vmul.f32 %v4360_v6, %v4358_v36  ;;  %v4535_v10 = vmul.f32 %v4533_v56, %v4530_v27 }
 0x891   : > { %v4544_v11 = vpack.c.bf16 %v4437_v15, %v4435_v25  ;;  %v4545_v62 = vpack.c.bf16 %v4438_v23, %v4436_v17  ;;  %v4560_v37 = vpack.c.b16 %v4558_v40, %v4558_v40 }
 0x893   : > { %4569 = vmatpush.bf16.msra.mxu0 %v4544_v11  ;;  %4595 = vmatpush.bf16.msrb.mxu2 %v4545_v62 }
 0x895   : > { %v4342_v0 = vpop.permute.xlu0 %4341  ;;  %v4369_v8 = vpop.permute.xlu1 %4368 }
 0x896   : > { %v4359_v9 = vsel %vm4351_vm13, %v4342_v0, %v4350_v42  ;;  %v4377_v22 = vsel %vm2510_vm15, %v9290_v45, %v4369_v8  ;;  %v4383_v51 = vsel %vm2510_vm15, %v4369_v8, %v9290_v45  ;;  %v4353_v58 = vsel %vm4351_vm13, %v4350_v42, %v4342_v0 }
 0x897   : > { %v4388_v46 = vmul.f32 %v4384_v61, %v4383_v51  ;;  %v4389_v63 = vmul.f32 %v4385_v2, %v4377_v22  ;;  %4570 = vmatpush.bf16.msra.mxu0 %v4542_v4  ;;  %4596 = vmatpush.bf16.msrb.mxu2 %v4543_v13  ;;  %v4352_v45 = vsel %vm4351_vm13, %v9318_v47, %v9328_v57 }
 0x898   : > { %v4364_v49 = vmul.f32 %v4360_v6, %v4359_v9  ;;  %v4365_v7 = vmul.f32 %v4361_v21, %v4353_v58  ;;  %v4363_v50 = vmul.f32 %v4361_v21, %v4352_v45 }
 0x899   : > { %v4540_v43 = vpack.c.bf16 %v4388_v46, %v4386_v39  ;;  %v4541_v33 = vpack.c.bf16 %v4389_v63, %v4387_v1 }
 0x89a   : > { %v4538_v29 = vpack.c.bf16 %v4364_v49, %v4362_v19  ;;  %v4539_v14 = vpack.c.bf16 %v4365_v7, %v4363_v50 }
 0x89b   : > { %4571 = vmatpush.bf16.msra.mxu0 %v4540_v43  ;;  %4597 = vmatpush.bf16.msrb.mxu2 %v4541_v33 }
 0x89d   : > { %v4520_v47 = vpop.permute.xlu0 %4519  ;;  %v4518_v57 = vpop.permute.xlu1 %4517 }
 0x89e   : > { %v4523_v28 = vsel %vm4521_vm14, %v4518_v57, %v4520_v47  ;;  %v4531_v12 = vsel %vm4521_vm14, %v4520_v47, %v4518_v57 }
 0x89f   : > { %v4536_v59 = vmul.f32 %v4532_v26, %v4523_v28  ;;  %v4537_v3 = vmul.f32 %v4533_v56, %v4531_v12  ;;  %4572 = vmatpush.bf16.msra.mxu0 %v4538_v29  ;;  %4598 = vmatpush.bf16.msrb.mxu2 %v4539_v14 }
 0x8a1   : > { %v4554_v5 = vpack.c.bf16 %v4536_v59, %v4534_v18  ;;  %v4555_v34 = vpack.c.bf16 %v4537_v3, %v4535_v10 }
 0x8a2   : > { %4573 = vmatmul.bf16.vlgmr.msra.gmra.mxu0 %v4559_v52  ;;  %4599 = vmatmul.bf16.vlgmr.msrb.gmra.mxu2 %v4559_v52 }
 0x8a3   : > { %4585 = vmatpush.bf16.msra.mxu1 %v4554_v5  ;;  %4611 = vmatpush.bf16.msrb.mxu3 %v4555_v34  ;;  %v4333_v5 = vld [vmem:[%s9653_s13] sm:$0xff]  ;;  %v4334_v34 = vld [vmem:[%s9653_s13 + $0x8] sm:$0xff] }
 0x8a6   : > { %6016 = vmatmul.msk.bf16.vlgmr.msra.gmra.mxu1 %vm2510_vm15, %v4560_v37  ;;  %6017 = vmatmul.msk.bf16.vlgmr.msrb.gmra.mxu3 %vm2510_vm15, %v4560_v37 }
 0x91f   : > { %v4574_v24 = vpop.f32.mrf.mxu0 }
 0x923   : > { %v4587_v42 = vpop.f32.mrf.mxu1 }
 0x924   : > { %v4588_v25 = vadd.f32 %v4587_v42, %v4574_v24 }
 0x925   : > { %v4600_v55 = vpop.f32.mrf.mxu2 }
 0x926   : > { %v4617_v48 = vmax.f32 %v4588_v25, 0.0  ;;  %v4335_v25 = vld [vmem:[%s9654_s14] sm:$0xff] }
 0x927   : > { %v4576_v35 = vpop.f32.mrf.mxu0 }
 0x928   : > { %v4619_v17 = vrot.slane %v4617_v48, 4  ;;  %v4631_v16 = vmul.f32 %v4617_v48, %v4617_v48 }
 0x929   : > { %v4613_v61 = vpop.f32.mrf.mxu3 }
 0x92a   : > { %v4620_v15 = vadd.f32 %v4619_v17, %v4617_v48  ;;  %v4633_v23 = vrot.slane %v4631_v16, 4  ;;  %v4614_v2 = vadd.f32 %v4613_v61, %v4600_v55 }
 0x92b   : > { %v4589_v38 = vpop.f32.mrf.mxu1 }
 0x92c   : > { %v4634_v31 = vadd.f32 %v4633_v23, %v4631_v16  ;;  %v4621_v11 = vrot.slane %v4620_v15, 2  ;;  %v4618_v62 = vmax.f32 %v4614_v2, 0.0  ;;  %v6231_v38 = vld [vmem:[%s9655_s15] sm:$0xff] }
 0x92d   : > { %v4602_v60 = vpop.f32.mrf.mxu2 }
 0x92e   : > { %v4635_v41 = vrot.slane %v4634_v31, 2  ;;  %v4625_v30 = vrot.slane %v4618_v62, 4  ;;  %v4632_v54 = vmul.f32 %v4618_v62, %v4618_v62  ;;  %v4622_v1 = vadd.f32 %v4621_v11, %v4620_v15 }
 0x930   : > { %v4636_v39 = vadd.f32 %v4635_v41, %v4634_v31  ;;  %v4626_v0 = vadd.f32 %v4625_v30, %v4618_v62  ;;  %v4639_v8 = vrot.slane %v4632_v54, 4  ;;  %v4623_v58 = vrot.slane %v4622_v1, 1 }
 0x931   : > { %v4615_v4 = vpop.f32.mrf.mxu3 }
 0x932   : > { %v4627_v9 = vrot.slane %v4626_v0, 2  ;;  %v4640_v22 = vadd.f32 %v4639_v8, %v4632_v54  ;;  %v4637_v51 = vrot.slane %v4636_v39, 1  ;;  %v4624_v21 = vadd.f32 %v4623_v58, %v4622_v1  ;;  %v6239_v54 = vld [vmem:[%s9656_s16 + $0x38] sm:$0xff]  ;;  %v6238_v1 = vld [vmem:[%s9656_s16 + $0x30] sm:$0xff]  ;;  %v6237_v8 = vld [vmem:[%s9656_s16 + $0x28] sm:$0xff] }
 0x933   : > { %4930 = vmatpush.bf16.msrb.mxu0 %v6239_v54  ;;  %v6245_v4 = vld [vmem:[%s9656_s16 + $0x68] sm:$0xff]  ;;  %v6242_v58 = vld [vmem:[%s9656_s16 + $0x50] sm:$0xff] }
 0x934   : > { %v4628_v13 = vadd.f32 %v4627_v9, %v4626_v0  ;;  %v4641_v6 = vrot.slane %v4640_v22, 2  ;;  %v4638_v63 = vadd.f32 %v4637_v51, %v4636_v39  ;;  %v6247_v39 = vld [vmem:[%s9656_s16 + $0x78] sm:$0xff]  ;;  %v6246_v0 = vld [vmem:[%s9656_s16 + $0x70] sm:$0xff]  ;;  %v6236_v9 = vld [vmem:[%s9656_s16 + $0x20] sm:$0xff] }
 0x935   : > { %v6235_v51 = vld [vmem:[%s9656_s16 + $0x18] sm:$0xff] }
 0x936   : > { %v4629_v46 = vrot.slane %v4628_v13, 1  ;;  %v4642_v53 = vadd.f32 %v4641_v6, %v4640_v22  ;;  %v4645_v43 = vsel %vm1628_vm10, %v4624_v21, %v4638_v63  ;;  %v6244_v22 = vld [vmem:[%s9656_s16 + $0x60] sm:$0xff]  ;;  %v6234_v6 = vld [vmem:[%s9656_s16 + $0x10] sm:$0xff]  ;;  %v6241_v63 = vld [vmem:[%s9656_s16 + $0x48] sm:$0xff] }
 0x937   : > { %v4647_v7 = vsel %vm1637_vm11, %v4645_v43, 0.0  ;;  %4931 = vmatpush.bf16.msrb.mxu0 %v6238_v1  ;;  %v6240_v21 = vld [vmem:[%s9656_s16 + $0x40] sm:$0xff] }
 0x938   : > { %v4643_v36 = vrot.slane %v4642_v53, 1  ;;  %v4630_v45 = vadd.f32 %v4629_v46, %v4628_v13  ;;  %v6243_v13 = vld [vmem:[%s9656_s16 + $0x58] sm:$0xff]  ;;  %v6233_v46 = vld [vmem:[%s9656_s16 + $0x8] sm:$0xff] }
 0x93a   : > { %v4644_v49 = vadd.f32 %v4643_v36, %v4642_v53  ;;  %v6232_v53 = vld [vmem:[%s9656_s16] sm:$0xff] }
 0x93b   : > { %4932 = vmatpush.bf16.msrb.mxu0 %v6237_v8 }
 0x93c   : > { %v4646_v33 = vsel %vm1628_vm10, %v4630_v45, %v4644_v49 }
 0x93d   : > { %v4648_v20 = vsel %vm1637_vm11, %v4646_v33, 0.0 }
 0x93e   : > { %v4649_v44 = vadd.f32 %v4648_v20, %v4647_v7 }
 0x93f   : > { %4933 = vmatpush.bf16.msrb.mxu0 %v6236_v9 }
 0x940   : > { %4650 = vadd.xlane.f32.xlu2 %v4649_v44 }
 0x943   : > { %4934 = vmatpush.bf16.msrb.mxu0 %v6235_v51 }
 0x947   : > { %4935 = vmatpush.bf16.msrb.mxu0 %v6234_v6 }
 0x94b   : > { %4936 = vmatpush.bf16.msrb.mxu0 %v6233_v46 }
 0x94f   : > { %4937 = vmatpush.bf16.msrb.mxu0 %v6232_v53 }
 0x9b3   : > { %v4651_v26 = vpop.xlane.xlu2 %4650 }
 0x9b4   : > { %v4652_v56 = vmul.f32 0.00048828125, %v4651_v26 }
 0x9b6   : > { %v4653_v19 = vmul.f32 %v4652_v56, %v4652_v56  ;;  %v4670_v10 = vperm.slane %v4652_v56, 0 }
 0x9b8   : > { %v4655_v32 = vrot.slane %v4653_v19, 7  ;;  %v4671_v59 = vsub.f32 %v4617_v48, %v4670_v10  ;;  %v4672_v3 = vsub.f32 %v4618_v62, %v4670_v10  ;;  %v4336_v48 = vld [vmem:[%s9654_s14 + $0x8] sm:$0xff] }
 0x9ba   : > { %v4657_v27 = vsub.f32 %v4652_v56, %v4655_v32 }
 0x9bc   : > { %v4658_v50 = vmax.f32 %v4657_v27, 0.0 }
 0x9be   : > { %v4659_v47 = vadd.f32 1e-05, %v4658_v50 }
 0x9c0   : > { %6458 = vrsqrt.f32 %v4659_v47  ;;  %vm4666_vm6 = vweird.f32 %v4659_v47 }
 0x9c6   : > { %v6459_v57 = vpop.eup %6458 }
 0x9c7   : > { %v4661_v29 = vmul.f32 %v6459_v57, %v4659_v47  ;;  %vm4667_vm3 = vweird.f32 %v6459_v57 }
 0x9c8   : > { %vm4668_vm7 = vmor %vm4666_vm6, %vm4667_vm3 }
 0x9c9   : > { %v4662_v40 = vmul.f32 %v6459_v57, %v4661_v29 }
 0x9cb   : > { %v4663_v28 = vmul.f32 0.5, %v4662_v40 }
 0x9cd   : > { %v4664_v12 = vsub.f32 1.5, %v4663_v28 }
 0x9cf   : > { %v4665_v14 = vmul.f32 %v6459_v57, %v4664_v12 }
 0x9d1   : > { %v4669_v52 = vsel %vm4668_vm7, %v6459_v57, %v4665_v14 }
 0x9d2   : > { %v4674_v18 = vrot.slane %v4669_v52, 1 }
 0x9d4   : > { %6255 = vpush %v4674_v18 }
 0xa05   : > { %s6256_s30 = spop %6255 }
 0xa06   : > { %v4676_v37 = vstv %s6256_s30  ;;  %s10095_s30 = sld [smem:[#allocation6_spill]] }
 0xa07   : > { %v4678_v24 = vmul.f32 %v4676_v37, %v4671_v59  ;;  %v4679_v42 = vmul.f32 %v4676_v37, %v4672_v3 }
 0xa09   : > { %v4680_v55 = vmul.f32 %v4678_v24, %v4333_v5  ;;  %v4681_v35 = vmul.f32 %v4679_v42, %v4334_v34 }
 0xa0b   : > { %v4682_v17 = vadd.f32 %v4680_v55, %v4335_v25  ;;  %v4683_v16 = vadd.f32 %v4681_v35, %v4336_v48 }
 0xa0d   : > { %v4718_v15 = vpack.c.bf16 %v4682_v17, %v4682_v17  ;;  %v4719_v23 = vpack.c.bf16 %v4683_v16, %v4683_v16 }
 0xa0f   : > { %v4729_v61 = vsel %vm1347_vm2, %v4718_v15, 0  ;;  %v4732_v2 = vsel %vm1347_vm2, %v4719_v23, 0 }
 0xa10   : > { %4741 = vmatpush.bf16.msrb.mxu1 %v4729_v61  ;;  %4755 = vmatpush.bf16.msra.mxu3 %v4732_v2 }
 0xa13   : > { %6022 = vmatmul.msk.bf16.vlgmr.msrb.gmra.mxu1 %vm3058_vm8, %v6231_v38  ;;  %6023 = vmatmul.msk.bf16.vlgmr.msra.gmra.mxu3 %vm3058_vm8, %v6231_v38 }
 0xa14   : > { %4944 = vmatpush.bf16.msra.mxu1 %v6247_v39 }
 0xa18   : > { %4945 = vmatpush.bf16.msra.mxu1 %v6246_v0 }
 0xa1c   : > { %4946 = vmatpush.bf16.msra.mxu1 %v6245_v4  ;;  %v847_v4 = vld [vmem:[%s10092_s1] sm:$0xff] }
 0xa1d   : > { %v9516_v9 = vperm.slane %v847_v4, 6  ;;  %v9520_v46 = vperm.slane %v847_v4, 5 }
 0xa20   : > { %4947 = vmatpush.bf16.msra.mxu1 %v6244_v22 }
 0xa24   : > { %4948 = vmatpush.bf16.msra.mxu1 %v6243_v13 }
 0xa28   : > { %4949 = vmatpush.bf16.msra.mxu1 %v6242_v58 }
 0xa2c   : > { %4950 = vmatpush.bf16.msra.mxu1 %v6241_v63 }
 0xa30   : > { %4951 = vmatpush.bf16.msra.mxu1 %v6240_v21 }
 0xa90   : > { %v9415_v31 = vpop.f32.mrf.mxu1 }
 0xa96   : > { %v9417_v11 = vpop.f32.mrf.mxu3 }
 0xa97   : > { %v6424_v62 = vpack.i.bf16 %v9417_v11, %v9415_v31 }
 0xa98   : > { %v9422_v41 = vpop.f32.mrf.mxu1 }
 0xa99   : > { %6425 = vrot.lane.b32.xlu1 %v6424_v62, %s9937_s28 }
 0xa9e   : > { %v9424_v60 = vpop.f32.mrf.mxu3 }
 0xa9f   : > { %v6439_v30 = vpack.i.bf16 %v9424_v60, %v9422_v41 }
 0xaa1   : > { %6430 = vrot.lane.b32.xlu1 %v6424_v62, %s6520_s2  ;;  %6440 = vrot.lane.b32.xlu0 %v6439_v30, %s9937_s28 }
 0xaa9   : > { %6435 = vrot.lane.b32.xlu1 %v6424_v62, %s6523_s8  ;;  %6445 = vrot.lane.b32.xlu0 %v6439_v30, %s6520_s2  ;;  %s6527_s2 = smov 121  }
 0xab1   : > { %6450 = vrot.lane.b32.xlu0 %v6439_v30, %s6523_s8  ;;  %s6528_s8 = smov 119  }
 0xb0b   : > { %v6426_v36 = vpop.permute.xlu1 %6425 }
 0xb0c   : > { %v6428_v43 = vunpack.i.h.bf16 %v6426_v36  ;;  %v6427_v33 = vunpack.i.l.bf16 %v6426_v36 }
 0xb0e   : > { %v4774_v50 = vsel %vm1114_vm4, %v6427_v33, %v6428_v43  ;;  %v4782_v47 = vsel %vm1114_vm4, %v6428_v43, %v6427_v33 }
 0xb0f   : > { %v4784_v10 = vmax.f32 %v9415_v31, %v4774_v50  ;;  %v4785_v59 = vmax.f32 %v9417_v11, %v4782_v47 }
 0xb13   : > { %v6431_v45 = vpop.permute.xlu1 %6430  ;;  %v6441_v49 = vpop.permute.xlu0 %6440 }
 0xb14   : > { %v6443_v20 = vunpack.i.h.bf16 %v6441_v49  ;;  %v6442_v44 = vunpack.i.l.bf16 %v6441_v49  ;;  %v6433_v56 = vunpack.i.h.bf16 %v6431_v45  ;;  %v6432_v19 = vunpack.i.l.bf16 %v6431_v45 }
 0xb15   : > { %v9524_v49 = vperm.slane %v847_v4, 4 }
 0xb16   : > { %v4775_v57 = vsel %vm1114_vm4, %v6442_v44, %v6443_v20  ;;  %v4783_v29 = vsel %vm1114_vm4, %v6443_v20, %v6442_v44  ;;  %v4796_v12 = vsel %vm4496_vm0, %v6432_v19, %v6433_v56  ;;  %v4804_v14 = vsel %vm4496_vm0, %v6433_v56, %v6432_v19 }
 0xb17   : > { %v4786_v3 = vmax.f32 %v9422_v41, %v4775_v57  ;;  %v4787_v5 = vmax.f32 %v9424_v60, %v4783_v29  ;;  %v4806_v48 = vmax.f32 %v4784_v10, %v4796_v12  ;;  %v4807_v55 = vmax.f32 %v4785_v59, %v4804_v14 }
 0xb18   : > { %v9528_v56 = vperm.slane %v847_v4, 3  ;;  %v9532_v29 = vperm.slane %v847_v4, 2 }
 0xb1b   : > { %v6446_v7 = vpop.permute.xlu0 %6445  ;;  %v6436_v26 = vpop.permute.xlu1 %6435 }
 0xb1c   : > { %v6448_v32 = vunpack.i.h.bf16 %v6446_v7  ;;  %v6447_v27 = vunpack.i.l.bf16 %v6446_v7  ;;  %v6438_v40 = vunpack.i.h.bf16 %v6436_v26  ;;  %v6437_v28 = vunpack.i.l.bf16 %v6436_v26 }
 0xb1e   : > { %v4797_v52 = vsel %vm4496_vm0, %v6447_v27, %v6448_v32  ;;  %v4805_v18 = vsel %vm4496_vm0, %v6448_v32, %v6447_v27  ;;  %v4818_v37 = vsel %vm4521_vm14, %v6437_v28, %v6438_v40  ;;  %v4826_v24 = vsel %vm4521_vm14, %v6438_v40, %v6437_v28 }
 0xb1f   : > { %v4808_v35 = vmax.f32 %v4786_v3, %v4797_v52  ;;  %v4809_v17 = vmax.f32 %v4787_v5, %v4805_v18  ;;  %v4828_v23 = vmax.f32 %v4806_v48, %v4818_v37  ;;  %v4829_v61 = vmax.f32 %v4807_v55, %v4826_v24 }
 0xb20   : > { %v9534_v28 = vperm.slane %v847_v4, 1  ;;  %v9540_v3 = vperm.slane %v847_v4, 7  ;;  %v9542_v5 = vperm.slane %v847_v4, 0 }
 0xb23   : > { %v6451_v34 = vpop.permute.xlu0 %6450 }
 0xb24   : > { %v6453_v42 = vunpack.i.h.bf16 %v6451_v34  ;;  %v6452_v25 = vunpack.i.l.bf16 %v6451_v34  ;;  %v4958_v34 = vld [vmem:[%s9657_s17] sm:$0xff] }
 0xb25   : > { %v5045_v48 = vunpack.c.l.b16 %v4958_v34  ;;  %v5046_v55 = vunpack.c.h.b16 %v4958_v34 }
 0xb26   : > { %v4819_v16 = vsel %vm4521_vm14, %v6452_v25, %v6453_v42  ;;  %v4827_v15 = vsel %vm4521_vm14, %v6453_v42, %v6452_v25 }
 0xb27   : > { %v4830_v2 = vmax.f32 %v4808_v35, %v4819_v16  ;;  %v4831_v38 = vmax.f32 %v4809_v17, %v4827_v15 }
 0xb29   : > { %v4833_v31 = vpack.c.bf16 %v4831_v38, %v4829_v61  ;;  %v4832_v11 = vpack.c.bf16 %v4830_v2, %v4828_v23  ;;  %v5047_v61 = vpack.c.b16 %v5045_v48, %v5045_v48  ;;  %v5048_v2 = vpack.c.b16 %v5046_v55, %v5046_v55 }
 0xb2b   : > { %4938 = vmatmul.bf16.vlgmr.msrb.gmra.mxu0 %v4832_v11  ;;  %4952 = vmatmul.bf16.vlgmr.msra.gmra.mxu1 %v4833_v31 }
 0xba8   : > { %v4939_v62 = vpop.f32.mrf.mxu0  ;;  %v4953_v41 = vpop.f32.mrf.mxu1 }
 0xba9   : > { %v4954_v60 = vadd.f32 %v4953_v41, %v4939_v62 }
 0xbab   : > { %4990 = vrot.lane.b32.xlu0 %v4954_v60, %s9883_s4  ;;  %4999 = vrot.lane.b32.xlu2 %v4954_v60, %s9937_s28 }
 0xbac   : > { %5017 = vrot.lane.b32.xlu1 %v4954_v60, %s6525_s27 }
 0xbb0   : > { %v4941_v30 = vpop.f32.mrf.mxu0  ;;  %v4955_v54 = vpop.f32.mrf.mxu1 }
 0xbb1   : > { %v4956_v39 = vadd.f32 %v4955_v54, %v4941_v30 }
 0xbb3   : > { %4974 = vrot.lane.b32.xlu2 %v4956_v39, %s6526_s26  ;;  %5019 = vrot.lane.b32.xlu0 %v4956_v39, %s6525_s27  ;;  %v5039_v1 = vpack.c.bf16 %v4956_v39, %v4954_v60 }
 0xbb4   : > { %5008 = vrot.lane.b32.xlu1 %v4954_v60, %s6527_s2 }
 0xbbb   : > { %5026 = vrot.lane.b32.xlu2 %v4954_v60, %s6528_s8  ;;  %5010 = vrot.lane.b32.xlu0 %v4956_v39, %s6527_s2 }
 0xbbc   : > { %4963 = vrot.lane.b32.xlu1 %v4954_v60, %s6529_s10 }
 0xbc3   : > { %4981 = vrot.lane.b32.xlu0 %v4954_v60, %s6530_s25 }
 0xbc4   : > { %5001 = vrot.lane.b32.xlu1 %v4956_v39, %s9937_s28 }
 0xbcb   : > { %4972 = vrot.lane.b32.xlu0 %v4954_v60, %s6526_s26 }
 0xbcc   : > { %4992 = vrot.lane.b32.xlu1 %v4956_v39, %s9883_s4 }
 0xbd3   : > { %4965 = vrot.lane.b32.xlu0 %v4956_v39, %s6529_s10 }
 0xbd4   : > { %4983 = vrot.lane.b32.xlu1 %v4956_v39, %s6530_s25 }
 0xbdc   : > { %5028 = vrot.lane.b32.xlu1 %v4956_v39, %s6528_s8 }
 0xc05   : > { %v5000_v43 = vpop.permute.xlu2 %4999 }
 0xc06   : > { %v5006_v20 = vmul.f32 %v9524_v49, %v5000_v43 }
 0xc0d   : > { %v4975_v57 = vpop.permute.xlu2 %4974 }
 0xc0e   : > { %v4980_v59 = vmul.f32 %v9534_v28, %v4975_v57 }
 0xc15   : > { %v5027_v37 = vpop.permute.xlu2 %5026 }
 0xc16   : > { %v5033_v35 = vmul.f32 %v9540_v3, %v5027_v37 }
 0xc1d   : > { %v4991_v0 = vpop.permute.xlu0 %4990 }
 0xc1e   : > { %v5018_v8 = vpop.permute.xlu1 %5017  ;;  %v4997_v32 = vmul.f32 %v9528_v56, %v4991_v0 }
 0xc1f   : > { %v5024_v51 = vmul.f32 %v9516_v9, %v5018_v8 }
 0xc25   : > { %v5020_v22 = vpop.permute.xlu0 %5019 }
 0xc26   : > { %v5009_v13 = vpop.permute.xlu1 %5008  ;;  %v5025_v6 = vmul.f32 %v9516_v9, %v5020_v22 }
 0xc27   : > { %v5015_v53 = vmul.f32 %v9520_v46, %v5009_v13 }
 0xc28   : > { %v5042_v58 = vpack.c.bf16 %v5025_v6, %v5024_v51 }
 0xc2a   : > { %5053 = vmatpush.bf16.msra.mxu2 %v5042_v58 }
 0xc2d   : > { %v5011_v63 = vpop.permute.xlu0 %5010 }
 0xc2e   : > { %v4964_v21 = vpop.permute.xlu1 %4963  ;;  %v5016_v36 = vmul.f32 %v9520_v46, %v5011_v63 }
 0xc2f   : > { %v4970_v17 = vmul.f32 %v9542_v5, %v4964_v21 }
 0xc30   : > { %v5041_v45 = vpack.c.bf16 %v5016_v36, %v5015_v53 }
 0xc32   : > { %5054 = vmatpush.bf16.msra.mxu2 %v5041_v45 }
 0xc35   : > { %v4982_v7 = vpop.permute.xlu0 %4981 }
 0xc36   : > { %v5002_v33 = vpop.permute.xlu1 %5001  ;;  %v4988_v12 = vmul.f32 %v9532_v29, %v4982_v7 }
 0xc37   : > { %v5007_v44 = vmul.f32 %v9524_v49, %v5002_v33 }
 0xc39   : > { %v5040_v26 = vpack.c.bf16 %v5007_v44, %v5006_v20 }
 0xc3b   : > { %5055 = vmatpush.bf16.msra.mxu2 %v5040_v26 }
 0xc3d   : > { %v4973_v50 = vpop.permute.xlu0 %4972 }
 0xc3e   : > { %v4993_v19 = vpop.permute.xlu1 %4992  ;;  %v4979_v52 = vmul.f32 %v9534_v28, %v4973_v50 }
 0xc3f   : > { %v4998_v27 = vmul.f32 %v9528_v56, %v4993_v19  ;;  %5056 = vmatpush.bf16.msra.mxu2 %v5039_v1 }
 0xc40   : > { %v5036_v24 = vpack.c.bf16 %v4980_v59, %v4979_v52  ;;  %v4959_v52 = vld [vmem:[%s9658_s18] sm:$0xff] }
 0xc41   : > { %v5038_v47 = vpack.c.bf16 %v4998_v27, %v4997_v32  ;;  %v4960_v59 = vld [vmem:[%s9659_s19] sm:$0xff] }
 0xc43   : > { %5057 = vmatpush.bf16.msra.mxu2 %v5038_v47 }
 0xc45   : > { %v4966_v10 = vpop.permute.xlu0 %4965 }
 0xc46   : > { %v4984_v40 = vpop.permute.xlu1 %4983  ;;  %v4971_v42 = vmul.f32 %v9542_v5, %v4966_v10 }
 0xc47   : > { %v4989_v14 = vmul.f32 %v9532_v29, %v4984_v40 }
 0xc48   : > { %v5035_v15 = vpack.c.bf16 %v4971_v42, %v4970_v17 }
 0xc49   : > { %v5037_v18 = vpack.c.bf16 %v4989_v14, %v4988_v12 }
 0xc4b   : > { %5058 = vmatpush.bf16.msra.mxu2 %v5037_v18 }
 0xc4e   : > { %v5029_v25 = vpop.permute.xlu1 %5028 }
 0xc4f   : > { %v5034_v16 = vmul.f32 %v9540_v3, %v5029_v25  ;;  %5059 = vmatpush.bf16.msra.mxu2 %v5036_v24 }
 0xc51   : > { %v5043_v23 = vpack.c.bf16 %v5034_v16, %v5033_v35 }
 0xc53   : > { %5060 = vmatpush.bf16.msra.mxu2 %v5035_v15  ;;  %5073 = vmatpush.bf16.msrb.mxu3 %v5043_v23 }
 0xc56   : > { %5061 = vmatmul.bf16.vlgmr.msra.gmra.mxu2 %v5047_v61  ;;  %6088 = vmatmul.msk.bf16.vlgmr.msrb.gmra.mxu3 %vm2510_vm15, %v5048_v2 }
 0xcd9   : > { %v5062_v38 = vpop.f32.mrf.mxu2  ;;  %v5075_v31 = vpop.f32.mrf.mxu3 }
 0xcda   : > { %v5076_v11 = vadd.f32 %v5075_v31, %v5062_v38 }
 0xcdc   : > { %v5079_v62 = vmax.f32 %v5076_v11, 0.0 }
 0xcde   : > { %v5080_v41 = vrot.slane %v5079_v62, 4  ;;  %v5086_v60 = vmul.f32 %v5079_v62, %v5079_v62 }
 0xce0   : > { %v5081_v30 = vadd.f32 %v5080_v41, %v5079_v62  ;;  %v5087_v54 = vrot.slane %v5086_v60, 4 }
 0xce1   : > { %v5064_v39 = vpop.f32.mrf.mxu2  ;;  %v5077_v1 = vpop.f32.mrf.mxu3 }
 0xce2   : > { %v5082_v0 = vrot.slane %v5081_v30, 2  ;;  %v5088_v8 = vadd.f32 %v5087_v54, %v5086_v60 }
 0xce4   : > { %v5083_v4 = vadd.f32 %v5082_v0, %v5081_v30  ;;  %v5089_v22 = vrot.slane %v5088_v8, 2  ;;  %v5125_v0 = vld [vmem:[%s9660_s20] sm:$0xf] }
 0xce6   : > { %v5084_v51 = vrot.slane %v5083_v4, 1  ;;  %v5090_v13 = vadd.f32 %v5089_v22, %v5088_v8 }
 0xce8   : > { %v5091_v6 = vrot.slane %v5090_v13, 1  ;;  %v5085_v58 = vadd.f32 %v5084_v51, %v5083_v4 }
 0xcea   : > { %v5092_v63 = vadd.f32 %v5091_v6, %v5090_v13 }
 0xcec   : > { %v5093_v53 = vsel %vm1628_vm10, %v5085_v58, %v5092_v63 }
 0xced   : > { %v5094_v21 = vsel %vm1637_vm11, %v5093_v53, 0.0 }
 0xcee   : > { %5095 = vadd.xlane.f32.xlu0 %v5094_v21 }
 0xd61   : > { %v5096_v36 = vpop.xlane.xlu0 %5095 }
 0xd62   : > { %v5097_v45 = vmul.f32 0.001953125, %v5096_v36 }
 0xd64   : > { %v5098_v43 = vmul.f32 %v5097_v45, %v5097_v45  ;;  %v5115_v12 = vperm.slane %v5097_v45, 0 }
 0xd66   : > { %v5100_v33 = vrot.slane %v5098_v43, 7  ;;  %v5116_v14 = vsub.f32 %v5079_v62, %v5115_v12 }
 0xd68   : > { %v5102_v7 = vsub.f32 %v5097_v45, %v5100_v33 }
 0xd6a   : > { %v5103_v20 = vmax.f32 %v5102_v7, 0.0 }
 0xd6c   : > { %v5104_v44 = vadd.f32 1e-05, %v5103_v20 }
 0xd6e   : > { %6460 = vrsqrt.f32 %v5104_v44  ;;  %vm5111_vm8 = vweird.f32 %v5104_v44 }
 0xd74   : > { %v6461_v26 = vpop.eup %6460 }
 0xd75   : > { %v5106_v19 = vmul.f32 %v6461_v26, %v5104_v44  ;;  %vm5112_vm4 = vweird.f32 %v6461_v26 }
 0xd76   : > { %vm5113_vm0 = vmor %vm5111_vm8, %vm5112_vm4 }
 0xd77   : > { %v5107_v32 = vmul.f32 %v6461_v26, %v5106_v19 }
 0xd79   : > { %v5108_v27 = vmul.f32 0.5, %v5107_v32 }
 0xd7b   : > { %v5109_v50 = vsub.f32 1.5, %v5108_v27 }
 0xd7d   : > { %v5110_v47 = vmul.f32 %v6461_v26, %v5109_v50 }
 0xd7f   : > { %v5114_v57 = vsel %vm5113_vm0, %v6461_v26, %v5110_v47 }
 0xd80   : > { %v5118_v40 = vrot.slane %v5114_v57, 1 }
 0xd82   : > { %6257 = vpush %v5118_v40 }
 0xdb3   : > { %s6258_s11 = spop %6257 }
 0xdb4   : > { %v5120_v18 = vstv %s6258_s11 }
 0xdb5   : > { %v5122_v10 = vmul.f32 %v5120_v18, %v5116_v14 }
 0xdb7   : > { %v5123_v34 = vmul.f32 %v5122_v10, %v4959_v52 }
 0xdb9   : > { %v5124_v37 = vadd.f32 %v5123_v34, %v4960_v59 }
 0xdbb   : > { %5149 = vrot.lane.b32.xlu1 %v5124_v37, %s6527_s2  ;;  %5157 = vrot.lane.b32.xlu2 %v5124_v37, %s6528_s8 }
 0xdc3   : > { %5145 = vrot.lane.b32.xlu1 %v5124_v37, %s9937_s28  ;;  %5153 = vrot.lane.b32.xlu2 %v5124_v37, %s6525_s27 }
 0xdcb   : > { %5141 = vrot.lane.b32.xlu1 %v5124_v37, %s9883_s4  ;;  %5137 = vrot.lane.b32.xlu2 %v5124_v37, %s6530_s25 }
 0xdd3   : > { %5133 = vrot.lane.b32.xlu1 %v5124_v37, %s6526_s26  ;;  %5129 = vrot.lane.b32.xlu2 %v5124_v37, %s6529_s10 }
 0xe15   : > { %v5158_v24 = vpop.permute.xlu2 %5157 }
 0xe16   : > { %v5160_v42 = vmul.f32 %v5158_v24, %v9540_v3 }
 0xe18   : > { %v5165_v25 = vpack.c.bf16 %v5160_v42, %v5160_v42 }
 0xe1a   : > { %v5170_v48 = vsel %vm1347_vm2, %v5165_v25, 0  ;;  %v5126_v25 = vld [vmem:[%s9661_s21] sm:$0xff] }
 0xe1b   : > { %5175 = vmatpush.bf16.msra.mxu3 %v5170_v48 }
 0xe1d   : > { %v5154_v55 = vpop.permute.xlu2 %5153 }
 0xe1e   : > { %v5156_v17 = vmul.f32 %v5154_v55, %v9516_v9 }
 0xe25   : > { %v5138_v38 = vpop.permute.xlu2 %5137 }
 0xe26   : > { %v5140_v11 = vmul.f32 %v5138_v38, %v9532_v29 }
 0xe2d   : > { %v5150_v35 = vpop.permute.xlu1 %5149  ;;  %v5130_v60 = vpop.permute.xlu2 %5129 }
 0xe2e   : > { %v5152_v16 = vmul.f32 %v5150_v35, %v9520_v46  ;;  %v5132_v54 = vmul.f32 %v5130_v60, %v9542_v5  ;;  %v5127_v35 = vld [vmem:[%s9662_s22] sm:$0xff] }
 0xe30   : > { %v5164_v15 = vpack.c.bf16 %v5156_v17, %v5152_v16 }
 0xe32   : > { %5176 = vmatpush.bf16.msra.mxu3 %v5164_v15 }
 0xe35   : > { %v5146_v23 = vpop.permute.xlu1 %5145 }
 0xe36   : > { %v5148_v61 = vmul.f32 %v5146_v23, %v9524_v49 }
 0xe38   : > { %v5163_v2 = vpack.c.bf16 %v5148_v61, %v5124_v37 }
 0xe3a   : > { %5177 = vmatpush.bf16.msra.mxu3 %v5163_v2 }
 0xe3d   : > { %v5142_v31 = vpop.permute.xlu1 %5141 }
 0xe3e   : > { %v5144_v62 = vmul.f32 %v5142_v31, %v9528_v56 }
 0xe40   : > { %v5162_v41 = vpack.c.bf16 %v5144_v62, %v5140_v11 }
 0xe42   : > { %5178 = vmatpush.bf16.msra.mxu3 %v5162_v41 }
 0xe45   : > { %v5134_v30 = vpop.permute.xlu1 %5133 }
 0xe46   : > { %v5136_v39 = vmul.f32 %v5134_v30, %v9534_v28 }
 0xe48   : > { %v5161_v1 = vpack.c.bf16 %v5136_v39, %v5132_v54 }
 0xe4a   : > { %5179 = vmatpush.bf16.msra.mxu3 %v5161_v1 }
 0xe4d   : > { %6089 = vmatmul.msk.bf16.vlgmr.msra.gmra.mxu3 %vm1343_vm9, %v5125_v0 }
 0xed0   : > { %v5181_v8 = vpop.f32.mrf.mxu3 }
 0xed1   : > { %v5185_v4 = vmax.f32 %v5181_v8, 0.0 }
 0xed3   : > { %v5186_v22 = vrot.slane %v5185_v4, 4  ;;  %v5192_v51 = vmul.f32 %v5185_v4, %v5185_v4 }
 0xed5   : > { %v5187_v13 = vadd.f32 %v5186_v22, %v5185_v4  ;;  %v5193_v6 = vrot.slane %v5192_v51, 4 }
 0xed7   : > { %v5188_v58 = vrot.slane %v5187_v13, 2  ;;  %v5194_v63 = vadd.f32 %v5193_v6, %v5192_v51 }
 0xed8   : > { %v5183_v53 = vpop.f32.mrf.mxu3 }
 0xed9   : > { %v5189_v21 = vadd.f32 %v5188_v58, %v5187_v13  ;;  %v5195_v36 = vrot.slane %v5194_v63, 2 }
 0xedb   : > { %v5190_v45 = vrot.slane %v5189_v21, 1  ;;  %v5196_v43 = vadd.f32 %v5195_v36, %v5194_v63 }
 0xedd   : > { %v5197_v33 = vrot.slane %v5196_v43, 1  ;;  %v5191_v7 = vadd.f32 %v5190_v45, %v5189_v21 }
 0xedf   : > { %v5198_v20 = vadd.f32 %v5197_v33, %v5196_v43 }
 0xee1   : > { %v5199_v44 = vsel %vm1628_vm10, %v5191_v7, %v5198_v20 }
 0xee2   : > { %v5200_v26 = vsel %vm1637_vm11, %v5199_v44, 0.0 }
 0xee3   : > { %5201 = vadd.xlane.f32.xlu2 %v5200_v26 }
 0xf56   : > { %v5202_v19 = vpop.xlane.xlu2 %5201 }
 0xf57   : > { %v5203_v32 = vmul.f32 0.00390625, %v5202_v19 }
 0xf59   : > { %v5204_v27 = vmul.f32 %v5203_v32, %v5203_v32  ;;  %v5221_v24 = vperm.slane %v5203_v32, 0 }
 0xf5b   : > { %v5206_v50 = vrot.slane %v5204_v27, 7  ;;  %v5222_v42 = vsub.f32 %v5185_v4, %v5221_v24 }
 0xf5d   : > { %v5208_v47 = vsub.f32 %v5203_v32, %v5206_v50 }
 0xf5f   : > { %v5209_v57 = vmax.f32 %v5208_v47, 0.0 }
 0xf61   : > { %v5210_v40 = vadd.f32 1e-05, %v5209_v57 }
 0xf63   : > { %6462 = vrsqrt.f32 %v5210_v40  ;;  %vm5217_vm12 = vweird.f32 %v5210_v40 }
 0xf69   : > { %v6463_v12 = vpop.eup %6462 }
 0xf6a   : > { %v5212_v14 = vmul.f32 %v6463_v12, %v5210_v40  ;;  %vm5218_vm1 = vweird.f32 %v6463_v12 }
 0xf6b   : > { %vm5219_vm13 = vmor %vm5217_vm12, %vm5218_vm1 }
 0xf6c   : > { %v5213_v52 = vmul.f32 %v6463_v12, %v5212_v14 }
 0xf6e   : > { %v5214_v18 = vmul.f32 0.5, %v5213_v52 }
 0xf70   : > { %v5215_v10 = vsub.f32 1.5, %v5214_v18 }
 0xf72   : > { %v5216_v59 = vmul.f32 %v6463_v12, %v5215_v10 }
 0xf74   : > { %v5220_v34 = vsel %vm5219_vm13, %v6463_v12, %v5216_v59 }
 0xf75   : > { %v5224_v37 = vrot.slane %v5220_v34, 1 }
 0xf77   : > { %6259 = vpush %v5224_v37 }
 0xfa8   : > { %s6260_s11 = spop %6259 }
 0xfa9   : > { %v5226_v48 = vstv %s6260_s11  ;;  %s10094_s11 = smov %s10093_s7 }
 0xfaa   : > { %v5228_v55 = vmul.f32 %v5226_v48, %v5222_v42 }
 0xfac   : > { %v5229_v17 = vmul.f32 %v5228_v55, %v5126_v25 }
 0xfae   : > { %v5230_v16 = vadd.f32 %v5229_v17, %v5127_v35 }
 0xfb0   : > { %5258 = vrot.lane.b32.xlu0 %v5230_v16, %s6527_s2  ;;  %5266 = vrot.lane.b32.xlu1 %v5230_v16, %s6528_s8  ;;  %s6100_s2 = sshll.u32 %s10095_s30, 4 }
 0xfb8   : > { %5250 = vrot.lane.b32.xlu0 %v5230_v16, %s9883_s4  ;;  %5262 = vrot.lane.b32.xlu1 %v5230_v16, %s6525_s27 }
 0xfc0   : > { %5242 = vrot.lane.b32.xlu0 %v5230_v16, %s6526_s26  ;;  %5254 = vrot.lane.b32.xlu1 %v5230_v16, %s9937_s28  ;;  %s10096_s28 = sld [smem:[#allocation100_spill]] }
 0xfc8   : > { %5246 = vrot.lane.b32.xlu1 %v5230_v16, %s6530_s25  ;;  %s10097_s25 = sld [smem:[#allocation101_spill]] }
 0xfce   : > { %s835_s9 = scalar_lea.vmem %s10097_s25, %s6100_s2 }
 0xfd0   : > { %5238 = vrot.lane.b32.xlu1 %v5230_v16, %s6529_s10 }
0x1022   : > { %v5267_v15 = vpop.permute.xlu1 %5266  ;;  %v5259_v38 = vpop.permute.xlu0 %5258 }
0x1023   : > { %v5269_v23 = vmul.f32 %v5267_v15, %v9540_v3  ;;  %v5261_v11 = vmul.f32 %v5259_v38, %v9520_v46  ;;  %v5234_v15 = vld [vmem:[%s9664_s24 + $0x8] sm:$0xff] }
0x1024   : > { %v5236_v38 = vld [vmem:[%s10093_s7 + $0x8] sm:$0xff] }
0x1025   : > { %v5274_v61 = vpack.c.bf16 %v5269_v23, %v5269_v23 }
0x1027   : > { %v5284_v2 = vsel %vm1347_vm2, %v5274_v61, 0 }
0x1028   : > { %5289 = vmatpush.bf16.msra.mxu0 %v5284_v2 }
0x102a   : > { %v5263_v31 = vpop.permute.xlu1 %5262  ;;  %v5251_v39 = vpop.permute.xlu0 %5250 }
0x102b   : > { %v5265_v62 = vmul.f32 %v5263_v31, %v9516_v9  ;;  %v5253_v3 = vmul.f32 %v5251_v39, %v9528_v56  ;;  %v5235_v31 = vld [vmem:[%s10094_s11] sm:$0xff] }
0x102d   : > { %v5273_v41 = vpack.c.bf16 %v5265_v62, %v5261_v11 }
0x102f   : > { %5290 = vmatpush.bf16.msra.mxu0 %v5273_v41 }
0x1032   : > { %v5255_v60 = vpop.permute.xlu1 %5254  ;;  %v5243_v4 = vpop.permute.xlu0 %5242 }
0x1033   : > { %v5257_v30 = vmul.f32 %v5255_v60, %v9524_v49  ;;  %v5245_v46 = vmul.f32 %v5243_v4, %v9534_v28  ;;  %v6248_v49 = vld [vmem:[%s9663_s23] sm:$0xff] }
0x1035   : > { %v5272_v54 = vpack.c.bf16 %v5257_v30, %v5230_v16  ;;  %v5233_v16 = vld [vmem:[%s9664_s24] sm:$0xff] }
0x1037   : > { %5291 = vmatpush.bf16.msra.mxu0 %v5272_v54 }
0x103a   : > { %v5247_v1 = vpop.permute.xlu1 %5246 }
0x103b   : > { %v5249_v0 = vmul.f32 %v5247_v1, %v9532_v29 }
0x103d   : > { %v5271_v8 = vpack.c.bf16 %v5253_v3, %v5249_v0  ;;  %v5360_v3 = vld [vmem:[%s10096_s28] sm:$0xff]  ;;  %v5361_v0 = vld [vmem:[%s10096_s28 + $0x8] sm:$0x3] }
0x103f   : > { %5292 = vmatpush.bf16.msra.mxu0 %v5271_v8 }
0x1042   : > { %v5239_v22 = vpop.permute.xlu1 %5238 }
0x1043   : > { %v5241_v9 = vmul.f32 %v5239_v22, %v9542_v5 }
0x1045   : > { %v5270_v51 = vpack.c.bf16 %v5245_v46, %v5241_v9 }
0x1047   : > { %5293 = vmatpush.bf16.msra.mxu0 %v5270_v51 }
0x104a   : > { %6094 = vmatmul.msk.bf16.vlgmr.msra.gmra.mxu0 %vm1343_vm9, %v6248_v49 }
0x10c7   : > { %v5295_v13 = vpop.f32.mrf.mxu0 }
0x10c8   : > { %v5300_v56 = vmax.f32 %v5295_v13, 0.0 }
0x10ca   : > { %v5309_v58 = vmul.f32 %v5300_v56, %v5300_v56 }
0x10cf   : > { %v5297_v6 = vpop.f32.mrf.mxu0 }
0x10d0   : > { %v5301_v29 = vmax.f32 %v5297_v6, 0.0 }
0x10d2   : > { %v5302_v63 = vadd.f32 %v5301_v29, %v5300_v56  ;;  %v5310_v53 = vmul.f32 %v5301_v29, %v5301_v29 }
0x10d4   : > { %v5303_v21 = vrot.slane %v5302_v63, 4  ;;  %v5311_v36 = vadd.f32 %v5310_v53, %v5309_v58 }
0x10d6   : > { %v5304_v28 = vadd.f32 %v5303_v21, %v5302_v63  ;;  %v5312_v45 = vrot.slane %v5311_v36, 4 }
0x10d8   : > { %v5305_v5 = vrot.slane %v5304_v28, 2  ;;  %v5313_v43 = vadd.f32 %v5312_v45, %v5311_v36 }
0x10da   : > { %v5306_v33 = vadd.f32 %v5305_v5, %v5304_v28  ;;  %v5314_v7 = vrot.slane %v5313_v43, 2 }
0x10dc   : > { %v5307_v20 = vrot.slane %v5306_v33, 1  ;;  %v5315_v44 = vadd.f32 %v5314_v7, %v5313_v43 }
0x10de   : > { %v5316_v26 = vrot.slane %v5315_v44, 1  ;;  %v5308_v19 = vadd.f32 %v5307_v20, %v5306_v33 }
0x10e0   : > { %v5317_v32 = vadd.f32 %v5316_v26, %v5315_v44 }
0x10e2   : > { %v5318_v27 = vsel %vm1628_vm10, %v5308_v19, %v5317_v32 }
0x10e3   : > { %v5319_v50 = vsel %vm1637_vm11, %v5318_v27, 0.0  ;;  %vm5392_vm11 = vcmask 1024  }
0x10e4   : > { %5320 = vadd.xlane.f32.xlu1 %v5319_v50 }
0x1157   : > { %v5321_v47 = vpop.xlane.xlu1 %5320 }
0x1158   : > { %v5322_v57 = vmul.f32 0.0015625, %v5321_v47 }
0x115a   : > { %v5323_v40 = vmul.f32 %v5322_v57, %v5322_v57  ;;  %v5340_v55 = vperm.slane %v5322_v57, 0 }
0x115c   : > { %v5325_v12 = vrot.slane %v5323_v40, 7  ;;  %v5341_v35 = vsub.f32 %v5300_v56, %v5340_v55  ;;  %v5342_v17 = vsub.f32 %v5301_v29, %v5340_v55 }
0x115e   : > { %v5327_v14 = vsub.f32 %v5322_v57, %v5325_v12 }
0x1160   : > { %v5328_v52 = vmax.f32 %v5327_v14, 0.0 }
0x1162   : > { %v5329_v18 = vadd.f32 1e-05, %v5328_v52 }
0x1164   : > { %6464 = vrsqrt.f32 %v5329_v18  ;;  %vm5336_vm9 = vweird.f32 %v5329_v18 }
0x116a   : > { %v6465_v10 = vpop.eup %6464 }
0x116b   : > { %v5331_v59 = vmul.f32 %v6465_v10, %v5329_v18  ;;  %vm5337_vm2 = vweird.f32 %v6465_v10 }
0x116c   : > { %vm5338_vm10 = vmor %vm5336_vm9, %vm5337_vm2 }
0x116d   : > { %v5332_v34 = vmul.f32 %v6465_v10, %v5331_v59 }
0x116f   : > { %v5333_v37 = vmul.f32 0.5, %v5332_v34 }
0x1171   : > { %v5334_v24 = vsub.f32 1.5, %v5333_v37 }
0x1173   : > { %v5335_v42 = vmul.f32 %v6465_v10, %v5334_v24 }
0x1175   : > { %v5339_v25 = vsel %vm5338_vm10, %v6465_v10, %v5335_v42 }
0x1176   : > { %v5344_v48 = vrot.slane %v5339_v25, 1 }
0x1178   : > { %6261 = vpush %v5344_v48 }
0x11a9   : > { %s6262_s27 = spop %6261 }
0x11aa   : > { %v5346_v23 = vstv %s6262_s27 }
0x11ab   : > { %v5348_v61 = vmul.f32 %v5346_v23, %v5341_v35  ;;  %v5349_v2 = vmul.f32 %v5346_v23, %v5342_v17 }
0x11ad   : > { %v5350_v11 = vmul.f32 %v5348_v61, %v5233_v16  ;;  %v5351_v62 = vmul.f32 %v5349_v2, %v5234_v15 }
0x11af   : > { %v5353_v41 = vadd.f32 %v5351_v62, %v5236_v38  ;;  %v5352_v60 = vadd.f32 %v5350_v11, %v5235_v31 }
0x11b1   : > { %5356 = vadd.xlane.f32.xlu2 %v5353_v41  ;;  %5354 = vadd.xlane.f32.xlu0 %v5352_v60 }
0x1224   : > { %v5357_v30 = vpop.xlane.xlu2 %5356  ;;  %v5355_v54 = vpop.xlane.xlu0 %5354 }
0x1225   : > { %v5359_v39 = vmul.f32 0.015625, %v5357_v30  ;;  %v5358_v1 = vmul.f32 0.015625, %v5355_v54 }
0x1227   : > { %5382 = vmatpush.msrb.mxu0 %v5359_v39  ;;  %6249 = vmatpush.msrb.mxu1 %v5359_v39 }
0x1229   : > { %5383 = vmatpush.msrb.mxu0 %v5358_v1  ;;  %6250 = vmatpush.msrb.mxu1 %v5358_v1 }
0x122a   : > { %6095 = vmatmul.msk.f32.vlgmr.msrb.gmra.mxu0 %vm2510_vm15, %v5360_v3  ;;  %6096 = vmatmul.msk.f32.vlgmr.msrb.gmra.mxu1 %vm2510_vm15, %v5361_v0 }
0x12a7   : > { %v5385_v8 = vpop.f32.mrf.mxu0  ;;  %v5388_v4 = vpop.f32.mrf.mxu1 }
0x12a8   : > { %5391 = vst.msk [vmem:[%s835_s9] sm:$0xff] %vm1065_vm5, %v5385_v8 }
0x12a9   : > { %5393 = vst.msk [vmem:[%s835_s9 + $0x8] sm:$0x3] %vm5392_vm11, %v5388_v4 }
0x12aa PF: > { %s10098_s7 = sld [smem:[#allocation5_spill]] }
0x12b0   : > { %s38_s7 = sadd.s32 1, %s10098_s7  }
0x12b1   : > { %p35_p7 = scmp.ge.s32.totalorder %s38_s7, 4  }
0x12b3   :  { %37 = sbr.rel (!%p35_p7) target bundleno = 17 (0x11), region = 163 }
0x12b8   :  { %5415 = vsyncpa [#allocation3], 1 }
0x12b9   :  { %5417 = vsyncpa [#allocation3 + $0x1], 1 }

</bundles_post_ra>
